<compile_context>
chip_gen: v7x
topology: tpu7x:2x2x1
jax: 0.10.0
libtpu: 0.0.40
codegen_flags: <defaults>
</compile_context>

<pallas_src>
import functools

import jax
import jax.numpy as jnp
from jax.experimental import pallas as pl
from jax.experimental.pallas import tpu as pltpu

LANE = 128  # TPU lane width; channel-padding granularity


# ----------------------------------------------------------------------------
# small helpers
# ----------------------------------------------------------------------------

def _round_up(x, m):
    return ((x + m - 1) // m) * m


def _pick_row_tile(dim, max_tile):
    """Largest row tile <= max_tile that divides `dim` and is a multiple of 8
    (sublanes); fall back to the full dimension (always a legal block)."""
    if dim <= max_tile:
        return dim
    for t in range(max_tile, 7, -1):
        if dim % t == 0 and t % 8 == 0:
            return t
    return dim


def _pad_channels(x, axis, target):
    pad = target - x.shape[axis]
    if pad <= 0:
        return x
    widths = [(0, 0)] * x.ndim
    widths[axis] = (0, pad)
    return jnp.pad(x, widths)


def _apply_act(y, act):
    if act == "leaky_relu":
        return jnp.where(y >= 0, y, 0.2 * y)
    if act == "relu":
        return jnp.maximum(y, 0.0)
    if act == "tanh":
        return jnp.tanh(y)
    return y


# ----------------------------------------------------------------------------
# Pallas kernels
# ----------------------------------------------------------------------------

def _matmul_stats_kernel(a_ref, b_ref, o_ref, sum_ref, sq_ref):
    """Per-group matmul with the BN statistics fused into the epilogue.

    Grid = (groups, M tiles).  The activation block is written once per step;
    per-group per-channel sum / sum-of-squares accumulate across the
    sequential ("arbitrary") M axis.
    """
    @pl.when(pl.program_id(1) == 0)
    def _():
        sum_ref[...] = jnp.zeros_like(sum_ref)
        sq_ref[...] = jnp.zeros_like(sq_ref)

    o = jnp.dot(a_ref[...], b_ref[...], preferred_element_type=jnp.float32)
    o_ref[...] = o
    sum_ref[...] += jnp.sum(o, axis=0, keepdims=True)
    sq_ref[...] += jnp.sum(o * o, axis=0, keepdims=True)


def grouped_matmul_stats(a, b, tm_max=2048):
    """a: (G, M, K) bf16, b: (G, K, C) bf16 ->
    (out (G, M, C) f32, sums (G, 1, C) f32, sums-of-squares (G, 1, C) f32)."""
    G, M, K = a.shape
    C = b.shape[-1]
    tm = _pick_row_tile(M, tm_max)
    return pl.pallas_call(
        _matmul_stats_kernel,
        out_shape=(jax.ShapeDtypeStruct((G, M, C), jnp.float32),
                   jax.ShapeDtypeStruct((G, 1, C), jnp.float32),
                   jax.ShapeDtypeStruct((G, 1, C), jnp.float32)),
        grid_spec=pltpu.PrefetchScalarGridSpec(
            num_scalar_prefetch=0,
            grid=(G, M // tm),
            in_specs=[pl.BlockSpec((None, tm, K), lambda g, m: (g, m, 0)),
                      pl.BlockSpec((None, K, C), lambda g, m: (g, 0, 0))],
            out_specs=(pl.BlockSpec((None, tm, C), lambda g, m: (g, m, 0)),
                       pl.BlockSpec((None, 1, C), lambda g, m: (g, 0, 0)),
                       pl.BlockSpec((None, 1, C), lambda g, m: (g, 0, 0)))),
        compiler_params=pltpu.CompilerParams(
            dimension_semantics=("parallel", "arbitrary")),
    )(a, b)


def _matmul_bias_act_kernel(a_ref, b_ref, bias_ref, o_ref, *, act):
    """Matmul with bias + activation fused into the epilogue (no-BN layer)."""
    o = jnp.dot(a_ref[...], b_ref[...], preferred_element_type=jnp.float32)
    o_ref[...] = _apply_act(o + bias_ref[...], act).astype(o_ref.dtype)


def grouped_matmul_bias_act(a, b, bias, act, out_dtype=jnp.float32,
                            tm_max=2048):
    G, M, K = a.shape
    C = b.shape[-1]
    tm = _pick_row_tile(M, tm_max)
    return pl.pallas_call(
        functools.partial(_matmul_bias_act_kernel, act=act),
        out_shape=jax.ShapeDtypeStruct((G, M, C), out_dtype),
        grid_spec=pltpu.PrefetchScalarGridSpec(
            num_scalar_prefetch=0,
            grid=(G, M // tm),
            in_specs=[pl.BlockSpec((None, tm, K), lambda g, m: (g, m, 0)),
                      pl.BlockSpec((None, K, C), lambda g, m: (g, 0, 0)),
                      pl.BlockSpec((1, C), lambda g, m: (0, 0))],
            out_specs=pl.BlockSpec((None, tm, C), lambda g, m: (g, m, 0))),
        compiler_params=pltpu.CompilerParams(
            dimension_semantics=("parallel", "parallel")),
    )(a, b, bias)


def _scale_shift_act_kernel(x_ref, s_ref, t_ref, o_ref, *, act):
    """y = act(x * scale + shift) with per-channel scale/shift (BN + act)."""
    y = x_ref[...] * s_ref[...] + t_ref[...]
    o_ref[...] = _apply_act(y, act).astype(o_ref.dtype)


def scale_shift_act(x, scale, shift, act, out_dtype=jnp.bfloat16,
                    tr_max=4096):
    R, C = x.shape
    tr = _pick_row_tile(R, tr_max)
    scale = scale.reshape(1, C).astype(jnp.float32)
    shift = shift.reshape(1, C).astype(jnp.float32)
    return pl.pallas_call(
        functools.partial(_scale_shift_act_kernel, act=act),
        out_shape=jax.ShapeDtypeStruct((R, C), out_dtype),
        grid_spec=pltpu.PrefetchScalarGridSpec(
            num_scalar_prefetch=0,
            grid=(R // tr,),
            in_specs=[pl.BlockSpec((tr, C), lambda i: (i, 0)),
                      pl.BlockSpec((1, C), lambda i: (0, 0)),
                      pl.BlockSpec((1, C), lambda i: (0, 0))],
            out_specs=pl.BlockSpec((tr, C), lambda i: (i, 0))),
        compiler_params=pltpu.CompilerParams(
            dimension_semantics=("parallel",)),
    )(x, scale, shift)


# ----------------------------------------------------------------------------
# ConvTranspose2d (k=4, s=2, p=1) via stride-parity decomposition
# ----------------------------------------------------------------------------
# For stride 2, each output-pixel parity (oh%2, ow%2) only touches a fixed 2x2
# subset of the 4x4 kernel and a 2x2 window of the (1-padded) input, so the
# deconv is 4 independent dense 2x2 convolutions -- no dilation zeros.

def _parity_patches(x_nhwc):
    """x: (N, H, W, Cpad) -> patches (4, N*H*W, 4*Cpad); groups ordered by
    output parity (dh, dw), columns ordered (di, dj, channel)."""
    N, H, W, C = x_nhwc.shape
    xp = jnp.pad(x_nhwc, ((0, 0), (1, 1), (1, 1), (0, 0)))
    groups = []
    for dh in (0, 1):
        for dw in (0, 1):
            win = xp[:, dh:dh + H + 1, dw:dw + W + 1, :]
            cols = [win[:, di:di + H, dj:dj + W, :]
                    for di in (0, 1) for dj in (0, 1)]
            groups.append(
                jnp.concatenate(cols, axis=-1).reshape(N * H * W, 4 * C))
    return jnp.stack(groups, axis=0)


def _parity_weights(w, cpad):
    """w: (Cin, Cout, 4, 4) -> (4, 4*cpad, cpad) bf16 weight matrices whose
    row/column ordering matches _parity_patches (flipped 2x2 sub-kernels)."""
    cin, cout = w.shape[0], w.shape[1]
    mats = []
    for dh in (0, 1):
        for dw in (0, 1):
            rows = []
            for di in (0, 1):
                for dj in (0, 1):
                    kh = (3 - 2 * di) if dh == 0 else (2 - 2 * di)
                    kw = (3 - 2 * dj) if dw == 0 else (2 - 2 * dj)
                    blk = jnp.zeros((cpad, cpad), jnp.float32)
                    blk = blk.at[:cin, :cout].set(
                        w[:, :, kh, kw].astype(jnp.float32))
                    rows.append(blk)
            mats.append(jnp.concatenate(rows, axis=0))
    return jnp.stack(mats, axis=0).astype(jnp.bfloat16)


def _parity_to_nhwc(y, N, H, W):
    """(4, N*H*W, C) parity-major output -> (N, 2H, 2W, C)."""
    C = y.shape[-1]
    y = y.reshape(2, 2, N, H, W, C)        # (dh, dw, n, h, w, c)
    y = y.transpose(2, 3, 0, 4, 1, 5)      # (n, h, dh, w, dw, c)
    return y.reshape(N, 2 * H, 2 * W, C)


def _bn_scale_shift(s, sq, count, gamma, beta, eps=1e-5):
    # Training-mode BatchNorm2d (biased variance), folded into per-channel
    # scale/shift.  E[x^2]-E[x]^2 in f32 from exactly-accumulated sums is
    # accurate enough at these sizes.
    mean = s / count
    var = jnp.maximum(sq / count - mean * mean, 0.0)
    scale = gamma / jnp.sqrt(var + eps)
    shift = beta - mean * scale
    return scale, shift


# ----------------------------------------------------------------------------
# Generator layers
# ----------------------------------------------------------------------------

def first_layer(x_cat, p, cpad):
    """ConvT(z+e -> 8f, k4, s2, p0) on a 1x1 input + train-mode BN + LeakyReLU.

    With a 1x1 input, output pixel (kh, kw) is the plain matmul
    x @ w[:, :, kh, kw]; run the 16 output pixels as 16 groups so the BN
    statistics come out of the fused matmul epilogue."""
    N, cin = x_cat.shape
    w = p["w"]
    b = jnp.stack([_pad_channels(w[:, :, g // 4, g % 4], 1, cpad)
                   for g in range(16)], axis=0).astype(jnp.bfloat16)
    a = jnp.broadcast_to(x_cat.astype(jnp.bfloat16)[None], (16, N, cin))
    out, s, sq = grouped_matmul_stats(a, b)            # (16, N, cpad) f32
    gamma = _pad_channels(p["gamma"], 0, cpad)
    beta = _pad_channels(p["beta"], 0, cpad)
    scale, shift = _bn_scale_shift(jnp.sum(s, axis=(0, 1)),
                                   jnp.sum(sq, axis=(0, 1)),
                                   16.0 * N, gamma, beta)
    y = scale_shift_act(out.reshape(16 * N, cpad), scale, shift, "leaky_relu")
    return y.reshape(4, 4, N, cpad).transpose(2, 0, 1, 3)   # NHWC (N,4,4,cpad)


def parity_conv_layer(x_nhwc, p, act, use_bn, cpad):
    """ConvTranspose2d(k4, s2, p1) (+BN) + activation; NHWC in / NHWC out.

    The ConvTranspose bias is omitted for BN layers (it cancels exactly under
    training-mode BN); the final layer fuses bias + tanh into the matmul."""
    N, H, W, _ = x_nhwc.shape
    a = _parity_patches(x_nhwc)                        # (4, N*H*W, 4*cpad) bf16
    b = _parity_weights(p["w"], cpad)                  # (4, 4*cpad, cpad) bf16
    if use_bn:
        out, s, sq = grouped_matmul_stats(a, b)
        gamma = _pad_channels(p["gamma"], 0, cpad)
        beta = _pad_channels(p["beta"], 0, cpad)
        scale, shift = _bn_scale_shift(jnp.sum(s, axis=(0, 1)),
                                       jnp.sum(sq, axis=(0, 1)),
                                       4.0 * N * H * W, gamma, beta)
        y = scale_shift_act(out.reshape(4 * N * H * W, cpad),
                            scale, shift, act)
        y = y.reshape(4, N * H * W, cpad)
    else:
        bias = _pad_channels(p["b"], 0, cpad).reshape(1, cpad)
        y = grouped_matmul_bias_act(a, b, bias.astype(jnp.float32), act,
                                    out_dtype=jnp.float32)
    return _parity_to_nhwc(y, N, H, W)


# ----------------------------------------------------------------------------
# Generator
# ----------------------------------------------------------------------------

def init_params(key, z_dim, out_ch, features, num_classes, embed_dim):
    ks = jax.random.split(key, 16)
    f = features
    params = {"embedding": jax.random.normal(
        ks[0], (num_classes, embed_dim), jnp.float32) * 0.1}
    dims = [(z_dim + embed_dim, f * 8), (f * 8, f * 4),
            (f * 4, f * 2), (f * 2, f), (f, out_ch)]
    for i, (cin, cout) in enumerate(dims):
        layer = {
            "w": jax.random.normal(ks[1 + 2 * i], (cin, cout, 4, 4),
                                   jnp.float32) * 0.05,
            "b": jax.random.normal(ks[2 + 2 * i], (cout,), jnp.float32) * 0.05,
        }
        if i < 4:   # BN layers
            layer["gamma"] = jnp.ones((cout,), jnp.float32)
            layer["beta"] = jnp.zeros((cout,), jnp.float32)
        params[f"l{i + 1}"] = layer
    return params


def generator_forward(params, x, label):
    N = x.shape[0]
    # One common lane-aligned channel width for every layer; padded channels
    # stay exactly zero through all layers and are sliced off at the end.
    max_c = max(params[f"l{i}"]["w"].shape[1] for i in range(1, 6))
    cpad = max(LANE, _round_up(max_c, LANE))

    emb = params["embedding"][label]                    # embedding gather
    h0 = jnp.concatenate([x.reshape(N, -1), emb], axis=1)   # (N, z+e)

    h = first_layer(h0, params["l1"], cpad)                           # 4x4
    h = parity_conv_layer(h, params["l2"], "relu", True, cpad)        # 8x8
    h = parity_conv_layer(h, params["l3"], "relu", True, cpad)        # 16x16
    h = parity_conv_layer(h, params["l4"], "relu", True, cpad)        # 32x32
    h = parity_conv_layer(h, params["l5"], "tanh", False, cpad)       # 64x64
    out_ch = params["l5"]["w"].shape[1]
    return h[..., :out_ch].transpose(0, 3, 1, 2)        # NCHW (N, out_ch, 64, 64)


if __name__ == "__main__":
    z_dim, out_ch, features, num_classes, img_size, embed_dim = 8, 3, 8, 10, 64, 8
    N = 2

    key = jax.random.PRNGKey(0)
    kp, kx, kl = jax.random.split(key, 3)
    params = init_params(kp, z_dim, out_ch, features, num_classes, embed_dim)
    x = jax.random.normal(kx, (N, z_dim, 1, 1), jnp.float32)
    label = jax.random.randint(kl, (N,), 0, num_classes)

    out = jax.jit(generator_forward)(params, x, label)
    out = jax.block_until_ready(out)

    assert out.shape == (N, out_ch, 64, 64), out.shape
    assert bool(jnp.all(jnp.isfinite(out)))
    assert bool(jnp.all(jnp.abs(out) <= 1.0 + 1e-6))   # tanh range
    print("KERNEL_OK")
</pallas_src>

<mosaic_0001>
module attributes {stable_mosaic.version = 11 : i64} {
  func.func @_scale_shift_act_kernel(%arg0: i32, %arg1: memref<32x128xf32, #tpu.memory_space<vmem>>, %arg2: memref<1x128xf32, #tpu.memory_space<vmem>>, %arg3: memref<1x128xf32, #tpu.memory_space<vmem>>, %arg4: memref<32x128xbf16, #tpu.memory_space<vmem>>) attributes {dimension_semantics = [#tpu.dimension_semantics<parallel>], iteration_bounds = array<i64: 1>, scalar_prefetch = 0 : i64, scratch_operands = 0 : i64, tpu.core_type = #tpu.core_type<tc>, window_params = [{transform_indices = @transform_0, window_bounds = array<i64: 32, 128>}, {pipeline_mode = #tpu.pipeline_mode<synchronous>, transform_indices = @transform_1, window_bounds = array<i64: 1, 128>}, {pipeline_mode = #tpu.pipeline_mode<synchronous>, transform_indices = @transform_2, window_bounds = array<i64: 1, 128>}, {transform_indices = @transform_3, window_bounds = array<i64: 32, 128>}]} {
    %c0 = arith.constant 0 : index
    %c0_0 = arith.constant 0 : index
    %0 = vector.load %arg1[%c0, %c0_0] : memref<32x128xf32, #tpu.memory_space<vmem>>, vector<32x128xf32>
    %c0_1 = arith.constant 0 : index
    %c0_2 = arith.constant 0 : index
    %1 = vector.load %arg2[%c0_1, %c0_2] : memref<1x128xf32, #tpu.memory_space<vmem>>, vector<1x128xf32>
    %2 = vector.broadcast %1 : vector<1x128xf32> to vector<32x128xf32>
    %3 = arith.mulf %0, %2 : vector<32x128xf32>
    %c0_3 = arith.constant 0 : index
    %c0_4 = arith.constant 0 : index
    %4 = vector.load %arg3[%c0_3, %c0_4] : memref<1x128xf32, #tpu.memory_space<vmem>>, vector<1x128xf32>
    %5 = vector.broadcast %4 : vector<1x128xf32> to vector<32x128xf32>
    %6 = arith.addf %3, %5 : vector<32x128xf32>
    %cst = arith.constant 0.000000e+00 : f32
    %7 = vector.broadcast %cst : f32 to vector<32x128xf32>
    %8 = arith.cmpf oge, %6, %7 : vector<32x128xf32>
    %cst_5 = arith.constant 2.000000e-01 : f32
    %9 = vector.broadcast %cst_5 : f32 to vector<32x128xf32>
    %10 = arith.mulf %9, %6 : vector<32x128xf32>
    %11 = arith.select %8, %6, %10 : vector<32x128xi1>, vector<32x128xf32>
    %12 = arith.truncf %11 : vector<32x128xf32> to vector<32x128xbf16>
    %c0_6 = arith.constant 0 : index
    %c0_7 = arith.constant 0 : index
    %13 = vector.load %arg4[%c0_6, %c0_7] : memref<32x128xbf16, #tpu.memory_space<vmem>>, vector<32x128xbf16>
    tpu.vector_store %arg4[%c0_6, %c0_7], %12 {strides = array<i32>} : memref<32x128xbf16, #tpu.memory_space<vmem>>, vector<32x128xbf16>,
    return
  }
  func.func @transform_0(%arg0: i32) -> (i32, i32) {
    %c0_i32 = arith.constant 0 : i32
    %c0_i32_0 = arith.constant 0 : i32
    return %arg0, %c0_i32 : i32, i32
  }
  func.func @transform_1(%arg0: i32) -> (i32, i32) {
    %c0_i32 = arith.constant 0 : i32
    %c0_i32_0 = arith.constant 0 : i32
    %c0_i32_1 = arith.constant 0 : i32
    return %c0_i32, %c0_i32_0 : i32, i32
  }
  func.func @transform_2(%arg0: i32) -> (i32, i32) {
    %c0_i32 = arith.constant 0 : i32
    %c0_i32_0 = arith.constant 0 : i32
    %c0_i32_1 = arith.constant 0 : i32
    return %c0_i32, %c0_i32_0 : i32, i32
  }
  func.func @transform_3(%arg0: i32) -> (i32, i32) {
    %c0_i32 = arith.constant 0 : i32
    %c0_i32_0 = arith.constant 0 : i32
    return %arg0, %c0_i32 : i32, i32
  }
}

module attributes {stable_mosaic.version = 11 : i64} {
  func.func @_matmul_stats_kernel(%arg0: i32, %arg1: i32, %arg2: memref<1x2x16xbf16, #tpu.memory_space<vmem>>, %arg3: memref<1x16x128xbf16, #tpu.memory_space<vmem>>, %arg4: memref<1x2x128xf32, #tpu.memory_space<vmem>>, %arg5: memref<1x1x128xf32, #tpu.memory_space<vmem>>, %arg6: memref<1x1x128xf32, #tpu.memory_space<vmem>>) attributes {dimension_semantics = [#tpu.dimension_semantics<parallel>, #tpu.dimension_semantics<arbitrary>], iteration_bounds = array<i64: 16, 1>, scalar_prefetch = 0 : i64, scratch_operands = 0 : i64, tpu.core_type = #tpu.core_type<tc>, window_params = [{transform_indices = @transform_0, window_bounds = array<i64: 1, 2, 16>}, {transform_indices = @transform_1, window_bounds = array<i64: 1, 16, 128>}, {transform_indices = @transform_2, window_bounds = array<i64: 1, 2, 128>}, {transform_indices = @transform_3, window_bounds = array<i64: 1, 1, 128>}, {transform_indices = @transform_4, window_bounds = array<i64: 1, 1, 128>}]} {
    %c0_i32 = arith.constant 0 : i32
    %0 = arith.cmpi eq, %arg1, %c0_i32 : i32
    %1 = arith.extui %0 : i1 to i32
    %c0_i32_0 = arith.constant 0 : i32
    %2 = arith.cmpi ne, %1, %c0_i32_0 : i32
    scf.if %2 {
      %cst_23 = arith.constant 0.000000e+00 : f32
      %28 = vector.broadcast %cst_23 : f32 to vector<1x128xf32>
      %c0_24 = arith.constant 0 : index
      %c0_25 = arith.constant 0 : index
      %c0_26 = arith.constant 0 : index
      %29 = vector.load %arg5[%c0_24, %c0_25, %c0_26] : memref<1x1x128xf32, #tpu.memory_space<vmem>>, vector<1x1x128xf32>
      %30 = vector.shape_cast %29 : vector<1x1x128xf32> to vector<1x128xf32>
      %31 = vector.shape_cast %28 : vector<1x128xf32> to vector<1x1x128xf32>
      tpu.vector_store %arg5[%c0_24, %c0_25, %c0_26], %31 {strides = array<i32>} : memref<1x1x128xf32, #tpu.memory_space<vmem>>, vector<1x1x128xf32>,
      %cst_27 = arith.constant 0.000000e+00 : f32
      %32 = vector.broadcast %cst_27 : f32 to vector<1x128xf32>
      %c0_28 = arith.constant 0 : index
      %c0_29 = arith.constant 0 : index
      %c0_30 = arith.constant 0 : index
      %33 = vector.load %arg6[%c0_28, %c0_29, %c0_30] : memref<1x1x128xf32, #tpu.memory_space<vmem>>, vector<1x1x128xf32>
      %34 = vector.shape_cast %33 : vector<1x1x128xf32> to vector<1x128xf32>
      %35 = vector.shape_cast %32 : vector<1x128xf32> to vector<1x1x128xf32>
      tpu.vector_store %arg6[%c0_28, %c0_29, %c0_30], %35 {strides = array<i32>} : memref<1x1x128xf32, #tpu.memory_space<vmem>>, vector<1x1x128xf32>,
    } else {
    }
    %c0 = arith.constant 0 : index
    %c0_1 = arith.constant 0 : index
    %c0_2 = arith.constant 0 : index
    %3 = vector.load %arg2[%c0, %c0_1, %c0_2] : memref<1x2x16xbf16, #tpu.memory_space<vmem>>, vector<1x2x16xbf16>
    %4 = vector.shape_cast %3 : vector<1x2x16xbf16> to vector<2x16xbf16>
    %c0_3 = arith.constant 0 : index
    %c0_4 = arith.constant 0 : index
    %c0_5 = arith.constant 0 : index
    %5 = vector.load %arg3[%c0_3, %c0_4, %c0_5] : memref<1x16x128xbf16, #tpu.memory_space<vmem>>, vector<1x16x128xbf16>
    %6 = vector.shape_cast %5 : vector<1x16x128xbf16> to vector<16x128xbf16>
    %cst = arith.constant dense<0.000000e+00> : vector<2x128xf32>
    %7 = tpu.matmul %4, %6, %cst {dimension_numbers = #tpu.dot_dimension_numbers<[1], [0], [0], [1], [0, 0, 1, 1], [], []>} : vector<2x16xbf16>, vector<16x128xbf16>, vector<2x128xf32> -> vector<2x128xf32>
    %c0_6 = arith.constant 0 : index
    %c0_7 = arith.constant 0 : index
    %c0_8 = arith.constant 0 : index
    %8 = vector.load %arg4[%c0_6, %c0_7, %c0_8] : memref<1x2x128xf32, #tpu.memory_space<vmem>>, vector<1x2x128xf32>
    %9 = vector.shape_cast %8 : vector<1x2x128xf32> to vector<2x128xf32>
    %10 = vector.shape_cast %7 : vector<2x128xf32> to vector<1x2x128xf32>
    tpu.vector_store %arg4[%c0_6, %c0_7, %c0_8], %10 {strides = array<i32>} : memref<1x2x128xf32, #tpu.memory_space<vmem>>, vector<1x2x128xf32>,
    %c0_9 = arith.constant 0 : index
    %c0_10 = arith.constant 0 : index
    %c0_11 = arith.constant 0 : index
    %11 = vector.load %arg5[%c0_9, %c0_10, %c0_11] : memref<1x1x128xf32, #tpu.memory_space<vmem>>, vector<1x1x128xf32>
    %12 = vector.shape_cast %11 : vector<1x1x128xf32> to vector<1x128xf32>
    %cst_12 = arith.constant dense<0.000000e+00> : vector<128xf32>
    %13 = vector.multi_reduction <add>, %7, %cst_12 [0] : vector<2x128xf32> to vector<128xf32>
    %14 = vector.shape_cast %13 : vector<128xf32> to vector<1x128xf32>
    %15 = arith.addf %12, %14 : vector<1x128xf32>
    %c0_13 = arith.constant 0 : index
    %c0_14 = arith.constant 0 : index
    %c0_15 = arith.constant 0 : index
    %16 = vector.load %arg5[%c0_13, %c0_14, %c0_15] : memref<1x1x128xf32, #tpu.memory_space<vmem>>, vector<1x1x128xf32>
    %17 = vector.shape_cast %16 : vector<1x1x128xf32> to vector<1x128xf32>
    %18 = vector.shape_cast %15 : vector<1x128xf32> to vector<1x1x128xf32>
    tpu.vector_store %arg5[%c0_13, %c0_14, %c0_15], %18 {strides = array<i32>} : memref<1x1x128xf32, #tpu.memory_space<vmem>>, vector<1x1x128xf32>,
    %c0_16 = arith.constant 0 : index
    %c0_17 = arith.constant 0 : index
    %c0_18 = arith.constant 0 : index
    %19 = vector.load %arg6[%c0_16, %c0_17, %c0_18] : memref<1x1x128xf32, #tpu.memory_space<vmem>>, vector<1x1x128xf32>
    %20 = vector.shape_cast %19 : vector<1x1x128xf32> to vector<1x128xf32>
    %21 = arith.mulf %7, %7 : vector<2x128xf32>
    %cst_19 = arith.constant dense<0.000000e+00> : vector<128xf32>
    %22 = vector.multi_reduction <add>, %21, %cst_19 [0] : vector<2x128xf32> to vector<128xf32>
    %23 = vector.shape_cast %22 : vector<128xf32> to vector<1x128xf32>
    %24 = arith.addf %20, %23 : vector<1x128xf32>
    %c0_20 = arith.constant 0 : index
    %c0_21 = arith.constant 0 : index
    %c0_22 = arith.constant 0 : index
    %25 = vector.load %arg6[%c0_20, %c0_21, %c0_22] : memref<1x1x128xf32, #tpu.memory_space<vmem>>, vector<1x1x128xf32>
    %26 = vector.shape_cast %25 : vector<1x1x128xf32> to vector<1x128xf32>
    %27 = vector.shape_cast %24 : vector<1x128xf32> to vector<1x1x128xf32>
    tpu.vector_store %arg6[%c0_20, %c0_21, %c0_22], %27 {strides = array<i32>} : memref<1x1x128xf32, #tpu.memory_space<vmem>>, vector<1x1x128xf32>,
    return
  }
  func.func @transform_0(%arg0: i32, %arg1: i32) -> (i32, i32, i32) {
    %c0_i32 = arith.constant 0 : i32
    %c0_i32_0 = arith.constant 0 : i32
    return %arg0, %arg1, %c0_i32 : i32, i32, i32
  }
  func.func @transform_1(%arg0: i32, %arg1: i32) -> (i32, i32, i32) {
    %c0_i32 = arith.constant 0 : i32
    %c0_i32_0 = arith.constant 0 : i32
    %c0_i32_1 = arith.constant 0 : i32
    return %arg0, %c0_i32, %c0_i32_0 : i32, i32, i32
  }
  func.func @transform_2(%arg0: i32, %arg1: i32) -> (i32, i32, i32) {
    %c0_i32 = arith.constant 0 : i32
    %c0_i32_0 = arith.constant 0 : i32
    return %arg0, %arg1, %c0_i32 : i32, i32, i32
  }
  func.func @transform_3(%arg0: i32, %arg1: i32) -> (i32, i32, i32) {
    %c0_i32 = arith.constant 0 : i32
    %c0_i32_0 = arith.constant 0 : i32
    %c0_i32_1 = arith.constant 0 : i32
    return %arg0, %c0_i32, %c0_i32_0 : i32, i32, i32
  }
  func.func @transform_4(%arg0: i32, %arg1: i32) -> (i32, i32, i32) {
    %c0_i32 = arith.constant 0 : i32
    %c0_i32_0 = arith.constant 0 : i32
    %c0_i32_1 = arith.constant 0 : i32
    return %arg0, %c0_i32, %c0_i32_0 : i32, i32, i32
  }
}

module attributes {stable_mosaic.version = 11 : i64} {
  func.func @_matmul_stats_kernel(%arg0: i32, %arg1: i32, %arg2: memref<1x32x512xbf16, #tpu.memory_space<vmem>>, %arg3: memref<1x512x128xbf16, #tpu.memory_space<vmem>>, %arg4: memref<1x32x128xf32, #tpu.memory_space<vmem>>, %arg5: memref<1x1x128xf32, #tpu.memory_space<vmem>>, %arg6: memref<1x1x128xf32, #tpu.memory_space<vmem>>) attributes {dimension_semantics = [#tpu.dimension_semantics<parallel>, #tpu.dimension_semantics<arbitrary>], iteration_bounds = array<i64: 4, 1>, scalar_prefetch = 0 : i64, scratch_operands = 0 : i64, tpu.core_type = #tpu.core_type<tc>, window_params = [{transform_indices = @transform_0, window_bounds = array<i64: 1, 32, 512>}, {transform_indices = @transform_1, window_bounds = array<i64: 1, 512, 128>}, {transform_indices = @transform_2, window_bounds = array<i64: 1, 32, 128>}, {transform_indices = @transform_3, window_bounds = array<i64: 1, 1, 128>}, {transform_indices = @transform_4, window_bounds = array<i64: 1, 1, 128>}]} {
    %c0_i32 = arith.constant 0 : i32
    %0 = arith.cmpi eq, %arg1, %c0_i32 : i32
    %1 = arith.extui %0 : i1 to i32
    %c0_i32_0 = arith.constant 0 : i32
    %2 = arith.cmpi ne, %1, %c0_i32_0 : i32
    scf.if %2 {
      %cst_23 = arith.constant 0.000000e+00 : f32
      %28 = vector.broadcast %cst_23 : f32 to vector<1x128xf32>
      %c0_24 = arith.constant 0 : index
      %c0_25 = arith.constant 0 : index
      %c0_26 = arith.constant 0 : index
      %29 = vector.load %arg5[%c0_24, %c0_25, %c0_26] : memref<1x1x128xf32, #tpu.memory_space<vmem>>, vector<1x1x128xf32>
      %30 = vector.shape_cast %29 : vector<1x1x128xf32> to vector<1x128xf32>
      %31 = vector.shape_cast %28 : vector<1x128xf32> to vector<1x1x128xf32>
      tpu.vector_store %arg5[%c0_24, %c0_25, %c0_26], %31 {strides = array<i32>} : memref<1x1x128xf32, #tpu.memory_space<vmem>>, vector<1x1x128xf32>,
      %cst_27 = arith.constant 0.000000e+00 : f32
      %32 = vector.broadcast %cst_27 : f32 to vector<1x128xf32>
      %c0_28 = arith.constant 0 : index
      %c0_29 = arith.constant 0 : index
      %c0_30 = arith.constant 0 : index
      %33 = vector.load %arg6[%c0_28, %c0_29, %c0_30] : memref<1x1x128xf32, #tpu.memory_space<vmem>>, vector<1x1x128xf32>
      %34 = vector.shape_cast %33 : vector<1x1x128xf32> to vector<1x128xf32>
      %35 = vector.shape_cast %32 : vector<1x128xf32> to vector<1x1x128xf32>
      tpu.vector_store %arg6[%c0_28, %c0_29, %c0_30], %35 {strides = array<i32>} : memref<1x1x128xf32, #tpu.memory_space<vmem>>, vector<1x1x128xf32>,
    } else {
    }
    %c0 = arith.constant 0 : index
    %c0_1 = arith.constant 0 : index
    %c0_2 = arith.constant 0 : index
    %3 = vector.load %arg2[%c0, %c0_1, %c0_2] : memref<1x32x512xbf16, #tpu.memory_space<vmem>>, vector<1x32x512xbf16>
    %4 = vector.shape_cast %3 : vector<1x32x512xbf16> to vector<32x512xbf16>
    %c0_3 = arith.constant 0 : index
    %c0_4 = arith.constant 0 : index
    %c0_5 = arith.constant 0 : index
    %5 = vector.load %arg3[%c0_3, %c0_4, %c0_5] : memref<1x512x128xbf16, #tpu.memory_space<vmem>>, vector<1x512x128xbf16>
    %6 = vector.shape_cast %5 : vector<1x512x128xbf16> to vector<512x128xbf16>
    %cst = arith.constant dense<0.000000e+00> : vector<32x128xf32>
    %7 = tpu.matmul %4, %6, %cst {dimension_numbers = #tpu.dot_dimension_numbers<[1], [0], [0], [1], [0, 0, 1, 1], [], []>} : vector<32x512xbf16>, vector<512x128xbf16>, vector<32x128xf32> -> vector<32x128xf32>
    %c0_6 = arith.constant 0 : index
    %c0_7 = arith.constant 0 : index
    %c0_8 = arith.constant 0 : index
    %8 = vector.load %arg4[%c0_6, %c0_7, %c0_8] : memref<1x32x128xf32, #tpu.memory_space<vmem>>, vector<1x32x128xf32>
    %9 = vector.shape_cast %8 : vector<1x32x128xf32> to vector<32x128xf32>
    %10 = vector.shape_cast %7 : vector<32x128xf32> to vector<1x32x128xf32>
    tpu.vector_store %arg4[%c0_6, %c0_7, %c0_8], %10 {strides = array<i32>} : memref<1x32x128xf32, #tpu.memory_space<vmem>>, vector<1x32x128xf32>,
    %c0_9 = arith.constant 0 : index
    %c0_10 = arith.constant 0 : index
    %c0_11 = arith.constant 0 : index
    %11 = vector.load %arg5[%c0_9, %c0_10, %c0_11] : memref<1x1x128xf32, #tpu.memory_space<vmem>>, vector<1x1x128xf32>
    %12 = vector.shape_cast %11 : vector<1x1x128xf32> to vector<1x128xf32>
    %cst_12 = arith.constant dense<0.000000e+00> : vector<128xf32>
    %13 = vector.multi_reduction <add>, %7, %cst_12 [0] : vector<32x128xf32> to vector<128xf32>
    %14 = vector.shape_cast %13 : vector<128xf32> to vector<1x128xf32>
    %15 = arith.addf %12, %14 : vector<1x128xf32>
    %c0_13 = arith.constant 0 : index
    %c0_14 = arith.constant 0 : index
    %c0_15 = arith.constant 0 : index
    %16 = vector.load %arg5[%c0_13, %c0_14, %c0_15] : memref<1x1x128xf32, #tpu.memory_space<vmem>>, vector<1x1x128xf32>
    %17 = vector.shape_cast %16 : vector<1x1x128xf32> to vector<1x128xf32>
    %18 = vector.shape_cast %15 : vector<1x128xf32> to vector<1x1x128xf32>
    tpu.vector_store %arg5[%c0_13, %c0_14, %c0_15], %18 {strides = array<i32>} : memref<1x1x128xf32, #tpu.memory_space<vmem>>, vector<1x1x128xf32>,
    %c0_16 = arith.constant 0 : index
    %c0_17 = arith.constant 0 : index
    %c0_18 = arith.constant 0 : index
    %19 = vector.load %arg6[%c0_16, %c0_17, %c0_18] : memref<1x1x128xf32, #tpu.memory_space<vmem>>, vector<1x1x128xf32>
    %20 = vector.shape_cast %19 : vector<1x1x128xf32> to vector<1x128xf32>
    %21 = arith.mulf %7, %7 : vector<32x128xf32>
    %cst_19 = arith.constant dense<0.000000e+00> : vector<128xf32>
    %22 = vector.multi_reduction <add>, %21, %cst_19 [0] : vector<32x128xf32> to vector<128xf32>
    %23 = vector.shape_cast %22 : vector<128xf32> to vector<1x128xf32>
    %24 = arith.addf %20, %23 : vector<1x128xf32>
    %c0_20 = arith.constant 0 : index
    %c0_21 = arith.constant 0 : index
    %c0_22 = arith.constant 0 : index
    %25 = vector.load %arg6[%c0_20, %c0_21, %c0_22] : memref<1x1x128xf32, #tpu.memory_space<vmem>>, vector<1x1x128xf32>
    %26 = vector.shape_cast %25 : vector<1x1x128xf32> to vector<1x128xf32>
    %27 = vector.shape_cast %24 : vector<1x128xf32> to vector<1x1x128xf32>
    tpu.vector_store %arg6[%c0_20, %c0_21, %c0_22], %27 {strides = array<i32>} : memref<1x1x128xf32, #tpu.memory_space<vmem>>, vector<1x1x128xf32>,
    return
  }
  func.func @transform_0(%arg0: i32, %arg1: i32) -> (i32, i32, i32) {
    %c0_i32 = arith.constant 0 : i32
    %c0_i32_0 = arith.constant 0 : i32
    return %arg0, %arg1, %c0_i32 : i32, i32, i32
  }
  func.func @transform_1(%arg0: i32, %arg1: i32) -> (i32, i32, i32) {
    %c0_i32 = arith.constant 0 : i32
    %c0_i32_0 = arith.constant 0 : i32
    %c0_i32_1 = arith.constant 0 : i32
    return %arg0, %c0_i32, %c0_i32_0 : i32, i32, i32
  }
  func.func @transform_2(%arg0: i32, %arg1: i32) -> (i32, i32, i32) {
    %c0_i32 = arith.constant 0 : i32
    %c0_i32_0 = arith.constant 0 : i32
    return %arg0, %arg1, %c0_i32 : i32, i32, i32
  }
  func.func @transform_3(%arg0: i32, %arg1: i32) -> (i32, i32, i32) {
    %c0_i32 = arith.constant 0 : i32
    %c0_i32_0 = arith.constant 0 : i32
    %c0_i32_1 = arith.constant 0 : i32
    return %arg0, %c0_i32, %c0_i32_0 : i32, i32, i32
  }
  func.func @transform_4(%arg0: i32, %arg1: i32) -> (i32, i32, i32) {
    %c0_i32 = arith.constant 0 : i32
    %c0_i32_0 = arith.constant 0 : i32
    %c0_i32_1 = arith.constant 0 : i32
    return %arg0, %c0_i32, %c0_i32_0 : i32, i32, i32
  }
}

module attributes {stable_mosaic.version = 11 : i64} {
  func.func @_scale_shift_act_kernel(%arg0: i32, %arg1: memref<128x128xf32, #tpu.memory_space<vmem>>, %arg2: memref<1x128xf32, #tpu.memory_space<vmem>>, %arg3: memref<1x128xf32, #tpu.memory_space<vmem>>, %arg4: memref<128x128xbf16, #tpu.memory_space<vmem>>) attributes {dimension_semantics = [#tpu.dimension_semantics<parallel>], iteration_bounds = array<i64: 1>, scalar_prefetch = 0 : i64, scratch_operands = 0 : i64, tpu.core_type = #tpu.core_type<tc>, window_params = [{transform_indices = @transform_0, window_bounds = array<i64: 128, 128>}, {pipeline_mode = #tpu.pipeline_mode<synchronous>, transform_indices = @transform_1, window_bounds = array<i64: 1, 128>}, {pipeline_mode = #tpu.pipeline_mode<synchronous>, transform_indices = @transform_2, window_bounds = array<i64: 1, 128>}, {transform_indices = @transform_3, window_bounds = array<i64: 128, 128>}]} {
    %c0 = arith.constant 0 : index
    %c0_0 = arith.constant 0 : index
    %0 = vector.load %arg1[%c0, %c0_0] : memref<128x128xf32, #tpu.memory_space<vmem>>, vector<128x128xf32>
    %c0_1 = arith.constant 0 : index
    %c0_2 = arith.constant 0 : index
    %1 = vector.load %arg2[%c0_1, %c0_2] : memref<1x128xf32, #tpu.memory_space<vmem>>, vector<1x128xf32>
    %2 = vector.broadcast %1 : vector<1x128xf32> to vector<128x128xf32>
    %3 = arith.mulf %0, %2 : vector<128x128xf32>
    %c0_3 = arith.constant 0 : index
    %c0_4 = arith.constant 0 : index
    %4 = vector.load %arg3[%c0_3, %c0_4] : memref<1x128xf32, #tpu.memory_space<vmem>>, vector<1x128xf32>
    %5 = vector.broadcast %4 : vector<1x128xf32> to vector<128x128xf32>
    %6 = arith.addf %3, %5 : vector<128x128xf32>
    %cst = arith.constant 0.000000e+00 : f32
    %7 = vector.broadcast %cst : f32 to vector<128x128xf32>
    %8 = arith.maximumf %6, %7 : vector<128x128xf32>
    %9 = arith.truncf %8 : vector<128x128xf32> to vector<128x128xbf16>
    %c0_5 = arith.constant 0 : index
    %c0_6 = arith.constant 0 : index
    %10 = vector.load %arg4[%c0_5, %c0_6] : memref<128x128xbf16, #tpu.memory_space<vmem>>, vector<128x128xbf16>
    tpu.vector_store %arg4[%c0_5, %c0_6], %9 {strides = array<i32>} : memref<128x128xbf16, #tpu.memory_space<vmem>>, vector<128x128xbf16>,
    return
  }
  func.func @transform_0(%arg0: i32) -> (i32, i32) {
    %c0_i32 = arith.constant 0 : i32
    %c0_i32_0 = arith.constant 0 : i32
    return %arg0, %c0_i32 : i32, i32
  }
  func.func @transform_1(%arg0: i32) -> (i32, i32) {
    %c0_i32 = arith.constant 0 : i32
    %c0_i32_0 = arith.constant 0 : i32
    %c0_i32_1 = arith.constant 0 : i32
    return %c0_i32, %c0_i32_0 : i32, i32
  }
  func.func @transform_2(%arg0: i32) -> (i32, i32) {
    %c0_i32 = arith.constant 0 : i32
    %c0_i32_0 = arith.constant 0 : i32
    %c0_i32_1 = arith.constant 0 : i32
    return %c0_i32, %c0_i32_0 : i32, i32
  }
  func.func @transform_3(%arg0: i32) -> (i32, i32) {
    %c0_i32 = arith.constant 0 : i32
    %c0_i32_0 = arith.constant 0 : i32
    return %arg0, %c0_i32 : i32, i32
  }
}

module attributes {stable_mosaic.version = 11 : i64} {
  func.func @_matmul_stats_kernel(%arg0: i32, %arg1: i32, %arg2: memref<1x128x512xbf16, #tpu.memory_space<vmem>>, %arg3: memref<1x512x128xbf16, #tpu.memory_space<vmem>>, %arg4: memref<1x128x128xf32, #tpu.memory_space<vmem>>, %arg5: memref<1x1x128xf32, #tpu.memory_space<vmem>>, %arg6: memref<1x1x128xf32, #tpu.memory_space<vmem>>) attributes {dimension_semantics = [#tpu.dimension_semantics<parallel>, #tpu.dimension_semantics<arbitrary>], iteration_bounds = array<i64: 4, 1>, scalar_prefetch = 0 : i64, scratch_operands = 0 : i64, tpu.core_type = #tpu.core_type<tc>, window_params = [{transform_indices = @transform_0, window_bounds = array<i64: 1, 128, 512>}, {transform_indices = @transform_1, window_bounds = array<i64: 1, 512, 128>}, {transform_indices = @transform_2, window_bounds = array<i64: 1, 128, 128>}, {transform_indices = @transform_3, window_bounds = array<i64: 1, 1, 128>}, {transform_indices = @transform_4, window_bounds = array<i64: 1, 1, 128>}]} {
    %c0_i32 = arith.constant 0 : i32
    %0 = arith.cmpi eq, %arg1, %c0_i32 : i32
    %1 = arith.extui %0 : i1 to i32
    %c0_i32_0 = arith.constant 0 : i32
    %2 = arith.cmpi ne, %1, %c0_i32_0 : i32
    scf.if %2 {
      %cst_23 = arith.constant 0.000000e+00 : f32
      %28 = vector.broadcast %cst_23 : f32 to vector<1x128xf32>
      %c0_24 = arith.constant 0 : index
      %c0_25 = arith.constant 0 : index
      %c0_26 = arith.constant 0 : index
      %29 = vector.load %arg5[%c0_24, %c0_25, %c0_26] : memref<1x1x128xf32, #tpu.memory_space<vmem>>, vector<1x1x128xf32>
      %30 = vector.shape_cast %29 : vector<1x1x128xf32> to vector<1x128xf32>
      %31 = vector.shape_cast %28 : vector<1x128xf32> to vector<1x1x128xf32>
      tpu.vector_store %arg5[%c0_24, %c0_25, %c0_26], %31 {strides = array<i32>} : memref<1x1x128xf32, #tpu.memory_space<vmem>>, vector<1x1x128xf32>,
      %cst_27 = arith.constant 0.000000e+00 : f32
      %32 = vector.broadcast %cst_27 : f32 to vector<1x128xf32>
      %c0_28 = arith.constant 0 : index
      %c0_29 = arith.constant 0 : index
      %c0_30 = arith.constant 0 : index
      %33 = vector.load %arg6[%c0_28, %c0_29, %c0_30] : memref<1x1x128xf32, #tpu.memory_space<vmem>>, vector<1x1x128xf32>
      %34 = vector.shape_cast %33 : vector<1x1x128xf32> to vector<1x128xf32>
      %35 = vector.shape_cast %32 : vector<1x128xf32> to vector<1x1x128xf32>
      tpu.vector_store %arg6[%c0_28, %c0_29, %c0_30], %35 {strides = array<i32>} : memref<1x1x128xf32, #tpu.memory_space<vmem>>, vector<1x1x128xf32>,
    } else {
    }
    %c0 = arith.constant 0 : index
    %c0_1 = arith.constant 0 : index
    %c0_2 = arith.constant 0 : index
    %3 = vector.load %arg2[%c0, %c0_1, %c0_2] : memref<1x128x512xbf16, #tpu.memory_space<vmem>>, vector<1x128x512xbf16>
    %4 = vector.shape_cast %3 : vector<1x128x512xbf16> to vector<128x512xbf16>
    %c0_3 = arith.constant 0 : index
    %c0_4 = arith.constant 0 : index
    %c0_5 = arith.constant 0 : index
    %5 = vector.load %arg3[%c0_3, %c0_4, %c0_5] : memref<1x512x128xbf16, #tpu.memory_space<vmem>>, vector<1x512x128xbf16>
    %6 = vector.shape_cast %5 : vector<1x512x128xbf16> to vector<512x128xbf16>
    %cst = arith.constant dense<0.000000e+00> : vector<128x128xf32>
    %7 = tpu.matmul %4, %6, %cst {dimension_numbers = #tpu.dot_dimension_numbers<[1], [0], [0], [1], [0, 0, 1, 1], [], []>} : vector<128x512xbf16>, vector<512x128xbf16>, vector<128x128xf32> -> vector<128x128xf32>
    %c0_6 = arith.constant 0 : index
    %c0_7 = arith.constant 0 : index
    %c0_8 = arith.constant 0 : index
    %8 = vector.load %arg4[%c0_6, %c0_7, %c0_8] : memref<1x128x128xf32, #tpu.memory_space<vmem>>, vector<1x128x128xf32>
    %9 = vector.shape_cast %8 : vector<1x128x128xf32> to vector<128x128xf32>
    %10 = vector.shape_cast %7 : vector<128x128xf32> to vector<1x128x128xf32>
    tpu.vector_store %arg4[%c0_6, %c0_7, %c0_8], %10 {strides = array<i32>} : memref<1x128x128xf32, #tpu.memory_space<vmem>>, vector<1x128x128xf32>,
    %c0_9 = arith.constant 0 : index
    %c0_10 = arith.constant 0 : index
    %c0_11 = arith.constant 0 : index
    %11 = vector.load %arg5[%c0_9, %c0_10, %c0_11] : memref<1x1x128xf32, #tpu.memory_space<vmem>>, vector<1x1x128xf32>
    %12 = vector.shape_cast %11 : vector<1x1x128xf32> to vector<1x128xf32>
    %cst_12 = arith.constant dense<0.000000e+00> : vector<128xf32>
    %13 = vector.multi_reduction <add>, %7, %cst_12 [0] : vector<128x128xf32> to vector<128xf32>
    %14 = vector.shape_cast %13 : vector<128xf32> to vector<1x128xf32>
    %15 = arith.addf %12, %14 : vector<1x128xf32>
    %c0_13 = arith.constant 0 : index
    %c0_14 = arith.constant 0 : index
    %c0_15 = arith.constant 0 : index
    %16 = vector.load %arg5[%c0_13, %c0_14, %c0_15] : memref<1x1x128xf32, #tpu.memory_space<vmem>>, vector<1x1x128xf32>
    %17 = vector.shape_cast %16 : vector<1x1x128xf32> to vector<1x128xf32>
    %18 = vector.shape_cast %15 : vector<1x128xf32> to vector<1x1x128xf32>
    tpu.vector_store %arg5[%c0_13, %c0_14, %c0_15], %18 {strides = array<i32>} : memref<1x1x128xf32, #tpu.memory_space<vmem>>, vector<1x1x128xf32>,
    %c0_16 = arith.constant 0 : index
    %c0_17 = arith.constant 0 : index
    %c0_18 = arith.constant 0 : index
    %19 = vector.load %arg6[%c0_16, %c0_17, %c0_18] : memref<1x1x128xf32, #tpu.memory_space<vmem>>, vector<1x1x128xf32>
    %20 = vector.shape_cast %19 : vector<1x1x128xf32> to vector<1x128xf32>
    %21 = arith.mulf %7, %7 : vector<128x128xf32>
    %cst_19 = arith.constant dense<0.000000e+00> : vector<128xf32>
    %22 = vector.multi_reduction <add>, %21, %cst_19 [0] : vector<128x128xf32> to vector<128xf32>
    %23 = vector.shape_cast %22 : vector<128xf32> to vector<1x128xf32>
    %24 = arith.addf %20, %23 : vector<1x128xf32>
    %c0_20 = arith.constant 0 : index
    %c0_21 = arith.constant 0 : index
    %c0_22 = arith.constant 0 : index
    %25 = vector.load %arg6[%c0_20, %c0_21, %c0_22] : memref<1x1x128xf32, #tpu.memory_space<vmem>>, vector<1x1x128xf32>
    %26 = vector.shape_cast %25 : vector<1x1x128xf32> to vector<1x128xf32>
    %27 = vector.shape_cast %24 : vector<1x128xf32> to vector<1x1x128xf32>
    tpu.vector_store %arg6[%c0_20, %c0_21, %c0_22], %27 {strides = array<i32>} : memref<1x1x128xf32, #tpu.memory_space<vmem>>, vector<1x1x128xf32>,
    return
  }
  func.func @transform_0(%arg0: i32, %arg1: i32) -> (i32, i32, i32) {
    %c0_i32 = arith.constant 0 : i32
    %c0_i32_0 = arith.constant 0 : i32
    return %arg0, %arg1, %c0_i32 : i32, i32, i32
  }
  func.func @transform_1(%arg0: i32, %arg1: i32) -> (i32, i32, i32) {
    %c0_i32 = arith.constant 0 : i32
    %c0_i32_0 = arith.constant 0 : i32
    %c0_i32_1 = arith.constant 0 : i32
    return %arg0, %c0_i32, %c0_i32_0 : i32, i32, i32
  }
  func.func @transform_2(%arg0: i32, %arg1: i32) -> (i32, i32, i32) {
    %c0_i32 = arith.constant 0 : i32
    %c0_i32_0 = arith.constant 0 : i32
    return %arg0, %arg1, %c0_i32 : i32, i32, i32
  }
  func.func @transform_3(%arg0: i32, %arg1: i32) -> (i32, i32, i32) {
    %c0_i32 = arith.constant 0 : i32
    %c0_i32_0 = arith.constant 0 : i32
    %c0_i32_1 = arith.constant 0 : i32
    return %arg0, %c0_i32, %c0_i32_0 : i32, i32, i32
  }
  func.func @transform_4(%arg0: i32, %arg1: i32) -> (i32, i32, i32) {
    %c0_i32 = arith.constant 0 : i32
    %c0_i32_0 = arith.constant 0 : i32
    %c0_i32_1 = arith.constant 0 : i32
    return %arg0, %c0_i32, %c0_i32_0 : i32, i32, i32
  }
}

module attributes {stable_mosaic.version = 11 : i64} {
  func.func @_scale_shift_act_kernel(%arg0: i32, %arg1: memref<512x128xf32, #tpu.memory_space<vmem>>, %arg2: memref<1x128xf32, #tpu.memory_space<vmem>>, %arg3: memref<1x128xf32, #tpu.memory_space<vmem>>, %arg4: memref<512x128xbf16, #tpu.memory_space<vmem>>) attributes {dimension_semantics = [#tpu.dimension_semantics<parallel>], iteration_bounds = array<i64: 1>, scalar_prefetch = 0 : i64, scratch_operands = 0 : i64, tpu.core_type = #tpu.core_type<tc>, window_params = [{transform_indices = @transform_0, window_bounds = array<i64: 512, 128>}, {pipeline_mode = #tpu.pipeline_mode<synchronous>, transform_indices = @transform_1, window_bounds = array<i64: 1, 128>}, {pipeline_mode = #tpu.pipeline_mode<synchronous>, transform_indices = @transform_2, window_bounds = array<i64: 1, 128>}, {transform_indices = @transform_3, window_bounds = array<i64: 512, 128>}]} {
    %c0 = arith.constant 0 : index
    %c0_0 = arith.constant 0 : index
    %0 = vector.load %arg1[%c0, %c0_0] : memref<512x128xf32, #tpu.memory_space<vmem>>, vector<512x128xf32>
    %c0_1 = arith.constant 0 : index
    %c0_2 = arith.constant 0 : index
    %1 = vector.load %arg2[%c0_1, %c0_2] : memref<1x128xf32, #tpu.memory_space<vmem>>, vector<1x128xf32>
    %2 = vector.broadcast %1 : vector<1x128xf32> to vector<512x128xf32>
    %3 = arith.mulf %0, %2 : vector<512x128xf32>
    %c0_3 = arith.constant 0 : index
    %c0_4 = arith.constant 0 : index
    %4 = vector.load %arg3[%c0_3, %c0_4] : memref<1x128xf32, #tpu.memory_space<vmem>>, vector<1x128xf32>
    %5 = vector.broadcast %4 : vector<1x128xf32> to vector<512x128xf32>
    %6 = arith.addf %3, %5 : vector<512x128xf32>
    %cst = arith.constant 0.000000e+00 : f32
    %7 = vector.broadcast %cst : f32 to vector<512x128xf32>
    %8 = arith.maximumf %6, %7 : vector<512x128xf32>
    %9 = arith.truncf %8 : vector<512x128xf32> to vector<512x128xbf16>
    %c0_5 = arith.constant 0 : index
    %c0_6 = arith.constant 0 : index
    %10 = vector.load %arg4[%c0_5, %c0_6] : memref<512x128xbf16, #tpu.memory_space<vmem>>, vector<512x128xbf16>
    tpu.vector_store %arg4[%c0_5, %c0_6], %9 {strides = array<i32>} : memref<512x128xbf16, #tpu.memory_space<vmem>>, vector<512x128xbf16>,
    return
  }
  func.func @transform_0(%arg0: i32) -> (i32, i32) {
    %c0_i32 = arith.constant 0 : i32
    %c0_i32_0 = arith.constant 0 : i32
    return %arg0, %c0_i32 : i32, i32
  }
  func.func @transform_1(%arg0: i32) -> (i32, i32) {
    %c0_i32 = arith.constant 0 : i32
    %c0_i32_0 = arith.constant 0 : i32
    %c0_i32_1 = arith.constant 0 : i32
    return %c0_i32, %c0_i32_0 : i32, i32
  }
  func.func @transform_2(%arg0: i32) -> (i32, i32) {
    %c0_i32 = arith.constant 0 : i32
    %c0_i32_0 = arith.constant 0 : i32
    %c0_i32_1 = arith.constant 0 : i32
    return %c0_i32, %c0_i32_0 : i32, i32
  }
  func.func @transform_3(%arg0: i32) -> (i32, i32) {
    %c0_i32 = arith.constant 0 : i32
    %c0_i32_0 = arith.constant 0 : i32
    return %arg0, %c0_i32 : i32, i32
  }
}

module attributes {stable_mosaic.version = 11 : i64} {
  func.func @_matmul_stats_kernel(%arg0: i32, %arg1: i32, %arg2: memref<1x512x512xbf16, #tpu.memory_space<vmem>>, %arg3: memref<1x512x128xbf16, #tpu.memory_space<vmem>>, %arg4: memref<1x512x128xf32, #tpu.memory_space<vmem>>, %arg5: memref<1x1x128xf32, #tpu.memory_space<vmem>>, %arg6: memref<1x1x128xf32, #tpu.memory_space<vmem>>) attributes {dimension_semantics = [#tpu.dimension_semantics<parallel>, #tpu.dimension_semantics<arbitrary>], iteration_bounds = array<i64: 4, 1>, scalar_prefetch = 0 : i64, scratch_operands = 0 : i64, tpu.core_type = #tpu.core_type<tc>, window_params = [{transform_indices = @transform_0, window_bounds = array<i64: 1, 512, 512>}, {transform_indices = @transform_1, window_bounds = array<i64: 1, 512, 128>}, {transform_indices = @transform_2, window_bounds = array<i64: 1, 512, 128>}, {transform_indices = @transform_3, window_bounds = array<i64: 1, 1, 128>}, {transform_indices = @transform_4, window_bounds = array<i64: 1, 1, 128>}]} {
    %c0_i32 = arith.constant 0 : i32
    %0 = arith.cmpi eq, %arg1, %c0_i32 : i32
    %1 = arith.extui %0 : i1 to i32
    %c0_i32_0 = arith.constant 0 : i32
    %2 = arith.cmpi ne, %1, %c0_i32_0 : i32
    scf.if %2 {
      %cst_23 = arith.constant 0.000000e+00 : f32
      %28 = vector.broadcast %cst_23 : f32 to vector<1x128xf32>
      %c0_24 = arith.constant 0 : index
      %c0_25 = arith.constant 0 : index
      %c0_26 = arith.constant 0 : index
      %29 = vector.load %arg5[%c0_24, %c0_25, %c0_26] : memref<1x1x128xf32, #tpu.memory_space<vmem>>, vector<1x1x128xf32>
      %30 = vector.shape_cast %29 : vector<1x1x128xf32> to vector<1x128xf32>
      %31 = vector.shape_cast %28 : vector<1x128xf32> to vector<1x1x128xf32>
      tpu.vector_store %arg5[%c0_24, %c0_25, %c0_26], %31 {strides = array<i32>} : memref<1x1x128xf32, #tpu.memory_space<vmem>>, vector<1x1x128xf32>,
      %cst_27 = arith.constant 0.000000e+00 : f32
      %32 = vector.broadcast %cst_27 : f32 to vector<1x128xf32>
      %c0_28 = arith.constant 0 : index
      %c0_29 = arith.constant 0 : index
      %c0_30 = arith.constant 0 : index
      %33 = vector.load %arg6[%c0_28, %c0_29, %c0_30] : memref<1x1x128xf32, #tpu.memory_space<vmem>>, vector<1x1x128xf32>
      %34 = vector.shape_cast %33 : vector<1x1x128xf32> to vector<1x128xf32>
      %35 = vector.shape_cast %32 : vector<1x128xf32> to vector<1x1x128xf32>
      tpu.vector_store %arg6[%c0_28, %c0_29, %c0_30], %35 {strides = array<i32>} : memref<1x1x128xf32, #tpu.memory_space<vmem>>, vector<1x1x128xf32>,
    } else {
    }
    %c0 = arith.constant 0 : index
    %c0_1 = arith.constant 0 : index
    %c0_2 = arith.constant 0 : index
    %3 = vector.load %arg2[%c0, %c0_1, %c0_2] : memref<1x512x512xbf16, #tpu.memory_space<vmem>>, vector<1x512x512xbf16>
    %4 = vector.shape_cast %3 : vector<1x512x512xbf16> to vector<512x512xbf16>
    %c0_3 = arith.constant 0 : index
    %c0_4 = arith.constant 0 : index
    %c0_5 = arith.constant 0 : index
    %5 = vector.load %arg3[%c0_3, %c0_4, %c0_5] : memref<1x512x128xbf16, #tpu.memory_space<vmem>>, vector<1x512x128xbf16>
    %6 = vector.shape_cast %5 : vector<1x512x128xbf16> to vector<512x128xbf16>
    %cst = arith.constant dense<0.000000e+00> : vector<512x128xf32>
    %7 = tpu.matmul %4, %6, %cst {dimension_numbers = #tpu.dot_dimension_numbers<[1], [0], [0], [1], [0, 0, 1, 1], [], []>} : vector<512x512xbf16>, vector<512x128xbf16>, vector<512x128xf32> -> vector<512x128xf32>
    %c0_6 = arith.constant 0 : index
    %c0_7 = arith.constant 0 : index
    %c0_8 = arith.constant 0 : index
    %8 = vector.load %arg4[%c0_6, %c0_7, %c0_8] : memref<1x512x128xf32, #tpu.memory_space<vmem>>, vector<1x512x128xf32>
    %9 = vector.shape_cast %8 : vector<1x512x128xf32> to vector<512x128xf32>
    %10 = vector.shape_cast %7 : vector<512x128xf32> to vector<1x512x128xf32>
    tpu.vector_store %arg4[%c0_6, %c0_7, %c0_8], %10 {strides = array<i32>} : memref<1x512x128xf32, #tpu.memory_space<vmem>>, vector<1x512x128xf32>,
    %c0_9 = arith.constant 0 : index
    %c0_10 = arith.constant 0 : index
    %c0_11 = arith.constant 0 : index
    %11 = vector.load %arg5[%c0_9, %c0_10, %c0_11] : memref<1x1x128xf32, #tpu.memory_space<vmem>>, vector<1x1x128xf32>
    %12 = vector.shape_cast %11 : vector<1x1x128xf32> to vector<1x128xf32>
    %cst_12 = arith.constant dense<0.000000e+00> : vector<128xf32>
    %13 = vector.multi_reduction <add>, %7, %cst_12 [0] : vector<512x128xf32> to vector<128xf32>
    %14 = vector.shape_cast %13 : vector<128xf32> to vector<1x128xf32>
    %15 = arith.addf %12, %14 : vector<1x128xf32>
    %c0_13 = arith.constant 0 : index
    %c0_14 = arith.constant 0 : index
    %c0_15 = arith.constant 0 : index
    %16 = vector.load %arg5[%c0_13, %c0_14, %c0_15] : memref<1x1x128xf32, #tpu.memory_space<vmem>>, vector<1x1x128xf32>
    %17 = vector.shape_cast %16 : vector<1x1x128xf32> to vector<1x128xf32>
    %18 = vector.shape_cast %15 : vector<1x128xf32> to vector<1x1x128xf32>
    tpu.vector_store %arg5[%c0_13, %c0_14, %c0_15], %18 {strides = array<i32>} : memref<1x1x128xf32, #tpu.memory_space<vmem>>, vector<1x1x128xf32>,
    %c0_16 = arith.constant 0 : index
    %c0_17 = arith.constant 0 : index
    %c0_18 = arith.constant 0 : index
    %19 = vector.load %arg6[%c0_16, %c0_17, %c0_18] : memref<1x1x128xf32, #tpu.memory_space<vmem>>, vector<1x1x128xf32>
    %20 = vector.shape_cast %19 : vector<1x1x128xf32> to vector<1x128xf32>
    %21 = arith.mulf %7, %7 : vector<512x128xf32>
    %cst_19 = arith.constant dense<0.000000e+00> : vector<128xf32>
    %22 = vector.multi_reduction <add>, %21, %cst_19 [0] : vector<512x128xf32> to vector<128xf32>
    %23 = vector.shape_cast %22 : vector<128xf32> to vector<1x128xf32>
    %24 = arith.addf %20, %23 : vector<1x128xf32>
    %c0_20 = arith.constant 0 : index
    %c0_21 = arith.constant 0 : index
    %c0_22 = arith.constant 0 : index
    %25 = vector.load %arg6[%c0_20, %c0_21, %c0_22] : memref<1x1x128xf32, #tpu.memory_space<vmem>>, vector<1x1x128xf32>
    %26 = vector.shape_cast %25 : vector<1x1x128xf32> to vector<1x128xf32>
    %27 = vector.shape_cast %24 : vector<1x128xf32> to vector<1x1x128xf32>
    tpu.vector_store %arg6[%c0_20, %c0_21, %c0_22], %27 {strides = array<i32>} : memref<1x1x128xf32, #tpu.memory_space<vmem>>, vector<1x1x128xf32>,
    return
  }
  func.func @transform_0(%arg0: i32, %arg1: i32) -> (i32, i32, i32) {
    %c0_i32 = arith.constant 0 : i32
    %c0_i32_0 = arith.constant 0 : i32
    return %arg0, %arg1, %c0_i32 : i32, i32, i32
  }
  func.func @transform_1(%arg0: i32, %arg1: i32) -> (i32, i32, i32) {
    %c0_i32 = arith.constant 0 : i32
    %c0_i32_0 = arith.constant 0 : i32
    %c0_i32_1 = arith.constant 0 : i32
    return %arg0, %c0_i32, %c0_i32_0 : i32, i32, i32
  }
  func.func @transform_2(%arg0: i32, %arg1: i32) -> (i32, i32, i32) {
    %c0_i32 = arith.constant 0 : i32
    %c0_i32_0 = arith.constant 0 : i32
    return %arg0, %arg1, %c0_i32 : i32, i32, i32
  }
  func.func @transform_3(%arg0: i32, %arg1: i32) -> (i32, i32, i32) {
    %c0_i32 = arith.constant 0 : i32
    %c0_i32_0 = arith.constant 0 : i32
    %c0_i32_1 = arith.constant 0 : i32
    return %arg0, %c0_i32, %c0_i32_0 : i32, i32, i32
  }
  func.func @transform_4(%arg0: i32, %arg1: i32) -> (i32, i32, i32) {
    %c0_i32 = arith.constant 0 : i32
    %c0_i32_0 = arith.constant 0 : i32
    %c0_i32_1 = arith.constant 0 : i32
    return %arg0, %c0_i32, %c0_i32_0 : i32, i32, i32
  }
}

module attributes {stable_mosaic.version = 11 : i64} {
  func.func @_scale_shift_act_kernel(%arg0: i32, %arg1: memref<2048x128xf32, #tpu.memory_space<vmem>>, %arg2: memref<1x128xf32, #tpu.memory_space<vmem>>, %arg3: memref<1x128xf32, #tpu.memory_space<vmem>>, %arg4: memref<2048x128xbf16, #tpu.memory_space<vmem>>) attributes {dimension_semantics = [#tpu.dimension_semantics<parallel>], iteration_bounds = array<i64: 1>, scalar_prefetch = 0 : i64, scratch_operands = 0 : i64, tpu.core_type = #tpu.core_type<tc>, window_params = [{transform_indices = @transform_0, window_bounds = array<i64: 2048, 128>}, {pipeline_mode = #tpu.pipeline_mode<synchronous>, transform_indices = @transform_1, window_bounds = array<i64: 1, 128>}, {pipeline_mode = #tpu.pipeline_mode<synchronous>, transform_indices = @transform_2, window_bounds = array<i64: 1, 128>}, {transform_indices = @transform_3, window_bounds = array<i64: 2048, 128>}]} {
    %c0 = arith.constant 0 : index
    %c0_0 = arith.constant 0 : index
    %0 = vector.load %arg1[%c0, %c0_0] : memref<2048x128xf32, #tpu.memory_space<vmem>>, vector<2048x128xf32>
    %c0_1 = arith.constant 0 : index
    %c0_2 = arith.constant 0 : index
    %1 = vector.load %arg2[%c0_1, %c0_2] : memref<1x128xf32, #tpu.memory_space<vmem>>, vector<1x128xf32>
    %2 = vector.broadcast %1 : vector<1x128xf32> to vector<2048x128xf32>
    %3 = arith.mulf %0, %2 : vector<2048x128xf32>
    %c0_3 = arith.constant 0 : index
    %c0_4 = arith.constant 0 : index
    %4 = vector.load %arg3[%c0_3, %c0_4] : memref<1x128xf32, #tpu.memory_space<vmem>>, vector<1x128xf32>
    %5 = vector.broadcast %4 : vector<1x128xf32> to vector<2048x128xf32>
    %6 = arith.addf %3, %5 : vector<2048x128xf32>
    %cst = arith.constant 0.000000e+00 : f32
    %7 = vector.broadcast %cst : f32 to vector<2048x128xf32>
    %8 = arith.maximumf %6, %7 : vector<2048x128xf32>
    %9 = arith.truncf %8 : vector<2048x128xf32> to vector<2048x128xbf16>
    %c0_5 = arith.constant 0 : index
    %c0_6 = arith.constant 0 : index
    %10 = vector.load %arg4[%c0_5, %c0_6] : memref<2048x128xbf16, #tpu.memory_space<vmem>>, vector<2048x128xbf16>
    tpu.vector_store %arg4[%c0_5, %c0_6], %9 {strides = array<i32>} : memref<2048x128xbf16, #tpu.memory_space<vmem>>, vector<2048x128xbf16>,
    return
  }
  func.func @transform_0(%arg0: i32) -> (i32, i32) {
    %c0_i32 = arith.constant 0 : i32
    %c0_i32_0 = arith.constant 0 : i32
    return %arg0, %c0_i32 : i32, i32
  }
  func.func @transform_1(%arg0: i32) -> (i32, i32) {
    %c0_i32 = arith.constant 0 : i32
    %c0_i32_0 = arith.constant 0 : i32
    %c0_i32_1 = arith.constant 0 : i32
    return %c0_i32, %c0_i32_0 : i32, i32
  }
  func.func @transform_2(%arg0: i32) -> (i32, i32) {
    %c0_i32 = arith.constant 0 : i32
    %c0_i32_0 = arith.constant 0 : i32
    %c0_i32_1 = arith.constant 0 : i32
    return %c0_i32, %c0_i32_0 : i32, i32
  }
  func.func @transform_3(%arg0: i32) -> (i32, i32) {
    %c0_i32 = arith.constant 0 : i32
    %c0_i32_0 = arith.constant 0 : i32
    return %arg0, %c0_i32 : i32, i32
  }
}

module attributes {stable_mosaic.version = 11 : i64} {
  func.func @_matmul_bias_act_kernel(%arg0: i32, %arg1: i32, %arg2: memref<1x2048x512xbf16, #tpu.memory_space<vmem>>, %arg3: memref<1x512x128xbf16, #tpu.memory_space<vmem>>, %arg4: memref<1x128xf32, #tpu.memory_space<vmem>>, %arg5: memref<1x2048x128xf32, #tpu.memory_space<vmem>>) attributes {dimension_semantics = [#tpu.dimension_semantics<parallel>, #tpu.dimension_semantics<parallel>], iteration_bounds = array<i64: 4, 1>, scalar_prefetch = 0 : i64, scratch_operands = 0 : i64, tpu.core_type = #tpu.core_type<tc>, window_params = [{transform_indices = @transform_0, window_bounds = array<i64: 1, 2048, 512>}, {transform_indices = @transform_1, window_bounds = array<i64: 1, 512, 128>}, {pipeline_mode = #tpu.pipeline_mode<synchronous>, transform_indices = @transform_2, window_bounds = array<i64: 1, 128>}, {transform_indices = @transform_3, window_bounds = array<i64: 1, 2048, 128>}]} {
    %c0 = arith.constant 0 : index
    %c0_0 = arith.constant 0 : index
    %c0_1 = arith.constant 0 : index
    %0 = vector.load %arg2[%c0, %c0_0, %c0_1] : memref<1x2048x512xbf16, #tpu.memory_space<vmem>>, vector<1x2048x512xbf16>
    %1 = vector.shape_cast %0 : vector<1x2048x512xbf16> to vector<2048x512xbf16>
    %c0_2 = arith.constant 0 : index
    %c0_3 = arith.constant 0 : index
    %c0_4 = arith.constant 0 : index
    %2 = vector.load %arg3[%c0_2, %c0_3, %c0_4] : memref<1x512x128xbf16, #tpu.memory_space<vmem>>, vector<1x512x128xbf16>
    %3 = vector.shape_cast %2 : vector<1x512x128xbf16> to vector<512x128xbf16>
    %cst = arith.constant dense<0.000000e+00> : vector<2048x128xf32>
    %4 = tpu.matmul %1, %3, %cst {dimension_numbers = #tpu.dot_dimension_numbers<[1], [0], [0], [1], [0, 0, 1, 1], [], []>} : vector<2048x512xbf16>, vector<512x128xbf16>, vector<2048x128xf32> -> vector<2048x128xf32>
    %c0_5 = arith.constant 0 : index
    %c0_6 = arith.constant 0 : index
    %5 = vector.load %arg4[%c0_5, %c0_6] : memref<1x128xf32, #tpu.memory_space<vmem>>, vector<1x128xf32>
    %6 = vector.broadcast %5 : vector<1x128xf32> to vector<2048x128xf32>
    %7 = arith.addf %4, %6 : vector<2048x128xf32>
    %8 = math.tanh %7 : vector<2048x128xf32>
    %c0_7 = arith.constant 0 : index
    %c0_8 = arith.constant 0 : index
    %c0_9 = arith.constant 0 : index
    %9 = vector.load %arg5[%c0_7, %c0_8, %c0_9] : memref<1x2048x128xf32, #tpu.memory_space<vmem>>, vector<1x2048x128xf32>
    %10 = vector.shape_cast %9 : vector<1x2048x128xf32> to vector<2048x128xf32>
    %11 = vector.shape_cast %8 : vector<2048x128xf32> to vector<1x2048x128xf32>
    tpu.vector_store %arg5[%c0_7, %c0_8, %c0_9], %11 {strides = array<i32>} : memref<1x2048x128xf32, #tpu.memory_space<vmem>>, vector<1x2048x128xf32>,
    return
  }
  func.func @transform_0(%arg0: i32, %arg1: i32) -> (i32, i32, i32) {
    %c0_i32 = arith.constant 0 : i32
    %c0_i32_0 = arith.constant 0 : i32
    return %arg0, %arg1, %c0_i32 : i32, i32, i32
  }
  func.func @transform_1(%arg0: i32, %arg1: i32) -> (i32, i32, i32) {
    %c0_i32 = arith.constant 0 : i32
    %c0_i32_0 = arith.constant 0 : i32
    %c0_i32_1 = arith.constant 0 : i32
    return %arg0, %c0_i32, %c0_i32_0 : i32, i32, i32
  }
  func.func @transform_2(%arg0: i32, %arg1: i32) -> (i32, i32) {
    %c0_i32 = arith.constant 0 : i32
    %c0_i32_0 = arith.constant 0 : i32
    %c0_i32_1 = arith.constant 0 : i32
    return %c0_i32, %c0_i32_0 : i32, i32
  }
  func.func @transform_3(%arg0: i32, %arg1: i32) -> (i32, i32, i32) {
    %c0_i32 = arith.constant 0 : i32
    %c0_i32_0 = arith.constant 0 : i32
    return %arg0, %arg1, %c0_i32 : i32, i32, i32
  }
}

</mosaic_0001>

<bundles_post_ra>
// kernel: generator_forward.10
= control target key start
LH: loop header
LB: loop body
LE: loop exit
PB: predicated region body
PF: predicated region fallthrough
CT: control target
= control target key end

     0   :  { %s141_s0 = inlined_call_operand.vmem [shape: f32[32,128], index: 0, kind: input, shape index: {}]   ;;  %s142_s1 = inlined_call_operand.vmem [shape: f32[1,128], index: 1, kind: input, shape index: {}]   ;;  %s143_s2 = inlined_call_operand.vmem [shape: f32[1,128], index: 2, kind: input, shape index: {}]   ;;  %s144_s3 = inlined_call_operand.vmem [shape: bf16[32,128], index: 3, kind: output, shape index: {}]  }
   0x1   :  { %v14_v0 = vld [vmem:[%s141_s0] sm:$0xff]  ;;  %v15_v1 = vld [vmem:[%s141_s0 + $0x8] sm:$0xff]  ;;  %v16_v6 = vld [vmem:[%s141_s0 + $0x10] sm:$0xff] }
   0x2   :  { %v76_v2 = vld [vmem:[%s142_s1] ss:$0 sm:$0xff]  ;;  %v17_v7 = vld [vmem:[%s141_s0 + $0x18] sm:$0xff] }
   0x3   :  { %v25_v3 = vmul.f32 %v76_v2, %v14_v0  ;;  %v26_v4 = vmul.f32 %v76_v2, %v15_v1  ;;  %v77_v5 = vld [vmem:[%s143_s2] ss:$0 sm:$0xff]  ;;  %v27_v8 = vmul.f32 %v76_v2, %v16_v6  ;;  %v28_v9 = vmul.f32 %v76_v2, %v17_v7 }
   0x5   :  { %v36_v10 = vadd.f32 %v77_v5, %v25_v3  ;;  %v37_v11 = vadd.f32 %v77_v5, %v26_v4  ;;  %v38_v12 = vadd.f32 %v77_v5, %v27_v8  ;;  %v39_v13 = vadd.f32 %v77_v5, %v28_v9 }
   0x7   :  { %vm40_vm0 = vcmp.ge.f32.partialorder %v36_v10, 0.0  ;;  %vm41_vm1 = vcmp.ge.f32.partialorder %v37_v11, 0.0  ;;  %v44_v14 = vmul.f32 0.2, %v36_v10  ;;  %v45_v15 = vmul.f32 0.2, %v37_v11 }
   0x8   :  { %vm42_vm2 = vcmp.ge.f32.partialorder %v38_v12, 0.0  ;;  %vm43_vm3 = vcmp.ge.f32.partialorder %v39_v13, 0.0  ;;  %v46_v16 = vmul.f32 0.2, %v38_v12  ;;  %v47_v17 = vmul.f32 0.2, %v39_v13 }
   0x9   :  { %v48_v18 = vsel %vm40_vm0, %v36_v10, %v44_v14  ;;  %v49_v19 = vsel %vm41_vm1, %v37_v11, %v45_v15 }
   0xa   :  { %v89_v20 = vpack.c.bf16 %v49_v19, %v48_v18  ;;  %v50_v21 = vsel %vm42_vm2, %v38_v12, %v46_v16  ;;  %v51_v22 = vsel %vm43_vm3, %v39_v13, %v47_v17 }
   0xb   :  { %v94_v23 = vpack.c.bf16 %v51_v22, %v50_v21 }
   0xc   :  { %90 = vst [vmem:[%s144_s3] sm:$0xff] %v89_v20  }
   0xd   :  { %96 = vst [vmem:[%s144_s3 + $0x8] sm:$0xff] %v94_v23  }

// kernel: generator_forward.9
= control target key start
LH: loop header
LB: loop body
LE: loop exit
PB: predicated region body
PF: predicated region fallthrough
CT: control target
= control target key end

     0   :  { %s573_s15 = smov 0   ;;  %s575_s16 = smov 0   ;;  %s625_s0 = inlined_call_operand.vmem [shape: bf16[16,2,16], index: 0, kind: input, shape index: {}]   ;;  %s626_s1 = inlined_call_operand.vmem [shape: bf16[16,16,128], index: 1, kind: input, shape index: {}]   ;;  %s627_s2 = inlined_call_operand.vmem [shape: f32[16,2,128], index: 2, kind: output, shape index: {0}]   ;;  %s628_s3 = inlined_call_operand.vmem [shape: f32[16,1,128], index: 3, kind: output, shape index: {1}]   ;;  %s629_s4 = inlined_call_operand.vmem [shape: f32[16,1,128], index: 4, kind: output, shape index: {2}]  }
   0x1   :  { %s577_s17 = smov 0  }
   0x2 LB: > { %s27_s18 = sadd.s32 1, %s540_s16  ;;  %p478_p0 = scmp.ge.s32.totalorder %s544_s17, 1  ;;  %s544_s17 = sphi %s577_s17, %s15_s17   ;;  %s540_s16 = sphi %s575_s16, %s631_s16   ;;  %s536_s15 = sphi %s573_s15, %s630_s15  }
   0x3   : > { %p29_p1 = scmp.ge.s32.totalorder %s27_s18, 16  ;;  %p194_p2 = scmp.lt.s32.totalorder %s544_s17, 17 }
   0x5   : > { %s633_s18 = smov (%p29_p1, %s27_s18), 0  ;;  %p195_p3 = pnand %p478_p0, %p194_p2 }
   0x6   : > { %p234_p4 = scmp.lt.s32.totalorder (!%p195_p3), %s536_s15, 15  ;;  %v546_v0 = vmov (!%p195_p3), 0.0   ;;  %vm547_vm0 = vmmov (!%p195_p3), 0   ;;  %vm274_vm1 = vcmask (!%p195_p3), 130048   ;;  %vm320_vm2 = vcmask (!%p195_p3), 1041408  }
   0x7   : > { %198 = sbr.rel (%p195_p3) target bundleno = 252 (0xfc), region = 28  ;;  %489 = vmatprep.subr.bf16.mxu0 (!%p195_p3), %v546_v0  ;;  %491 = vmatprep.mubr.msk.bf16.mxu0 (!%p195_p3), %vm547_vm0, %v546_v0 }
   0xe   : > { %s635_s15 = smov (!%p234_p4, %s536_s15), 15 }
   0xf   : > { %s594_s21 = scalar_lea.vmem %s628_s3, %s635_s15  ;;  %s599_s24 = scalar_lea.vmem %s629_s4, %s635_s15 }
  0x10   : > { %263 = vst [vmem:[%s594_s21] sm:$0x1] %v546_v0  ;;  %264 = vst [vmem:[%s599_s24] sm:$0x1] %v546_v0  ;;  %s486_s25 = sshll.u32 %s635_s15, 3  ;;  %s239_s5 = scalar_lea.vmem %s625_s0, %s635_s15 }
  0x11   : > { %s244_s28 = scalar_lea.vmem %s626_s1, %s486_s25  ;;  %v265_v2 = vld [vmem:[%s239_s5] sm:$0x1]  ;;  %s481_s6 = sshll.u32 %s635_s15, 1 }
  0x12   : > { %v521_v1 = vld [vmem:[%s244_s28] sm:$0xff]   ;;  %s251_s9 = scalar_lea.vmem %s627_s2, %s481_s6 }
  0x13   : > { %490 = vmatpush3.bf16.msra.mxu0 %v521_v1 }
  0x16   : > { %492 = vmatmul.mubr.msk.bf16.vlgmr.msra.gmra.mrb[0].mxu0 %vm274_vm1, %v265_v2 }
  0x17   : > { %v319_v19 = vld [vmem:[%s594_s21] sm:$0x1] }
  0x18   : > { %v330_v22 = vld [vmem:[%s599_s24] sm:$0x1] }
  0xe9   : > { %v312_v3 = vpop.f32.mrb[0].mxu0 }
  0xea   : > { %318 = vst [vmem:[%s251_s9] sm:$0x3] %v312_v3  ;;  %v321_v4 = vsel %vm320_vm2, %v312_v3, 0.0  ;;  %v331_v5 = vmul.f32 %v312_v3, %v312_v3  ;;  %v493_v6 = vpop.f32.mrb[1].mxu0 }
  0xeb   : > { %v322_v7 = vrot.slane %v321_v4, 4  ;;  %v315_v8 = vpop.f32.mrb[2].mxu0 }
  0xec   : > { %v332_v9 = vsel %vm320_vm2, %v331_v5, 0.0  ;;  %v494_v10 = vpop.f32.mrb[3].mxu0 }
  0xed   : > { %v323_v11 = vadd.f32 %v322_v7, %v321_v4  ;;  %v333_v12 = vrot.slane %v332_v9, 4 }
  0xef   : > { %v324_v13 = vrot.slane %v323_v11, 2  ;;  %v334_v14 = vadd.f32 %v333_v12, %v332_v9 }
  0xf1   : > { %v325_v15 = vadd.f32 %v324_v13, %v323_v11  ;;  %v335_v16 = vrot.slane %v334_v14, 2 }
  0xf3   : > { %v326_v17 = vrot.slane %v325_v15, 1  ;;  %v336_v18 = vadd.f32 %v335_v16, %v334_v14 }
  0xf5   : > { %v327_v20 = vadd.f32 %v326_v17, %v325_v15  ;;  %v337_v21 = vrot.slane %v336_v18, 1 }
  0xf7   : > { %v328_v23 = vadd.f32 %v327_v20, %v319_v19  ;;  %v338_v24 = vadd.f32 %v337_v21, %v336_v18 }
  0xf9   : > { %329 = vst [vmem:[%s594_s21] sm:$0x1] %v328_v23  ;;  %v339_v25 = vadd.f32 %v338_v24, %v330_v22 }
  0xfb   : > { %340 = vst [vmem:[%s599_s24] sm:$0x1] %v339_v25 }
  0xfc PF: > { %s15_s17 = sadd.s32 1, %s544_s17   ;;  %s630_s15 = smov %s540_s16 }
  0xfd   : > { %p12_p5 = scmp.ge.s32.totalorder %s15_s17, 18   ;;  %s631_s16 = smov %s633_s18 }
  0xff   :  { %14 = sbr.rel (!%p12_p5) target bundleno = 2 (0x2), region = 89 }

// kernel: generator_forward.11
= control target key start
LH: loop header
LB: loop body
LE: loop exit
PB: predicated region body
PF: predicated region fallthrough
CT: control target
= control target key end

     0   :  { %s1101_s15 = smov 0   ;;  %s1103_s16 = smov 0   ;;  %s1194_s0 = inlined_call_operand.vmem [shape: bf16[4,32,512], index: 0, kind: input, shape index: {}]   ;;  %s1195_s1 = inlined_call_operand.vmem [shape: bf16[4,512,128], index: 1, kind: input, shape index: {}]   ;;  %s1196_s2 = inlined_call_operand.vmem [shape: f32[4,32,128], index: 2, kind: output, shape index: {0}]   ;;  %s1197_s3 = inlined_call_operand.vmem [shape: f32[4,1,128], index: 3, kind: output, shape index: {1}]   ;;  %s1198_s4 = inlined_call_operand.vmem [shape: f32[4,1,128], index: 4, kind: output, shape index: {2}]  }
   0x1   :  { %s1105_s17 = smov 0  }
   0x2 LB: > { %s27_s18 = sadd.s32 1, %s1069_s16  ;;  %p874_p0 = scmp.ge.s32.totalorder %s1073_s17, 1  ;;  %s1073_s17 = sphi %s1105_s17, %s15_s17   ;;  %s1069_s16 = sphi %s1103_s16, %s1200_s16   ;;  %s1065_s15 = sphi %s1101_s15, %s1199_s15  }
   0x3   : > { %p29_p1 = scmp.ge.s32.totalorder %s27_s18, 4  ;;  %p199_p2 = scmp.lt.s32.totalorder %s1073_s17, 5 }
   0x5   : > { %s1202_s18 = smov (%p29_p1, %s27_s18), 0  ;;  %p200_p3 = pnand %p874_p0, %p199_p2 }
   0x6   : > { %p246_p4 = scmp.lt.s32.totalorder (!%p200_p3), %s1065_s15, 3  ;;  %v1075_v40 = vmov (!%p200_p3), 0.0  }
   0x7   : > { %203 = sbr.rel (%p200_p3) target bundleno = 298 (0x12a), region = 28 }
   0xe   : > { %s1204_s15 = smov (!%p246_p4, %s1065_s15), 3 }
   0xf   : > { %s924_s19 = sshll.u32 %s1204_s15, 8  ;;  %s923_s23 = sshll.u32 %s1204_s15, 6 }
  0x10   : > { %s1125_s22 = scalar_lea.vmem %s1195_s1, %s924_s19  ;;  %s254_s26 = scalar_lea.vmem %s1194_s0, %s923_s23 }
  0x11   : > { %v1007_v0 = vld [vmem:[%s1125_s22 + $0x40] sm:$0xff]   ;;  %v1011_v4 = vld [vmem:[%s1125_s22 + $0x48] sm:$0xff]   ;;  %v1015_v8 = vld [vmem:[%s1125_s22 + $0x50] sm:$0xff]   ;;  %s1167_s29 = scalar_lea.vmem %s1197_s3, %s1204_s15  ;;  %s1173_s6 = scalar_lea.vmem %s1198_s4, %s1204_s15 }
  0x12   : > { %v1008_v1 = vld [vmem:[%s1125_s22 + $0xc0] sm:$0xff]   ;;  %926 = vmatprep.subr.bf16.mxu0 %v1007_v0  ;;  %v1012_v5 = vld [vmem:[%s1125_s22 + $0xc8] sm:$0xff]   ;;  %v1016_v9 = vld [vmem:[%s1125_s22 + $0xd0] sm:$0xff]   ;;  %282 = vst [vmem:[%s1167_s29] sm:$0x1] %v1075_v40  ;;  %s925_s7 = sshll.u32 %s1204_s15, 5 }
  0x13   : > { %v1009_v2 = vld [vmem:[%s1125_s22] sm:$0xff]   ;;  %954 = vmatprep.subr.bf16.mxu1 %v1008_v1  ;;  %v1013_v6 = vld [vmem:[%s1125_s22 + $0x8] sm:$0xff]   ;;  %v1017_v10 = vld [vmem:[%s1125_s22 + $0x10] sm:$0xff]   ;;  %283 = vst [vmem:[%s1173_s6] sm:$0x1] %v1075_v40  ;;  %s269_s10 = scalar_lea.vmem %s1196_s2, %s925_s7 }
  0x14   : > { %v1010_v3 = vld [vmem:[%s1125_s22 + $0x80] sm:$0xff]   ;;  %927 = vmatpush3.bf16.msra.mxu0 %v1009_v2  ;;  %v1014_v7 = vld [vmem:[%s1125_s22 + $0x88] sm:$0xff]   ;;  %v1018_v11 = vld [vmem:[%s1125_s22 + $0x90] sm:$0xff]  }
  0x15   : > { %955 = vmatpush3.bf16.msra.mxu1 %v1010_v3  ;;  %928 = vmatprep.subr.bf16.mxu0 %v1011_v4  ;;  %v1019_v12 = vld [vmem:[%s1125_s22 + $0x58] sm:$0xff]   ;;  %v1023_v16 = vld [vmem:[%s1125_s22 + $0x60] sm:$0xff]   ;;  %v1027_v20 = vld [vmem:[%s1125_s22 + $0x68] sm:$0xff]  }
  0x16   : > { %956 = vmatprep.subr.bf16.mxu1 %v1012_v5  ;;  %v1020_v13 = vld [vmem:[%s1125_s22 + $0xd8] sm:$0xff]   ;;  %v1024_v17 = vld [vmem:[%s1125_s22 + $0xe0] sm:$0xff]   ;;  %v1028_v21 = vld [vmem:[%s1125_s22 + $0xe8] sm:$0xff]  }
  0x17   : > { %v1021_v14 = vld [vmem:[%s1125_s22 + $0x18] sm:$0xff]   ;;  %v1025_v18 = vld [vmem:[%s1125_s22 + $0x20] sm:$0xff]   ;;  %v1029_v22 = vld [vmem:[%s1125_s22 + $0x28] sm:$0xff]  }
  0x18   : > { %929 = vmatpush3.bf16.msra.mxu0 %v1013_v6  ;;  %v1022_v15 = vld [vmem:[%s1125_s22 + $0x98] sm:$0xff]   ;;  %v1026_v19 = vld [vmem:[%s1125_s22 + $0xa0] sm:$0xff]   ;;  %v1030_v23 = vld [vmem:[%s1125_s22 + $0xa8] sm:$0xff]  }
  0x19   : > { %957 = vmatpush3.bf16.msra.mxu1 %v1014_v7  ;;  %930 = vmatprep.subr.bf16.mxu0 %v1015_v8  ;;  %v1031_v24 = vld [vmem:[%s1125_s22 + $0x70] sm:$0xff]   ;;  %v1035_v28 = vld [vmem:[%s1125_s22 + $0x78] sm:$0xff]  }
  0x1a   : > { %958 = vmatprep.subr.bf16.mxu1 %v1016_v9  ;;  %v1032_v25 = vld [vmem:[%s1125_s22 + $0xf0] sm:$0xff]   ;;  %v1036_v29 = vld [vmem:[%s1125_s22 + $0xf8] sm:$0xff]  }
  0x1b   : > { %v1033_v26 = vld [vmem:[%s1125_s22 + $0x30] sm:$0xff]   ;;  %v1037_v30 = vld [vmem:[%s1125_s22 + $0x38] sm:$0xff]  }
  0x1c   : > { %931 = vmatpush3.bf16.msra.mxu0 %v1017_v10  ;;  %v1034_v27 = vld [vmem:[%s1125_s22 + $0xb0] sm:$0xff]   ;;  %v1038_v31 = vld [vmem:[%s1125_s22 + $0xb8] sm:$0xff]  }
  0x1d   : > { %959 = vmatpush3.bf16.msra.mxu1 %v1018_v11  ;;  %932 = vmatprep.subr.bf16.mxu0 %v1019_v12  ;;  %v1039_v32 = vld [vmem:[%s254_s26] ss:$16 sps:$4 sm:$0xff]   ;;  %v1041_v33 = vld [vmem:[%s254_s26 + $0x4] ss:$16 sps:$4 sm:$0xff]   ;;  %v1042_v34 = vld [vmem:[%s254_s26 + $0x8] ss:$16 sps:$4 sm:$0xff]  }
  0x1e   : > { %960 = vmatprep.subr.bf16.mxu1 %v1020_v13  ;;  %v1044_v35 = vld [vmem:[%s254_s26 + $0xc] ss:$16 sps:$4 sm:$0xff]   ;;  %620 = vmatprep.mubr.bf16.mxu0 %v1041_v33  ;;  %v1045_v36 = vld [vmem:[%s254_s26 + $0x24] ss:$16 sps:$4 sm:$0xff]   ;;  %v1049_v38 = vld [vmem:[%s254_s26 + $0x20] ss:$16 sps:$4 sm:$0xff]  }
  0x1f   : > { %669 = vmatprep.mubr.bf16.mxu1 %v1044_v35  ;;  %v1047_v37 = vld [vmem:[%s254_s26 + $0x2c] ss:$16 sps:$4 sm:$0xff]   ;;  %v1050_v39 = vld [vmem:[%s254_s26 + $0x28] ss:$16 sps:$4 sm:$0xff]  }
  0x20   : > { %933 = vmatpush3.bf16.msra.mxu0 %v1021_v14 }
  0x21   : > { %961 = vmatpush3.bf16.msra.mxu1 %v1022_v15  ;;  %934 = vmatprep.subr.bf16.mxu0 %v1023_v16 }
  0x22   : > { %962 = vmatprep.subr.bf16.mxu1 %v1024_v17 }
  0x24   : > { %935 = vmatpush3.bf16.msra.mxu0 %v1025_v18 }
  0x25   : > { %963 = vmatpush3.bf16.msra.mxu1 %v1026_v19  ;;  %936 = vmatprep.subr.bf16.mxu0 %v1027_v20 }
  0x26   : > { %964 = vmatprep.subr.bf16.mxu1 %v1028_v21 }
  0x28   : > { %937 = vmatpush3.bf16.msra.mxu0 %v1029_v22 }
  0x29   : > { %965 = vmatpush3.bf16.msra.mxu1 %v1030_v23  ;;  %938 = vmatprep.subr.bf16.mxu0 %v1031_v24  ;;  %v690_v24 = vld [vmem:[%s1167_s29] sm:$0x1] }
  0x2a   : > { %966 = vmatprep.subr.bf16.mxu1 %v1032_v25 }
  0x2c   : > { %939 = vmatpush3.bf16.msra.mxu0 %v1033_v26 }
  0x2d   : > { %967 = vmatpush3.bf16.msra.mxu1 %v1034_v27  ;;  %940 = vmatprep.subr.bf16.mxu0 %v1035_v28  ;;  %v702_v27 = vld [vmem:[%s1173_s6] sm:$0x1] }
  0x2e   : > { %968 = vmatprep.subr.bf16.mxu1 %v1036_v29 }
  0x30   : > { %941 = vmatpush3.bf16.msra.mxu0 %v1037_v30 }
  0x31   : > { %969 = vmatpush3.bf16.msra.mxu1 %v1038_v31 }
  0x33   : > { %621 = vmatmul.mubr.bf16.vlgmr.msra.gmra.mrb[0].mxu0 %v1039_v32 }
  0x34   : > { %670 = vmatmul.mubr.bf16.vlgmr.msra.gmra.mrb[0].mxu1 %v1042_v34  ;;  %628 = vmatprep.mubr.bf16.mxu0 %v1045_v36 }
  0x35   : > { %677 = vmatprep.mubr.bf16.mxu1 %v1047_v37 }
  0x3b   : > { %629 = vmatmul.mubr.bf16.gmra.mrb[4].mxu0 %v1049_v38 }
  0x3c   : > { %678 = vmatmul.mubr.bf16.gmra.mrb[4].mxu1 %v1050_v39 }
 0x106   : > { %v942_v41 = vpop.f32.mrb[0].mxu0 }
 0x107   : > { %v970_v42 = vpop.f32.mrb[0].mxu1  ;;  %v943_v43 = vpop.f32.mrb[1].mxu0 }
 0x108   : > { %v944_v44 = vadd.f32 %v943_v43, %v942_v41  ;;  %v971_v45 = vpop.f32.mrb[1].mxu1  ;;  %v945_v46 = vpop.f32.mrb[2].mxu0 }
 0x109   : > { %v972_v47 = vadd.f32 %v971_v45, %v970_v42  ;;  %v973_v48 = vpop.f32.mrb[2].mxu1  ;;  %v946_v49 = vpop.f32.mrb[3].mxu0 }
 0x10a   : > { %v947_v50 = vadd.f32 %v946_v49, %v945_v46  ;;  %v974_v51 = vpop.f32.mrb[3].mxu1 }
 0x10b   : > { %v672_v52 = vadd.f32 %v972_v47, %v944_v44  ;;  %v975_v53 = vadd.f32 %v974_v51, %v973_v48 }
 0x10d   : > { %686 = vst [vmem:[%s269_s10] sm:$0xff] %v672_v52  ;;  %v675_v54 = vadd.f32 %v975_v53, %v947_v50  ;;  %v703_v56 = vmul.f32 %v672_v52, %v672_v52 }
 0x10e   : > { %v948_v55 = vpop.f32.mrb[4].mxu0 }
 0x10f   : > { %687 = vst [vmem:[%s269_s10 + $0x8] sm:$0xff] %v675_v54  ;;  %v691_v57 = vadd.f32 %v675_v54, %v672_v52  ;;  %v704_v58 = vmul.f32 %v675_v54, %v675_v54  ;;  %v976_v59 = vpop.f32.mrb[4].mxu1  ;;  %v949_v60 = vpop.f32.mrb[5].mxu0 }
 0x110   : > { %v950_v61 = vadd.f32 %v949_v60, %v948_v55  ;;  %v977_v62 = vpop.f32.mrb[5].mxu1  ;;  %v951_v63 = vpop.f32.mrb[6].mxu0 }
 0x111   : > { %v707_v0 = vadd.f32 %v704_v58, %v703_v56  ;;  %v978_v1 = vadd.f32 %v977_v62, %v976_v59  ;;  %v979_v2 = vpop.f32.mrb[6].mxu1  ;;  %v952_v3 = vpop.f32.mrb[7].mxu0 }
 0x112   : > { %v953_v4 = vadd.f32 %v952_v3, %v951_v63  ;;  %v980_v5 = vpop.f32.mrb[7].mxu1 }
 0x113   : > { %v680_v6 = vadd.f32 %v978_v1, %v950_v61  ;;  %v981_v7 = vadd.f32 %v980_v5, %v979_v2 }
 0x115   : > { %688 = vst [vmem:[%s269_s10 + $0x10] sm:$0xff] %v680_v6  ;;  %v692_v8 = vadd.f32 %v691_v57, %v680_v6  ;;  %v705_v9 = vmul.f32 %v680_v6, %v680_v6  ;;  %v683_v10 = vadd.f32 %v981_v7, %v953_v4 }
 0x117   : > { %v708_v11 = vadd.f32 %v707_v0, %v705_v9  ;;  %689 = vst [vmem:[%s269_s10 + $0x18] sm:$0xff] %v683_v10  ;;  %v693_v12 = vadd.f32 %v692_v8, %v683_v10  ;;  %v706_v13 = vmul.f32 %v683_v10, %v683_v10 }
 0x119   : > { %v694_v14 = vrot.slane %v693_v12, 4  ;;  %v709_v15 = vadd.f32 %v708_v11, %v706_v13 }
 0x11b   : > { %v695_v16 = vadd.f32 %v694_v14, %v693_v12  ;;  %v710_v17 = vrot.slane %v709_v15, 4 }
 0x11d   : > { %v696_v18 = vrot.slane %v695_v16, 2  ;;  %v711_v19 = vadd.f32 %v710_v17, %v709_v15 }
 0x11f   : > { %v697_v20 = vadd.f32 %v696_v18, %v695_v16  ;;  %v712_v21 = vrot.slane %v711_v19, 2 }
 0x121   : > { %v698_v22 = vrot.slane %v697_v20, 1  ;;  %v713_v23 = vadd.f32 %v712_v21, %v711_v19 }
 0x123   : > { %v699_v25 = vadd.f32 %v698_v22, %v697_v20  ;;  %v714_v26 = vrot.slane %v713_v23, 1 }
 0x125   : > { %v700_v28 = vadd.f32 %v699_v25, %v690_v24  ;;  %v715_v29 = vadd.f32 %v714_v26, %v713_v23 }
 0x127   : > { %701 = vst [vmem:[%s1167_s29] sm:$0x1] %v700_v28  ;;  %v716_v30 = vadd.f32 %v715_v29, %v702_v27 }
 0x129   : > { %717 = vst [vmem:[%s1173_s6] sm:$0x1] %v716_v30 }
 0x12a PF: > { %s15_s17 = sadd.s32 1, %s1073_s17   ;;  %s1199_s15 = smov %s1069_s16 }
 0x12b   : > { %p12_p5 = scmp.ge.s32.totalorder %s15_s17, 6   ;;  %s1200_s16 = smov %s1202_s18 }
 0x12d   :  { %14 = sbr.rel (!%p12_p5) target bundleno = 2 (0x2), region = 89 }

// kernel: generator_forward.12
= control target key start
LH: loop header
LB: loop body
LE: loop exit
PB: predicated region body
PF: predicated region fallthrough
CT: control target
= control target key end

     0   :  { %s391_s0 = inlined_call_operand.vmem [shape: f32[128,128], index: 0, kind: input, shape index: {}]   ;;  %s392_s1 = inlined_call_operand.vmem [shape: f32[1,128], index: 1, kind: input, shape index: {}]   ;;  %s393_s2 = inlined_call_operand.vmem [shape: f32[1,128], index: 2, kind: input, shape index: {}]   ;;  %s394_s3 = inlined_call_operand.vmem [shape: bf16[128,128], index: 3, kind: output, shape index: {}]  }
   0x1   :  { %v14_v0 = vld [vmem:[%s391_s0] sm:$0xff]  ;;  %v15_v1 = vld [vmem:[%s391_s0 + $0x8] sm:$0xff]  ;;  %v16_v6 = vld [vmem:[%s391_s0 + $0x10] sm:$0xff] }
   0x2   :  { %v286_v2 = vld [vmem:[%s392_s1] ss:$0 sm:$0xff]  ;;  %v17_v7 = vld [vmem:[%s391_s0 + $0x18] sm:$0xff]  ;;  %v19_v11 = vld [vmem:[%s391_s0 + $0x28] sm:$0xff] }
   0x3   :  { %v37_v3 = vmul.f32 %v286_v2, %v14_v0  ;;  %v38_v4 = vmul.f32 %v286_v2, %v15_v1  ;;  %v293_v5 = vld [vmem:[%s393_s2] ss:$0 sm:$0xff]  ;;  %v39_v8 = vmul.f32 %v286_v2, %v16_v6  ;;  %v40_v9 = vmul.f32 %v286_v2, %v17_v7  ;;  %v20_v12 = vld [vmem:[%s391_s0 + $0x30] sm:$0xff]  ;;  %v21_v17 = vld [vmem:[%s391_s0 + $0x38] sm:$0xff] }
   0x4   :  { %v18_v10 = vld [vmem:[%s391_s0 + $0x20] sm:$0xff]  ;;  %v42_v16 = vmul.f32 %v286_v2, %v19_v11  ;;  %v43_v20 = vmul.f32 %v286_v2, %v20_v12  ;;  %v44_v21 = vmul.f32 %v286_v2, %v21_v17  ;;  %v23_v27 = vld [vmem:[%s391_s0 + $0x48] sm:$0xff]  ;;  %v24_v32 = vld [vmem:[%s391_s0 + $0x50] sm:$0xff] }
   0x5   :  { %v60_v13 = vadd.f32 %v293_v5, %v37_v3  ;;  %v61_v14 = vadd.f32 %v293_v5, %v38_v4  ;;  %v41_v15 = vmul.f32 %v286_v2, %v18_v10  ;;  %v62_v18 = vadd.f32 %v293_v5, %v39_v8  ;;  %v22_v22 = vld [vmem:[%s391_s0 + $0x40] sm:$0xff]  ;;  %v25_v33 = vld [vmem:[%s391_s0 + $0x58] sm:$0xff]  ;;  %v27_v39 = vld [vmem:[%s391_s0 + $0x68] sm:$0xff] }
   0x6   :  { %v63_v19 = vadd.f32 %v293_v5, %v40_v9  ;;  %v65_v26 = vadd.f32 %v293_v5, %v42_v16  ;;  %v66_v30 = vadd.f32 %v293_v5, %v43_v20  ;;  %v67_v31 = vadd.f32 %v293_v5, %v44_v21  ;;  %v26_v38 = vld [vmem:[%s391_s0 + $0x60] sm:$0xff]  ;;  %v28_v44 = vld [vmem:[%s391_s0 + $0x70] sm:$0xff]  ;;  %v29_v49 = vld [vmem:[%s391_s0 + $0x78] sm:$0xff] }
   0x7   :  { %v76_v23 = vmax.f32 %v60_v13, 0.0  ;;  %v77_v24 = vmax.f32 %v61_v14, 0.0  ;;  %v64_v25 = vadd.f32 %v293_v5, %v41_v15  ;;  %v78_v28 = vmax.f32 %v62_v18, 0.0 }
   0x8   :  { %v79_v29 = vmax.f32 %v63_v19, 0.0  ;;  %v81_v36 = vmax.f32 %v65_v26, 0.0  ;;  %v45_v37 = vmul.f32 %v286_v2, %v22_v22  ;;  %v82_v41 = vmax.f32 %v66_v30, 0.0 }
   0x9   :  { %v213_v34 = vpack.c.bf16 %v77_v24, %v76_v23  ;;  %v80_v35 = vmax.f32 %v64_v25, 0.0  ;;  %v83_v42 = vmax.f32 %v67_v31, 0.0  ;;  %v46_v43 = vmul.f32 %v286_v2, %v23_v27 }
   0xa   :  { %v218_v40 = vpack.c.bf16 %v79_v29, %v78_v28  ;;  %v68_v46 = vadd.f32 %v293_v5, %v45_v37  ;;  %v47_v47 = vmul.f32 %v286_v2, %v24_v32  ;;  %v48_v48 = vmul.f32 %v286_v2, %v25_v33 }
   0xb   :  { %214 = vst [vmem:[%s394_s3] sm:$0xff] %v213_v34   ;;  %v223_v45 = vpack.c.bf16 %v81_v36, %v80_v35  ;;  %v228_v50 = vpack.c.bf16 %v83_v42, %v82_v41  ;;  %v69_v51 = vadd.f32 %v293_v5, %v46_v43  ;;  %v49_v52 = vmul.f32 %v286_v2, %v26_v38 }
   0xc   :  { %250 = vst [vmem:[%s394_s3 + $0x8] sm:$0xff] %v218_v40   ;;  %v50_v53 = vmul.f32 %v286_v2, %v27_v39  ;;  %v84_v54 = vmax.f32 %v68_v46, 0.0  ;;  %v70_v55 = vadd.f32 %v293_v5, %v47_v47  ;;  %v71_v56 = vadd.f32 %v293_v5, %v48_v48 }
   0xd   :  { %251 = vst [vmem:[%s394_s3 + $0x10] sm:$0xff] %v223_v45   ;;  %v51_v57 = vmul.f32 %v286_v2, %v28_v44  ;;  %252 = vst [vmem:[%s394_s3 + $0x18] sm:$0xff] %v228_v50   ;;  %v85_v58 = vmax.f32 %v69_v51, 0.0  ;;  %v72_v59 = vadd.f32 %v293_v5, %v49_v52  ;;  %v52_v61 = vmul.f32 %v286_v2, %v29_v49 }
   0xe   :  { %v73_v60 = vadd.f32 %v293_v5, %v50_v53  ;;  %v86_v62 = vmax.f32 %v70_v55, 0.0  ;;  %v87_v63 = vmax.f32 %v71_v56, 0.0 }
   0xf   :  { %v74_v0 = vadd.f32 %v293_v5, %v51_v57  ;;  %v233_v1 = vpack.c.bf16 %v85_v58, %v84_v54  ;;  %v88_v3 = vmax.f32 %v72_v59, 0.0  ;;  %v75_v6 = vadd.f32 %v293_v5, %v52_v61 }
  0x10   :  { %v89_v4 = vmax.f32 %v73_v60, 0.0  ;;  %v238_v7 = vpack.c.bf16 %v87_v63, %v86_v62 }
  0x11   :  { %v90_v8 = vmax.f32 %v74_v0, 0.0  ;;  %253 = vst [vmem:[%s394_s3 + $0x20] sm:$0xff] %v233_v1   ;;  %v91_v10 = vmax.f32 %v75_v6, 0.0 }
  0x12   :  { %v243_v9 = vpack.c.bf16 %v89_v4, %v88_v3  ;;  %254 = vst [vmem:[%s394_s3 + $0x28] sm:$0xff] %v238_v7  }
  0x13   :  { %v248_v2 = vpack.c.bf16 %v91_v10, %v90_v8 }
  0x14   :  { %255 = vst [vmem:[%s394_s3 + $0x30] sm:$0xff] %v243_v9  }
  0x15   :  { %256 = vst [vmem:[%s394_s3 + $0x38] sm:$0xff] %v248_v2  }

// kernel: generator_forward.14
= control target key start
LH: loop header
LB: loop body
LE: loop exit
PB: predicated region body
PF: predicated region fallthrough
CT: control target
= control target key end

     0   :  { %s1375_s0 = inlined_call_operand.vmem [shape: f32[512,128], index: 0, kind: input, shape index: {}]   ;;  %s1376_s1 = inlined_call_operand.vmem [shape: f32[1,128], index: 1, kind: input, shape index: {}]   ;;  %s1377_s2 = inlined_call_operand.vmem [shape: f32[1,128], index: 2, kind: input, shape index: {}]   ;;  %s1378_s3 = inlined_call_operand.vmem [shape: bf16[512,128], index: 3, kind: output, shape index: {}]  }
   0x1   :  { %v14_v0 = vld [vmem:[%s1375_s0] sm:$0xff]  ;;  %v15_v1 = vld [vmem:[%s1375_s0 + $0x8] sm:$0xff]  ;;  %v16_v6 = vld [vmem:[%s1375_s0 + $0x10] sm:$0xff] }
   0x2   :  { %v958_v2 = vld [vmem:[%s1376_s1] ss:$0 sm:$0xff]  ;;  %v17_v7 = vld [vmem:[%s1375_s0 + $0x18] sm:$0xff]  ;;  %v19_v11 = vld [vmem:[%s1375_s0 + $0x28] sm:$0xff] }
   0x3   :  { %v85_v3 = vmul.f32 %v958_v2, %v14_v0  ;;  %v86_v4 = vmul.f32 %v958_v2, %v15_v1  ;;  %v965_v5 = vld [vmem:[%s1377_s2] ss:$0 sm:$0xff]  ;;  %v87_v8 = vmul.f32 %v958_v2, %v16_v6  ;;  %v88_v9 = vmul.f32 %v958_v2, %v17_v7  ;;  %v20_v12 = vld [vmem:[%s1375_s0 + $0x30] sm:$0xff]  ;;  %v21_v17 = vld [vmem:[%s1375_s0 + $0x38] sm:$0xff] }
   0x4   :  { %v18_v10 = vld [vmem:[%s1375_s0 + $0x20] sm:$0xff]  ;;  %v90_v16 = vmul.f32 %v958_v2, %v19_v11  ;;  %v91_v20 = vmul.f32 %v958_v2, %v20_v12  ;;  %v92_v21 = vmul.f32 %v958_v2, %v21_v17  ;;  %v23_v27 = vld [vmem:[%s1375_s0 + $0x48] sm:$0xff]  ;;  %v24_v32 = vld [vmem:[%s1375_s0 + $0x50] sm:$0xff] }
   0x5   :  { %v156_v13 = vadd.f32 %v965_v5, %v85_v3  ;;  %v157_v14 = vadd.f32 %v965_v5, %v86_v4  ;;  %v89_v15 = vmul.f32 %v958_v2, %v18_v10  ;;  %v158_v18 = vadd.f32 %v965_v5, %v87_v8  ;;  %v22_v22 = vld [vmem:[%s1375_s0 + $0x40] sm:$0xff]  ;;  %v25_v33 = vld [vmem:[%s1375_s0 + $0x58] sm:$0xff]  ;;  %v27_v39 = vld [vmem:[%s1375_s0 + $0x68] sm:$0xff] }
   0x6   :  { %v159_v19 = vadd.f32 %v965_v5, %v88_v9  ;;  %v161_v26 = vadd.f32 %v965_v5, %v90_v16  ;;  %v162_v30 = vadd.f32 %v965_v5, %v91_v20  ;;  %v163_v31 = vadd.f32 %v965_v5, %v92_v21  ;;  %v26_v38 = vld [vmem:[%s1375_s0 + $0x60] sm:$0xff]  ;;  %v28_v44 = vld [vmem:[%s1375_s0 + $0x70] sm:$0xff]  ;;  %v29_v49 = vld [vmem:[%s1375_s0 + $0x78] sm:$0xff] }
   0x7   :  { %v220_v23 = vmax.f32 %v156_v13, 0.0  ;;  %v221_v24 = vmax.f32 %v157_v14, 0.0  ;;  %v160_v25 = vadd.f32 %v965_v5, %v89_v15  ;;  %v222_v28 = vmax.f32 %v158_v18, 0.0  ;;  %v30_v54 = vld [vmem:[%s1375_s0 + $0x80] sm:$0xff]  ;;  %v31_v63 = vld [vmem:[%s1375_s0 + $0x88] sm:$0xff]  ;;  %v32_v6 = vld [vmem:[%s1375_s0 + $0x90] sm:$0xff] }
   0x8   :  { %v223_v29 = vmax.f32 %v159_v19, 0.0  ;;  %v225_v36 = vmax.f32 %v161_v26, 0.0  ;;  %v93_v37 = vmul.f32 %v958_v2, %v22_v22  ;;  %v226_v41 = vmax.f32 %v162_v30, 0.0  ;;  %v33_v7 = vld [vmem:[%s1375_s0 + $0x98] sm:$0xff]  ;;  %v34_v12 = vld [vmem:[%s1375_s0 + $0xa0] sm:$0xff]  ;;  %v35_v13 = vld [vmem:[%s1375_s0 + $0xa8] sm:$0xff] }
   0x9   :  { %v741_v34 = vpack.c.bf16 %v221_v24, %v220_v23  ;;  %v224_v35 = vmax.f32 %v160_v25, 0.0  ;;  %v227_v42 = vmax.f32 %v163_v31, 0.0  ;;  %v94_v43 = vmul.f32 %v958_v2, %v23_v27  ;;  %v36_v18 = vld [vmem:[%s1375_s0 + $0xb0] sm:$0xff]  ;;  %v37_v23 = vld [vmem:[%s1375_s0 + $0xb8] sm:$0xff] }
   0xa   :  { %v746_v40 = vpack.c.bf16 %v223_v29, %v222_v28  ;;  %v164_v46 = vadd.f32 %v965_v5, %v93_v37  ;;  %v95_v47 = vmul.f32 %v958_v2, %v24_v32  ;;  %v96_v48 = vmul.f32 %v958_v2, %v25_v33  ;;  %v38_v28 = vld [vmem:[%s1375_s0 + $0xc0] sm:$0xff]  ;;  %v39_v37 = vld [vmem:[%s1375_s0 + $0xc8] sm:$0xff] }
   0xb   :  { %742 = vst [vmem:[%s1378_s3] sm:$0xff] %v741_v34   ;;  %v751_v45 = vpack.c.bf16 %v225_v36, %v224_v35  ;;  %v756_v50 = vpack.c.bf16 %v227_v42, %v226_v41  ;;  %v165_v51 = vadd.f32 %v965_v5, %v94_v43  ;;  %v97_v52 = vmul.f32 %v958_v2, %v26_v38  ;;  %v40_v42 = vld [vmem:[%s1375_s0 + $0xd0] sm:$0xff]  ;;  %v41_v43 = vld [vmem:[%s1375_s0 + $0xd8] sm:$0xff] }
   0xc   :  { %898 = vst [vmem:[%s1378_s3 + $0x8] sm:$0xff] %v746_v40   ;;  %v98_v53 = vmul.f32 %v958_v2, %v27_v39  ;;  %v228_v55 = vmax.f32 %v164_v46, 0.0  ;;  %v166_v56 = vadd.f32 %v965_v5, %v95_v47  ;;  %v167_v57 = vadd.f32 %v965_v5, %v96_v48  ;;  %v42_v48 = vld [vmem:[%s1375_s0 + $0xe0] sm:$0xff] }
   0xd   :  { %899 = vst [vmem:[%s1378_s3 + $0x10] sm:$0xff] %v751_v45   ;;  %v99_v58 = vmul.f32 %v958_v2, %v28_v44  ;;  %900 = vst [vmem:[%s1378_s3 + $0x18] sm:$0xff] %v756_v50   ;;  %v229_v59 = vmax.f32 %v165_v51, 0.0  ;;  %v168_v60 = vadd.f32 %v965_v5, %v97_v52  ;;  %v100_v62 = vmul.f32 %v958_v2, %v29_v49  ;;  %v43_v49 = vld [vmem:[%s1375_s0 + $0xe8] sm:$0xff] }
   0xe   :  { %v169_v61 = vadd.f32 %v965_v5, %v98_v53  ;;  %v230_v0 = vmax.f32 %v166_v56, 0.0  ;;  %v231_v1 = vmax.f32 %v167_v57, 0.0  ;;  %v101_v4 = vmul.f32 %v958_v2, %v30_v54  ;;  %v44_v54 = vld [vmem:[%s1375_s0 + $0xf0] sm:$0xff] }
   0xf   :  { %v170_v3 = vadd.f32 %v965_v5, %v99_v58  ;;  %v761_v8 = vpack.c.bf16 %v229_v59, %v228_v55  ;;  %v232_v9 = vmax.f32 %v168_v60, 0.0  ;;  %v171_v11 = vadd.f32 %v965_v5, %v100_v62  ;;  %v45_v59 = vld [vmem:[%s1375_s0 + $0xf8] sm:$0xff] }
  0x10   :  { %v233_v10 = vmax.f32 %v169_v61, 0.0  ;;  %v766_v14 = vpack.c.bf16 %v231_v1, %v230_v0  ;;  %v102_v16 = vmul.f32 %v958_v2, %v31_v63  ;;  %v172_v17 = vadd.f32 %v965_v5, %v101_v4  ;;  %v46_v0 = vld [vmem:[%s1375_s0 + $0x100] sm:$0xff] }
  0x11   :  { %v234_v15 = vmax.f32 %v170_v3, 0.0  ;;  %901 = vst [vmem:[%s1378_s3 + $0x20] sm:$0xff] %v761_v8   ;;  %v235_v20 = vmax.f32 %v171_v11, 0.0  ;;  %v103_v21 = vmul.f32 %v958_v2, %v32_v6  ;;  %v104_v22 = vmul.f32 %v958_v2, %v33_v7  ;;  %v47_v11 = vld [vmem:[%s1375_s0 + $0x108] sm:$0xff] }
  0x12   :  { %v771_v19 = vpack.c.bf16 %v233_v10, %v232_v9  ;;  %902 = vst [vmem:[%s1378_s3 + $0x28] sm:$0xff] %v766_v14   ;;  %v173_v24 = vadd.f32 %v965_v5, %v102_v16  ;;  %v236_v25 = vmax.f32 %v172_v17, 0.0  ;;  %v105_v26 = vmul.f32 %v958_v2, %v34_v12  ;;  %v48_v16 = vld [vmem:[%s1375_s0 + $0x110] sm:$0xff]  ;;  %v49_v17 = vld [vmem:[%s1375_s0 + $0x118] sm:$0xff] }
  0x13   :  { %v106_v27 = vmul.f32 %v958_v2, %v35_v13  ;;  %v776_v29 = vpack.c.bf16 %v235_v20, %v234_v15  ;;  %v174_v30 = vadd.f32 %v965_v5, %v103_v21  ;;  %v175_v31 = vadd.f32 %v965_v5, %v104_v22  ;;  %v50_v22 = vld [vmem:[%s1375_s0 + $0x120] sm:$0xff] }
  0x14   :  { %903 = vst [vmem:[%s1378_s3 + $0x30] sm:$0xff] %v771_v19   ;;  %v107_v32 = vmul.f32 %v958_v2, %v36_v18  ;;  %v237_v33 = vmax.f32 %v173_v24, 0.0  ;;  %v176_v34 = vadd.f32 %v965_v5, %v105_v26  ;;  %v108_v36 = vmul.f32 %v958_v2, %v37_v23  ;;  %v51_v23 = vld [vmem:[%s1375_s0 + $0x128] sm:$0xff] }
  0x15   :  { %v177_v35 = vadd.f32 %v965_v5, %v106_v27  ;;  %904 = vst [vmem:[%s1378_s3 + $0x38] sm:$0xff] %v776_v29   ;;  %v238_v38 = vmax.f32 %v174_v30, 0.0  ;;  %v239_v39 = vmax.f32 %v175_v31, 0.0  ;;  %v109_v41 = vmul.f32 %v958_v2, %v38_v28  ;;  %v52_v28 = vld [vmem:[%s1375_s0 + $0x130] sm:$0xff] }
  0x16   :  { %v178_v40 = vadd.f32 %v965_v5, %v107_v32  ;;  %v781_v44 = vpack.c.bf16 %v237_v33, %v236_v25  ;;  %v240_v45 = vmax.f32 %v176_v34, 0.0  ;;  %v179_v47 = vadd.f32 %v965_v5, %v108_v36  ;;  %v53_v33 = vld [vmem:[%s1375_s0 + $0x138] sm:$0xff] }
  0x17   :  { %v241_v46 = vmax.f32 %v177_v35, 0.0  ;;  %v786_v50 = vpack.c.bf16 %v239_v39, %v238_v38  ;;  %v110_v52 = vmul.f32 %v958_v2, %v39_v37  ;;  %v180_v53 = vadd.f32 %v965_v5, %v109_v41  ;;  %v54_v38 = vld [vmem:[%s1375_s0 + $0x140] sm:$0xff] }
  0x18   :  { %v242_v51 = vmax.f32 %v178_v40, 0.0  ;;  %905 = vst [vmem:[%s1378_s3 + $0x40] sm:$0xff] %v781_v44   ;;  %v243_v56 = vmax.f32 %v179_v47, 0.0  ;;  %v111_v57 = vmul.f32 %v958_v2, %v40_v42  ;;  %v112_v58 = vmul.f32 %v958_v2, %v41_v43  ;;  %v55_v47 = vld [vmem:[%s1375_s0 + $0x148] sm:$0xff] }
  0x19   :  { %v791_v55 = vpack.c.bf16 %v241_v46, %v240_v45  ;;  %906 = vst [vmem:[%s1378_s3 + $0x48] sm:$0xff] %v786_v50   ;;  %v181_v60 = vadd.f32 %v965_v5, %v110_v52  ;;  %v244_v61 = vmax.f32 %v180_v53, 0.0  ;;  %v113_v62 = vmul.f32 %v958_v2, %v42_v48  ;;  %v56_v52 = vld [vmem:[%s1375_s0 + $0x150] sm:$0xff]  ;;  %v57_v53 = vld [vmem:[%s1375_s0 + $0x158] sm:$0xff] }
  0x1a   :  { %v114_v63 = vmul.f32 %v958_v2, %v43_v49  ;;  %v796_v1 = vpack.c.bf16 %v243_v56, %v242_v51  ;;  %v182_v3 = vadd.f32 %v965_v5, %v111_v57  ;;  %v183_v4 = vadd.f32 %v965_v5, %v112_v58  ;;  %v58_v58 = vld [vmem:[%s1375_s0 + $0x160] sm:$0xff] }
  0x1b   :  { %907 = vst [vmem:[%s1378_s3 + $0x50] sm:$0xff] %v791_v55   ;;  %v115_v6 = vmul.f32 %v958_v2, %v44_v54  ;;  %v245_v7 = vmax.f32 %v181_v60, 0.0  ;;  %v184_v8 = vadd.f32 %v965_v5, %v113_v62  ;;  %v116_v10 = vmul.f32 %v958_v2, %v45_v59  ;;  %v59_v59 = vld [vmem:[%s1375_s0 + $0x168] sm:$0xff] }
  0x1c   :  { %v185_v9 = vadd.f32 %v965_v5, %v114_v63  ;;  %908 = vst [vmem:[%s1378_s3 + $0x58] sm:$0xff] %v796_v1   ;;  %v246_v12 = vmax.f32 %v182_v3, 0.0  ;;  %v247_v13 = vmax.f32 %v183_v4, 0.0  ;;  %v117_v15 = vmul.f32 %v958_v2, %v46_v0  ;;  %v60_v0 = vld [vmem:[%s1375_s0 + $0x170] sm:$0xff] }
  0x1d   :  { %v186_v14 = vadd.f32 %v965_v5, %v115_v6  ;;  %v801_v18 = vpack.c.bf16 %v245_v7, %v244_v61  ;;  %v248_v19 = vmax.f32 %v184_v8, 0.0  ;;  %v187_v21 = vadd.f32 %v965_v5, %v116_v10  ;;  %v61_v7 = vld [vmem:[%s1375_s0 + $0x178] sm:$0xff] }
  0x1e   :  { %v249_v20 = vmax.f32 %v185_v9, 0.0  ;;  %v806_v24 = vpack.c.bf16 %v247_v13, %v246_v12  ;;  %v118_v26 = vmul.f32 %v958_v2, %v47_v11  ;;  %v188_v27 = vadd.f32 %v965_v5, %v117_v15  ;;  %v62_v12 = vld [vmem:[%s1375_s0 + $0x180] sm:$0xff] }
  0x1f   :  { %v250_v25 = vmax.f32 %v186_v14, 0.0  ;;  %909 = vst [vmem:[%s1378_s3 + $0x60] sm:$0xff] %v801_v18   ;;  %v251_v30 = vmax.f32 %v187_v21, 0.0  ;;  %v119_v31 = vmul.f32 %v958_v2, %v48_v16  ;;  %v120_v32 = vmul.f32 %v958_v2, %v49_v17  ;;  %v63_v21 = vld [vmem:[%s1375_s0 + $0x188] sm:$0xff] }
  0x20   :  { %v811_v29 = vpack.c.bf16 %v249_v20, %v248_v19  ;;  %910 = vst [vmem:[%s1378_s3 + $0x68] sm:$0xff] %v806_v24   ;;  %v189_v34 = vadd.f32 %v965_v5, %v118_v26  ;;  %v252_v35 = vmax.f32 %v188_v27, 0.0  ;;  %v121_v36 = vmul.f32 %v958_v2, %v50_v22  ;;  %v64_v26 = vld [vmem:[%s1375_s0 + $0x190] sm:$0xff]  ;;  %v65_v27 = vld [vmem:[%s1375_s0 + $0x198] sm:$0xff] }
  0x21   :  { %v122_v37 = vmul.f32 %v958_v2, %v51_v23  ;;  %v816_v39 = vpack.c.bf16 %v251_v30, %v250_v25  ;;  %v190_v40 = vadd.f32 %v965_v5, %v119_v31  ;;  %v191_v41 = vadd.f32 %v965_v5, %v120_v32  ;;  %v66_v32 = vld [vmem:[%s1375_s0 + $0x1a0] sm:$0xff] }
  0x22   :  { %911 = vst [vmem:[%s1378_s3 + $0x70] sm:$0xff] %v811_v29   ;;  %v123_v42 = vmul.f32 %v958_v2, %v52_v28  ;;  %v253_v43 = vmax.f32 %v189_v34, 0.0  ;;  %v192_v44 = vadd.f32 %v965_v5, %v121_v36  ;;  %v124_v46 = vmul.f32 %v958_v2, %v53_v33  ;;  %v67_v33 = vld [vmem:[%s1375_s0 + $0x1a8] sm:$0xff] }
  0x23   :  { %v193_v45 = vadd.f32 %v965_v5, %v122_v37  ;;  %912 = vst [vmem:[%s1378_s3 + $0x78] sm:$0xff] %v816_v39   ;;  %v254_v48 = vmax.f32 %v190_v40, 0.0  ;;  %v255_v49 = vmax.f32 %v191_v41, 0.0  ;;  %v125_v51 = vmul.f32 %v958_v2, %v54_v38  ;;  %v68_v38 = vld [vmem:[%s1375_s0 + $0x1b0] sm:$0xff] }
  0x24   :  { %v194_v50 = vadd.f32 %v965_v5, %v123_v42  ;;  %v821_v54 = vpack.c.bf16 %v253_v43, %v252_v35  ;;  %v256_v55 = vmax.f32 %v192_v44, 0.0  ;;  %v195_v57 = vadd.f32 %v965_v5, %v124_v46  ;;  %v69_v43 = vld [vmem:[%s1375_s0 + $0x1b8] sm:$0xff] }
  0x25   :  { %v257_v56 = vmax.f32 %v193_v45, 0.0  ;;  %v826_v60 = vpack.c.bf16 %v255_v49, %v254_v48  ;;  %v126_v62 = vmul.f32 %v958_v2, %v55_v47  ;;  %v196_v63 = vadd.f32 %v965_v5, %v125_v51  ;;  %v70_v48 = vld [vmem:[%s1375_s0 + $0x1c0] sm:$0xff] }
  0x26   :  { %v258_v61 = vmax.f32 %v194_v50, 0.0  ;;  %913 = vst [vmem:[%s1378_s3 + $0x80] sm:$0xff] %v821_v54   ;;  %v259_v3 = vmax.f32 %v195_v57, 0.0  ;;  %v127_v4 = vmul.f32 %v958_v2, %v56_v52  ;;  %v128_v6 = vmul.f32 %v958_v2, %v57_v53  ;;  %v71_v57 = vld [vmem:[%s1375_s0 + $0x1c8] sm:$0xff] }
  0x27   :  { %v831_v1 = vpack.c.bf16 %v257_v56, %v256_v55  ;;  %914 = vst [vmem:[%s1378_s3 + $0x88] sm:$0xff] %v826_v60   ;;  %v197_v8 = vadd.f32 %v965_v5, %v126_v62  ;;  %v260_v9 = vmax.f32 %v196_v63, 0.0  ;;  %v129_v10 = vmul.f32 %v958_v2, %v58_v58  ;;  %v72_v62 = vld [vmem:[%s1375_s0 + $0x1d0] sm:$0xff]  ;;  %v73_v63 = vld [vmem:[%s1375_s0 + $0x1d8] sm:$0xff] }
  0x28   :  { %v130_v11 = vmul.f32 %v958_v2, %v59_v59  ;;  %v836_v13 = vpack.c.bf16 %v259_v3, %v258_v61  ;;  %v198_v14 = vadd.f32 %v965_v5, %v127_v4  ;;  %v199_v15 = vadd.f32 %v965_v5, %v128_v6  ;;  %v74_v6 = vld [vmem:[%s1375_s0 + $0x1e0] sm:$0xff] }
  0x29   :  { %915 = vst [vmem:[%s1378_s3 + $0x90] sm:$0xff] %v831_v1   ;;  %v131_v16 = vmul.f32 %v958_v2, %v60_v0  ;;  %v261_v17 = vmax.f32 %v197_v8, 0.0  ;;  %v200_v18 = vadd.f32 %v965_v5, %v129_v10  ;;  %v132_v20 = vmul.f32 %v958_v2, %v61_v7  ;;  %v75_v7 = vld [vmem:[%s1375_s0 + $0x1e8] sm:$0xff] }
  0x2a   :  { %v201_v19 = vadd.f32 %v965_v5, %v130_v11  ;;  %916 = vst [vmem:[%s1378_s3 + $0x98] sm:$0xff] %v836_v13   ;;  %v262_v22 = vmax.f32 %v198_v14, 0.0  ;;  %v263_v23 = vmax.f32 %v199_v15, 0.0  ;;  %v133_v25 = vmul.f32 %v958_v2, %v62_v12  ;;  %v76_v12 = vld [vmem:[%s1375_s0 + $0x1f0] sm:$0xff] }
  0x2b   :  { %v202_v24 = vadd.f32 %v965_v5, %v131_v16  ;;  %v841_v28 = vpack.c.bf16 %v261_v17, %v260_v9  ;;  %v264_v29 = vmax.f32 %v200_v18, 0.0  ;;  %v203_v31 = vadd.f32 %v965_v5, %v132_v20  ;;  %v77_v17 = vld [vmem:[%s1375_s0 + $0x1f8] sm:$0xff] }
  0x2c   :  { %v265_v30 = vmax.f32 %v201_v19, 0.0  ;;  %v846_v34 = vpack.c.bf16 %v263_v23, %v262_v22  ;;  %v134_v36 = vmul.f32 %v958_v2, %v63_v21  ;;  %v204_v37 = vadd.f32 %v965_v5, %v133_v25 }
  0x2d   :  { %v266_v35 = vmax.f32 %v202_v24, 0.0  ;;  %917 = vst [vmem:[%s1378_s3 + $0xa0] sm:$0xff] %v841_v28   ;;  %v267_v40 = vmax.f32 %v203_v31, 0.0  ;;  %v135_v41 = vmul.f32 %v958_v2, %v64_v26  ;;  %v136_v42 = vmul.f32 %v958_v2, %v65_v27 }
  0x2e   :  { %v851_v39 = vpack.c.bf16 %v265_v30, %v264_v29  ;;  %918 = vst [vmem:[%s1378_s3 + $0xa8] sm:$0xff] %v846_v34   ;;  %v205_v44 = vadd.f32 %v965_v5, %v134_v36  ;;  %v268_v45 = vmax.f32 %v204_v37, 0.0  ;;  %v137_v46 = vmul.f32 %v958_v2, %v66_v32 }
  0x2f   :  { %v138_v47 = vmul.f32 %v958_v2, %v67_v33  ;;  %v856_v49 = vpack.c.bf16 %v267_v40, %v266_v35  ;;  %v206_v50 = vadd.f32 %v965_v5, %v135_v41  ;;  %v207_v51 = vadd.f32 %v965_v5, %v136_v42 }
  0x30   :  { %919 = vst [vmem:[%s1378_s3 + $0xb0] sm:$0xff] %v851_v39   ;;  %v139_v52 = vmul.f32 %v958_v2, %v68_v38  ;;  %v269_v53 = vmax.f32 %v205_v44, 0.0  ;;  %v208_v54 = vadd.f32 %v965_v5, %v137_v46  ;;  %v140_v56 = vmul.f32 %v958_v2, %v69_v43 }
  0x31   :  { %v209_v55 = vadd.f32 %v965_v5, %v138_v47  ;;  %920 = vst [vmem:[%s1378_s3 + $0xb8] sm:$0xff] %v856_v49   ;;  %v270_v58 = vmax.f32 %v206_v50, 0.0  ;;  %v271_v59 = vmax.f32 %v207_v51, 0.0  ;;  %v141_v61 = vmul.f32 %v958_v2, %v70_v48 }
  0x32   :  { %v210_v60 = vadd.f32 %v965_v5, %v139_v52  ;;  %v861_v0 = vpack.c.bf16 %v269_v53, %v268_v45  ;;  %v272_v1 = vmax.f32 %v208_v54, 0.0  ;;  %v211_v4 = vadd.f32 %v965_v5, %v140_v56 }
  0x33   :  { %v273_v3 = vmax.f32 %v209_v55, 0.0  ;;  %v866_v8 = vpack.c.bf16 %v271_v59, %v270_v58  ;;  %v142_v10 = vmul.f32 %v958_v2, %v71_v57  ;;  %v212_v11 = vadd.f32 %v965_v5, %v141_v61 }
  0x34   :  { %v274_v9 = vmax.f32 %v210_v60, 0.0  ;;  %921 = vst [vmem:[%s1378_s3 + $0xc0] sm:$0xff] %v861_v0   ;;  %v275_v14 = vmax.f32 %v211_v4, 0.0  ;;  %v143_v15 = vmul.f32 %v958_v2, %v72_v62  ;;  %v144_v16 = vmul.f32 %v958_v2, %v73_v63 }
  0x35   :  { %v871_v13 = vpack.c.bf16 %v273_v3, %v272_v1  ;;  %922 = vst [vmem:[%s1378_s3 + $0xc8] sm:$0xff] %v866_v8   ;;  %v213_v18 = vadd.f32 %v965_v5, %v142_v10  ;;  %v276_v19 = vmax.f32 %v212_v11, 0.0  ;;  %v145_v20 = vmul.f32 %v958_v2, %v74_v6 }
  0x36   :  { %v146_v21 = vmul.f32 %v958_v2, %v75_v7  ;;  %v876_v22 = vpack.c.bf16 %v275_v14, %v274_v9  ;;  %v214_v23 = vadd.f32 %v965_v5, %v143_v15  ;;  %v215_v24 = vadd.f32 %v965_v5, %v144_v16 }
  0x37   :  { %923 = vst [vmem:[%s1378_s3 + $0xd0] sm:$0xff] %v871_v13   ;;  %v147_v25 = vmul.f32 %v958_v2, %v76_v12  ;;  %v277_v26 = vmax.f32 %v213_v18, 0.0  ;;  %v216_v27 = vadd.f32 %v965_v5, %v145_v20  ;;  %v148_v29 = vmul.f32 %v958_v2, %v77_v17 }
  0x38   :  { %v217_v28 = vadd.f32 %v965_v5, %v146_v21  ;;  %924 = vst [vmem:[%s1378_s3 + $0xd8] sm:$0xff] %v876_v22   ;;  %v278_v30 = vmax.f32 %v214_v23, 0.0  ;;  %v279_v31 = vmax.f32 %v215_v24, 0.0 }
  0x39   :  { %v218_v32 = vadd.f32 %v965_v5, %v147_v25  ;;  %v881_v33 = vpack.c.bf16 %v277_v26, %v276_v19  ;;  %v280_v34 = vmax.f32 %v216_v27, 0.0  ;;  %v219_v36 = vadd.f32 %v965_v5, %v148_v29 }
  0x3a   :  { %v281_v35 = vmax.f32 %v217_v28, 0.0  ;;  %v886_v37 = vpack.c.bf16 %v279_v31, %v278_v30 }
  0x3b   :  { %v282_v38 = vmax.f32 %v218_v32, 0.0  ;;  %925 = vst [vmem:[%s1378_s3 + $0xe0] sm:$0xff] %v881_v33   ;;  %v283_v39 = vmax.f32 %v219_v36, 0.0 }
  0x3c   :  { %v891_v2 = vpack.c.bf16 %v281_v35, %v280_v34  ;;  %926 = vst [vmem:[%s1378_s3 + $0xe8] sm:$0xff] %v886_v37  }
  0x3d   :  { %v896_v40 = vpack.c.bf16 %v283_v39, %v282_v38 }
  0x3e   :  { %927 = vst [vmem:[%s1378_s3 + $0xf0] sm:$0xff] %v891_v2  }
  0x3f   :  { %928 = vst [vmem:[%s1378_s3 + $0xf8] sm:$0xff] %v896_v40  }

// kernel: generator_forward.13
= control target key start
LH: loop header
LB: loop body
LE: loop exit
PB: predicated region body
PF: predicated region fallthrough
CT: control target
= control target key end

     0   :  { %s1521_s15 = smov 0   ;;  %s1523_s16 = smov 0   ;;  %s1669_s0 = inlined_call_operand.vmem [shape: bf16[4,128,512], index: 0, kind: input, shape index: {}]   ;;  %s1670_s1 = inlined_call_operand.vmem [shape: bf16[4,512,128], index: 1, kind: input, shape index: {}]   ;;  %s1671_s2 = inlined_call_operand.vmem [shape: f32[4,128,128], index: 2, kind: output, shape index: {0}]   ;;  %s1672_s3 = inlined_call_operand.vmem [shape: f32[4,1,128], index: 3, kind: output, shape index: {1}]   ;;  %s1673_s4 = inlined_call_operand.vmem [shape: f32[4,1,128], index: 4, kind: output, shape index: {2}]  }
   0x1   :  { %s1525_s17 = smov 0  }
   0x2 LB: > { %s27_s18 = sadd.s32 1, %s1489_s16  ;;  %p1162_p0 = scmp.ge.s32.totalorder %s1493_s17, 1  ;;  %s1493_s17 = sphi %s1525_s17, %s15_s17   ;;  %s1489_s16 = sphi %s1523_s16, %s1675_s16   ;;  %s1485_s15 = sphi %s1521_s15, %s1674_s15  }
   0x3   : > { %p29_p1 = scmp.ge.s32.totalorder %s27_s18, 4  ;;  %p199_p2 = scmp.lt.s32.totalorder %s1493_s17, 5 }
   0x5   : > { %s1677_s18 = smov (%p29_p1, %s27_s18), 0  ;;  %p200_p3 = pnand %p1162_p0, %p199_p2 }
   0x6   : > { %p246_p4 = scmp.lt.s32.totalorder (!%p200_p3), %s1485_s15, 3 }
   0x7   : > { %203 = sbr.rel (%p200_p3) target bundleno = 346 (0x15a), region = 28 }
   0xe   : > { %s1679_s15 = smov (!%p246_p4, %s1485_s15), 3 }
   0xf   : > { %s1235_s19 = sshll.u32 %s1679_s15, 8  ;;  %s1624_s28 = scalar_lea.vmem %s1672_s3, %s1679_s15 }
  0x10   : > { %s1547_s22 = scalar_lea.vmem %s1670_s1, %s1235_s19  ;;  %s1584_s25 = scalar_lea.vmem %s1669_s0, %s1235_s19 }
  0x11   : > { %v1391_v0 = vld [vmem:[%s1547_s22 + $0x40] sm:$0xff]   ;;  %v1395_v4 = vld [vmem:[%s1547_s22 + $0x48] sm:$0xff]   ;;  %v1399_v8 = vld [vmem:[%s1547_s22 + $0x50] sm:$0xff]   ;;  %s1630_s5 = scalar_lea.vmem %s1673_s4, %s1679_s15  ;;  %s1237_s6 = sshll.u32 %s1679_s15, 7 }
  0x12   : > { %v1392_v1 = vld [vmem:[%s1547_s22 + $0xc0] sm:$0xff]   ;;  %1238 = vmatprep.subr.bf16.mxu0 %v1391_v0  ;;  %v1396_v5 = vld [vmem:[%s1547_s22 + $0xc8] sm:$0xff]   ;;  %v1400_v9 = vld [vmem:[%s1547_s22 + $0xd0] sm:$0xff]   ;;  %v1495_v0 = vmov 0.0   ;;  %s1638_s9 = scalar_lea.vmem %s1671_s2, %s1237_s6 }
  0x13   : > { %v1393_v2 = vld [vmem:[%s1547_s22] sm:$0xff]   ;;  %1302 = vmatprep.subr.bf16.mxu1 %v1392_v1  ;;  %v1397_v6 = vld [vmem:[%s1547_s22 + $0x8] sm:$0xff]   ;;  %v1401_v10 = vld [vmem:[%s1547_s22 + $0x10] sm:$0xff]   ;;  %282 = vst [vmem:[%s1624_s28] sm:$0x1] %v1495_v0 }
  0x14   : > { %v1394_v3 = vld [vmem:[%s1547_s22 + $0x80] sm:$0xff]   ;;  %1239 = vmatpush3.bf16.msra.mxu0 %v1393_v2  ;;  %v1398_v7 = vld [vmem:[%s1547_s22 + $0x88] sm:$0xff]   ;;  %v1402_v11 = vld [vmem:[%s1547_s22 + $0x90] sm:$0xff]   ;;  %283 = vst [vmem:[%s1630_s5] sm:$0x1] %v1495_v0 }
  0x15   : > { %1303 = vmatpush3.bf16.msra.mxu1 %v1394_v3  ;;  %1240 = vmatprep.subr.bf16.mxu0 %v1395_v4  ;;  %v1403_v12 = vld [vmem:[%s1547_s22 + $0x58] sm:$0xff]   ;;  %v1407_v16 = vld [vmem:[%s1547_s22 + $0x60] sm:$0xff]   ;;  %v1411_v20 = vld [vmem:[%s1547_s22 + $0x68] sm:$0xff]  }
  0x16   : > { %1304 = vmatprep.subr.bf16.mxu1 %v1396_v5  ;;  %v1404_v13 = vld [vmem:[%s1547_s22 + $0xd8] sm:$0xff]   ;;  %v1408_v17 = vld [vmem:[%s1547_s22 + $0xe0] sm:$0xff]   ;;  %v1412_v21 = vld [vmem:[%s1547_s22 + $0xe8] sm:$0xff]  }
  0x17   : > { %v1405_v14 = vld [vmem:[%s1547_s22 + $0x18] sm:$0xff]   ;;  %v1409_v18 = vld [vmem:[%s1547_s22 + $0x20] sm:$0xff]   ;;  %v1413_v22 = vld [vmem:[%s1547_s22 + $0x28] sm:$0xff]  }
  0x18   : > { %1241 = vmatpush3.bf16.msra.mxu0 %v1397_v6  ;;  %v1406_v15 = vld [vmem:[%s1547_s22 + $0x98] sm:$0xff]   ;;  %v1410_v19 = vld [vmem:[%s1547_s22 + $0xa0] sm:$0xff]   ;;  %v1414_v23 = vld [vmem:[%s1547_s22 + $0xa8] sm:$0xff]  }
  0x19   : > { %1305 = vmatpush3.bf16.msra.mxu1 %v1398_v7  ;;  %1242 = vmatprep.subr.bf16.mxu0 %v1399_v8  ;;  %v1415_v24 = vld [vmem:[%s1547_s22 + $0x70] sm:$0xff]   ;;  %v1419_v28 = vld [vmem:[%s1547_s22 + $0x78] sm:$0xff]  }
  0x1a   : > { %1306 = vmatprep.subr.bf16.mxu1 %v1400_v9  ;;  %v1416_v25 = vld [vmem:[%s1547_s22 + $0xf0] sm:$0xff]   ;;  %v1420_v29 = vld [vmem:[%s1547_s22 + $0xf8] sm:$0xff]  }
  0x1b   : > { %v1417_v26 = vld [vmem:[%s1547_s22 + $0x30] sm:$0xff]   ;;  %v1421_v30 = vld [vmem:[%s1547_s22 + $0x38] sm:$0xff]  }
  0x1c   : > { %1243 = vmatpush3.bf16.msra.mxu0 %v1401_v10  ;;  %v1418_v27 = vld [vmem:[%s1547_s22 + $0xb0] sm:$0xff]   ;;  %v1422_v31 = vld [vmem:[%s1547_s22 + $0xb8] sm:$0xff]  }
  0x1d   : > { %1307 = vmatpush3.bf16.msra.mxu1 %v1402_v11  ;;  %1244 = vmatprep.subr.bf16.mxu0 %v1403_v12  ;;  %v1423_v32 = vld [vmem:[%s1584_s25] ss:$16 sps:$4 sm:$0xff]   ;;  %v1425_v33 = vld [vmem:[%s1584_s25 + $0x4] ss:$16 sps:$4 sm:$0xff]   ;;  %v1426_v34 = vld [vmem:[%s1584_s25 + $0x8] ss:$16 sps:$4 sm:$0xff]  }
  0x1e   : > { %1308 = vmatprep.subr.bf16.mxu1 %v1404_v13  ;;  %v1428_v35 = vld [vmem:[%s1584_s25 + $0xc] ss:$16 sps:$4 sm:$0xff]   ;;  %764 = vmatprep.mubr.bf16.mxu0 %v1425_v33  ;;  %v1429_v36 = vld [vmem:[%s1584_s25 + $0x24] ss:$16 sps:$4 sm:$0xff]   ;;  %v1433_v38 = vld [vmem:[%s1584_s25 + $0x20] ss:$16 sps:$4 sm:$0xff]  }
  0x1f   : > { %861 = vmatprep.mubr.bf16.mxu1 %v1428_v35  ;;  %v1431_v37 = vld [vmem:[%s1584_s25 + $0x2c] ss:$16 sps:$4 sm:$0xff]   ;;  %v1434_v39 = vld [vmem:[%s1584_s25 + $0x28] ss:$16 sps:$4 sm:$0xff]   ;;  %v1435_v40 = vld [vmem:[%s1584_s25 + $0x44] ss:$16 sps:$4 sm:$0xff]  }
  0x20   : > { %1245 = vmatpush3.bf16.msra.mxu0 %v1405_v14  ;;  %v1437_v41 = vld [vmem:[%s1584_s25 + $0x4c] ss:$16 sps:$4 sm:$0xff]   ;;  %v1439_v42 = vld [vmem:[%s1584_s25 + $0x40] ss:$16 sps:$4 sm:$0xff]   ;;  %v1440_v43 = vld [vmem:[%s1584_s25 + $0x48] ss:$16 sps:$4 sm:$0xff]  }
  0x21   : > { %1309 = vmatpush3.bf16.msra.mxu1 %v1406_v15  ;;  %1246 = vmatprep.subr.bf16.mxu0 %v1407_v16  ;;  %v1441_v44 = vld [vmem:[%s1584_s25 + $0x64] ss:$16 sps:$4 sm:$0xff]   ;;  %v1443_v45 = vld [vmem:[%s1584_s25 + $0x6c] ss:$16 sps:$4 sm:$0xff]   ;;  %v1445_v46 = vld [vmem:[%s1584_s25 + $0x60] ss:$16 sps:$4 sm:$0xff]  }
  0x22   : > { %1310 = vmatprep.subr.bf16.mxu1 %v1408_v17  ;;  %v1446_v47 = vld [vmem:[%s1584_s25 + $0x68] ss:$16 sps:$4 sm:$0xff]   ;;  %v1447_v48 = vld [vmem:[%s1584_s25 + $0x84] ss:$16 sps:$4 sm:$0xff]   ;;  %v1449_v49 = vld [vmem:[%s1584_s25 + $0x8c] ss:$16 sps:$4 sm:$0xff]  }
  0x23   : > { %v1451_v50 = vld [vmem:[%s1584_s25 + $0x80] ss:$16 sps:$4 sm:$0xff]   ;;  %v1452_v51 = vld [vmem:[%s1584_s25 + $0x88] ss:$16 sps:$4 sm:$0xff]   ;;  %v1453_v52 = vld [vmem:[%s1584_s25 + $0xa4] ss:$16 sps:$4 sm:$0xff]  }
  0x24   : > { %1247 = vmatpush3.bf16.msra.mxu0 %v1409_v18  ;;  %v1455_v53 = vld [vmem:[%s1584_s25 + $0xac] ss:$16 sps:$4 sm:$0xff]   ;;  %v1457_v54 = vld [vmem:[%s1584_s25 + $0xa0] ss:$16 sps:$4 sm:$0xff]   ;;  %v1458_v55 = vld [vmem:[%s1584_s25 + $0xa8] ss:$16 sps:$4 sm:$0xff]  }
  0x25   : > { %1311 = vmatpush3.bf16.msra.mxu1 %v1410_v19  ;;  %1248 = vmatprep.subr.bf16.mxu0 %v1411_v20  ;;  %v1459_v56 = vld [vmem:[%s1584_s25 + $0xc4] ss:$16 sps:$4 sm:$0xff]   ;;  %v1461_v57 = vld [vmem:[%s1584_s25 + $0xcc] ss:$16 sps:$4 sm:$0xff]   ;;  %v1463_v58 = vld [vmem:[%s1584_s25 + $0xc0] ss:$16 sps:$4 sm:$0xff]  }
  0x26   : > { %1312 = vmatprep.subr.bf16.mxu1 %v1412_v21  ;;  %v1464_v59 = vld [vmem:[%s1584_s25 + $0xc8] ss:$16 sps:$4 sm:$0xff]   ;;  %v1465_v60 = vld [vmem:[%s1584_s25 + $0xe4] ss:$16 sps:$4 sm:$0xff]   ;;  %v1467_v61 = vld [vmem:[%s1584_s25 + $0xec] ss:$16 sps:$4 sm:$0xff]  }
  0x27   : > { %v1469_v62 = vld [vmem:[%s1584_s25 + $0xe0] ss:$16 sps:$4 sm:$0xff]   ;;  %v1470_v63 = vld [vmem:[%s1584_s25 + $0xe8] ss:$16 sps:$4 sm:$0xff]  }
  0x28   : > { %1249 = vmatpush3.bf16.msra.mxu0 %v1413_v22 }
  0x29   : > { %1313 = vmatpush3.bf16.msra.mxu1 %v1414_v23  ;;  %1250 = vmatprep.subr.bf16.mxu0 %v1415_v24 }
  0x2a   : > { %1314 = vmatprep.subr.bf16.mxu1 %v1416_v25 }
  0x2c   : > { %1251 = vmatpush3.bf16.msra.mxu0 %v1417_v26 }
  0x2d   : > { %1315 = vmatpush3.bf16.msra.mxu1 %v1418_v27  ;;  %1252 = vmatprep.subr.bf16.mxu0 %v1419_v28 }
  0x2e   : > { %1316 = vmatprep.subr.bf16.mxu1 %v1420_v29 }
  0x30   : > { %1253 = vmatpush3.bf16.msra.mxu0 %v1421_v30 }
  0x31   : > { %1317 = vmatpush3.bf16.msra.mxu1 %v1422_v31 }
  0x33   : > { %765 = vmatmul.mubr.bf16.vlgmr.msra.gmra.mrb[0].mxu0 %v1423_v32 }
  0x34   : > { %862 = vmatmul.mubr.bf16.vlgmr.msra.gmra.mrb[0].mxu1 %v1426_v34  ;;  %772 = vmatprep.mubr.bf16.mxu0 %v1429_v36 }
  0x35   : > { %869 = vmatprep.mubr.bf16.mxu1 %v1431_v37 }
  0x3b   : > { %773 = vmatmul.mubr.bf16.gmra.mrb[4].mxu0 %v1433_v38 }
  0x3c   : > { %870 = vmatmul.mubr.bf16.gmra.mrb[4].mxu1 %v1434_v39  ;;  %780 = vmatprep.mubr.bf16.mxu0 %v1435_v40 }
  0x3d   : > { %877 = vmatprep.mubr.bf16.mxu1 %v1437_v41 }
  0x43   : > { %781 = vmatmul.mubr.bf16.gmra.mrb[8].mxu0 %v1439_v42 }
  0x44   : > { %878 = vmatmul.mubr.bf16.gmra.mrb[8].mxu1 %v1440_v43  ;;  %788 = vmatprep.mubr.bf16.mxu0 %v1441_v44 }
  0x45   : > { %885 = vmatprep.mubr.bf16.mxu1 %v1443_v45 }
  0x4b   : > { %789 = vmatmul.mubr.bf16.gmra.mrb[12].mxu0 %v1445_v46 }
  0x4c   : > { %886 = vmatmul.mubr.bf16.gmra.mrb[12].mxu1 %v1446_v47  ;;  %796 = vmatprep.mubr.bf16.mxu0 %v1447_v48 }
  0x4d   : > { %893 = vmatprep.mubr.bf16.mxu1 %v1449_v49 }
  0x53   : > { %797 = vmatmul.mubr.bf16.gmra.mrb[16].mxu0 %v1451_v50 }
  0x54   : > { %894 = vmatmul.mubr.bf16.gmra.mrb[16].mxu1 %v1452_v51  ;;  %804 = vmatprep.mubr.bf16.mxu0 %v1453_v52 }
  0x55   : > { %901 = vmatprep.mubr.bf16.mxu1 %v1455_v53 }
  0x5b   : > { %805 = vmatmul.mubr.bf16.gmra.mrb[20].mxu0 %v1457_v54 }
  0x5c   : > { %902 = vmatmul.mubr.bf16.gmra.mrb[20].mxu1 %v1458_v55  ;;  %812 = vmatprep.mubr.bf16.mxu0 %v1459_v56 }
  0x5d   : > { %909 = vmatprep.mubr.bf16.mxu1 %v1461_v57 }
  0x63   : > { %813 = vmatmul.mubr.bf16.gmra.mrb[24].mxu0 %v1463_v58 }
  0x64   : > { %910 = vmatmul.mubr.bf16.gmra.mrb[24].mxu1 %v1464_v59  ;;  %820 = vmatprep.mubr.bf16.mxu0 %v1465_v60 }
  0x65   : > { %917 = vmatprep.mubr.bf16.mxu1 %v1467_v61 }
  0x6b   : > { %821 = vmatmul.mubr.bf16.gmra.mrb[28].mxu0 %v1469_v62 }
  0x6c   : > { %918 = vmatmul.mubr.bf16.gmra.mrb[28].mxu1 %v1470_v63 }
 0x106   : > { %v1254_v1 = vpop.f32.mrb[0].mxu0 }
 0x107   : > { %v1318_v2 = vpop.f32.mrb[0].mxu1  ;;  %v1255_v3 = vpop.f32.mrb[1].mxu0 }
 0x108   : > { %v1256_v4 = vadd.f32 %v1255_v3, %v1254_v1  ;;  %v1319_v5 = vpop.f32.mrb[1].mxu1  ;;  %v1257_v6 = vpop.f32.mrb[2].mxu0 }
 0x109   : > { %v1320_v7 = vadd.f32 %v1319_v5, %v1318_v2  ;;  %v1321_v8 = vpop.f32.mrb[2].mxu1  ;;  %v1258_v9 = vpop.f32.mrb[3].mxu0 }
 0x10a   : > { %v1259_v10 = vadd.f32 %v1258_v9, %v1257_v6  ;;  %v1322_v11 = vpop.f32.mrb[3].mxu1 }
 0x10b   : > { %v864_v12 = vadd.f32 %v1320_v7, %v1256_v4  ;;  %v1323_v13 = vadd.f32 %v1322_v11, %v1321_v8 }
 0x10d   : > { %926 = vst [vmem:[%s1638_s9] sm:$0xff] %v864_v12  ;;  %v867_v14 = vadd.f32 %v1323_v13, %v1259_v10  ;;  %v967_v16 = vmul.f32 %v864_v12, %v864_v12 }
 0x10e   : > { %v1260_v15 = vpop.f32.mrb[4].mxu0 }
 0x10f   : > { %927 = vst [vmem:[%s1638_s9 + $0x8] sm:$0xff] %v867_v14  ;;  %v943_v17 = vadd.f32 %v867_v14, %v864_v12  ;;  %v968_v18 = vmul.f32 %v867_v14, %v867_v14  ;;  %v1324_v19 = vpop.f32.mrb[4].mxu1  ;;  %v1261_v20 = vpop.f32.mrb[5].mxu0 }
 0x110   : > { %v1262_v21 = vadd.f32 %v1261_v20, %v1260_v15  ;;  %v1325_v22 = vpop.f32.mrb[5].mxu1  ;;  %v1263_v23 = vpop.f32.mrb[6].mxu0 }
 0x111   : > { %v983_v24 = vadd.f32 %v968_v18, %v967_v16  ;;  %v1326_v25 = vadd.f32 %v1325_v22, %v1324_v19  ;;  %v1327_v26 = vpop.f32.mrb[6].mxu1  ;;  %v1264_v27 = vpop.f32.mrb[7].mxu0 }
 0x112   : > { %v1265_v28 = vadd.f32 %v1264_v27, %v1263_v23  ;;  %v1328_v29 = vpop.f32.mrb[7].mxu1 }
 0x113   : > { %v872_v30 = vadd.f32 %v1326_v25, %v1262_v21  ;;  %v1329_v31 = vadd.f32 %v1328_v29, %v1327_v26 }
 0x115   : > { %928 = vst [vmem:[%s1638_s9 + $0x10] sm:$0xff] %v872_v30  ;;  %v944_v32 = vadd.f32 %v943_v17, %v872_v30  ;;  %v969_v33 = vmul.f32 %v872_v30, %v872_v30  ;;  %v875_v34 = vadd.f32 %v1329_v31, %v1265_v28 }
 0x116   : > { %v1266_v35 = vpop.f32.mrb[8].mxu0 }
 0x117   : > { %v984_v36 = vadd.f32 %v983_v24, %v969_v33  ;;  %929 = vst [vmem:[%s1638_s9 + $0x18] sm:$0xff] %v875_v34  ;;  %v945_v37 = vadd.f32 %v944_v32, %v875_v34  ;;  %v970_v38 = vmul.f32 %v875_v34, %v875_v34  ;;  %v1330_v39 = vpop.f32.mrb[8].mxu1  ;;  %v1267_v40 = vpop.f32.mrb[9].mxu0 }
 0x118   : > { %v1268_v41 = vadd.f32 %v1267_v40, %v1266_v35  ;;  %v1331_v42 = vpop.f32.mrb[9].mxu1  ;;  %v1269_v43 = vpop.f32.mrb[10].mxu0 }
 0x119   : > { %v985_v44 = vadd.f32 %v984_v36, %v970_v38  ;;  %v1332_v45 = vadd.f32 %v1331_v42, %v1330_v39  ;;  %v1333_v46 = vpop.f32.mrb[10].mxu1  ;;  %v1270_v47 = vpop.f32.mrb[11].mxu0 }
 0x11a   : > { %v1271_v48 = vadd.f32 %v1270_v47, %v1269_v43  ;;  %v1334_v49 = vpop.f32.mrb[11].mxu1 }
 0x11b   : > { %v880_v50 = vadd.f32 %v1332_v45, %v1268_v41  ;;  %v1335_v51 = vadd.f32 %v1334_v49, %v1333_v46 }
 0x11d   : > { %930 = vst [vmem:[%s1638_s9 + $0x20] sm:$0xff] %v880_v50  ;;  %v946_v52 = vadd.f32 %v945_v37, %v880_v50  ;;  %v971_v53 = vmul.f32 %v880_v50, %v880_v50  ;;  %v883_v54 = vadd.f32 %v1335_v51, %v1271_v48 }
 0x11e   : > { %v1272_v55 = vpop.f32.mrb[12].mxu0 }
 0x11f   : > { %v986_v56 = vadd.f32 %v985_v44, %v971_v53  ;;  %931 = vst [vmem:[%s1638_s9 + $0x28] sm:$0xff] %v883_v54  ;;  %v947_v57 = vadd.f32 %v946_v52, %v883_v54  ;;  %v972_v58 = vmul.f32 %v883_v54, %v883_v54  ;;  %v1336_v59 = vpop.f32.mrb[12].mxu1  ;;  %v1273_v60 = vpop.f32.mrb[13].mxu0 }
 0x120   : > { %v1274_v61 = vadd.f32 %v1273_v60, %v1272_v55  ;;  %v1337_v62 = vpop.f32.mrb[13].mxu1  ;;  %v1275_v63 = vpop.f32.mrb[14].mxu0 }
 0x121   : > { %v987_v0 = vadd.f32 %v986_v56, %v972_v58  ;;  %v1338_v1 = vadd.f32 %v1337_v62, %v1336_v59  ;;  %v1339_v2 = vpop.f32.mrb[14].mxu1  ;;  %v1276_v3 = vpop.f32.mrb[15].mxu0 }
 0x122   : > { %v1277_v4 = vadd.f32 %v1276_v3, %v1275_v63  ;;  %v1340_v5 = vpop.f32.mrb[15].mxu1 }
 0x123   : > { %v888_v6 = vadd.f32 %v1338_v1, %v1274_v61  ;;  %v1341_v7 = vadd.f32 %v1340_v5, %v1339_v2 }
 0x125   : > { %932 = vst [vmem:[%s1638_s9 + $0x30] sm:$0xff] %v888_v6  ;;  %v948_v8 = vadd.f32 %v947_v57, %v888_v6  ;;  %v973_v9 = vmul.f32 %v888_v6, %v888_v6  ;;  %v891_v10 = vadd.f32 %v1341_v7, %v1277_v4 }
 0x126   : > { %v1278_v11 = vpop.f32.mrb[16].mxu0 }
 0x127   : > { %v988_v12 = vadd.f32 %v987_v0, %v973_v9  ;;  %933 = vst [vmem:[%s1638_s9 + $0x38] sm:$0xff] %v891_v10  ;;  %v949_v13 = vadd.f32 %v948_v8, %v891_v10  ;;  %v974_v14 = vmul.f32 %v891_v10, %v891_v10  ;;  %v1342_v15 = vpop.f32.mrb[16].mxu1  ;;  %v1279_v16 = vpop.f32.mrb[17].mxu0 }
 0x128   : > { %v1280_v17 = vadd.f32 %v1279_v16, %v1278_v11  ;;  %v1343_v18 = vpop.f32.mrb[17].mxu1  ;;  %v1281_v19 = vpop.f32.mrb[18].mxu0 }
 0x129   : > { %v989_v20 = vadd.f32 %v988_v12, %v974_v14  ;;  %v1344_v21 = vadd.f32 %v1343_v18, %v1342_v15  ;;  %v1345_v22 = vpop.f32.mrb[18].mxu1  ;;  %v1282_v23 = vpop.f32.mrb[19].mxu0 }
 0x12a   : > { %v1283_v24 = vadd.f32 %v1282_v23, %v1281_v19  ;;  %v1346_v25 = vpop.f32.mrb[19].mxu1 }
 0x12b   : > { %v896_v26 = vadd.f32 %v1344_v21, %v1280_v17  ;;  %v1347_v27 = vadd.f32 %v1346_v25, %v1345_v22 }
 0x12d   : > { %934 = vst [vmem:[%s1638_s9 + $0x40] sm:$0xff] %v896_v26  ;;  %v950_v28 = vadd.f32 %v949_v13, %v896_v26  ;;  %v975_v29 = vmul.f32 %v896_v26, %v896_v26  ;;  %v899_v30 = vadd.f32 %v1347_v27, %v1283_v24 }
 0x12e   : > { %v1284_v31 = vpop.f32.mrb[20].mxu0 }
 0x12f   : > { %v990_v32 = vadd.f32 %v989_v20, %v975_v29  ;;  %935 = vst [vmem:[%s1638_s9 + $0x48] sm:$0xff] %v899_v30  ;;  %v951_v33 = vadd.f32 %v950_v28, %v899_v30  ;;  %v976_v34 = vmul.f32 %v899_v30, %v899_v30  ;;  %v1348_v35 = vpop.f32.mrb[20].mxu1  ;;  %v1285_v36 = vpop.f32.mrb[21].mxu0 }
 0x130   : > { %v1286_v37 = vadd.f32 %v1285_v36, %v1284_v31  ;;  %v1349_v38 = vpop.f32.mrb[21].mxu1  ;;  %v1287_v39 = vpop.f32.mrb[22].mxu0 }
 0x131   : > { %v991_v40 = vadd.f32 %v990_v32, %v976_v34  ;;  %v1350_v41 = vadd.f32 %v1349_v38, %v1348_v35  ;;  %v1351_v42 = vpop.f32.mrb[22].mxu1  ;;  %v1288_v43 = vpop.f32.mrb[23].mxu0 }
 0x132   : > { %v1289_v44 = vadd.f32 %v1288_v43, %v1287_v39  ;;  %v1352_v45 = vpop.f32.mrb[23].mxu1  ;;  %v966_v43 = vld [vmem:[%s1630_s5] sm:$0x1] }
 0x133   : > { %v904_v46 = vadd.f32 %v1350_v41, %v1286_v37  ;;  %v1353_v47 = vadd.f32 %v1352_v45, %v1351_v42 }
 0x135   : > { %936 = vst [vmem:[%s1638_s9 + $0x50] sm:$0xff] %v904_v46  ;;  %v952_v48 = vadd.f32 %v951_v33, %v904_v46  ;;  %v977_v49 = vmul.f32 %v904_v46, %v904_v46  ;;  %v907_v50 = vadd.f32 %v1353_v47, %v1289_v44 }
 0x136   : > { %v1290_v51 = vpop.f32.mrb[24].mxu0 }
 0x137   : > { %v992_v52 = vadd.f32 %v991_v40, %v977_v49  ;;  %937 = vst [vmem:[%s1638_s9 + $0x58] sm:$0xff] %v907_v50  ;;  %v953_v53 = vadd.f32 %v952_v48, %v907_v50  ;;  %v978_v54 = vmul.f32 %v907_v50, %v907_v50  ;;  %v1354_v55 = vpop.f32.mrb[24].mxu1  ;;  %v1291_v56 = vpop.f32.mrb[25].mxu0  ;;  %v942_v40 = vld [vmem:[%s1624_s28] sm:$0x1] }
 0x138   : > { %v1292_v57 = vadd.f32 %v1291_v56, %v1290_v51  ;;  %v1355_v58 = vpop.f32.mrb[25].mxu1  ;;  %v1293_v59 = vpop.f32.mrb[26].mxu0 }
 0x139   : > { %v993_v60 = vadd.f32 %v992_v52, %v978_v54  ;;  %v1356_v61 = vadd.f32 %v1355_v58, %v1354_v55  ;;  %v1357_v62 = vpop.f32.mrb[26].mxu1  ;;  %v1294_v63 = vpop.f32.mrb[27].mxu0 }
 0x13a   : > { %v1295_v0 = vadd.f32 %v1294_v63, %v1293_v59  ;;  %v1358_v1 = vpop.f32.mrb[27].mxu1 }
 0x13b   : > { %v912_v2 = vadd.f32 %v1356_v61, %v1292_v57  ;;  %v1359_v3 = vadd.f32 %v1358_v1, %v1357_v62 }
 0x13d   : > { %938 = vst [vmem:[%s1638_s9 + $0x60] sm:$0xff] %v912_v2  ;;  %v954_v4 = vadd.f32 %v953_v53, %v912_v2  ;;  %v979_v5 = vmul.f32 %v912_v2, %v912_v2  ;;  %v915_v6 = vadd.f32 %v1359_v3, %v1295_v0 }
 0x13e   : > { %v1296_v7 = vpop.f32.mrb[28].mxu0 }
 0x13f   : > { %v994_v8 = vadd.f32 %v993_v60, %v979_v5  ;;  %939 = vst [vmem:[%s1638_s9 + $0x68] sm:$0xff] %v915_v6  ;;  %v955_v9 = vadd.f32 %v954_v4, %v915_v6  ;;  %v980_v10 = vmul.f32 %v915_v6, %v915_v6  ;;  %v1360_v11 = vpop.f32.mrb[28].mxu1  ;;  %v1297_v12 = vpop.f32.mrb[29].mxu0 }
 0x140   : > { %v1298_v13 = vadd.f32 %v1297_v12, %v1296_v7  ;;  %v1361_v14 = vpop.f32.mrb[29].mxu1  ;;  %v1299_v15 = vpop.f32.mrb[30].mxu0 }
 0x141   : > { %v995_v16 = vadd.f32 %v994_v8, %v980_v10  ;;  %v1362_v17 = vadd.f32 %v1361_v14, %v1360_v11  ;;  %v1363_v18 = vpop.f32.mrb[30].mxu1  ;;  %v1300_v19 = vpop.f32.mrb[31].mxu0 }
 0x142   : > { %v1301_v20 = vadd.f32 %v1300_v19, %v1299_v15  ;;  %v1364_v21 = vpop.f32.mrb[31].mxu1 }
 0x143   : > { %v920_v22 = vadd.f32 %v1362_v17, %v1298_v13  ;;  %v1365_v23 = vadd.f32 %v1364_v21, %v1363_v18 }
 0x145   : > { %940 = vst [vmem:[%s1638_s9 + $0x70] sm:$0xff] %v920_v22  ;;  %v956_v24 = vadd.f32 %v955_v9, %v920_v22  ;;  %v981_v25 = vmul.f32 %v920_v22, %v920_v22  ;;  %v923_v26 = vadd.f32 %v1365_v23, %v1301_v20 }
 0x147   : > { %v996_v27 = vadd.f32 %v995_v16, %v981_v25  ;;  %941 = vst [vmem:[%s1638_s9 + $0x78] sm:$0xff] %v923_v26  ;;  %v957_v28 = vadd.f32 %v956_v24, %v923_v26  ;;  %v982_v29 = vmul.f32 %v923_v26, %v923_v26 }
 0x149   : > { %v958_v30 = vrot.slane %v957_v28, 4  ;;  %v997_v31 = vadd.f32 %v996_v27, %v982_v29 }
 0x14b   : > { %v959_v32 = vadd.f32 %v958_v30, %v957_v28  ;;  %v998_v33 = vrot.slane %v997_v31, 4 }
 0x14d   : > { %v960_v34 = vrot.slane %v959_v32, 2  ;;  %v999_v35 = vadd.f32 %v998_v33, %v997_v31 }
 0x14f   : > { %v961_v36 = vadd.f32 %v960_v34, %v959_v32  ;;  %v1000_v37 = vrot.slane %v999_v35, 2 }
 0x151   : > { %v962_v38 = vrot.slane %v961_v36, 1  ;;  %v1001_v39 = vadd.f32 %v1000_v37, %v999_v35 }
 0x153   : > { %v963_v41 = vadd.f32 %v962_v38, %v961_v36  ;;  %v1002_v42 = vrot.slane %v1001_v39, 1 }
 0x155   : > { %v964_v44 = vadd.f32 %v963_v41, %v942_v40  ;;  %v1003_v45 = vadd.f32 %v1002_v42, %v1001_v39 }
 0x157   : > { %965 = vst [vmem:[%s1624_s28] sm:$0x1] %v964_v44  ;;  %v1004_v46 = vadd.f32 %v1003_v45, %v966_v43 }
 0x159   : > { %1005 = vst [vmem:[%s1630_s5] sm:$0x1] %v1004_v46 }
 0x15a PF: > { %s15_s17 = sadd.s32 1, %s1493_s17   ;;  %s1674_s15 = smov %s1489_s16 }
 0x15b   : > { %p12_p5 = scmp.ge.s32.totalorder %s15_s17, 6   ;;  %s1675_s16 = smov %s1677_s18 }
 0x15d   :  { %14 = sbr.rel (!%p12_p5) target bundleno = 2 (0x2), region = 89 }

// kernel: generator_forward.15
= control target key start
LH: loop header
LB: loop body
LE: loop exit
PB: predicated region body
PF: predicated region fallthrough
CT: control target
= control target key end

     0   :  { %s2851_s15 = smov 0   ;;  %s2853_s16 = smov 0   ;;  %s3172_s0 = inlined_call_operand.vmem [shape: bf16[4,512,512], index: 0, kind: input, shape index: {}]   ;;  %s3173_s1 = inlined_call_operand.vmem [shape: bf16[4,512,128], index: 1, kind: input, shape index: {}]   ;;  %s3174_s2 = inlined_call_operand.vmem [shape: f32[4,512,128], index: 2, kind: output, shape index: {0}]   ;;  %s3175_s3 = inlined_call_operand.vmem [shape: f32[4,1,128], index: 3, kind: output, shape index: {1}]   ;;  %s3176_s4 = inlined_call_operand.vmem [shape: f32[4,1,128], index: 4, kind: output, shape index: {2}]  }
   0x1   :  { %s2855_s17 = smov 0  }
   0x2 LB: > { %s27_s18 = sadd.s32 1, %s2818_s16  ;;  %p2314_p0 = scmp.ge.s32.totalorder %s2822_s17, 1  ;;  %s2822_s17 = sphi %s2855_s17, %s15_s17   ;;  %s2818_s16 = sphi %s2853_s16, %s3178_s16   ;;  %s2814_s15 = sphi %s2851_s15, %s3177_s15  }
   0x3   : > { %p29_p1 = scmp.ge.s32.totalorder %s27_s18, 4  ;;  %p199_p2 = scmp.lt.s32.totalorder %s2822_s17, 5 }
   0x5   : > { %s3180_s18 = smov (%p29_p1, %s27_s18), 0  ;;  %p200_p3 = pnand %p2314_p0, %p199_p2 }
   0x6   : > { %p246_p4 = scmp.lt.s32.totalorder (!%p200_p3), %s2814_s15, 3  ;;  %v2824_v0 = vmov (!%p200_p3), 0  }
   0x7   : > { %203 = sbr.rel (%p200_p3) target bundleno = 565 (0x235), region = 28  ;;  %1308 = vmatprep.subr.bf16.mxu1 (!%p200_p3), %v2824_v0  ;;  %1597 = vmatprep.subr.bf16.mxu0 (!%p200_p3), %v2824_v0 }
   0xe   : > { %s3182_s15 = smov (!%p246_p4, %s2814_s15), 3 }
   0xf   : > { %s2484_s19 = sshll.u32 %s3182_s15, 8  ;;  %s2483_s23 = sshll.u32 %s3182_s15, 10 }
  0x10   : > { %s2877_s22 = scalar_lea.vmem %s3173_s1, %s2484_s19  ;;  %s2914_s26 = scalar_lea.vmem %s3172_s0, %s2483_s23 }
  0x11   : > { %v2576_v1 = vld [vmem:[%s2877_s22] sm:$0xff]   ;;  %v2578_v3 = vld [vmem:[%s2877_s22 + $0x8] sm:$0xff]   ;;  %v2580_v5 = vld [vmem:[%s2877_s22 + $0x10] sm:$0xff]   ;;  %s2485_s27 = sshll.u32 %s3182_s15, 9  ;;  %s3117_s7 = scalar_lea.vmem %s3175_s3, %s3182_s15 }
  0x12   : > { %v2577_v2 = vld [vmem:[%s2877_s22 + $0x80] sm:$0xff]   ;;  %1309 = vmatpush1.bf16.msra.mxu1 %v2576_v1  ;;  %v2579_v4 = vld [vmem:[%s2877_s22 + $0x88] sm:$0xff]   ;;  %v2581_v6 = vld [vmem:[%s2877_s22 + $0x90] sm:$0xff]   ;;  %s3061_s30 = scalar_lea.vmem %s3174_s2, %s2485_s27  ;;  %s3123_s10 = scalar_lea.vmem %s3176_s4, %s3182_s15 }
  0x13   : > { %1598 = vmatpush1.bf16.msra.mxu0 %v2577_v2  ;;  %1310 = vmatprep.subr.bf16.mxu1 %v2824_v0  ;;  %v2582_v7 = vld [vmem:[%s2877_s22 + $0x18] sm:$0xff]   ;;  %v2584_v9 = vld [vmem:[%s2877_s22 + $0x20] sm:$0xff]   ;;  %v2586_v11 = vld [vmem:[%s2877_s22 + $0x28] sm:$0xff]  }
  0x14   : > { %1599 = vmatprep.subr.bf16.mxu0 %v2824_v0  ;;  %v2583_v8 = vld [vmem:[%s2877_s22 + $0x98] sm:$0xff]   ;;  %v2585_v10 = vld [vmem:[%s2877_s22 + $0xa0] sm:$0xff]   ;;  %v2587_v12 = vld [vmem:[%s2877_s22 + $0xa8] sm:$0xff]  }
  0x15   : > { %v2588_v13 = vld [vmem:[%s2877_s22 + $0x30] sm:$0xff]   ;;  %v2590_v15 = vld [vmem:[%s2877_s22 + $0x38] sm:$0xff]   ;;  %v2592_v17 = vld [vmem:[%s2877_s22 + $0x40] sm:$0xff]  }
  0x16   : > { %1311 = vmatpush1.bf16.msra.mxu1 %v2578_v3  ;;  %v2589_v14 = vld [vmem:[%s2877_s22 + $0xb0] sm:$0xff]   ;;  %v2591_v16 = vld [vmem:[%s2877_s22 + $0xb8] sm:$0xff]   ;;  %v2593_v18 = vld [vmem:[%s2877_s22 + $0xc0] sm:$0xff]  }
  0x17   : > { %1600 = vmatpush1.bf16.msra.mxu0 %v2579_v4  ;;  %1312 = vmatprep.subr.bf16.mxu1 %v2824_v0  ;;  %v2610_v19 = vld [vmem:[%s2914_s26 + $0x4] ss:$16 sps:$4 sm:$0xff]   ;;  %v2594_v20 = vld [vmem:[%s2877_s22 + $0x48] sm:$0xff]   ;;  %v2598_v25 = vld [vmem:[%s2877_s22 + $0x58] sm:$0xff]  }
  0x18   : > { %1601 = vmatprep.subr.bf16.mxu0 %v2824_v0  ;;  %v2613_v21 = vld [vmem:[%s2914_s26 + $0xc] ss:$16 sps:$4 sm:$0xff]   ;;  %1340 = vmatprep.mubr.bf16.mxu1 %v2610_v19  ;;  %v2596_v23 = vld [vmem:[%s2877_s22 + $0x50] sm:$0xff]   ;;  %v2600_v27 = vld [vmem:[%s2877_s22 + $0x60] sm:$0xff]  }
  0x19   : > { %v2595_v22 = vld [vmem:[%s2877_s22 + $0xc8] sm:$0xff]   ;;  %1629 = vmatprep.mubr.bf16.mxu0 %v2613_v21  ;;  %v2597_v24 = vld [vmem:[%s2877_s22 + $0xd0] sm:$0xff]   ;;  %v2599_v26 = vld [vmem:[%s2877_s22 + $0xd8] sm:$0xff]  }
  0x1a   : > { %1313 = vmatpush1.bf16.msra.mxu1 %v2580_v5  ;;  %v2601_v28 = vld [vmem:[%s2877_s22 + $0xe0] sm:$0xff]   ;;  %v2602_v29 = vld [vmem:[%s2877_s22 + $0x68] sm:$0xff]   ;;  %v2604_v31 = vld [vmem:[%s2877_s22 + $0x70] sm:$0xff]  }
  0x1b   : > { %1602 = vmatpush1.bf16.msra.mxu0 %v2581_v6  ;;  %1314 = vmatprep.subr.bf16.mxu1 %v2824_v0  ;;  %v2603_v30 = vld [vmem:[%s2877_s22 + $0xe8] sm:$0xff]   ;;  %v2605_v32 = vld [vmem:[%s2877_s22 + $0xf0] sm:$0xff]   ;;  %v2606_v33 = vld [vmem:[%s2877_s22 + $0x78] sm:$0xff]  }
  0x1c   : > { %1603 = vmatprep.subr.bf16.mxu0 %v2824_v0  ;;  %v2607_v34 = vld [vmem:[%s2877_s22 + $0xf8] sm:$0xff]   ;;  %v2608_v35 = vld [vmem:[%s2914_s26] ss:$16 sps:$4 sm:$0xff]   ;;  %v2614_v37 = vld [vmem:[%s2914_s26 + $0x24] ss:$16 sps:$4 sm:$0xff]  }
  0x1d   : > { %v2611_v36 = vld [vmem:[%s2914_s26 + $0x8] ss:$16 sps:$4 sm:$0xff]   ;;  %v2616_v38 = vld [vmem:[%s2914_s26 + $0x2c] ss:$16 sps:$4 sm:$0xff]   ;;  %v2618_v39 = vld [vmem:[%s2914_s26 + $0x20] ss:$16 sps:$4 sm:$0xff]  }
  0x1e   : > { %1315 = vmatpush1.bf16.msra.mxu1 %v2582_v7  ;;  %v2619_v40 = vld [vmem:[%s2914_s26 + $0x28] ss:$16 sps:$4 sm:$0xff]   ;;  %v2620_v41 = vld [vmem:[%s2914_s26 + $0x44] ss:$16 sps:$4 sm:$0xff]   ;;  %v2622_v42 = vld [vmem:[%s2914_s26 + $0x4c] ss:$16 sps:$4 sm:$0xff]  }
  0x1f   : > { %1604 = vmatpush1.bf16.msra.mxu0 %v2583_v8  ;;  %1316 = vmatprep.subr.bf16.mxu1 %v2824_v0  ;;  %v2624_v43 = vld [vmem:[%s2914_s26 + $0x40] ss:$16 sps:$4 sm:$0xff]   ;;  %v2625_v44 = vld [vmem:[%s2914_s26 + $0x48] ss:$16 sps:$4 sm:$0xff]   ;;  %v2626_v45 = vld [vmem:[%s2914_s26 + $0x64] ss:$16 sps:$4 sm:$0xff]  }
  0x20   : > { %1605 = vmatprep.subr.bf16.mxu0 %v2824_v0  ;;  %v2628_v46 = vld [vmem:[%s2914_s26 + $0x6c] ss:$16 sps:$4 sm:$0xff]   ;;  %v2630_v47 = vld [vmem:[%s2914_s26 + $0x60] ss:$16 sps:$4 sm:$0xff]   ;;  %v2631_v48 = vld [vmem:[%s2914_s26 + $0x68] ss:$16 sps:$4 sm:$0xff]  }
  0x21   : > { %v2632_v49 = vld [vmem:[%s2914_s26 + $0x84] ss:$16 sps:$4 sm:$0xff]   ;;  %v2634_v50 = vld [vmem:[%s2914_s26 + $0x8c] ss:$16 sps:$4 sm:$0xff]   ;;  %v2636_v51 = vld [vmem:[%s2914_s26 + $0x80] ss:$16 sps:$4 sm:$0xff]  }
  0x22   : > { %1317 = vmatpush1.bf16.msra.mxu1 %v2584_v9  ;;  %v2637_v52 = vld [vmem:[%s2914_s26 + $0x88] ss:$16 sps:$4 sm:$0xff]   ;;  %v2638_v53 = vld [vmem:[%s2914_s26 + $0xa4] ss:$16 sps:$4 sm:$0xff]   ;;  %v2640_v54 = vld [vmem:[%s2914_s26 + $0xac] ss:$16 sps:$4 sm:$0xff]  }
  0x23   : > { %1606 = vmatpush1.bf16.msra.mxu0 %v2585_v10  ;;  %1318 = vmatprep.subr.bf16.mxu1 %v2824_v0  ;;  %v2642_v55 = vld [vmem:[%s2914_s26 + $0xa0] ss:$16 sps:$4 sm:$0xff]   ;;  %v2643_v56 = vld [vmem:[%s2914_s26 + $0xa8] ss:$16 sps:$4 sm:$0xff]   ;;  %v2644_v57 = vld [vmem:[%s2914_s26 + $0xc4] ss:$16 sps:$4 sm:$0xff]  }
  0x24   : > { %1607 = vmatprep.subr.bf16.mxu0 %v2824_v0  ;;  %v2646_v58 = vld [vmem:[%s2914_s26 + $0xcc] ss:$16 sps:$4 sm:$0xff]   ;;  %v2648_v59 = vld [vmem:[%s2914_s26 + $0xc0] ss:$16 sps:$4 sm:$0xff]   ;;  %v2649_v60 = vld [vmem:[%s2914_s26 + $0xc8] ss:$16 sps:$4 sm:$0xff]  }
  0x25   : > { %v2650_v61 = vld [vmem:[%s2914_s26 + $0xe4] ss:$16 sps:$4 sm:$0xff]   ;;  %v2652_v62 = vld [vmem:[%s2914_s26 + $0xec] ss:$16 sps:$4 sm:$0xff]   ;;  %v2654_v63 = vld [vmem:[%s2914_s26 + $0xe0] ss:$16 sps:$4 sm:$0xff]  }
  0x26   : > { %1319 = vmatpush1.bf16.msra.mxu1 %v2586_v11  ;;  %v2656_v1 = vld [vmem:[%s2914_s26 + $0x104] ss:$16 sps:$4 sm:$0xff]   ;;  %v2658_v2 = vld [vmem:[%s2914_s26 + $0x10c] ss:$16 sps:$4 sm:$0xff]   ;;  %v2660_v3 = vld [vmem:[%s2914_s26 + $0x100] ss:$16 sps:$4 sm:$0xff]  }
  0x27   : > { %1608 = vmatpush1.bf16.msra.mxu0 %v2587_v12  ;;  %1320 = vmatprep.subr.bf16.mxu1 %v2824_v0  ;;  %v2661_v4 = vld [vmem:[%s2914_s26 + $0x108] ss:$16 sps:$4 sm:$0xff]   ;;  %v2662_v5 = vld [vmem:[%s2914_s26 + $0x124] ss:$16 sps:$4 sm:$0xff]   ;;  %v2664_v6 = vld [vmem:[%s2914_s26 + $0x12c] ss:$16 sps:$4 sm:$0xff]  }
  0x28   : > { %1609 = vmatprep.subr.bf16.mxu0 %v2824_v0  ;;  %v2666_v7 = vld [vmem:[%s2914_s26 + $0x120] ss:$16 sps:$4 sm:$0xff]   ;;  %v2667_v8 = vld [vmem:[%s2914_s26 + $0x128] ss:$16 sps:$4 sm:$0xff]   ;;  %v2668_v9 = vld [vmem:[%s2914_s26 + $0x144] ss:$16 sps:$4 sm:$0xff]  }
  0x29   : > { %v2670_v10 = vld [vmem:[%s2914_s26 + $0x14c] ss:$16 sps:$4 sm:$0xff]   ;;  %v2672_v11 = vld [vmem:[%s2914_s26 + $0x140] ss:$16 sps:$4 sm:$0xff]   ;;  %v2673_v12 = vld [vmem:[%s2914_s26 + $0x148] ss:$16 sps:$4 sm:$0xff]  }
  0x2a   : > { %1321 = vmatpush1.bf16.msra.mxu1 %v2588_v13  ;;  %v2674_v13 = vld [vmem:[%s2914_s26 + $0x164] ss:$16 sps:$4 sm:$0xff]   ;;  %v2684_v19 = vld [vmem:[%s2914_s26 + $0x180] ss:$16 sps:$4 sm:$0xff]  }
  0x2b   : > { %1610 = vmatpush1.bf16.msra.mxu0 %v2589_v14  ;;  %1322 = vmatprep.subr.bf16.mxu1 %v2824_v0  ;;  %v2676_v14 = vld [vmem:[%s2914_s26 + $0x16c] ss:$16 sps:$4 sm:$0xff]   ;;  %v2686_v21 = vld [vmem:[%s2914_s26 + $0x1a4] ss:$16 sps:$4 sm:$0xff]  }
  0x2c   : > { %1611 = vmatprep.subr.bf16.mxu0 %v2824_v0 }
  0x2e   : > { %1323 = vmatpush1.bf16.msra.mxu1 %v2590_v15  ;;  %v2678_v15 = vld [vmem:[%s2914_s26 + $0x160] ss:$16 sps:$4 sm:$0xff]  }
  0x2f   : > { %1612 = vmatpush1.bf16.msra.mxu0 %v2591_v16  ;;  %1324 = vmatprep.subr.bf16.mxu1 %v2824_v0  ;;  %v2679_v16 = vld [vmem:[%s2914_s26 + $0x168] ss:$16 sps:$4 sm:$0xff]  }
  0x30   : > { %1613 = vmatprep.subr.bf16.mxu0 %v2824_v0 }
  0x32   : > { %1325 = vmatpush1.bf16.msra.mxu1 %v2592_v17  ;;  %v2680_v17 = vld [vmem:[%s2914_s26 + $0x184] ss:$16 sps:$4 sm:$0xff]  }
  0x33   : > { %1614 = vmatpush1.bf16.msra.mxu0 %v2593_v18  ;;  %1326 = vmatprep.subr.bf16.mxu1 %v2824_v0  ;;  %v2682_v18 = vld [vmem:[%s2914_s26 + $0x18c] ss:$16 sps:$4 sm:$0xff]  }
  0x34   : > { %1615 = vmatprep.subr.bf16.mxu0 %v2824_v0 }
  0x36   : > { %1327 = vmatpush1.bf16.msra.mxu1 %v2594_v20  ;;  %v2685_v20 = vld [vmem:[%s2914_s26 + $0x188] ss:$16 sps:$4 sm:$0xff]  }
  0x37   : > { %1616 = vmatpush1.bf16.msra.mxu0 %v2595_v22  ;;  %1328 = vmatprep.subr.bf16.mxu1 %v2824_v0  ;;  %v2688_v22 = vld [vmem:[%s2914_s26 + $0x1ac] ss:$16 sps:$4 sm:$0xff]  }
  0x38   : > { %1617 = vmatprep.subr.bf16.mxu0 %v2824_v0 }
  0x3a   : > { %1329 = vmatpush1.bf16.msra.mxu1 %v2596_v23  ;;  %v2690_v23 = vld [vmem:[%s2914_s26 + $0x1a0] ss:$16 sps:$4 sm:$0xff]  }
  0x3b   : > { %1618 = vmatpush1.bf16.msra.mxu0 %v2597_v24  ;;  %1330 = vmatprep.subr.bf16.mxu1 %v2824_v0  ;;  %v2691_v24 = vld [vmem:[%s2914_s26 + $0x1a8] ss:$16 sps:$4 sm:$0xff]  }
  0x3c   : > { %1619 = vmatprep.subr.bf16.mxu0 %v2824_v0 }
  0x3e   : > { %1331 = vmatpush1.bf16.msra.mxu1 %v2598_v25  ;;  %v2692_v25 = vld [vmem:[%s2914_s26 + $0x1c4] ss:$16 sps:$4 sm:$0xff]  }
  0x3f   : > { %1620 = vmatpush1.bf16.msra.mxu0 %v2599_v26  ;;  %1332 = vmatprep.subr.bf16.mxu1 %v2824_v0  ;;  %v2694_v26 = vld [vmem:[%s2914_s26 + $0x1cc] ss:$16 sps:$4 sm:$0xff]  }
  0x40   : > { %1621 = vmatprep.subr.bf16.mxu0 %v2824_v0 }
  0x42   : > { %1333 = vmatpush1.bf16.msra.mxu1 %v2600_v27  ;;  %v2696_v27 = vld [vmem:[%s2914_s26 + $0x1c0] ss:$16 sps:$4 sm:$0xff]  }
  0x43   : > { %1622 = vmatpush1.bf16.msra.mxu0 %v2601_v28  ;;  %1334 = vmatprep.subr.bf16.mxu1 %v2824_v0  ;;  %v2697_v28 = vld [vmem:[%s2914_s26 + $0x1c8] ss:$16 sps:$4 sm:$0xff]  }
  0x44   : > { %1623 = vmatprep.subr.bf16.mxu0 %v2824_v0 }
  0x46   : > { %1335 = vmatpush1.bf16.msra.mxu1 %v2602_v29  ;;  %v2698_v29 = vld [vmem:[%s2914_s26 + $0x1e4] ss:$16 sps:$4 sm:$0xff]  }
  0x47   : > { %1624 = vmatpush1.bf16.msra.mxu0 %v2603_v30  ;;  %1336 = vmatprep.subr.bf16.mxu1 %v2824_v0  ;;  %v2700_v30 = vld [vmem:[%s2914_s26 + $0x1ec] ss:$16 sps:$4 sm:$0xff]  }
  0x48   : > { %1625 = vmatprep.subr.bf16.mxu0 %v2824_v0 }
  0x4a   : > { %1337 = vmatpush1.bf16.msra.mxu1 %v2604_v31  ;;  %v2702_v31 = vld [vmem:[%s2914_s26 + $0x1e0] ss:$16 sps:$4 sm:$0xff]  }
  0x4b   : > { %1626 = vmatpush1.bf16.msra.mxu0 %v2605_v32  ;;  %1338 = vmatprep.subr.bf16.mxu1 %v2824_v0  ;;  %v2703_v32 = vld [vmem:[%s2914_s26 + $0x1e8] ss:$16 sps:$4 sm:$0xff]  }
  0x4c   : > { %1627 = vmatprep.subr.bf16.mxu0 %v2824_v0  ;;  %v2655_v0 = vld [vmem:[%s2914_s26 + $0xe8] ss:$16 sps:$4 sm:$0xff]  }
  0x4e   : > { %1339 = vmatpush1.bf16.msra.mxu1 %v2606_v33  ;;  %v2704_v33 = vld [vmem:[%s2914_s26 + $0x204] ss:$16 sps:$4 sm:$0xff]  }
  0x4f   : > { %1628 = vmatpush1.bf16.msra.mxu0 %v2607_v34  ;;  %v2706_v34 = vld [vmem:[%s2914_s26 + $0x20c] ss:$16 sps:$4 sm:$0xff]  }
  0x51   : > { %1341 = vmatmul.mubr.bf16.vlgmr.msra.gmra.mrb[0].mxu1 %v2608_v35  ;;  %v2708_v35 = vld [vmem:[%s2914_s26 + $0x200] ss:$16 sps:$4 sm:$0xff]  }
  0x52   : > { %1630 = vmatmul.mubr.bf16.vlgmr.msra.gmra.mrb[0].mxu0 %v2611_v36  ;;  %1348 = vmatprep.mubr.bf16.mxu1 %v2614_v37  ;;  %v2709_v36 = vld [vmem:[%s2914_s26 + $0x208] ss:$16 sps:$4 sm:$0xff]   ;;  %v2710_v37 = vld [vmem:[%s2914_s26 + $0x224] ss:$16 sps:$4 sm:$0xff]  }
  0x53   : > { %1637 = vmatprep.mubr.bf16.mxu0 %v2616_v38  ;;  %v2712_v38 = vld [vmem:[%s2914_s26 + $0x22c] ss:$16 sps:$4 sm:$0xff]  }
  0x59   : > { %1349 = vmatmul.mubr.bf16.gmra.mrb[4].mxu1 %v2618_v39  ;;  %v2714_v39 = vld [vmem:[%s2914_s26 + $0x220] ss:$16 sps:$4 sm:$0xff]  }
  0x5a   : > { %1638 = vmatmul.mubr.bf16.gmra.mrb[4].mxu0 %v2619_v40  ;;  %1356 = vmatprep.mubr.bf16.mxu1 %v2620_v41  ;;  %v2715_v40 = vld [vmem:[%s2914_s26 + $0x228] ss:$16 sps:$4 sm:$0xff]   ;;  %v2716_v41 = vld [vmem:[%s2914_s26 + $0x244] ss:$16 sps:$4 sm:$0xff]  }
  0x5b   : > { %1645 = vmatprep.mubr.bf16.mxu0 %v2622_v42  ;;  %v2718_v42 = vld [vmem:[%s2914_s26 + $0x24c] ss:$16 sps:$4 sm:$0xff]  }
  0x61   : > { %1357 = vmatmul.mubr.bf16.gmra.mrb[8].mxu1 %v2624_v43  ;;  %v2720_v43 = vld [vmem:[%s2914_s26 + $0x240] ss:$16 sps:$4 sm:$0xff]  }
  0x62   : > { %1646 = vmatmul.mubr.bf16.gmra.mrb[8].mxu0 %v2625_v44  ;;  %1364 = vmatprep.mubr.bf16.mxu1 %v2626_v45  ;;  %v2721_v44 = vld [vmem:[%s2914_s26 + $0x248] ss:$16 sps:$4 sm:$0xff]   ;;  %v2722_v45 = vld [vmem:[%s2914_s26 + $0x264] ss:$16 sps:$4 sm:$0xff]  }
  0x63   : > { %1653 = vmatprep.mubr.bf16.mxu0 %v2628_v46  ;;  %v2724_v46 = vld [vmem:[%s2914_s26 + $0x26c] ss:$16 sps:$4 sm:$0xff]  }
  0x69   : > { %1365 = vmatmul.mubr.bf16.gmra.mrb[12].mxu1 %v2630_v47  ;;  %v2726_v47 = vld [vmem:[%s2914_s26 + $0x260] ss:$16 sps:$4 sm:$0xff]  }
  0x6a   : > { %1654 = vmatmul.mubr.bf16.gmra.mrb[12].mxu0 %v2631_v48  ;;  %1372 = vmatprep.mubr.bf16.mxu1 %v2632_v49  ;;  %v2727_v48 = vld [vmem:[%s2914_s26 + $0x268] ss:$16 sps:$4 sm:$0xff]   ;;  %v2728_v49 = vld [vmem:[%s2914_s26 + $0x284] ss:$16 sps:$4 sm:$0xff]  }
  0x6b   : > { %1661 = vmatprep.mubr.bf16.mxu0 %v2634_v50  ;;  %v2730_v50 = vld [vmem:[%s2914_s26 + $0x28c] ss:$16 sps:$4 sm:$0xff]  }
  0x71   : > { %1373 = vmatmul.mubr.bf16.gmra.mrb[16].mxu1 %v2636_v51  ;;  %v2732_v51 = vld [vmem:[%s2914_s26 + $0x280] ss:$16 sps:$4 sm:$0xff]  }
  0x72   : > { %1662 = vmatmul.mubr.bf16.gmra.mrb[16].mxu0 %v2637_v52  ;;  %1380 = vmatprep.mubr.bf16.mxu1 %v2638_v53  ;;  %v2733_v52 = vld [vmem:[%s2914_s26 + $0x288] ss:$16 sps:$4 sm:$0xff]   ;;  %v2734_v53 = vld [vmem:[%s2914_s26 + $0x2a4] ss:$16 sps:$4 sm:$0xff]  }
  0x73   : > { %1669 = vmatprep.mubr.bf16.mxu0 %v2640_v54  ;;  %v2736_v54 = vld [vmem:[%s2914_s26 + $0x2ac] ss:$16 sps:$4 sm:$0xff]  }
  0x79   : > { %1381 = vmatmul.mubr.bf16.gmra.mrb[20].mxu1 %v2642_v55  ;;  %v2738_v55 = vld [vmem:[%s2914_s26 + $0x2a0] ss:$16 sps:$4 sm:$0xff]  }
  0x7a   : > { %1670 = vmatmul.mubr.bf16.gmra.mrb[20].mxu0 %v2643_v56  ;;  %1388 = vmatprep.mubr.bf16.mxu1 %v2644_v57  ;;  %v2739_v56 = vld [vmem:[%s2914_s26 + $0x2a8] ss:$16 sps:$4 sm:$0xff]   ;;  %v2740_v57 = vld [vmem:[%s2914_s26 + $0x2c4] ss:$16 sps:$4 sm:$0xff]  }
  0x7b   : > { %1677 = vmatprep.mubr.bf16.mxu0 %v2646_v58  ;;  %v2742_v58 = vld [vmem:[%s2914_s26 + $0x2cc] ss:$16 sps:$4 sm:$0xff]  }
  0x81   : > { %1389 = vmatmul.mubr.bf16.gmra.mrb[24].mxu1 %v2648_v59  ;;  %v2744_v59 = vld [vmem:[%s2914_s26 + $0x2c0] ss:$16 sps:$4 sm:$0xff]  }
  0x82   : > { %1678 = vmatmul.mubr.bf16.gmra.mrb[24].mxu0 %v2649_v60  ;;  %1396 = vmatprep.mubr.bf16.mxu1 %v2650_v61  ;;  %v2745_v60 = vld [vmem:[%s2914_s26 + $0x2c8] ss:$16 sps:$4 sm:$0xff]   ;;  %v2746_v61 = vld [vmem:[%s2914_s26 + $0x2e4] ss:$16 sps:$4 sm:$0xff]  }
  0x83   : > { %1685 = vmatprep.mubr.bf16.mxu0 %v2652_v62  ;;  %v2748_v62 = vld [vmem:[%s2914_s26 + $0x2ec] ss:$16 sps:$4 sm:$0xff]  }
  0x89   : > { %1397 = vmatmul.mubr.bf16.gmra.mrb[28].mxu1 %v2654_v63  ;;  %v2750_v63 = vld [vmem:[%s2914_s26 + $0x2e0] ss:$16 sps:$4 sm:$0xff]  }
  0x8a   : > { %1686 = vmatmul.mubr.bf16.gmra.mrb[28].mxu0 %v2655_v0  ;;  %1404 = vmatprep.mubr.bf16.mxu1 %v2656_v1  ;;  %v2751_v0 = vld [vmem:[%s2914_s26 + $0x2e8] ss:$16 sps:$4 sm:$0xff]   ;;  %v2752_v1 = vld [vmem:[%s2914_s26 + $0x304] ss:$16 sps:$4 sm:$0xff]  }
  0x8b   : > { %1693 = vmatprep.mubr.bf16.mxu0 %v2658_v2  ;;  %v2754_v2 = vld [vmem:[%s2914_s26 + $0x30c] ss:$16 sps:$4 sm:$0xff]  }
  0x91   : > { %1405 = vmatmul.mubr.bf16.gmra.mrb[32].mxu1 %v2660_v3  ;;  %v2756_v3 = vld [vmem:[%s2914_s26 + $0x300] ss:$16 sps:$4 sm:$0xff]  }
  0x92   : > { %1694 = vmatmul.mubr.bf16.gmra.mrb[32].mxu0 %v2661_v4  ;;  %1412 = vmatprep.mubr.bf16.mxu1 %v2662_v5  ;;  %v2757_v4 = vld [vmem:[%s2914_s26 + $0x308] ss:$16 sps:$4 sm:$0xff]   ;;  %v2758_v5 = vld [vmem:[%s2914_s26 + $0x324] ss:$16 sps:$4 sm:$0xff]  }
  0x93   : > { %1701 = vmatprep.mubr.bf16.mxu0 %v2664_v6  ;;  %v2760_v6 = vld [vmem:[%s2914_s26 + $0x32c] ss:$16 sps:$4 sm:$0xff]  }
  0x99   : > { %1413 = vmatmul.mubr.bf16.gmra.mrb[36].mxu1 %v2666_v7  ;;  %v2762_v7 = vld [vmem:[%s2914_s26 + $0x320] ss:$16 sps:$4 sm:$0xff]  }
  0x9a   : > { %1702 = vmatmul.mubr.bf16.gmra.mrb[36].mxu0 %v2667_v8  ;;  %1420 = vmatprep.mubr.bf16.mxu1 %v2668_v9  ;;  %v2763_v8 = vld [vmem:[%s2914_s26 + $0x328] ss:$16 sps:$4 sm:$0xff]   ;;  %v2764_v9 = vld [vmem:[%s2914_s26 + $0x344] ss:$16 sps:$4 sm:$0xff]  }
  0x9b   : > { %1709 = vmatprep.mubr.bf16.mxu0 %v2670_v10  ;;  %v2766_v10 = vld [vmem:[%s2914_s26 + $0x34c] ss:$16 sps:$4 sm:$0xff]  }
  0xa1   : > { %1421 = vmatmul.mubr.bf16.gmra.mrb[40].mxu1 %v2672_v11  ;;  %v2768_v11 = vld [vmem:[%s2914_s26 + $0x340] ss:$16 sps:$4 sm:$0xff]  }
  0xa2   : > { %1710 = vmatmul.mubr.bf16.gmra.mrb[40].mxu0 %v2673_v12  ;;  %1428 = vmatprep.mubr.bf16.mxu1 %v2674_v13  ;;  %v2769_v12 = vld [vmem:[%s2914_s26 + $0x348] ss:$16 sps:$4 sm:$0xff]   ;;  %v2770_v13 = vld [vmem:[%s2914_s26 + $0x364] ss:$16 sps:$4 sm:$0xff]  }
  0xa3   : > { %1717 = vmatprep.mubr.bf16.mxu0 %v2676_v14  ;;  %v2772_v14 = vld [vmem:[%s2914_s26 + $0x36c] ss:$16 sps:$4 sm:$0xff]  }
  0xa9   : > { %1429 = vmatmul.mubr.bf16.gmra.mrb[44].mxu1 %v2678_v15 }
  0xaa   : > { %1718 = vmatmul.mubr.bf16.gmra.mrb[44].mxu0 %v2679_v16  ;;  %1436 = vmatprep.mubr.bf16.mxu1 %v2680_v17 }
  0xab   : > { %1725 = vmatprep.mubr.bf16.mxu0 %v2682_v18  ;;  %v2774_v18 = vld [vmem:[%s2914_s26 + $0x360] ss:$16 sps:$4 sm:$0xff]  }
  0xb1   : > { %1437 = vmatmul.mubr.bf16.gmra.mrb[48].mxu1 %v2684_v19 }
  0xb2   : > { %1726 = vmatmul.mubr.bf16.gmra.mrb[48].mxu0 %v2685_v20  ;;  %1444 = vmatprep.mubr.bf16.mxu1 %v2686_v21 }
  0xb3   : > { %1733 = vmatprep.mubr.bf16.mxu0 %v2688_v22  ;;  %v2775_v22 = vld [vmem:[%s2914_s26 + $0x368] ss:$16 sps:$4 sm:$0xff]  }
  0xb9   : > { %1445 = vmatmul.mubr.bf16.gmra.mrb[52].mxu1 %v2690_v23  ;;  %v2776_v23 = vld [vmem:[%s2914_s26 + $0x384] ss:$16 sps:$4 sm:$0xff]  }
  0xba   : > { %1734 = vmatmul.mubr.bf16.gmra.mrb[52].mxu0 %v2691_v24  ;;  %1452 = vmatprep.mubr.bf16.mxu1 %v2692_v25 }
  0xbb   : > { %1741 = vmatprep.mubr.bf16.mxu0 %v2694_v26  ;;  %v2778_v26 = vld [vmem:[%s2914_s26 + $0x38c] ss:$16 sps:$4 sm:$0xff]  }
  0xc1   : > { %1453 = vmatmul.mubr.bf16.gmra.mrb[56].mxu1 %v2696_v27 }
  0xc2   : > { %1742 = vmatmul.mubr.bf16.gmra.mrb[56].mxu0 %v2697_v28  ;;  %1460 = vmatprep.mubr.bf16.mxu1 %v2698_v29 }
  0xc3   : > { %1749 = vmatprep.mubr.bf16.mxu0 %v2700_v30 }
  0xc9   : > { %1461 = vmatmul.mubr.bf16.gmra.mrb[60].mxu1 %v2702_v31 }
  0xca   : > { %1750 = vmatmul.mubr.bf16.gmra.mrb[60].mxu0 %v2703_v32  ;;  %1468 = vmatprep.mubr.bf16.mxu1 %v2704_v33 }
  0xcb   : > { %1757 = vmatprep.mubr.bf16.mxu0 %v2706_v34 }
  0xd1   : > { %1469 = vmatmul.mubr.bf16.gmra.mrb[64].mxu1 %v2708_v35 }
  0xd2   : > { %1758 = vmatmul.mubr.bf16.gmra.mrb[64].mxu0 %v2709_v36  ;;  %1476 = vmatprep.mubr.bf16.mxu1 %v2710_v37  ;;  %v2780_v36 = vld [vmem:[%s2914_s26 + $0x380] ss:$16 sps:$4 sm:$0xff]  }
  0xd3   : > { %1765 = vmatprep.mubr.bf16.mxu0 %v2712_v38 }
  0xd9   : > { %1477 = vmatmul.mubr.bf16.gmra.mrb[68].mxu1 %v2714_v39 }
  0xda   : > { %1766 = vmatmul.mubr.bf16.gmra.mrb[68].mxu0 %v2715_v40  ;;  %1484 = vmatprep.mubr.bf16.mxu1 %v2716_v41  ;;  %v2781_v40 = vld [vmem:[%s2914_s26 + $0x388] ss:$16 sps:$4 sm:$0xff]   ;;  %v2782_v41 = vld [vmem:[%s2914_s26 + $0x3a4] ss:$16 sps:$4 sm:$0xff]  }
  0xdb   : > { %1773 = vmatprep.mubr.bf16.mxu0 %v2718_v42 }
  0xe1   : > { %1485 = vmatmul.mubr.bf16.gmra.mrb[72].mxu1 %v2720_v43 }
  0xe2   : > { %1774 = vmatmul.mubr.bf16.gmra.mrb[72].mxu0 %v2721_v44  ;;  %1492 = vmatprep.mubr.bf16.mxu1 %v2722_v45  ;;  %v2784_v44 = vld [vmem:[%s2914_s26 + $0x3ac] ss:$16 sps:$4 sm:$0xff]  }
  0xe3   : > { %1781 = vmatprep.mubr.bf16.mxu0 %v2724_v46 }
  0xe9   : > { %1493 = vmatmul.mubr.bf16.gmra.mrb[76].mxu1 %v2726_v47 }
  0xea   : > { %1782 = vmatmul.mubr.bf16.gmra.mrb[76].mxu0 %v2727_v48  ;;  %1500 = vmatprep.mubr.bf16.mxu1 %v2728_v49 }
  0xeb   : > { %1789 = vmatprep.mubr.bf16.mxu0 %v2730_v50 }
  0xf1   : > { %1501 = vmatmul.mubr.bf16.gmra.mrb[80].mxu1 %v2732_v51 }
  0xf2   : > { %1790 = vmatmul.mubr.bf16.gmra.mrb[80].mxu0 %v2733_v52  ;;  %1508 = vmatprep.mubr.bf16.mxu1 %v2734_v53 }
  0xf3   : > { %1797 = vmatprep.mubr.bf16.mxu0 %v2736_v54 }
  0xf9   : > { %1509 = vmatmul.mubr.bf16.gmra.mrb[84].mxu1 %v2738_v55 }
  0xfa   : > { %1798 = vmatmul.mubr.bf16.gmra.mrb[84].mxu0 %v2739_v56  ;;  %1516 = vmatprep.mubr.bf16.mxu1 %v2740_v57  ;;  %v2786_v56 = vld [vmem:[%s2914_s26 + $0x3a0] ss:$16 sps:$4 sm:$0xff]  }
  0xfb   : > { %1805 = vmatprep.mubr.bf16.mxu0 %v2742_v58 }
 0x101   : > { %1517 = vmatmul.mubr.bf16.gmra.mrb[88].mxu1 %v2744_v59 }
 0x102   : > { %1806 = vmatmul.mubr.bf16.gmra.mrb[88].mxu0 %v2745_v60  ;;  %1524 = vmatprep.mubr.bf16.mxu1 %v2746_v61  ;;  %v2787_v60 = vld [vmem:[%s2914_s26 + $0x3a8] ss:$16 sps:$4 sm:$0xff]   ;;  %v2788_v61 = vld [vmem:[%s2914_s26 + $0x3c4] ss:$16 sps:$4 sm:$0xff]  }
 0x103   : > { %1813 = vmatprep.mubr.bf16.mxu0 %v2748_v62 }
 0x109   : > { %1525 = vmatmul.mubr.bf16.gmra.mrb[92].mxu1 %v2750_v63 }
 0x10a   : > { %1814 = vmatmul.mubr.bf16.gmra.mrb[92].mxu0 %v2751_v0  ;;  %1532 = vmatprep.mubr.bf16.mxu1 %v2752_v1  ;;  %v2790_v0 = vld [vmem:[%s2914_s26 + $0x3cc] ss:$16 sps:$4 sm:$0xff]  }
 0x10b   : > { %1821 = vmatprep.mubr.bf16.mxu0 %v2754_v2 }
 0x111   : > { %1533 = vmatmul.mubr.bf16.gmra.mrb[96].mxu1 %v2756_v3 }
 0x112   : > { %1822 = vmatmul.mubr.bf16.gmra.mrb[96].mxu0 %v2757_v4  ;;  %1540 = vmatprep.mubr.bf16.mxu1 %v2758_v5 }
 0x113   : > { %1829 = vmatprep.mubr.bf16.mxu0 %v2760_v6 }
 0x119   : > { %1541 = vmatmul.mubr.bf16.gmra.mrb[100].mxu1 %v2762_v7 }
 0x11a   : > { %1830 = vmatmul.mubr.bf16.gmra.mrb[100].mxu0 %v2763_v8  ;;  %1548 = vmatprep.mubr.bf16.mxu1 %v2764_v9 }
 0x11b   : > { %1837 = vmatprep.mubr.bf16.mxu0 %v2766_v10 }
 0x121   : > { %1549 = vmatmul.mubr.bf16.gmra.mrb[104].mxu1 %v2768_v11 }
 0x122   : > { %1838 = vmatmul.mubr.bf16.gmra.mrb[104].mxu0 %v2769_v12  ;;  %1556 = vmatprep.mubr.bf16.mxu1 %v2770_v13  ;;  %v2792_v12 = vld [vmem:[%s2914_s26 + $0x3c0] ss:$16 sps:$4 sm:$0xff]  }
 0x123   : > { %1845 = vmatprep.mubr.bf16.mxu0 %v2772_v14 }
 0x124   : > { %v1342_v15 = vpop.f32.mrb[0].mxu1 }
 0x125   : > { %v1631_v16 = vpop.f32.mrb[0].mxu0  ;;  %v1344_v17 = vpop.f32.mrb[1].mxu1 }
 0x126   : > { %v1632_v19 = vadd.f32 %v1631_v16, %v1342_v15  ;;  %v1633_v20 = vpop.f32.mrb[1].mxu0  ;;  %v1345_v21 = vpop.f32.mrb[2].mxu1  ;;  %v2793_v16 = vld [vmem:[%s2914_s26 + $0x3c8] ss:$16 sps:$4 sm:$0xff]   ;;  %v2794_v17 = vld [vmem:[%s2914_s26 + $0x3e4] ss:$16 sps:$4 sm:$0xff]  }
 0x127   : > { %v1634_v24 = vpop.f32.mrb[2].mxu0  ;;  %v1347_v25 = vpop.f32.mrb[3].mxu1  ;;  %v2796_v20 = vld [vmem:[%s2914_s26 + $0x3ec] ss:$16 sps:$4 sm:$0xff]  }
 0x128   : > { %1886 = vst [vmem:[%s3061_s30] sm:$0xff] %v1632_v19  ;;  %v1635_v27 = vadd.f32 %v1634_v24, %v1345_v21  ;;  %v1636_v28 = vpop.f32.mrb[3].mxu0  ;;  %v2023_v29 = vmul.f32 %v1632_v19, %v1632_v19 }
 0x129   : > { %1557 = vmatmul.mubr.bf16.gmra.mrb[108].mxu1 %v2774_v18 }
 0x12a   : > { %1887 = vst [vmem:[%s3061_s30 + $0x8] sm:$0xff] %v1635_v27  ;;  %v1951_v30 = vadd.f32 %v1635_v27, %v1632_v19  ;;  %v2024_v31 = vmul.f32 %v1635_v27, %v1635_v27  ;;  %1846 = vmatmul.mubr.bf16.gmra.mrb[108].mxu0 %v2775_v22  ;;  %1564 = vmatprep.mubr.bf16.mxu1 %v2776_v23 }
 0x12b   : > { %1853 = vmatprep.mubr.bf16.mxu0 %v2778_v26 }
 0x12c   : > { %v2087_v32 = vadd.f32 %v2024_v31, %v2023_v29  ;;  %v1350_v33 = vpop.f32.mrb[4].mxu1 }
 0x12d   : > { %v1639_v34 = vpop.f32.mrb[4].mxu0  ;;  %v1352_v35 = vpop.f32.mrb[5].mxu1 }
 0x12e   : > { %v1640_v37 = vadd.f32 %v1639_v34, %v1350_v33  ;;  %v1641_v38 = vpop.f32.mrb[5].mxu0  ;;  %v1353_v39 = vpop.f32.mrb[6].mxu1 }
 0x12f   : > { %v1642_v42 = vpop.f32.mrb[6].mxu0  ;;  %v1355_v43 = vpop.f32.mrb[7].mxu1 }
 0x130   : > { %1888 = vst [vmem:[%s3061_s30 + $0x10] sm:$0xff] %v1640_v37  ;;  %v1952_v45 = vadd.f32 %v1951_v30, %v1640_v37  ;;  %v2025_v46 = vmul.f32 %v1640_v37, %v1640_v37  ;;  %v1643_v47 = vadd.f32 %v1642_v42, %v1353_v39  ;;  %v1644_v48 = vpop.f32.mrb[7].mxu0 }
 0x131   : > { %1565 = vmatmul.mubr.bf16.gmra.mrb[112].mxu1 %v2780_v36  ;;  %v2799_v36 = vld [vmem:[%s2914_s26 + $0x3e8] ss:$16 sps:$4 sm:$0xff]  }
 0x132   : > { %v2088_v49 = vadd.f32 %v2087_v32, %v2025_v46  ;;  %1889 = vst [vmem:[%s3061_s30 + $0x18] sm:$0xff] %v1643_v47  ;;  %v1953_v50 = vadd.f32 %v1952_v45, %v1643_v47  ;;  %v2026_v51 = vmul.f32 %v1643_v47, %v1643_v47  ;;  %1854 = vmatmul.mubr.bf16.gmra.mrb[112].mxu0 %v2781_v40  ;;  %v2798_v32 = vld [vmem:[%s2914_s26 + $0x3e0] ss:$16 sps:$4 sm:$0xff]  }
 0x133   : > { %1572 = vmatprep.mubr.bf16.mxu1 %v2782_v41  ;;  %1861 = vmatprep.mubr.bf16.mxu0 %v2784_v44 }
 0x134   : > { %v2089_v52 = vadd.f32 %v2088_v49, %v2026_v51  ;;  %v1358_v53 = vpop.f32.mrb[8].mxu1 }
 0x135   : > { %v1647_v54 = vpop.f32.mrb[8].mxu0  ;;  %v1360_v55 = vpop.f32.mrb[9].mxu1 }
 0x136   : > { %v1648_v57 = vadd.f32 %v1647_v54, %v1358_v53  ;;  %v1649_v58 = vpop.f32.mrb[9].mxu0  ;;  %v1361_v59 = vpop.f32.mrb[10].mxu1 }
 0x137   : > { %v1650_v62 = vpop.f32.mrb[10].mxu0  ;;  %v1363_v63 = vpop.f32.mrb[11].mxu1 }
 0x138   : > { %1890 = vst [vmem:[%s3061_s30 + $0x20] sm:$0xff] %v1648_v57  ;;  %v1954_v1 = vadd.f32 %v1953_v50, %v1648_v57  ;;  %v2027_v2 = vmul.f32 %v1648_v57, %v1648_v57  ;;  %v1651_v3 = vadd.f32 %v1650_v62, %v1361_v59  ;;  %v1652_v4 = vpop.f32.mrb[11].mxu0 }
 0x139   : > { %1573 = vmatmul.mubr.bf16.gmra.mrb[116].mxu1 %v2786_v56 }
 0x13a   : > { %v2090_v5 = vadd.f32 %v2089_v52, %v2027_v2  ;;  %1891 = vst [vmem:[%s3061_s30 + $0x28] sm:$0xff] %v1651_v3  ;;  %v1955_v6 = vadd.f32 %v1954_v1, %v1651_v3  ;;  %v2028_v7 = vmul.f32 %v1651_v3, %v1651_v3  ;;  %1862 = vmatmul.mubr.bf16.gmra.mrb[116].mxu0 %v2787_v60 }
 0x13b   : > { %1580 = vmatprep.mubr.bf16.mxu1 %v2788_v61  ;;  %1869 = vmatprep.mubr.bf16.mxu0 %v2790_v0 }
 0x13c   : > { %v2091_v8 = vadd.f32 %v2090_v5, %v2028_v7  ;;  %v1366_v9 = vpop.f32.mrb[12].mxu1 }
 0x13d   : > { %v1655_v10 = vpop.f32.mrb[12].mxu0  ;;  %v1368_v11 = vpop.f32.mrb[13].mxu1 }
 0x13e   : > { %v1656_v13 = vadd.f32 %v1655_v10, %v1366_v9  ;;  %v1657_v14 = vpop.f32.mrb[13].mxu0  ;;  %v1369_v15 = vpop.f32.mrb[14].mxu1 }
 0x13f   : > { %v1658_v18 = vpop.f32.mrb[14].mxu0  ;;  %v1371_v19 = vpop.f32.mrb[15].mxu1 }
 0x140   : > { %1892 = vst [vmem:[%s3061_s30 + $0x30] sm:$0xff] %v1656_v13  ;;  %v1956_v21 = vadd.f32 %v1955_v6, %v1656_v13  ;;  %v2029_v22 = vmul.f32 %v1656_v13, %v1656_v13  ;;  %v1659_v23 = vadd.f32 %v1658_v18, %v1369_v15  ;;  %v1660_v24 = vpop.f32.mrb[15].mxu0 }
 0x141   : > { %1581 = vmatmul.mubr.bf16.gmra.mrb[120].mxu1 %v2792_v12 }
 0x142   : > { %v2092_v25 = vadd.f32 %v2091_v8, %v2029_v22  ;;  %1893 = vst [vmem:[%s3061_s30 + $0x38] sm:$0xff] %v1659_v23  ;;  %v1957_v26 = vadd.f32 %v1956_v21, %v1659_v23  ;;  %v2030_v27 = vmul.f32 %v1659_v23, %v1659_v23  ;;  %1870 = vmatmul.mubr.bf16.gmra.mrb[120].mxu0 %v2793_v16 }
 0x143   : > { %1588 = vmatprep.mubr.bf16.mxu1 %v2794_v17  ;;  %1877 = vmatprep.mubr.bf16.mxu0 %v2796_v20 }
 0x144   : > { %v2093_v28 = vadd.f32 %v2092_v25, %v2030_v27  ;;  %v1374_v29 = vpop.f32.mrb[16].mxu1 }
 0x145   : > { %v1663_v30 = vpop.f32.mrb[16].mxu0  ;;  %v1376_v31 = vpop.f32.mrb[17].mxu1 }
 0x146   : > { %v1664_v33 = vadd.f32 %v1663_v30, %v1374_v29  ;;  %v1665_v34 = vpop.f32.mrb[17].mxu0  ;;  %v1377_v35 = vpop.f32.mrb[18].mxu1 }
 0x147   : > { %v1666_v37 = vpop.f32.mrb[18].mxu0  ;;  %v1379_v38 = vpop.f32.mrb[19].mxu1 }
 0x148   : > { %1894 = vst [vmem:[%s3061_s30 + $0x40] sm:$0xff] %v1664_v33  ;;  %v1958_v39 = vadd.f32 %v1957_v26, %v1664_v33  ;;  %v2031_v40 = vmul.f32 %v1664_v33, %v1664_v33  ;;  %v1667_v41 = vadd.f32 %v1666_v37, %v1377_v35  ;;  %v1668_v42 = vpop.f32.mrb[19].mxu0 }
 0x149   : > { %1589 = vmatmul.mubr.bf16.gmra.mrb[124].mxu1 %v2798_v32 }
 0x14a   : > { %v2094_v43 = vadd.f32 %v2093_v28, %v2031_v40  ;;  %1895 = vst [vmem:[%s3061_s30 + $0x48] sm:$0xff] %v1667_v41  ;;  %v1959_v44 = vadd.f32 %v1958_v39, %v1667_v41  ;;  %v2032_v45 = vmul.f32 %v1667_v41, %v1667_v41  ;;  %1878 = vmatmul.mubr.bf16.gmra.mrb[124].mxu0 %v2799_v36 }
 0x14c   : > { %v2095_v46 = vadd.f32 %v2094_v43, %v2032_v45  ;;  %v1382_v47 = vpop.f32.mrb[20].mxu1 }
 0x14d   : > { %v1671_v48 = vpop.f32.mrb[20].mxu0  ;;  %v1384_v49 = vpop.f32.mrb[21].mxu1 }
 0x14e   : > { %v1672_v50 = vadd.f32 %v1671_v48, %v1382_v47  ;;  %v1673_v51 = vpop.f32.mrb[21].mxu0  ;;  %v1385_v52 = vpop.f32.mrb[22].mxu1 }
 0x14f   : > { %v1674_v53 = vpop.f32.mrb[22].mxu0  ;;  %v1387_v54 = vpop.f32.mrb[23].mxu1 }
 0x150   : > { %1896 = vst [vmem:[%s3061_s30 + $0x50] sm:$0xff] %v1672_v50  ;;  %v1960_v55 = vadd.f32 %v1959_v44, %v1672_v50  ;;  %v2033_v56 = vmul.f32 %v1672_v50, %v1672_v50  ;;  %v1675_v57 = vadd.f32 %v1674_v53, %v1385_v52  ;;  %v1676_v58 = vpop.f32.mrb[23].mxu0 }
 0x152   : > { %v2096_v59 = vadd.f32 %v2095_v46, %v2033_v56  ;;  %1897 = vst [vmem:[%s3061_s30 + $0x58] sm:$0xff] %v1675_v57  ;;  %v1961_v60 = vadd.f32 %v1960_v55, %v1675_v57  ;;  %v2034_v61 = vmul.f32 %v1675_v57, %v1675_v57 }
 0x154   : > { %v2097_v62 = vadd.f32 %v2096_v59, %v2034_v61  ;;  %v1390_v63 = vpop.f32.mrb[24].mxu1 }
 0x155   : > { %v1679_v0 = vpop.f32.mrb[24].mxu0  ;;  %v1392_v1 = vpop.f32.mrb[25].mxu1 }
 0x156   : > { %v1680_v2 = vadd.f32 %v1679_v0, %v1390_v63  ;;  %v1681_v3 = vpop.f32.mrb[25].mxu0  ;;  %v1393_v4 = vpop.f32.mrb[26].mxu1 }
 0x157   : > { %v1682_v5 = vpop.f32.mrb[26].mxu0  ;;  %v1395_v6 = vpop.f32.mrb[27].mxu1 }
 0x158   : > { %1898 = vst [vmem:[%s3061_s30 + $0x60] sm:$0xff] %v1680_v2  ;;  %v1962_v7 = vadd.f32 %v1961_v60, %v1680_v2  ;;  %v2035_v8 = vmul.f32 %v1680_v2, %v1680_v2  ;;  %v1683_v9 = vadd.f32 %v1682_v5, %v1393_v4  ;;  %v1684_v10 = vpop.f32.mrb[27].mxu0 }
 0x15a   : > { %v2098_v11 = vadd.f32 %v2097_v62, %v2035_v8  ;;  %1899 = vst [vmem:[%s3061_s30 + $0x68] sm:$0xff] %v1683_v9  ;;  %v1963_v12 = vadd.f32 %v1962_v7, %v1683_v9  ;;  %v2036_v13 = vmul.f32 %v1683_v9, %v1683_v9 }
 0x15c   : > { %v2099_v14 = vadd.f32 %v2098_v11, %v2036_v13  ;;  %v1398_v15 = vpop.f32.mrb[28].mxu1 }
 0x15d   : > { %v1687_v16 = vpop.f32.mrb[28].mxu0  ;;  %v1400_v17 = vpop.f32.mrb[29].mxu1 }
 0x15e   : > { %v1688_v18 = vadd.f32 %v1687_v16, %v1398_v15  ;;  %v1689_v19 = vpop.f32.mrb[29].mxu0  ;;  %v1401_v20 = vpop.f32.mrb[30].mxu1 }
 0x15f   : > { %v1690_v21 = vpop.f32.mrb[30].mxu0  ;;  %v1403_v22 = vpop.f32.mrb[31].mxu1 }
 0x160   : > { %1900 = vst [vmem:[%s3061_s30 + $0x70] sm:$0xff] %v1688_v18  ;;  %v1964_v23 = vadd.f32 %v1963_v12, %v1688_v18  ;;  %v2037_v24 = vmul.f32 %v1688_v18, %v1688_v18  ;;  %v1691_v25 = vadd.f32 %v1690_v21, %v1401_v20  ;;  %v1692_v26 = vpop.f32.mrb[31].mxu0 }
 0x162   : > { %v2100_v27 = vadd.f32 %v2099_v14, %v2037_v24  ;;  %1901 = vst [vmem:[%s3061_s30 + $0x78] sm:$0xff] %v1691_v25  ;;  %v1965_v28 = vadd.f32 %v1964_v23, %v1691_v25  ;;  %v2038_v29 = vmul.f32 %v1691_v25, %v1691_v25 }
 0x164   : > { %v2101_v30 = vadd.f32 %v2100_v27, %v2038_v29  ;;  %v1406_v31 = vpop.f32.mrb[32].mxu1 }
 0x165   : > { %v1695_v32 = vpop.f32.mrb[32].mxu0  ;;  %v1408_v33 = vpop.f32.mrb[33].mxu1 }
 0x166   : > { %v1696_v34 = vadd.f32 %v1695_v32, %v1406_v31  ;;  %v1697_v35 = vpop.f32.mrb[33].mxu0  ;;  %v1409_v36 = vpop.f32.mrb[34].mxu1 }
 0x167   : > { %v1698_v37 = vpop.f32.mrb[34].mxu0  ;;  %v1411_v38 = vpop.f32.mrb[35].mxu1 }
 0x168   : > { %1902 = vst [vmem:[%s3061_s30 + $0x80] sm:$0xff] %v1696_v34  ;;  %v1966_v39 = vadd.f32 %v1965_v28, %v1696_v34  ;;  %v2039_v40 = vmul.f32 %v1696_v34, %v1696_v34  ;;  %v1699_v41 = vadd.f32 %v1698_v37, %v1409_v36  ;;  %v1700_v42 = vpop.f32.mrb[35].mxu0 }
 0x16a   : > { %v2102_v43 = vadd.f32 %v2101_v30, %v2039_v40  ;;  %1903 = vst [vmem:[%s3061_s30 + $0x88] sm:$0xff] %v1699_v41  ;;  %v1967_v44 = vadd.f32 %v1966_v39, %v1699_v41  ;;  %v2040_v45 = vmul.f32 %v1699_v41, %v1699_v41 }
 0x16c   : > { %v2103_v46 = vadd.f32 %v2102_v43, %v2040_v45  ;;  %v1414_v47 = vpop.f32.mrb[36].mxu1 }
 0x16d   : > { %v1703_v48 = vpop.f32.mrb[36].mxu0  ;;  %v1416_v49 = vpop.f32.mrb[37].mxu1 }
 0x16e   : > { %v1704_v50 = vadd.f32 %v1703_v48, %v1414_v47  ;;  %v1705_v51 = vpop.f32.mrb[37].mxu0  ;;  %v1417_v52 = vpop.f32.mrb[38].mxu1 }
 0x16f   : > { %v1706_v53 = vpop.f32.mrb[38].mxu0  ;;  %v1419_v54 = vpop.f32.mrb[39].mxu1 }
 0x170   : > { %1904 = vst [vmem:[%s3061_s30 + $0x90] sm:$0xff] %v1704_v50  ;;  %v1968_v55 = vadd.f32 %v1967_v44, %v1704_v50  ;;  %v2041_v56 = vmul.f32 %v1704_v50, %v1704_v50  ;;  %v1707_v57 = vadd.f32 %v1706_v53, %v1417_v52  ;;  %v1708_v58 = vpop.f32.mrb[39].mxu0 }
 0x172   : > { %v2104_v59 = vadd.f32 %v2103_v46, %v2041_v56  ;;  %1905 = vst [vmem:[%s3061_s30 + $0x98] sm:$0xff] %v1707_v57  ;;  %v1969_v60 = vadd.f32 %v1968_v55, %v1707_v57  ;;  %v2042_v61 = vmul.f32 %v1707_v57, %v1707_v57 }
 0x174   : > { %v2105_v62 = vadd.f32 %v2104_v59, %v2042_v61  ;;  %v1422_v63 = vpop.f32.mrb[40].mxu1 }
 0x175   : > { %v1711_v0 = vpop.f32.mrb[40].mxu0  ;;  %v1424_v1 = vpop.f32.mrb[41].mxu1 }
 0x176   : > { %v1712_v2 = vadd.f32 %v1711_v0, %v1422_v63  ;;  %v1713_v3 = vpop.f32.mrb[41].mxu0  ;;  %v1425_v4 = vpop.f32.mrb[42].mxu1 }
 0x177   : > { %v1714_v5 = vpop.f32.mrb[42].mxu0  ;;  %v1427_v6 = vpop.f32.mrb[43].mxu1 }
 0x178   : > { %1906 = vst [vmem:[%s3061_s30 + $0xa0] sm:$0xff] %v1712_v2  ;;  %v1970_v7 = vadd.f32 %v1969_v60, %v1712_v2  ;;  %v2043_v8 = vmul.f32 %v1712_v2, %v1712_v2  ;;  %v1715_v9 = vadd.f32 %v1714_v5, %v1425_v4  ;;  %v1716_v10 = vpop.f32.mrb[43].mxu0 }
 0x17a   : > { %v2106_v11 = vadd.f32 %v2105_v62, %v2043_v8  ;;  %1907 = vst [vmem:[%s3061_s30 + $0xa8] sm:$0xff] %v1715_v9  ;;  %v1971_v12 = vadd.f32 %v1970_v7, %v1715_v9  ;;  %v2044_v13 = vmul.f32 %v1715_v9, %v1715_v9 }
 0x17c   : > { %v2107_v14 = vadd.f32 %v2106_v11, %v2044_v13  ;;  %v1430_v15 = vpop.f32.mrb[44].mxu1 }
 0x17d   : > { %v1719_v16 = vpop.f32.mrb[44].mxu0  ;;  %v1432_v17 = vpop.f32.mrb[45].mxu1 }
 0x17e   : > { %v1720_v18 = vadd.f32 %v1719_v16, %v1430_v15  ;;  %v1721_v19 = vpop.f32.mrb[45].mxu0  ;;  %v1433_v20 = vpop.f32.mrb[46].mxu1 }
 0x17f   : > { %v1722_v21 = vpop.f32.mrb[46].mxu0  ;;  %v1435_v22 = vpop.f32.mrb[47].mxu1 }
 0x180   : > { %1908 = vst [vmem:[%s3061_s30 + $0xb0] sm:$0xff] %v1720_v18  ;;  %v1972_v23 = vadd.f32 %v1971_v12, %v1720_v18  ;;  %v2045_v24 = vmul.f32 %v1720_v18, %v1720_v18  ;;  %v1723_v25 = vadd.f32 %v1722_v21, %v1433_v20  ;;  %v1724_v26 = vpop.f32.mrb[47].mxu0 }
 0x182   : > { %v2108_v27 = vadd.f32 %v2107_v14, %v2045_v24  ;;  %1909 = vst [vmem:[%s3061_s30 + $0xb8] sm:$0xff] %v1723_v25  ;;  %v1973_v28 = vadd.f32 %v1972_v23, %v1723_v25  ;;  %v2046_v29 = vmul.f32 %v1723_v25, %v1723_v25 }
 0x184   : > { %v2109_v30 = vadd.f32 %v2108_v27, %v2046_v29  ;;  %v1438_v31 = vpop.f32.mrb[48].mxu1 }
 0x185   : > { %v1727_v32 = vpop.f32.mrb[48].mxu0  ;;  %v1440_v33 = vpop.f32.mrb[49].mxu1 }
 0x186   : > { %v1728_v34 = vadd.f32 %v1727_v32, %v1438_v31  ;;  %v1729_v35 = vpop.f32.mrb[49].mxu0  ;;  %v1441_v36 = vpop.f32.mrb[50].mxu1 }
 0x187   : > { %v1730_v37 = vpop.f32.mrb[50].mxu0  ;;  %v1443_v38 = vpop.f32.mrb[51].mxu1 }
 0x188   : > { %1910 = vst [vmem:[%s3061_s30 + $0xc0] sm:$0xff] %v1728_v34  ;;  %v1974_v39 = vadd.f32 %v1973_v28, %v1728_v34  ;;  %v2047_v40 = vmul.f32 %v1728_v34, %v1728_v34  ;;  %v1731_v41 = vadd.f32 %v1730_v37, %v1441_v36  ;;  %v1732_v42 = vpop.f32.mrb[51].mxu0 }
 0x18a   : > { %v2110_v43 = vadd.f32 %v2109_v30, %v2047_v40  ;;  %1911 = vst [vmem:[%s3061_s30 + $0xc8] sm:$0xff] %v1731_v41  ;;  %v1975_v44 = vadd.f32 %v1974_v39, %v1731_v41  ;;  %v2048_v45 = vmul.f32 %v1731_v41, %v1731_v41  ;;  %v2825_v30 = vmov 0.0  }
 0x18b   : > { %282 = vst [vmem:[%s3117_s7] sm:$0x1] %v2825_v30  ;;  %283 = vst [vmem:[%s3123_s10] sm:$0x1] %v2825_v30 }
 0x18c   : > { %v2111_v46 = vadd.f32 %v2110_v43, %v2048_v45  ;;  %v1446_v47 = vpop.f32.mrb[52].mxu1 }
 0x18d   : > { %v1735_v48 = vpop.f32.mrb[52].mxu0  ;;  %v1448_v49 = vpop.f32.mrb[53].mxu1 }
 0x18e   : > { %v1736_v50 = vadd.f32 %v1735_v48, %v1446_v47  ;;  %v1737_v51 = vpop.f32.mrb[53].mxu0  ;;  %v1449_v52 = vpop.f32.mrb[54].mxu1 }
 0x18f   : > { %v1738_v53 = vpop.f32.mrb[54].mxu0  ;;  %v1451_v54 = vpop.f32.mrb[55].mxu1 }
 0x190   : > { %1912 = vst [vmem:[%s3061_s30 + $0xd0] sm:$0xff] %v1736_v50  ;;  %v1976_v55 = vadd.f32 %v1975_v44, %v1736_v50  ;;  %v2049_v56 = vmul.f32 %v1736_v50, %v1736_v50  ;;  %v1739_v57 = vadd.f32 %v1738_v53, %v1449_v52  ;;  %v1740_v58 = vpop.f32.mrb[55].mxu0 }
 0x192   : > { %v2112_v59 = vadd.f32 %v2111_v46, %v2049_v56  ;;  %1913 = vst [vmem:[%s3061_s30 + $0xd8] sm:$0xff] %v1739_v57  ;;  %v1977_v60 = vadd.f32 %v1976_v55, %v1739_v57  ;;  %v2050_v61 = vmul.f32 %v1739_v57, %v1739_v57 }
 0x194   : > { %v2113_v62 = vadd.f32 %v2112_v59, %v2050_v61  ;;  %v1454_v63 = vpop.f32.mrb[56].mxu1 }
 0x195   : > { %v1743_v0 = vpop.f32.mrb[56].mxu0  ;;  %v1456_v1 = vpop.f32.mrb[57].mxu1 }
 0x196   : > { %v1744_v2 = vadd.f32 %v1743_v0, %v1454_v63  ;;  %v1745_v3 = vpop.f32.mrb[57].mxu0  ;;  %v1457_v4 = vpop.f32.mrb[58].mxu1 }
 0x197   : > { %v1746_v5 = vpop.f32.mrb[58].mxu0  ;;  %v1459_v6 = vpop.f32.mrb[59].mxu1 }
 0x198   : > { %1914 = vst [vmem:[%s3061_s30 + $0xe0] sm:$0xff] %v1744_v2  ;;  %v1978_v7 = vadd.f32 %v1977_v60, %v1744_v2  ;;  %v2051_v8 = vmul.f32 %v1744_v2, %v1744_v2  ;;  %v1747_v9 = vadd.f32 %v1746_v5, %v1457_v4  ;;  %v1748_v10 = vpop.f32.mrb[59].mxu0 }
 0x19a   : > { %v2114_v11 = vadd.f32 %v2113_v62, %v2051_v8  ;;  %1915 = vst [vmem:[%s3061_s30 + $0xe8] sm:$0xff] %v1747_v9  ;;  %v1979_v12 = vadd.f32 %v1978_v7, %v1747_v9  ;;  %v2052_v13 = vmul.f32 %v1747_v9, %v1747_v9 }
 0x19c   : > { %v2115_v14 = vadd.f32 %v2114_v11, %v2052_v13  ;;  %v1462_v15 = vpop.f32.mrb[60].mxu1 }
 0x19d   : > { %v1751_v16 = vpop.f32.mrb[60].mxu0  ;;  %v1464_v17 = vpop.f32.mrb[61].mxu1 }
 0x19e   : > { %v1752_v18 = vadd.f32 %v1751_v16, %v1462_v15  ;;  %v1753_v19 = vpop.f32.mrb[61].mxu0  ;;  %v1465_v20 = vpop.f32.mrb[62].mxu1 }
 0x19f   : > { %v1754_v21 = vpop.f32.mrb[62].mxu0  ;;  %v1467_v22 = vpop.f32.mrb[63].mxu1 }
 0x1a0   : > { %1916 = vst [vmem:[%s3061_s30 + $0xf0] sm:$0xff] %v1752_v18  ;;  %v1980_v23 = vadd.f32 %v1979_v12, %v1752_v18  ;;  %v2053_v24 = vmul.f32 %v1752_v18, %v1752_v18  ;;  %v1755_v25 = vadd.f32 %v1754_v21, %v1465_v20  ;;  %v1756_v26 = vpop.f32.mrb[63].mxu0 }
 0x1a2   : > { %v2116_v27 = vadd.f32 %v2115_v14, %v2053_v24  ;;  %1917 = vst [vmem:[%s3061_s30 + $0xf8] sm:$0xff] %v1755_v25  ;;  %v1981_v28 = vadd.f32 %v1980_v23, %v1755_v25  ;;  %v2054_v29 = vmul.f32 %v1755_v25, %v1755_v25 }
 0x1a4   : > { %v2117_v31 = vadd.f32 %v2116_v27, %v2054_v29  ;;  %v1470_v32 = vpop.f32.mrb[64].mxu1 }
 0x1a5   : > { %v1759_v33 = vpop.f32.mrb[64].mxu0  ;;  %v1472_v34 = vpop.f32.mrb[65].mxu1 }
 0x1a6   : > { %v1760_v35 = vadd.f32 %v1759_v33, %v1470_v32  ;;  %v1761_v36 = vpop.f32.mrb[65].mxu0  ;;  %v1473_v37 = vpop.f32.mrb[66].mxu1 }
 0x1a7   : > { %v1762_v38 = vpop.f32.mrb[66].mxu0  ;;  %v1475_v39 = vpop.f32.mrb[67].mxu1 }
 0x1a8   : > { %1918 = vst [vmem:[%s3061_s30 + $0x100] sm:$0xff] %v1760_v35  ;;  %v1982_v40 = vadd.f32 %v1981_v28, %v1760_v35  ;;  %v2055_v41 = vmul.f32 %v1760_v35, %v1760_v35  ;;  %v1763_v42 = vadd.f32 %v1762_v38, %v1473_v37  ;;  %v1764_v43 = vpop.f32.mrb[67].mxu0 }
 0x1aa   : > { %v2118_v44 = vadd.f32 %v2117_v31, %v2055_v41  ;;  %1919 = vst [vmem:[%s3061_s30 + $0x108] sm:$0xff] %v1763_v42  ;;  %v1983_v45 = vadd.f32 %v1982_v40, %v1763_v42  ;;  %v2056_v46 = vmul.f32 %v1763_v42, %v1763_v42 }
 0x1ac   : > { %v2119_v47 = vadd.f32 %v2118_v44, %v2056_v46  ;;  %v1478_v48 = vpop.f32.mrb[68].mxu1 }
 0x1ad   : > { %v1767_v49 = vpop.f32.mrb[68].mxu0  ;;  %v1480_v50 = vpop.f32.mrb[69].mxu1 }
 0x1ae   : > { %v1768_v51 = vadd.f32 %v1767_v49, %v1478_v48  ;;  %v1769_v52 = vpop.f32.mrb[69].mxu0  ;;  %v1481_v53 = vpop.f32.mrb[70].mxu1 }
 0x1af   : > { %v1770_v54 = vpop.f32.mrb[70].mxu0  ;;  %v1483_v55 = vpop.f32.mrb[71].mxu1 }
 0x1b0   : > { %1920 = vst [vmem:[%s3061_s30 + $0x110] sm:$0xff] %v1768_v51  ;;  %v1984_v56 = vadd.f32 %v1983_v45, %v1768_v51  ;;  %v2057_v57 = vmul.f32 %v1768_v51, %v1768_v51  ;;  %v1771_v58 = vadd.f32 %v1770_v54, %v1481_v53  ;;  %v1772_v59 = vpop.f32.mrb[71].mxu0 }
 0x1b2   : > { %v2120_v60 = vadd.f32 %v2119_v47, %v2057_v57  ;;  %1921 = vst [vmem:[%s3061_s30 + $0x118] sm:$0xff] %v1771_v58  ;;  %v1985_v61 = vadd.f32 %v1984_v56, %v1771_v58  ;;  %v2058_v62 = vmul.f32 %v1771_v58, %v1771_v58 }
 0x1b4   : > { %v2121_v63 = vadd.f32 %v2120_v60, %v2058_v62  ;;  %v1486_v0 = vpop.f32.mrb[72].mxu1 }
 0x1b5   : > { %v1775_v1 = vpop.f32.mrb[72].mxu0  ;;  %v1488_v2 = vpop.f32.mrb[73].mxu1 }
 0x1b6   : > { %v1776_v3 = vadd.f32 %v1775_v1, %v1486_v0  ;;  %v1777_v4 = vpop.f32.mrb[73].mxu0  ;;  %v1489_v5 = vpop.f32.mrb[74].mxu1 }
 0x1b7   : > { %v1778_v6 = vpop.f32.mrb[74].mxu0  ;;  %v1491_v7 = vpop.f32.mrb[75].mxu1 }
 0x1b8   : > { %1922 = vst [vmem:[%s3061_s30 + $0x120] sm:$0xff] %v1776_v3  ;;  %v1986_v8 = vadd.f32 %v1985_v61, %v1776_v3  ;;  %v2059_v9 = vmul.f32 %v1776_v3, %v1776_v3  ;;  %v1779_v10 = vadd.f32 %v1778_v6, %v1489_v5  ;;  %v1780_v11 = vpop.f32.mrb[75].mxu0 }
 0x1ba   : > { %v2122_v12 = vadd.f32 %v2121_v63, %v2059_v9  ;;  %1923 = vst [vmem:[%s3061_s30 + $0x128] sm:$0xff] %v1779_v10  ;;  %v1987_v13 = vadd.f32 %v1986_v8, %v1779_v10  ;;  %v2060_v14 = vmul.f32 %v1779_v10, %v1779_v10 }
 0x1bc   : > { %v2123_v15 = vadd.f32 %v2122_v12, %v2060_v14  ;;  %v1494_v16 = vpop.f32.mrb[76].mxu1 }
 0x1bd   : > { %v1783_v17 = vpop.f32.mrb[76].mxu0  ;;  %v1496_v18 = vpop.f32.mrb[77].mxu1 }
 0x1be   : > { %v1784_v19 = vadd.f32 %v1783_v17, %v1494_v16  ;;  %v1785_v20 = vpop.f32.mrb[77].mxu0  ;;  %v1497_v21 = vpop.f32.mrb[78].mxu1 }
 0x1bf   : > { %v1786_v22 = vpop.f32.mrb[78].mxu0  ;;  %v1499_v23 = vpop.f32.mrb[79].mxu1 }
 0x1c0   : > { %1924 = vst [vmem:[%s3061_s30 + $0x130] sm:$0xff] %v1784_v19  ;;  %v1988_v24 = vadd.f32 %v1987_v13, %v1784_v19  ;;  %v2061_v25 = vmul.f32 %v1784_v19, %v1784_v19  ;;  %v1787_v26 = vadd.f32 %v1786_v22, %v1497_v21  ;;  %v1788_v27 = vpop.f32.mrb[79].mxu0 }
 0x1c2   : > { %v2124_v28 = vadd.f32 %v2123_v15, %v2061_v25  ;;  %1925 = vst [vmem:[%s3061_s30 + $0x138] sm:$0xff] %v1787_v26  ;;  %v1989_v29 = vadd.f32 %v1988_v24, %v1787_v26  ;;  %v2062_v30 = vmul.f32 %v1787_v26, %v1787_v26 }
 0x1c4   : > { %v2125_v31 = vadd.f32 %v2124_v28, %v2062_v30  ;;  %v1502_v32 = vpop.f32.mrb[80].mxu1 }
 0x1c5   : > { %v1791_v33 = vpop.f32.mrb[80].mxu0  ;;  %v1504_v34 = vpop.f32.mrb[81].mxu1 }
 0x1c6   : > { %v1792_v35 = vadd.f32 %v1791_v33, %v1502_v32  ;;  %v1793_v36 = vpop.f32.mrb[81].mxu0  ;;  %v1505_v37 = vpop.f32.mrb[82].mxu1 }
 0x1c7   : > { %v1794_v38 = vpop.f32.mrb[82].mxu0  ;;  %v1507_v39 = vpop.f32.mrb[83].mxu1 }
 0x1c8   : > { %1926 = vst [vmem:[%s3061_s30 + $0x140] sm:$0xff] %v1792_v35  ;;  %v1990_v40 = vadd.f32 %v1989_v29, %v1792_v35  ;;  %v2063_v41 = vmul.f32 %v1792_v35, %v1792_v35  ;;  %v1795_v42 = vadd.f32 %v1794_v38, %v1505_v37  ;;  %v1796_v43 = vpop.f32.mrb[83].mxu0 }
 0x1ca   : > { %v2126_v44 = vadd.f32 %v2125_v31, %v2063_v41  ;;  %1927 = vst [vmem:[%s3061_s30 + $0x148] sm:$0xff] %v1795_v42  ;;  %v1991_v45 = vadd.f32 %v1990_v40, %v1795_v42  ;;  %v2064_v46 = vmul.f32 %v1795_v42, %v1795_v42 }
 0x1cc   : > { %v2127_v47 = vadd.f32 %v2126_v44, %v2064_v46  ;;  %v1510_v48 = vpop.f32.mrb[84].mxu1 }
 0x1cd   : > { %v1799_v49 = vpop.f32.mrb[84].mxu0  ;;  %v1512_v50 = vpop.f32.mrb[85].mxu1 }
 0x1ce   : > { %v1800_v51 = vadd.f32 %v1799_v49, %v1510_v48  ;;  %v1801_v52 = vpop.f32.mrb[85].mxu0  ;;  %v1513_v53 = vpop.f32.mrb[86].mxu1 }
 0x1cf   : > { %v1802_v54 = vpop.f32.mrb[86].mxu0  ;;  %v1515_v55 = vpop.f32.mrb[87].mxu1 }
 0x1d0   : > { %1928 = vst [vmem:[%s3061_s30 + $0x150] sm:$0xff] %v1800_v51  ;;  %v1992_v56 = vadd.f32 %v1991_v45, %v1800_v51  ;;  %v2065_v57 = vmul.f32 %v1800_v51, %v1800_v51  ;;  %v1803_v58 = vadd.f32 %v1802_v54, %v1513_v53  ;;  %v1804_v59 = vpop.f32.mrb[87].mxu0 }
 0x1d2   : > { %v2128_v60 = vadd.f32 %v2127_v47, %v2065_v57  ;;  %1929 = vst [vmem:[%s3061_s30 + $0x158] sm:$0xff] %v1803_v58  ;;  %v1993_v61 = vadd.f32 %v1992_v56, %v1803_v58  ;;  %v2066_v62 = vmul.f32 %v1803_v58, %v1803_v58 }
 0x1d4   : > { %v2129_v63 = vadd.f32 %v2128_v60, %v2066_v62  ;;  %v1518_v0 = vpop.f32.mrb[88].mxu1 }
 0x1d5   : > { %v1807_v1 = vpop.f32.mrb[88].mxu0  ;;  %v1520_v2 = vpop.f32.mrb[89].mxu1 }
 0x1d6   : > { %v1808_v3 = vadd.f32 %v1807_v1, %v1518_v0  ;;  %v1809_v4 = vpop.f32.mrb[89].mxu0  ;;  %v1521_v5 = vpop.f32.mrb[90].mxu1 }
 0x1d7   : > { %v1810_v6 = vpop.f32.mrb[90].mxu0  ;;  %v1523_v7 = vpop.f32.mrb[91].mxu1 }
 0x1d8   : > { %1930 = vst [vmem:[%s3061_s30 + $0x160] sm:$0xff] %v1808_v3  ;;  %v1994_v8 = vadd.f32 %v1993_v61, %v1808_v3  ;;  %v2067_v9 = vmul.f32 %v1808_v3, %v1808_v3  ;;  %v1811_v10 = vadd.f32 %v1810_v6, %v1521_v5  ;;  %v1812_v11 = vpop.f32.mrb[91].mxu0 }
 0x1da   : > { %v2130_v12 = vadd.f32 %v2129_v63, %v2067_v9  ;;  %1931 = vst [vmem:[%s3061_s30 + $0x168] sm:$0xff] %v1811_v10  ;;  %v1995_v13 = vadd.f32 %v1994_v8, %v1811_v10  ;;  %v2068_v14 = vmul.f32 %v1811_v10, %v1811_v10 }
 0x1dc   : > { %v2131_v15 = vadd.f32 %v2130_v12, %v2068_v14  ;;  %v1526_v16 = vpop.f32.mrb[92].mxu1 }
 0x1dd   : > { %v1815_v17 = vpop.f32.mrb[92].mxu0  ;;  %v1528_v18 = vpop.f32.mrb[93].mxu1 }
 0x1de   : > { %v1816_v19 = vadd.f32 %v1815_v17, %v1526_v16  ;;  %v1817_v20 = vpop.f32.mrb[93].mxu0  ;;  %v1529_v21 = vpop.f32.mrb[94].mxu1 }
 0x1df   : > { %v1818_v22 = vpop.f32.mrb[94].mxu0  ;;  %v1531_v23 = vpop.f32.mrb[95].mxu1 }
 0x1e0   : > { %1932 = vst [vmem:[%s3061_s30 + $0x170] sm:$0xff] %v1816_v19  ;;  %v1996_v24 = vadd.f32 %v1995_v13, %v1816_v19  ;;  %v2069_v25 = vmul.f32 %v1816_v19, %v1816_v19  ;;  %v1819_v26 = vadd.f32 %v1818_v22, %v1529_v21  ;;  %v1820_v27 = vpop.f32.mrb[95].mxu0 }
 0x1e2   : > { %v2132_v28 = vadd.f32 %v2131_v15, %v2069_v25  ;;  %1933 = vst [vmem:[%s3061_s30 + $0x178] sm:$0xff] %v1819_v26  ;;  %v1997_v29 = vadd.f32 %v1996_v24, %v1819_v26  ;;  %v2070_v30 = vmul.f32 %v1819_v26, %v1819_v26 }
 0x1e4   : > { %v2133_v31 = vadd.f32 %v2132_v28, %v2070_v30  ;;  %v1534_v32 = vpop.f32.mrb[96].mxu1 }
 0x1e5   : > { %v1823_v33 = vpop.f32.mrb[96].mxu0  ;;  %v1536_v34 = vpop.f32.mrb[97].mxu1 }
 0x1e6   : > { %v1824_v35 = vadd.f32 %v1823_v33, %v1534_v32  ;;  %v1825_v36 = vpop.f32.mrb[97].mxu0  ;;  %v1537_v37 = vpop.f32.mrb[98].mxu1 }
 0x1e7   : > { %v1826_v38 = vpop.f32.mrb[98].mxu0  ;;  %v1539_v39 = vpop.f32.mrb[99].mxu1 }
 0x1e8   : > { %1934 = vst [vmem:[%s3061_s30 + $0x180] sm:$0xff] %v1824_v35  ;;  %v1998_v40 = vadd.f32 %v1997_v29, %v1824_v35  ;;  %v2071_v41 = vmul.f32 %v1824_v35, %v1824_v35  ;;  %v1827_v42 = vadd.f32 %v1826_v38, %v1537_v37  ;;  %v1828_v43 = vpop.f32.mrb[99].mxu0 }
 0x1ea   : > { %v2134_v44 = vadd.f32 %v2133_v31, %v2071_v41  ;;  %1935 = vst [vmem:[%s3061_s30 + $0x188] sm:$0xff] %v1827_v42  ;;  %v1999_v45 = vadd.f32 %v1998_v40, %v1827_v42  ;;  %v2072_v46 = vmul.f32 %v1827_v42, %v1827_v42 }
 0x1ec   : > { %v2135_v47 = vadd.f32 %v2134_v44, %v2072_v46  ;;  %v1542_v48 = vpop.f32.mrb[100].mxu1 }
 0x1ed   : > { %v1831_v49 = vpop.f32.mrb[100].mxu0  ;;  %v1544_v50 = vpop.f32.mrb[101].mxu1 }
 0x1ee   : > { %v1832_v51 = vadd.f32 %v1831_v49, %v1542_v48  ;;  %v1833_v52 = vpop.f32.mrb[101].mxu0  ;;  %v1545_v53 = vpop.f32.mrb[102].mxu1 }
 0x1ef   : > { %v1834_v54 = vpop.f32.mrb[102].mxu0  ;;  %v1547_v55 = vpop.f32.mrb[103].mxu1 }
 0x1f0   : > { %1936 = vst [vmem:[%s3061_s30 + $0x190] sm:$0xff] %v1832_v51  ;;  %v2000_v56 = vadd.f32 %v1999_v45, %v1832_v51  ;;  %v2073_v57 = vmul.f32 %v1832_v51, %v1832_v51  ;;  %v1835_v58 = vadd.f32 %v1834_v54, %v1545_v53  ;;  %v1836_v59 = vpop.f32.mrb[103].mxu0 }
 0x1f2   : > { %v2136_v60 = vadd.f32 %v2135_v47, %v2073_v57  ;;  %1937 = vst [vmem:[%s3061_s30 + $0x198] sm:$0xff] %v1835_v58  ;;  %v2001_v61 = vadd.f32 %v2000_v56, %v1835_v58  ;;  %v2074_v62 = vmul.f32 %v1835_v58, %v1835_v58 }
 0x1f4   : > { %v2137_v63 = vadd.f32 %v2136_v60, %v2074_v62  ;;  %v1550_v0 = vpop.f32.mrb[104].mxu1 }
 0x1f5   : > { %v1839_v1 = vpop.f32.mrb[104].mxu0  ;;  %v1552_v2 = vpop.f32.mrb[105].mxu1 }
 0x1f6   : > { %v1840_v3 = vadd.f32 %v1839_v1, %v1550_v0  ;;  %v1841_v4 = vpop.f32.mrb[105].mxu0  ;;  %v1553_v5 = vpop.f32.mrb[106].mxu1 }
 0x1f7   : > { %v1842_v6 = vpop.f32.mrb[106].mxu0  ;;  %v1555_v7 = vpop.f32.mrb[107].mxu1 }
 0x1f8   : > { %1938 = vst [vmem:[%s3061_s30 + $0x1a0] sm:$0xff] %v1840_v3  ;;  %v2002_v8 = vadd.f32 %v2001_v61, %v1840_v3  ;;  %v2075_v9 = vmul.f32 %v1840_v3, %v1840_v3  ;;  %v1843_v10 = vadd.f32 %v1842_v6, %v1553_v5  ;;  %v1844_v11 = vpop.f32.mrb[107].mxu0 }
 0x1fa   : > { %v2138_v12 = vadd.f32 %v2137_v63, %v2075_v9  ;;  %1939 = vst [vmem:[%s3061_s30 + $0x1a8] sm:$0xff] %v1843_v10  ;;  %v2003_v13 = vadd.f32 %v2002_v8, %v1843_v10  ;;  %v2076_v14 = vmul.f32 %v1843_v10, %v1843_v10 }
 0x1fc   : > { %v2139_v15 = vadd.f32 %v2138_v12, %v2076_v14  ;;  %v1558_v16 = vpop.f32.mrb[108].mxu1 }
 0x1fd   : > { %v1847_v17 = vpop.f32.mrb[108].mxu0  ;;  %v1560_v18 = vpop.f32.mrb[109].mxu1 }
 0x1fe   : > { %v1848_v19 = vadd.f32 %v1847_v17, %v1558_v16  ;;  %v1849_v20 = vpop.f32.mrb[109].mxu0  ;;  %v1561_v21 = vpop.f32.mrb[110].mxu1 }
 0x1ff   : > { %v1850_v22 = vpop.f32.mrb[110].mxu0  ;;  %v1563_v23 = vpop.f32.mrb[111].mxu1 }
 0x200   : > { %1940 = vst [vmem:[%s3061_s30 + $0x1b0] sm:$0xff] %v1848_v19  ;;  %v2004_v24 = vadd.f32 %v2003_v13, %v1848_v19  ;;  %v2077_v25 = vmul.f32 %v1848_v19, %v1848_v19  ;;  %v1851_v26 = vadd.f32 %v1850_v22, %v1561_v21  ;;  %v1852_v27 = vpop.f32.mrb[111].mxu0 }
 0x202   : > { %v2140_v28 = vadd.f32 %v2139_v15, %v2077_v25  ;;  %1941 = vst [vmem:[%s3061_s30 + $0x1b8] sm:$0xff] %v1851_v26  ;;  %v2005_v29 = vadd.f32 %v2004_v24, %v1851_v26  ;;  %v2078_v30 = vmul.f32 %v1851_v26, %v1851_v26 }
 0x204   : > { %v2141_v31 = vadd.f32 %v2140_v28, %v2078_v30  ;;  %v1566_v32 = vpop.f32.mrb[112].mxu1 }
 0x205   : > { %v1855_v33 = vpop.f32.mrb[112].mxu0  ;;  %v1568_v34 = vpop.f32.mrb[113].mxu1 }
 0x206   : > { %v1856_v35 = vadd.f32 %v1855_v33, %v1566_v32  ;;  %v1857_v36 = vpop.f32.mrb[113].mxu0  ;;  %v1569_v37 = vpop.f32.mrb[114].mxu1 }
 0x207   : > { %v1858_v38 = vpop.f32.mrb[114].mxu0  ;;  %v1571_v39 = vpop.f32.mrb[115].mxu1 }
 0x208   : > { %1942 = vst [vmem:[%s3061_s30 + $0x1c0] sm:$0xff] %v1856_v35  ;;  %v2006_v40 = vadd.f32 %v2005_v29, %v1856_v35  ;;  %v2079_v41 = vmul.f32 %v1856_v35, %v1856_v35  ;;  %v1859_v42 = vadd.f32 %v1858_v38, %v1569_v37  ;;  %v1860_v43 = vpop.f32.mrb[115].mxu0 }
 0x20a   : > { %v2142_v44 = vadd.f32 %v2141_v31, %v2079_v41  ;;  %1943 = vst [vmem:[%s3061_s30 + $0x1c8] sm:$0xff] %v1859_v42  ;;  %v2007_v45 = vadd.f32 %v2006_v40, %v1859_v42  ;;  %v2080_v46 = vmul.f32 %v1859_v42, %v1859_v42  ;;  %v1950_v41 = vld [vmem:[%s3117_s7] sm:$0x1] }
 0x20c   : > { %v2143_v47 = vadd.f32 %v2142_v44, %v2080_v46  ;;  %v1574_v48 = vpop.f32.mrb[116].mxu1  ;;  %v2022_v44 = vld [vmem:[%s3123_s10] sm:$0x1] }
 0x20d   : > { %v1863_v49 = vpop.f32.mrb[116].mxu0  ;;  %v1576_v50 = vpop.f32.mrb[117].mxu1 }
 0x20e   : > { %v1864_v51 = vadd.f32 %v1863_v49, %v1574_v48  ;;  %v1865_v52 = vpop.f32.mrb[117].mxu0  ;;  %v1577_v53 = vpop.f32.mrb[118].mxu1 }
 0x20f   : > { %v1866_v54 = vpop.f32.mrb[118].mxu0  ;;  %v1579_v55 = vpop.f32.mrb[119].mxu1 }
 0x210   : > { %1944 = vst [vmem:[%s3061_s30 + $0x1d0] sm:$0xff] %v1864_v51  ;;  %v2008_v56 = vadd.f32 %v2007_v45, %v1864_v51  ;;  %v2081_v57 = vmul.f32 %v1864_v51, %v1864_v51  ;;  %v1867_v58 = vadd.f32 %v1866_v54, %v1577_v53  ;;  %v1868_v59 = vpop.f32.mrb[119].mxu0 }
 0x212   : > { %v2144_v60 = vadd.f32 %v2143_v47, %v2081_v57  ;;  %1945 = vst [vmem:[%s3061_s30 + $0x1d8] sm:$0xff] %v1867_v58  ;;  %v2009_v61 = vadd.f32 %v2008_v56, %v1867_v58  ;;  %v2082_v62 = vmul.f32 %v1867_v58, %v1867_v58 }
 0x214   : > { %v2145_v63 = vadd.f32 %v2144_v60, %v2082_v62  ;;  %v1582_v0 = vpop.f32.mrb[120].mxu1 }
 0x215   : > { %v1871_v1 = vpop.f32.mrb[120].mxu0  ;;  %v1584_v2 = vpop.f32.mrb[121].mxu1 }
 0x216   : > { %v1872_v3 = vadd.f32 %v1871_v1, %v1582_v0  ;;  %v1873_v4 = vpop.f32.mrb[121].mxu0  ;;  %v1585_v5 = vpop.f32.mrb[122].mxu1 }
 0x217   : > { %v1874_v6 = vpop.f32.mrb[122].mxu0  ;;  %v1587_v7 = vpop.f32.mrb[123].mxu1 }
 0x218   : > { %1946 = vst [vmem:[%s3061_s30 + $0x1e0] sm:$0xff] %v1872_v3  ;;  %v2010_v8 = vadd.f32 %v2009_v61, %v1872_v3  ;;  %v2083_v9 = vmul.f32 %v1872_v3, %v1872_v3  ;;  %v1875_v10 = vadd.f32 %v1874_v6, %v1585_v5  ;;  %v1876_v11 = vpop.f32.mrb[123].mxu0 }
 0x21a   : > { %v2146_v12 = vadd.f32 %v2145_v63, %v2083_v9  ;;  %1947 = vst [vmem:[%s3061_s30 + $0x1e8] sm:$0xff] %v1875_v10  ;;  %v2011_v13 = vadd.f32 %v2010_v8, %v1875_v10  ;;  %v2084_v14 = vmul.f32 %v1875_v10, %v1875_v10 }
 0x21c   : > { %v2147_v15 = vadd.f32 %v2146_v12, %v2084_v14  ;;  %v1590_v16 = vpop.f32.mrb[124].mxu1 }
 0x21d   : > { %v1879_v17 = vpop.f32.mrb[124].mxu0  ;;  %v1592_v18 = vpop.f32.mrb[125].mxu1 }
 0x21e   : > { %v1880_v19 = vadd.f32 %v1879_v17, %v1590_v16  ;;  %v1881_v20 = vpop.f32.mrb[125].mxu0  ;;  %v1593_v21 = vpop.f32.mrb[126].mxu1 }
 0x21f   : > { %v1882_v22 = vpop.f32.mrb[126].mxu0  ;;  %v1595_v23 = vpop.f32.mrb[127].mxu1 }
 0x220   : > { %1948 = vst [vmem:[%s3061_s30 + $0x1f0] sm:$0xff] %v1880_v19  ;;  %v2012_v24 = vadd.f32 %v2011_v13, %v1880_v19  ;;  %v2085_v25 = vmul.f32 %v1880_v19, %v1880_v19  ;;  %v1883_v26 = vadd.f32 %v1882_v22, %v1593_v21  ;;  %v1884_v27 = vpop.f32.mrb[127].mxu0 }
 0x222   : > { %v2148_v28 = vadd.f32 %v2147_v15, %v2085_v25  ;;  %1949 = vst [vmem:[%s3061_s30 + $0x1f8] sm:$0xff] %v1883_v26  ;;  %v2013_v29 = vadd.f32 %v2012_v24, %v1883_v26  ;;  %v2086_v30 = vmul.f32 %v1883_v26, %v1883_v26 }
 0x224   : > { %v2014_v31 = vrot.slane %v2013_v29, 4  ;;  %v2149_v32 = vadd.f32 %v2148_v28, %v2086_v30 }
 0x226   : > { %v2015_v33 = vadd.f32 %v2014_v31, %v2013_v29  ;;  %v2150_v34 = vrot.slane %v2149_v32, 4 }
 0x228   : > { %v2016_v35 = vrot.slane %v2015_v33, 2  ;;  %v2151_v36 = vadd.f32 %v2150_v34, %v2149_v32 }
 0x22a   : > { %v2017_v37 = vadd.f32 %v2016_v35, %v2015_v33  ;;  %v2152_v38 = vrot.slane %v2151_v36, 2 }
 0x22c   : > { %v2018_v39 = vrot.slane %v2017_v37, 1  ;;  %v2153_v40 = vadd.f32 %v2152_v38, %v2151_v36 }
 0x22e   : > { %v2019_v42 = vadd.f32 %v2018_v39, %v2017_v37  ;;  %v2154_v43 = vrot.slane %v2153_v40, 1 }
 0x230   : > { %v2020_v45 = vadd.f32 %v2019_v42, %v1950_v41  ;;  %v2155_v46 = vadd.f32 %v2154_v43, %v2153_v40 }
 0x232   : > { %2021 = vst [vmem:[%s3117_s7] sm:$0x1] %v2020_v45  ;;  %v2156_v47 = vadd.f32 %v2155_v46, %v2022_v44 }
 0x234   : > { %2157 = vst [vmem:[%s3123_s10] sm:$0x1] %v2156_v47 }
 0x235 PF: > { %s15_s17 = sadd.s32 1, %s2822_s17   ;;  %s3177_s15 = smov %s2818_s16 }
 0x236   : > { %p12_p5 = scmp.ge.s32.totalorder %s15_s17, 6   ;;  %s3178_s16 = smov %s3180_s18 }
 0x238   :  { %14 = sbr.rel (!%p12_p5) target bundleno = 2 (0x2), region = 89 }

// kernel: generator_forward.16
= control target key start
LH: loop header
LB: loop body
LE: loop exit
PB: predicated region body
PF: predicated region fallthrough
CT: control target
= control target key end

     0   :  { %s5335_s0 = inlined_call_operand.vmem [shape: f32[2048,128], index: 0, kind: input, shape index: {}]   ;;  %s5336_s1 = inlined_call_operand.vmem [shape: f32[1,128], index: 1, kind: input, shape index: {}]   ;;  %s5337_s2 = inlined_call_operand.vmem [shape: f32[1,128], index: 2, kind: input, shape index: {}]   ;;  %s5338_s3 = inlined_call_operand.vmem [shape: bf16[2048,128], index: 3, kind: output, shape index: {}]  }
   0x1   :  { %v14_v0 = vld [vmem:[%s5335_s0] sm:$0xff]  ;;  %v15_v1 = vld [vmem:[%s5335_s0 + $0x8] sm:$0xff]  ;;  %v16_v6 = vld [vmem:[%s5335_s0 + $0x10] sm:$0xff] }
   0x2   :  { %v3650_v2 = vld [vmem:[%s5336_s1] ss:$0 sm:$0xff]  ;;  %v17_v7 = vld [vmem:[%s5335_s0 + $0x18] sm:$0xff]  ;;  %v19_v11 = vld [vmem:[%s5335_s0 + $0x28] sm:$0xff] }
   0x3   :  { %v277_v3 = vmul.f32 %v3650_v2, %v14_v0  ;;  %v278_v4 = vmul.f32 %v3650_v2, %v15_v1  ;;  %v3657_v5 = vld [vmem:[%s5337_s2] ss:$0 sm:$0xff]  ;;  %v279_v8 = vmul.f32 %v3650_v2, %v16_v6  ;;  %v280_v9 = vmul.f32 %v3650_v2, %v17_v7  ;;  %v20_v12 = vld [vmem:[%s5335_s0 + $0x30] sm:$0xff]  ;;  %v21_v17 = vld [vmem:[%s5335_s0 + $0x38] sm:$0xff] }
   0x4   :  { %v18_v10 = vld [vmem:[%s5335_s0 + $0x20] sm:$0xff]  ;;  %v282_v16 = vmul.f32 %v3650_v2, %v19_v11  ;;  %v283_v20 = vmul.f32 %v3650_v2, %v20_v12  ;;  %v284_v21 = vmul.f32 %v3650_v2, %v21_v17  ;;  %v23_v27 = vld [vmem:[%s5335_s0 + $0x48] sm:$0xff]  ;;  %v24_v32 = vld [vmem:[%s5335_s0 + $0x50] sm:$0xff] }
   0x5   :  { %v540_v13 = vadd.f32 %v3657_v5, %v277_v3  ;;  %v541_v14 = vadd.f32 %v3657_v5, %v278_v4  ;;  %v281_v15 = vmul.f32 %v3650_v2, %v18_v10  ;;  %v542_v18 = vadd.f32 %v3657_v5, %v279_v8  ;;  %v22_v22 = vld [vmem:[%s5335_s0 + $0x40] sm:$0xff]  ;;  %v25_v33 = vld [vmem:[%s5335_s0 + $0x58] sm:$0xff]  ;;  %v27_v39 = vld [vmem:[%s5335_s0 + $0x68] sm:$0xff] }
   0x6   :  { %v543_v19 = vadd.f32 %v3657_v5, %v280_v9  ;;  %v545_v26 = vadd.f32 %v3657_v5, %v282_v16  ;;  %v546_v30 = vadd.f32 %v3657_v5, %v283_v20  ;;  %v547_v31 = vadd.f32 %v3657_v5, %v284_v21  ;;  %v26_v38 = vld [vmem:[%s5335_s0 + $0x60] sm:$0xff]  ;;  %v28_v44 = vld [vmem:[%s5335_s0 + $0x70] sm:$0xff]  ;;  %v29_v49 = vld [vmem:[%s5335_s0 + $0x78] sm:$0xff] }
   0x7   :  { %v796_v23 = vmax.f32 %v540_v13, 0.0  ;;  %v797_v24 = vmax.f32 %v541_v14, 0.0  ;;  %v544_v25 = vadd.f32 %v3657_v5, %v281_v15  ;;  %v798_v28 = vmax.f32 %v542_v18, 0.0  ;;  %v30_v54 = vld [vmem:[%s5335_s0 + $0x80] sm:$0xff]  ;;  %v31_v63 = vld [vmem:[%s5335_s0 + $0x88] sm:$0xff]  ;;  %v32_v6 = vld [vmem:[%s5335_s0 + $0x90] sm:$0xff] }
   0x8   :  { %v799_v29 = vmax.f32 %v543_v19, 0.0  ;;  %v801_v36 = vmax.f32 %v545_v26, 0.0  ;;  %v285_v37 = vmul.f32 %v3650_v2, %v22_v22  ;;  %v802_v41 = vmax.f32 %v546_v30, 0.0  ;;  %v33_v7 = vld [vmem:[%s5335_s0 + $0x98] sm:$0xff]  ;;  %v34_v12 = vld [vmem:[%s5335_s0 + $0xa0] sm:$0xff]  ;;  %v35_v13 = vld [vmem:[%s5335_s0 + $0xa8] sm:$0xff] }
   0x9   :  { %v2853_v34 = vpack.c.bf16 %v797_v24, %v796_v23  ;;  %v800_v35 = vmax.f32 %v544_v25, 0.0  ;;  %v803_v42 = vmax.f32 %v547_v31, 0.0  ;;  %v286_v43 = vmul.f32 %v3650_v2, %v23_v27  ;;  %v36_v18 = vld [vmem:[%s5335_s0 + $0xb0] sm:$0xff]  ;;  %v37_v23 = vld [vmem:[%s5335_s0 + $0xb8] sm:$0xff] }
   0xa   :  { %v2858_v40 = vpack.c.bf16 %v799_v29, %v798_v28  ;;  %v548_v46 = vadd.f32 %v3657_v5, %v285_v37  ;;  %v287_v47 = vmul.f32 %v3650_v2, %v24_v32  ;;  %v288_v48 = vmul.f32 %v3650_v2, %v25_v33  ;;  %v38_v28 = vld [vmem:[%s5335_s0 + $0xc0] sm:$0xff]  ;;  %v39_v37 = vld [vmem:[%s5335_s0 + $0xc8] sm:$0xff] }
   0xb   :  { %2854 = vst [vmem:[%s5338_s3] sm:$0xff] %v2853_v34   ;;  %v2863_v45 = vpack.c.bf16 %v801_v36, %v800_v35  ;;  %v2868_v50 = vpack.c.bf16 %v803_v42, %v802_v41  ;;  %v549_v51 = vadd.f32 %v3657_v5, %v286_v43  ;;  %v289_v52 = vmul.f32 %v3650_v2, %v26_v38  ;;  %v40_v42 = vld [vmem:[%s5335_s0 + $0xd0] sm:$0xff]  ;;  %v41_v43 = vld [vmem:[%s5335_s0 + $0xd8] sm:$0xff] }
   0xc   :  { %3490 = vst [vmem:[%s5338_s3 + $0x8] sm:$0xff] %v2858_v40   ;;  %v290_v53 = vmul.f32 %v3650_v2, %v27_v39  ;;  %v804_v55 = vmax.f32 %v548_v46, 0.0  ;;  %v550_v56 = vadd.f32 %v3657_v5, %v287_v47  ;;  %v551_v57 = vadd.f32 %v3657_v5, %v288_v48  ;;  %v42_v48 = vld [vmem:[%s5335_s0 + $0xe0] sm:$0xff] }
   0xd   :  { %3491 = vst [vmem:[%s5338_s3 + $0x10] sm:$0xff] %v2863_v45   ;;  %v291_v58 = vmul.f32 %v3650_v2, %v28_v44  ;;  %3492 = vst [vmem:[%s5338_s3 + $0x18] sm:$0xff] %v2868_v50   ;;  %v805_v59 = vmax.f32 %v549_v51, 0.0  ;;  %v552_v60 = vadd.f32 %v3657_v5, %v289_v52  ;;  %v292_v62 = vmul.f32 %v3650_v2, %v29_v49  ;;  %v43_v49 = vld [vmem:[%s5335_s0 + $0xe8] sm:$0xff] }
   0xe   :  { %v553_v61 = vadd.f32 %v3657_v5, %v290_v53  ;;  %v806_v0 = vmax.f32 %v550_v56, 0.0  ;;  %v807_v1 = vmax.f32 %v551_v57, 0.0  ;;  %v293_v4 = vmul.f32 %v3650_v2, %v30_v54  ;;  %v44_v54 = vld [vmem:[%s5335_s0 + $0xf0] sm:$0xff] }
   0xf   :  { %v554_v3 = vadd.f32 %v3657_v5, %v291_v58  ;;  %v2873_v8 = vpack.c.bf16 %v805_v59, %v804_v55  ;;  %v808_v9 = vmax.f32 %v552_v60, 0.0  ;;  %v555_v11 = vadd.f32 %v3657_v5, %v292_v62  ;;  %v45_v59 = vld [vmem:[%s5335_s0 + $0xf8] sm:$0xff] }
  0x10   :  { %v809_v10 = vmax.f32 %v553_v61, 0.0  ;;  %v2878_v14 = vpack.c.bf16 %v807_v1, %v806_v0  ;;  %v294_v16 = vmul.f32 %v3650_v2, %v31_v63  ;;  %v556_v17 = vadd.f32 %v3657_v5, %v293_v4  ;;  %v46_v0 = vld [vmem:[%s5335_s0 + $0x100] sm:$0xff] }
  0x11   :  { %v810_v15 = vmax.f32 %v554_v3, 0.0  ;;  %3493 = vst [vmem:[%s5338_s3 + $0x20] sm:$0xff] %v2873_v8   ;;  %v811_v20 = vmax.f32 %v555_v11, 0.0  ;;  %v295_v21 = vmul.f32 %v3650_v2, %v32_v6  ;;  %v296_v22 = vmul.f32 %v3650_v2, %v33_v7  ;;  %v47_v11 = vld [vmem:[%s5335_s0 + $0x108] sm:$0xff] }
  0x12   :  { %v2883_v19 = vpack.c.bf16 %v809_v10, %v808_v9  ;;  %3494 = vst [vmem:[%s5338_s3 + $0x28] sm:$0xff] %v2878_v14   ;;  %v557_v24 = vadd.f32 %v3657_v5, %v294_v16  ;;  %v812_v25 = vmax.f32 %v556_v17, 0.0  ;;  %v297_v26 = vmul.f32 %v3650_v2, %v34_v12  ;;  %v48_v16 = vld [vmem:[%s5335_s0 + $0x110] sm:$0xff]  ;;  %v49_v17 = vld [vmem:[%s5335_s0 + $0x118] sm:$0xff] }
  0x13   :  { %v298_v27 = vmul.f32 %v3650_v2, %v35_v13  ;;  %v2888_v29 = vpack.c.bf16 %v811_v20, %v810_v15  ;;  %v558_v30 = vadd.f32 %v3657_v5, %v295_v21  ;;  %v559_v31 = vadd.f32 %v3657_v5, %v296_v22  ;;  %v50_v22 = vld [vmem:[%s5335_s0 + $0x120] sm:$0xff] }
  0x14   :  { %3495 = vst [vmem:[%s5338_s3 + $0x30] sm:$0xff] %v2883_v19   ;;  %v299_v32 = vmul.f32 %v3650_v2, %v36_v18  ;;  %v813_v33 = vmax.f32 %v557_v24, 0.0  ;;  %v560_v34 = vadd.f32 %v3657_v5, %v297_v26  ;;  %v300_v36 = vmul.f32 %v3650_v2, %v37_v23  ;;  %v51_v23 = vld [vmem:[%s5335_s0 + $0x128] sm:$0xff] }
  0x15   :  { %v561_v35 = vadd.f32 %v3657_v5, %v298_v27  ;;  %3496 = vst [vmem:[%s5338_s3 + $0x38] sm:$0xff] %v2888_v29   ;;  %v814_v38 = vmax.f32 %v558_v30, 0.0  ;;  %v815_v39 = vmax.f32 %v559_v31, 0.0  ;;  %v301_v41 = vmul.f32 %v3650_v2, %v38_v28  ;;  %v52_v28 = vld [vmem:[%s5335_s0 + $0x130] sm:$0xff] }
  0x16   :  { %v562_v40 = vadd.f32 %v3657_v5, %v299_v32  ;;  %v2893_v44 = vpack.c.bf16 %v813_v33, %v812_v25  ;;  %v816_v45 = vmax.f32 %v560_v34, 0.0  ;;  %v563_v47 = vadd.f32 %v3657_v5, %v300_v36  ;;  %v53_v33 = vld [vmem:[%s5335_s0 + $0x138] sm:$0xff] }
  0x17   :  { %v817_v46 = vmax.f32 %v561_v35, 0.0  ;;  %v2898_v50 = vpack.c.bf16 %v815_v39, %v814_v38  ;;  %v302_v52 = vmul.f32 %v3650_v2, %v39_v37  ;;  %v564_v53 = vadd.f32 %v3657_v5, %v301_v41  ;;  %v54_v38 = vld [vmem:[%s5335_s0 + $0x140] sm:$0xff] }
  0x18   :  { %v818_v51 = vmax.f32 %v562_v40, 0.0  ;;  %3497 = vst [vmem:[%s5338_s3 + $0x40] sm:$0xff] %v2893_v44   ;;  %v819_v56 = vmax.f32 %v563_v47, 0.0  ;;  %v303_v57 = vmul.f32 %v3650_v2, %v40_v42  ;;  %v304_v58 = vmul.f32 %v3650_v2, %v41_v43  ;;  %v55_v47 = vld [vmem:[%s5335_s0 + $0x148] sm:$0xff] }
  0x19   :  { %v2903_v55 = vpack.c.bf16 %v817_v46, %v816_v45  ;;  %3498 = vst [vmem:[%s5338_s3 + $0x48] sm:$0xff] %v2898_v50   ;;  %v565_v60 = vadd.f32 %v3657_v5, %v302_v52  ;;  %v820_v61 = vmax.f32 %v564_v53, 0.0  ;;  %v305_v62 = vmul.f32 %v3650_v2, %v42_v48  ;;  %v56_v52 = vld [vmem:[%s5335_s0 + $0x150] sm:$0xff]  ;;  %v57_v53 = vld [vmem:[%s5335_s0 + $0x158] sm:$0xff] }
  0x1a   :  { %v306_v63 = vmul.f32 %v3650_v2, %v43_v49  ;;  %v2908_v1 = vpack.c.bf16 %v819_v56, %v818_v51  ;;  %v566_v3 = vadd.f32 %v3657_v5, %v303_v57  ;;  %v567_v4 = vadd.f32 %v3657_v5, %v304_v58  ;;  %v58_v58 = vld [vmem:[%s5335_s0 + $0x160] sm:$0xff] }
  0x1b   :  { %3499 = vst [vmem:[%s5338_s3 + $0x50] sm:$0xff] %v2903_v55   ;;  %v307_v6 = vmul.f32 %v3650_v2, %v44_v54  ;;  %v821_v7 = vmax.f32 %v565_v60, 0.0  ;;  %v568_v8 = vadd.f32 %v3657_v5, %v305_v62  ;;  %v308_v10 = vmul.f32 %v3650_v2, %v45_v59  ;;  %v59_v59 = vld [vmem:[%s5335_s0 + $0x168] sm:$0xff] }
  0x1c   :  { %v569_v9 = vadd.f32 %v3657_v5, %v306_v63  ;;  %3500 = vst [vmem:[%s5338_s3 + $0x58] sm:$0xff] %v2908_v1   ;;  %v822_v12 = vmax.f32 %v566_v3, 0.0  ;;  %v823_v13 = vmax.f32 %v567_v4, 0.0  ;;  %v309_v15 = vmul.f32 %v3650_v2, %v46_v0  ;;  %v60_v0 = vld [vmem:[%s5335_s0 + $0x170] sm:$0xff] }
  0x1d   :  { %v570_v14 = vadd.f32 %v3657_v5, %v307_v6  ;;  %v2913_v18 = vpack.c.bf16 %v821_v7, %v820_v61  ;;  %v824_v19 = vmax.f32 %v568_v8, 0.0  ;;  %v571_v21 = vadd.f32 %v3657_v5, %v308_v10  ;;  %v61_v7 = vld [vmem:[%s5335_s0 + $0x178] sm:$0xff] }
  0x1e   :  { %v825_v20 = vmax.f32 %v569_v9, 0.0  ;;  %v2918_v24 = vpack.c.bf16 %v823_v13, %v822_v12  ;;  %v310_v26 = vmul.f32 %v3650_v2, %v47_v11  ;;  %v572_v27 = vadd.f32 %v3657_v5, %v309_v15  ;;  %v62_v12 = vld [vmem:[%s5335_s0 + $0x180] sm:$0xff] }
  0x1f   :  { %v826_v25 = vmax.f32 %v570_v14, 0.0  ;;  %3501 = vst [vmem:[%s5338_s3 + $0x60] sm:$0xff] %v2913_v18   ;;  %v827_v30 = vmax.f32 %v571_v21, 0.0  ;;  %v311_v31 = vmul.f32 %v3650_v2, %v48_v16  ;;  %v312_v32 = vmul.f32 %v3650_v2, %v49_v17  ;;  %v63_v21 = vld [vmem:[%s5335_s0 + $0x188] sm:$0xff] }
  0x20   :  { %v2923_v29 = vpack.c.bf16 %v825_v20, %v824_v19  ;;  %3502 = vst [vmem:[%s5338_s3 + $0x68] sm:$0xff] %v2918_v24   ;;  %v573_v34 = vadd.f32 %v3657_v5, %v310_v26  ;;  %v828_v35 = vmax.f32 %v572_v27, 0.0  ;;  %v313_v36 = vmul.f32 %v3650_v2, %v50_v22  ;;  %v64_v26 = vld [vmem:[%s5335_s0 + $0x190] sm:$0xff]  ;;  %v65_v27 = vld [vmem:[%s5335_s0 + $0x198] sm:$0xff] }
  0x21   :  { %v314_v37 = vmul.f32 %v3650_v2, %v51_v23  ;;  %v2928_v39 = vpack.c.bf16 %v827_v30, %v826_v25  ;;  %v574_v40 = vadd.f32 %v3657_v5, %v311_v31  ;;  %v575_v41 = vadd.f32 %v3657_v5, %v312_v32  ;;  %v66_v32 = vld [vmem:[%s5335_s0 + $0x1a0] sm:$0xff] }
  0x22   :  { %3503 = vst [vmem:[%s5338_s3 + $0x70] sm:$0xff] %v2923_v29   ;;  %v315_v42 = vmul.f32 %v3650_v2, %v52_v28  ;;  %v829_v43 = vmax.f32 %v573_v34, 0.0  ;;  %v576_v44 = vadd.f32 %v3657_v5, %v313_v36  ;;  %v316_v46 = vmul.f32 %v3650_v2, %v53_v33  ;;  %v67_v33 = vld [vmem:[%s5335_s0 + $0x1a8] sm:$0xff] }
  0x23   :  { %v577_v45 = vadd.f32 %v3657_v5, %v314_v37  ;;  %3504 = vst [vmem:[%s5338_s3 + $0x78] sm:$0xff] %v2928_v39   ;;  %v830_v48 = vmax.f32 %v574_v40, 0.0  ;;  %v831_v49 = vmax.f32 %v575_v41, 0.0  ;;  %v317_v51 = vmul.f32 %v3650_v2, %v54_v38  ;;  %v68_v38 = vld [vmem:[%s5335_s0 + $0x1b0] sm:$0xff] }
  0x24   :  { %v578_v50 = vadd.f32 %v3657_v5, %v315_v42  ;;  %v2933_v54 = vpack.c.bf16 %v829_v43, %v828_v35  ;;  %v832_v55 = vmax.f32 %v576_v44, 0.0  ;;  %v579_v57 = vadd.f32 %v3657_v5, %v316_v46  ;;  %v69_v43 = vld [vmem:[%s5335_s0 + $0x1b8] sm:$0xff] }
  0x25   :  { %v833_v56 = vmax.f32 %v577_v45, 0.0  ;;  %v2938_v60 = vpack.c.bf16 %v831_v49, %v830_v48  ;;  %v318_v62 = vmul.f32 %v3650_v2, %v55_v47  ;;  %v580_v63 = vadd.f32 %v3657_v5, %v317_v51  ;;  %v70_v48 = vld [vmem:[%s5335_s0 + $0x1c0] sm:$0xff] }
  0x26   :  { %v834_v61 = vmax.f32 %v578_v50, 0.0  ;;  %3505 = vst [vmem:[%s5338_s3 + $0x80] sm:$0xff] %v2933_v54   ;;  %v835_v3 = vmax.f32 %v579_v57, 0.0  ;;  %v319_v4 = vmul.f32 %v3650_v2, %v56_v52  ;;  %v320_v6 = vmul.f32 %v3650_v2, %v57_v53  ;;  %v71_v57 = vld [vmem:[%s5335_s0 + $0x1c8] sm:$0xff] }
  0x27   :  { %v2943_v1 = vpack.c.bf16 %v833_v56, %v832_v55  ;;  %3506 = vst [vmem:[%s5338_s3 + $0x88] sm:$0xff] %v2938_v60   ;;  %v581_v8 = vadd.f32 %v3657_v5, %v318_v62  ;;  %v836_v9 = vmax.f32 %v580_v63, 0.0  ;;  %v321_v10 = vmul.f32 %v3650_v2, %v58_v58  ;;  %v72_v62 = vld [vmem:[%s5335_s0 + $0x1d0] sm:$0xff]  ;;  %v73_v63 = vld [vmem:[%s5335_s0 + $0x1d8] sm:$0xff] }
  0x28   :  { %v322_v11 = vmul.f32 %v3650_v2, %v59_v59  ;;  %v2948_v13 = vpack.c.bf16 %v835_v3, %v834_v61  ;;  %v582_v14 = vadd.f32 %v3657_v5, %v319_v4  ;;  %v583_v15 = vadd.f32 %v3657_v5, %v320_v6  ;;  %v74_v6 = vld [vmem:[%s5335_s0 + $0x1e0] sm:$0xff] }
  0x29   :  { %3507 = vst [vmem:[%s5338_s3 + $0x90] sm:$0xff] %v2943_v1   ;;  %v323_v16 = vmul.f32 %v3650_v2, %v60_v0  ;;  %v837_v17 = vmax.f32 %v581_v8, 0.0  ;;  %v584_v18 = vadd.f32 %v3657_v5, %v321_v10  ;;  %v324_v20 = vmul.f32 %v3650_v2, %v61_v7  ;;  %v75_v7 = vld [vmem:[%s5335_s0 + $0x1e8] sm:$0xff] }
  0x2a   :  { %v585_v19 = vadd.f32 %v3657_v5, %v322_v11  ;;  %3508 = vst [vmem:[%s5338_s3 + $0x98] sm:$0xff] %v2948_v13   ;;  %v838_v22 = vmax.f32 %v582_v14, 0.0  ;;  %v839_v23 = vmax.f32 %v583_v15, 0.0  ;;  %v325_v25 = vmul.f32 %v3650_v2, %v62_v12  ;;  %v76_v12 = vld [vmem:[%s5335_s0 + $0x1f0] sm:$0xff] }
  0x2b   :  { %v586_v24 = vadd.f32 %v3657_v5, %v323_v16  ;;  %v2953_v28 = vpack.c.bf16 %v837_v17, %v836_v9  ;;  %v840_v29 = vmax.f32 %v584_v18, 0.0  ;;  %v587_v31 = vadd.f32 %v3657_v5, %v324_v20  ;;  %v77_v17 = vld [vmem:[%s5335_s0 + $0x1f8] sm:$0xff] }
  0x2c   :  { %v841_v30 = vmax.f32 %v585_v19, 0.0  ;;  %v2958_v34 = vpack.c.bf16 %v839_v23, %v838_v22  ;;  %v326_v36 = vmul.f32 %v3650_v2, %v63_v21  ;;  %v588_v37 = vadd.f32 %v3657_v5, %v325_v25  ;;  %v78_v22 = vld [vmem:[%s5335_s0 + $0x200] sm:$0xff] }
  0x2d   :  { %v842_v35 = vmax.f32 %v586_v24, 0.0  ;;  %3509 = vst [vmem:[%s5338_s3 + $0xa0] sm:$0xff] %v2953_v28   ;;  %v843_v40 = vmax.f32 %v587_v31, 0.0  ;;  %v327_v41 = vmul.f32 %v3650_v2, %v64_v26  ;;  %v328_v42 = vmul.f32 %v3650_v2, %v65_v27  ;;  %v79_v31 = vld [vmem:[%s5335_s0 + $0x208] sm:$0xff] }
  0x2e   :  { %v2963_v39 = vpack.c.bf16 %v841_v30, %v840_v29  ;;  %3510 = vst [vmem:[%s5338_s3 + $0xa8] sm:$0xff] %v2958_v34   ;;  %v589_v44 = vadd.f32 %v3657_v5, %v326_v36  ;;  %v844_v45 = vmax.f32 %v588_v37, 0.0  ;;  %v329_v46 = vmul.f32 %v3650_v2, %v66_v32  ;;  %v80_v36 = vld [vmem:[%s5335_s0 + $0x210] sm:$0xff]  ;;  %v81_v37 = vld [vmem:[%s5335_s0 + $0x218] sm:$0xff] }
  0x2f   :  { %v330_v47 = vmul.f32 %v3650_v2, %v67_v33  ;;  %v2968_v49 = vpack.c.bf16 %v843_v40, %v842_v35  ;;  %v590_v50 = vadd.f32 %v3657_v5, %v327_v41  ;;  %v591_v51 = vadd.f32 %v3657_v5, %v328_v42  ;;  %v82_v42 = vld [vmem:[%s5335_s0 + $0x220] sm:$0xff] }
  0x30   :  { %3511 = vst [vmem:[%s5338_s3 + $0xb0] sm:$0xff] %v2963_v39   ;;  %v331_v52 = vmul.f32 %v3650_v2, %v68_v38  ;;  %v845_v53 = vmax.f32 %v589_v44, 0.0  ;;  %v592_v54 = vadd.f32 %v3657_v5, %v329_v46  ;;  %v332_v56 = vmul.f32 %v3650_v2, %v69_v43  ;;  %v83_v43 = vld [vmem:[%s5335_s0 + $0x228] sm:$0xff] }
  0x31   :  { %v593_v55 = vadd.f32 %v3657_v5, %v330_v47  ;;  %3512 = vst [vmem:[%s5338_s3 + $0xb8] sm:$0xff] %v2968_v49   ;;  %v846_v58 = vmax.f32 %v590_v50, 0.0  ;;  %v847_v59 = vmax.f32 %v591_v51, 0.0  ;;  %v333_v61 = vmul.f32 %v3650_v2, %v70_v48  ;;  %v84_v48 = vld [vmem:[%s5335_s0 + $0x230] sm:$0xff] }
  0x32   :  { %v594_v60 = vadd.f32 %v3657_v5, %v331_v52  ;;  %v2973_v0 = vpack.c.bf16 %v845_v53, %v844_v45  ;;  %v848_v1 = vmax.f32 %v592_v54, 0.0  ;;  %v595_v4 = vadd.f32 %v3657_v5, %v332_v56  ;;  %v85_v53 = vld [vmem:[%s5335_s0 + $0x238] sm:$0xff] }
  0x33   :  { %v849_v3 = vmax.f32 %v593_v55, 0.0  ;;  %v2978_v8 = vpack.c.bf16 %v847_v59, %v846_v58  ;;  %v334_v10 = vmul.f32 %v3650_v2, %v71_v57  ;;  %v596_v11 = vadd.f32 %v3657_v5, %v333_v61  ;;  %v86_v58 = vld [vmem:[%s5335_s0 + $0x240] sm:$0xff] }
  0x34   :  { %v850_v9 = vmax.f32 %v594_v60, 0.0  ;;  %3513 = vst [vmem:[%s5338_s3 + $0xc0] sm:$0xff] %v2973_v0   ;;  %v851_v14 = vmax.f32 %v595_v4, 0.0  ;;  %v335_v15 = vmul.f32 %v3650_v2, %v72_v62  ;;  %v336_v16 = vmul.f32 %v3650_v2, %v73_v63  ;;  %v87_v4 = vld [vmem:[%s5335_s0 + $0x248] sm:$0xff] }
  0x35   :  { %v2983_v13 = vpack.c.bf16 %v849_v3, %v848_v1  ;;  %3514 = vst [vmem:[%s5338_s3 + $0xc8] sm:$0xff] %v2978_v8   ;;  %v597_v18 = vadd.f32 %v3657_v5, %v334_v10  ;;  %v852_v19 = vmax.f32 %v596_v11, 0.0  ;;  %v337_v20 = vmul.f32 %v3650_v2, %v74_v6  ;;  %v88_v10 = vld [vmem:[%s5335_s0 + $0x250] sm:$0xff]  ;;  %v89_v11 = vld [vmem:[%s5335_s0 + $0x258] sm:$0xff] }
  0x36   :  { %v338_v21 = vmul.f32 %v3650_v2, %v75_v7  ;;  %v2988_v23 = vpack.c.bf16 %v851_v14, %v850_v9  ;;  %v598_v24 = vadd.f32 %v3657_v5, %v335_v15  ;;  %v599_v25 = vadd.f32 %v3657_v5, %v336_v16  ;;  %v90_v16 = vld [vmem:[%s5335_s0 + $0x260] sm:$0xff] }
  0x37   :  { %3515 = vst [vmem:[%s5338_s3 + $0xd0] sm:$0xff] %v2983_v13   ;;  %v339_v26 = vmul.f32 %v3650_v2, %v76_v12  ;;  %v853_v27 = vmax.f32 %v597_v18, 0.0  ;;  %v600_v28 = vadd.f32 %v3657_v5, %v337_v20  ;;  %v340_v30 = vmul.f32 %v3650_v2, %v77_v17  ;;  %v91_v17 = vld [vmem:[%s5335_s0 + $0x268] sm:$0xff] }
  0x38   :  { %v601_v29 = vadd.f32 %v3657_v5, %v338_v21  ;;  %3516 = vst [vmem:[%s5338_s3 + $0xd8] sm:$0xff] %v2988_v23   ;;  %v854_v32 = vmax.f32 %v598_v24, 0.0  ;;  %v855_v33 = vmax.f32 %v599_v25, 0.0  ;;  %v341_v35 = vmul.f32 %v3650_v2, %v78_v22  ;;  %v92_v22 = vld [vmem:[%s5335_s0 + $0x270] sm:$0xff] }
  0x39   :  { %v602_v34 = vadd.f32 %v3657_v5, %v339_v26  ;;  %v2993_v38 = vpack.c.bf16 %v853_v27, %v852_v19  ;;  %v856_v39 = vmax.f32 %v600_v28, 0.0  ;;  %v603_v41 = vadd.f32 %v3657_v5, %v340_v30  ;;  %v93_v27 = vld [vmem:[%s5335_s0 + $0x278] sm:$0xff] }
  0x3a   :  { %v857_v40 = vmax.f32 %v601_v29, 0.0  ;;  %v2998_v44 = vpack.c.bf16 %v855_v33, %v854_v32  ;;  %v342_v46 = vmul.f32 %v3650_v2, %v79_v31  ;;  %v604_v47 = vadd.f32 %v3657_v5, %v341_v35  ;;  %v94_v32 = vld [vmem:[%s5335_s0 + $0x280] sm:$0xff] }
  0x3b   :  { %v858_v45 = vmax.f32 %v602_v34, 0.0  ;;  %3517 = vst [vmem:[%s5338_s3 + $0xe0] sm:$0xff] %v2993_v38   ;;  %v859_v50 = vmax.f32 %v603_v41, 0.0  ;;  %v343_v51 = vmul.f32 %v3650_v2, %v80_v36  ;;  %v344_v52 = vmul.f32 %v3650_v2, %v81_v37  ;;  %v95_v41 = vld [vmem:[%s5335_s0 + $0x288] sm:$0xff] }
  0x3c   :  { %v3003_v49 = vpack.c.bf16 %v857_v40, %v856_v39  ;;  %3518 = vst [vmem:[%s5338_s3 + $0xe8] sm:$0xff] %v2998_v44   ;;  %v605_v54 = vadd.f32 %v3657_v5, %v342_v46  ;;  %v860_v55 = vmax.f32 %v604_v47, 0.0  ;;  %v345_v56 = vmul.f32 %v3650_v2, %v82_v42  ;;  %v96_v46 = vld [vmem:[%s5335_s0 + $0x290] sm:$0xff]  ;;  %v97_v47 = vld [vmem:[%s5335_s0 + $0x298] sm:$0xff] }
  0x3d   :  { %v346_v57 = vmul.f32 %v3650_v2, %v83_v43  ;;  %v3008_v59 = vpack.c.bf16 %v859_v50, %v858_v45  ;;  %v606_v60 = vadd.f32 %v3657_v5, %v343_v51  ;;  %v607_v61 = vadd.f32 %v3657_v5, %v344_v52  ;;  %v98_v52 = vld [vmem:[%s5335_s0 + $0x2a0] sm:$0xff] }
  0x3e   :  { %3519 = vst [vmem:[%s5338_s3 + $0xf0] sm:$0xff] %v3003_v49   ;;  %v347_v62 = vmul.f32 %v3650_v2, %v84_v48  ;;  %v861_v63 = vmax.f32 %v605_v54, 0.0  ;;  %v608_v0 = vadd.f32 %v3657_v5, %v345_v56  ;;  %v348_v3 = vmul.f32 %v3650_v2, %v85_v53  ;;  %v99_v53 = vld [vmem:[%s5335_s0 + $0x2a8] sm:$0xff] }
  0x3f   :  { %v609_v1 = vadd.f32 %v3657_v5, %v346_v57  ;;  %3520 = vst [vmem:[%s5338_s3 + $0xf8] sm:$0xff] %v3008_v59   ;;  %v862_v6 = vmax.f32 %v606_v60, 0.0  ;;  %v863_v7 = vmax.f32 %v607_v61, 0.0  ;;  %v349_v9 = vmul.f32 %v3650_v2, %v86_v58  ;;  %v100_v58 = vld [vmem:[%s5335_s0 + $0x2b0] sm:$0xff] }
  0x40   :  { %v610_v8 = vadd.f32 %v3657_v5, %v347_v62  ;;  %v3013_v12 = vpack.c.bf16 %v861_v63, %v860_v55  ;;  %v864_v13 = vmax.f32 %v608_v0, 0.0  ;;  %v611_v15 = vadd.f32 %v3657_v5, %v348_v3  ;;  %v101_v63 = vld [vmem:[%s5335_s0 + $0x2b8] sm:$0xff] }
  0x41   :  { %v865_v14 = vmax.f32 %v609_v1, 0.0  ;;  %v3018_v18 = vpack.c.bf16 %v863_v7, %v862_v6  ;;  %v350_v20 = vmul.f32 %v3650_v2, %v87_v4  ;;  %v612_v21 = vadd.f32 %v3657_v5, %v349_v9  ;;  %v102_v6 = vld [vmem:[%s5335_s0 + $0x2c0] sm:$0xff] }
  0x42   :  { %v866_v19 = vmax.f32 %v610_v8, 0.0  ;;  %3521 = vst [vmem:[%s5338_s3 + $0x100] sm:$0xff] %v3013_v12   ;;  %v867_v24 = vmax.f32 %v611_v15, 0.0  ;;  %v351_v25 = vmul.f32 %v3650_v2, %v88_v10  ;;  %v352_v26 = vmul.f32 %v3650_v2, %v89_v11  ;;  %v103_v15 = vld [vmem:[%s5335_s0 + $0x2c8] sm:$0xff] }
  0x43   :  { %v3023_v23 = vpack.c.bf16 %v865_v14, %v864_v13  ;;  %3522 = vst [vmem:[%s5338_s3 + $0x108] sm:$0xff] %v3018_v18   ;;  %v613_v28 = vadd.f32 %v3657_v5, %v350_v20  ;;  %v868_v29 = vmax.f32 %v612_v21, 0.0  ;;  %v353_v30 = vmul.f32 %v3650_v2, %v90_v16  ;;  %v104_v20 = vld [vmem:[%s5335_s0 + $0x2d0] sm:$0xff]  ;;  %v105_v21 = vld [vmem:[%s5335_s0 + $0x2d8] sm:$0xff] }
  0x44   :  { %v354_v31 = vmul.f32 %v3650_v2, %v91_v17  ;;  %v3028_v33 = vpack.c.bf16 %v867_v24, %v866_v19  ;;  %v614_v34 = vadd.f32 %v3657_v5, %v351_v25  ;;  %v615_v35 = vadd.f32 %v3657_v5, %v352_v26  ;;  %v106_v26 = vld [vmem:[%s5335_s0 + $0x2e0] sm:$0xff] }
  0x45   :  { %3523 = vst [vmem:[%s5338_s3 + $0x110] sm:$0xff] %v3023_v23   ;;  %v355_v36 = vmul.f32 %v3650_v2, %v92_v22  ;;  %v869_v37 = vmax.f32 %v613_v28, 0.0  ;;  %v616_v38 = vadd.f32 %v3657_v5, %v353_v30  ;;  %v356_v40 = vmul.f32 %v3650_v2, %v93_v27  ;;  %v107_v27 = vld [vmem:[%s5335_s0 + $0x2e8] sm:$0xff] }
  0x46   :  { %v617_v39 = vadd.f32 %v3657_v5, %v354_v31  ;;  %3524 = vst [vmem:[%s5338_s3 + $0x118] sm:$0xff] %v3028_v33   ;;  %v870_v42 = vmax.f32 %v614_v34, 0.0  ;;  %v871_v43 = vmax.f32 %v615_v35, 0.0  ;;  %v357_v45 = vmul.f32 %v3650_v2, %v94_v32  ;;  %v108_v32 = vld [vmem:[%s5335_s0 + $0x2f0] sm:$0xff] }
  0x47   :  { %v618_v44 = vadd.f32 %v3657_v5, %v355_v36  ;;  %v3033_v48 = vpack.c.bf16 %v869_v37, %v868_v29  ;;  %v872_v49 = vmax.f32 %v616_v38, 0.0  ;;  %v619_v51 = vadd.f32 %v3657_v5, %v356_v40  ;;  %v109_v37 = vld [vmem:[%s5335_s0 + $0x2f8] sm:$0xff] }
  0x48   :  { %v873_v50 = vmax.f32 %v617_v39, 0.0  ;;  %v3038_v54 = vpack.c.bf16 %v871_v43, %v870_v42  ;;  %v358_v56 = vmul.f32 %v3650_v2, %v95_v41  ;;  %v620_v57 = vadd.f32 %v3657_v5, %v357_v45  ;;  %v110_v42 = vld [vmem:[%s5335_s0 + $0x300] sm:$0xff] }
  0x49   :  { %v874_v55 = vmax.f32 %v618_v44, 0.0  ;;  %3525 = vst [vmem:[%s5338_s3 + $0x120] sm:$0xff] %v3033_v48   ;;  %v875_v60 = vmax.f32 %v619_v51, 0.0  ;;  %v359_v61 = vmul.f32 %v3650_v2, %v96_v46  ;;  %v360_v62 = vmul.f32 %v3650_v2, %v97_v47  ;;  %v111_v51 = vld [vmem:[%s5335_s0 + $0x308] sm:$0xff] }
  0x4a   :  { %v3043_v59 = vpack.c.bf16 %v873_v50, %v872_v49  ;;  %3526 = vst [vmem:[%s5338_s3 + $0x128] sm:$0xff] %v3038_v54   ;;  %v621_v0 = vadd.f32 %v3657_v5, %v358_v56  ;;  %v876_v1 = vmax.f32 %v620_v57, 0.0  ;;  %v361_v3 = vmul.f32 %v3650_v2, %v98_v52  ;;  %v112_v56 = vld [vmem:[%s5335_s0 + $0x310] sm:$0xff]  ;;  %v113_v57 = vld [vmem:[%s5335_s0 + $0x318] sm:$0xff] }
  0x4b   :  { %v362_v4 = vmul.f32 %v3650_v2, %v99_v53  ;;  %v3048_v7 = vpack.c.bf16 %v875_v60, %v874_v55  ;;  %v622_v8 = vadd.f32 %v3657_v5, %v359_v61  ;;  %v623_v9 = vadd.f32 %v3657_v5, %v360_v62  ;;  %v114_v62 = vld [vmem:[%s5335_s0 + $0x320] sm:$0xff] }
  0x4c   :  { %3527 = vst [vmem:[%s5338_s3 + $0x130] sm:$0xff] %v3043_v59   ;;  %v363_v10 = vmul.f32 %v3650_v2, %v100_v58  ;;  %v877_v11 = vmax.f32 %v621_v0, 0.0  ;;  %v624_v12 = vadd.f32 %v3657_v5, %v361_v3  ;;  %v364_v14 = vmul.f32 %v3650_v2, %v101_v63  ;;  %v115_v63 = vld [vmem:[%s5335_s0 + $0x328] sm:$0xff] }
  0x4d   :  { %v625_v13 = vadd.f32 %v3657_v5, %v362_v4  ;;  %3528 = vst [vmem:[%s5338_s3 + $0x138] sm:$0xff] %v3048_v7   ;;  %v878_v16 = vmax.f32 %v622_v8, 0.0  ;;  %v879_v17 = vmax.f32 %v623_v9, 0.0  ;;  %v365_v19 = vmul.f32 %v3650_v2, %v102_v6  ;;  %v116_v6 = vld [vmem:[%s5335_s0 + $0x330] sm:$0xff] }
  0x4e   :  { %v626_v18 = vadd.f32 %v3657_v5, %v363_v10  ;;  %v3053_v22 = vpack.c.bf16 %v877_v11, %v876_v1  ;;  %v880_v23 = vmax.f32 %v624_v12, 0.0  ;;  %v627_v25 = vadd.f32 %v3657_v5, %v364_v14  ;;  %v117_v11 = vld [vmem:[%s5335_s0 + $0x338] sm:$0xff] }
  0x4f   :  { %v881_v24 = vmax.f32 %v625_v13, 0.0  ;;  %v3058_v28 = vpack.c.bf16 %v879_v17, %v878_v16  ;;  %v366_v30 = vmul.f32 %v3650_v2, %v103_v15  ;;  %v628_v31 = vadd.f32 %v3657_v5, %v365_v19  ;;  %v118_v16 = vld [vmem:[%s5335_s0 + $0x340] sm:$0xff] }
  0x50   :  { %v882_v29 = vmax.f32 %v626_v18, 0.0  ;;  %3529 = vst [vmem:[%s5338_s3 + $0x140] sm:$0xff] %v3053_v22   ;;  %v883_v34 = vmax.f32 %v627_v25, 0.0  ;;  %v367_v35 = vmul.f32 %v3650_v2, %v104_v20  ;;  %v368_v36 = vmul.f32 %v3650_v2, %v105_v21  ;;  %v119_v25 = vld [vmem:[%s5335_s0 + $0x348] sm:$0xff] }
  0x51   :  { %v3063_v33 = vpack.c.bf16 %v881_v24, %v880_v23  ;;  %3530 = vst [vmem:[%s5338_s3 + $0x148] sm:$0xff] %v3058_v28   ;;  %v629_v38 = vadd.f32 %v3657_v5, %v366_v30  ;;  %v884_v39 = vmax.f32 %v628_v31, 0.0  ;;  %v369_v40 = vmul.f32 %v3650_v2, %v106_v26  ;;  %v120_v30 = vld [vmem:[%s5335_s0 + $0x350] sm:$0xff]  ;;  %v121_v31 = vld [vmem:[%s5335_s0 + $0x358] sm:$0xff] }
  0x52   :  { %v370_v41 = vmul.f32 %v3650_v2, %v107_v27  ;;  %v3068_v43 = vpack.c.bf16 %v883_v34, %v882_v29  ;;  %v630_v44 = vadd.f32 %v3657_v5, %v367_v35  ;;  %v631_v45 = vadd.f32 %v3657_v5, %v368_v36  ;;  %v4330_v35 = vld [vmem:[%s5337_s2] ss:$0 sm:$0xff]  ;;  %v123_v36 = vld [vmem:[%s5335_s0 + $0x368] sm:$0xff] }
  0x53   :  { %3531 = vst [vmem:[%s5338_s3 + $0x150] sm:$0xff] %v3063_v33   ;;  %v371_v46 = vmul.f32 %v3650_v2, %v108_v32  ;;  %v885_v47 = vmax.f32 %v629_v38, 0.0  ;;  %v632_v48 = vadd.f32 %v3657_v5, %v369_v40  ;;  %v372_v50 = vmul.f32 %v3650_v2, %v109_v37 }
  0x54   :  { %v633_v49 = vadd.f32 %v3657_v5, %v370_v41  ;;  %3532 = vst [vmem:[%s5338_s3 + $0x158] sm:$0xff] %v3068_v43   ;;  %v886_v52 = vmax.f32 %v630_v44, 0.0  ;;  %v887_v53 = vmax.f32 %v631_v45, 0.0  ;;  %v373_v55 = vmul.f32 %v3650_v2, %v110_v42  ;;  %v124_v42 = vld [vmem:[%s5335_s0 + $0x370] sm:$0xff] }
  0x55   :  { %v634_v54 = vadd.f32 %v3657_v5, %v371_v46  ;;  %v3073_v58 = vpack.c.bf16 %v885_v47, %v884_v39  ;;  %v888_v59 = vmax.f32 %v632_v48, 0.0  ;;  %v635_v61 = vadd.f32 %v3657_v5, %v372_v50  ;;  %v4342_v39 = vld [vmem:[%s5336_s1] ss:$0 sm:$0xff]  ;;  %v125_v47 = vld [vmem:[%s5335_s0 + $0x378] sm:$0xff] }
  0x56   :  { %v889_v60 = vmax.f32 %v633_v49, 0.0  ;;  %v3078_v0 = vpack.c.bf16 %v887_v53, %v886_v52  ;;  %v374_v3 = vmul.f32 %v3650_v2, %v111_v51  ;;  %v636_v4 = vadd.f32 %v3657_v5, %v373_v55  ;;  %v126_v52 = vld [vmem:[%s5335_s0 + $0x380] sm:$0xff] }
  0x57   :  { %v890_v1 = vmax.f32 %v634_v54, 0.0  ;;  %3533 = vst [vmem:[%s5338_s3 + $0x160] sm:$0xff] %v3073_v58   ;;  %v891_v8 = vmax.f32 %v635_v61, 0.0  ;;  %v375_v9 = vmul.f32 %v3650_v2, %v112_v56  ;;  %v376_v10 = vmul.f32 %v3650_v2, %v113_v57  ;;  %v127_v61 = vld [vmem:[%s5335_s0 + $0x388] sm:$0xff] }
  0x58   :  { %v3083_v7 = vpack.c.bf16 %v889_v60, %v888_v59  ;;  %3534 = vst [vmem:[%s5338_s3 + $0x168] sm:$0xff] %v3078_v0   ;;  %v637_v12 = vadd.f32 %v3657_v5, %v374_v3  ;;  %v892_v13 = vmax.f32 %v636_v4, 0.0  ;;  %v377_v14 = vmul.f32 %v3650_v2, %v114_v62  ;;  %v128_v3 = vld [vmem:[%s5335_s0 + $0x390] sm:$0xff]  ;;  %v129_v4 = vld [vmem:[%s5335_s0 + $0x398] sm:$0xff] }
  0x59   :  { %v378_v15 = vmul.f32 %v3650_v2, %v115_v63  ;;  %v3088_v17 = vpack.c.bf16 %v891_v8, %v890_v1  ;;  %v638_v18 = vadd.f32 %v3657_v5, %v375_v9  ;;  %v639_v19 = vadd.f32 %v3657_v5, %v376_v10  ;;  %v130_v10 = vld [vmem:[%s5335_s0 + $0x3a0] sm:$0xff] }
  0x5a   :  { %3535 = vst [vmem:[%s5338_s3 + $0x170] sm:$0xff] %v3083_v7   ;;  %v379_v20 = vmul.f32 %v3650_v2, %v116_v6  ;;  %v893_v21 = vmax.f32 %v637_v12, 0.0  ;;  %v640_v22 = vadd.f32 %v3657_v5, %v377_v14  ;;  %v380_v24 = vmul.f32 %v3650_v2, %v117_v11  ;;  %v131_v11 = vld [vmem:[%s5335_s0 + $0x3a8] sm:$0xff] }
  0x5b   :  { %v641_v23 = vadd.f32 %v3657_v5, %v378_v15  ;;  %3536 = vst [vmem:[%s5338_s3 + $0x178] sm:$0xff] %v3088_v17   ;;  %v894_v26 = vmax.f32 %v638_v18, 0.0  ;;  %v895_v27 = vmax.f32 %v639_v19, 0.0  ;;  %v381_v29 = vmul.f32 %v3650_v2, %v118_v16  ;;  %v122_v2 = vld [vmem:[%s5335_s0 + $0x360] sm:$0xff]  ;;  %v132_v16 = vld [vmem:[%s5335_s0 + $0x3b0] sm:$0xff] }
  0x5c   :  { %v642_v28 = vadd.f32 %v3657_v5, %v379_v20  ;;  %v3093_v32 = vpack.c.bf16 %v893_v21, %v892_v13  ;;  %v896_v33 = vmax.f32 %v640_v22, 0.0  ;;  %v643_v5 = vadd.f32 %v4330_v35, %v380_v24  ;;  %v133_v21 = vld [vmem:[%s5335_s0 + $0x3b8] sm:$0xff] }
  0x5d   :  { %v897_v34 = vmax.f32 %v641_v23, 0.0  ;;  %v3098_v37 = vpack.c.bf16 %v895_v27, %v894_v26  ;;  %v382_v40 = vmul.f32 %v4342_v39, %v119_v25  ;;  %v644_v41 = vadd.f32 %v4330_v35, %v381_v29  ;;  %v134_v26 = vld [vmem:[%s5335_s0 + $0x3c0] sm:$0xff] }
  0x5e   :  { %v898_v38 = vmax.f32 %v642_v28, 0.0  ;;  %3537 = vst [vmem:[%s5338_s3 + $0x180] sm:$0xff] %v3093_v32   ;;  %v899_v44 = vmax.f32 %v643_v5, 0.0  ;;  %v383_v45 = vmul.f32 %v4342_v39, %v120_v30  ;;  %v384_v46 = vmul.f32 %v4342_v39, %v121_v31  ;;  %v135_v5 = vld [vmem:[%s5335_s0 + $0x3c8] sm:$0xff] }
  0x5f   :  { %v3103_v43 = vpack.c.bf16 %v897_v34, %v896_v33  ;;  %3538 = vst [vmem:[%s5338_s3 + $0x188] sm:$0xff] %v3098_v37   ;;  %v645_v48 = vadd.f32 %v4330_v35, %v382_v40  ;;  %v900_v49 = vmax.f32 %v644_v41, 0.0  ;;  %v385_v50 = vmul.f32 %v4342_v39, %v122_v2  ;;  %v136_v40 = vld [vmem:[%s5335_s0 + $0x3d0] sm:$0xff]  ;;  %v137_v41 = vld [vmem:[%s5335_s0 + $0x3d8] sm:$0xff] }
  0x60   :  { %v386_v51 = vmul.f32 %v4342_v39, %v123_v36  ;;  %v3108_v53 = vpack.c.bf16 %v899_v44, %v898_v38  ;;  %v646_v54 = vadd.f32 %v4330_v35, %v383_v45  ;;  %v647_v55 = vadd.f32 %v4330_v35, %v384_v46  ;;  %v138_v46 = vld [vmem:[%s5335_s0 + $0x3e0] sm:$0xff] }
  0x61   :  { %3539 = vst [vmem:[%s5338_s3 + $0x190] sm:$0xff] %v3103_v43   ;;  %v387_v56 = vmul.f32 %v4342_v39, %v124_v42  ;;  %v901_v57 = vmax.f32 %v645_v48, 0.0  ;;  %v648_v58 = vadd.f32 %v4330_v35, %v385_v50  ;;  %v388_v60 = vmul.f32 %v4342_v39, %v125_v47  ;;  %v139_v47 = vld [vmem:[%s5335_s0 + $0x3e8] sm:$0xff] }
  0x62   :  { %v649_v59 = vadd.f32 %v4330_v35, %v386_v51  ;;  %3540 = vst [vmem:[%s5338_s3 + $0x198] sm:$0xff] %v3108_v53   ;;  %v902_v62 = vmax.f32 %v646_v54, 0.0  ;;  %v903_v63 = vmax.f32 %v647_v55, 0.0  ;;  %v389_v1 = vmul.f32 %v4342_v39, %v126_v52  ;;  %v140_v52 = vld [vmem:[%s5335_s0 + $0x3f0] sm:$0xff] }
  0x63   :  { %v650_v0 = vadd.f32 %v4330_v35, %v387_v56  ;;  %v3113_v6 = vpack.c.bf16 %v901_v57, %v900_v49  ;;  %v904_v7 = vmax.f32 %v648_v58, 0.0  ;;  %v651_v9 = vadd.f32 %v4330_v35, %v388_v60  ;;  %v141_v57 = vld [vmem:[%s5335_s0 + $0x3f8] sm:$0xff] }
  0x64   :  { %v905_v8 = vmax.f32 %v649_v59, 0.0  ;;  %v3118_v12 = vpack.c.bf16 %v903_v63, %v902_v62  ;;  %v390_v14 = vmul.f32 %v4342_v39, %v127_v61  ;;  %v652_v15 = vadd.f32 %v4330_v35, %v389_v1  ;;  %v142_v62 = vld [vmem:[%s5335_s0 + $0x400] sm:$0xff] }
  0x65   :  { %v906_v13 = vmax.f32 %v650_v0, 0.0  ;;  %3541 = vst [vmem:[%s5338_s3 + $0x1a0] sm:$0xff] %v3113_v6   ;;  %v907_v18 = vmax.f32 %v651_v9, 0.0  ;;  %v391_v19 = vmul.f32 %v4342_v39, %v128_v3  ;;  %v392_v20 = vmul.f32 %v4342_v39, %v129_v4  ;;  %v143_v9 = vld [vmem:[%s5335_s0 + $0x408] sm:$0xff] }
  0x66   :  { %v3123_v17 = vpack.c.bf16 %v905_v8, %v904_v7  ;;  %3542 = vst [vmem:[%s5338_s3 + $0x1a8] sm:$0xff] %v3118_v12   ;;  %v653_v22 = vadd.f32 %v4330_v35, %v390_v14  ;;  %v908_v23 = vmax.f32 %v652_v15, 0.0  ;;  %v393_v24 = vmul.f32 %v4342_v39, %v130_v10  ;;  %v144_v14 = vld [vmem:[%s5335_s0 + $0x410] sm:$0xff]  ;;  %v145_v15 = vld [vmem:[%s5335_s0 + $0x418] sm:$0xff] }
  0x67   :  { %v394_v25 = vmul.f32 %v4342_v39, %v131_v11  ;;  %v3128_v27 = vpack.c.bf16 %v907_v18, %v906_v13  ;;  %v654_v28 = vadd.f32 %v4330_v35, %v391_v19  ;;  %v655_v29 = vadd.f32 %v4330_v35, %v392_v20  ;;  %v146_v20 = vld [vmem:[%s5335_s0 + $0x420] sm:$0xff] }
  0x68   :  { %3543 = vst [vmem:[%s5338_s3 + $0x1b0] sm:$0xff] %v3123_v17   ;;  %v395_v30 = vmul.f32 %v4342_v39, %v132_v16  ;;  %v909_v31 = vmax.f32 %v653_v22, 0.0  ;;  %v656_v32 = vadd.f32 %v4330_v35, %v393_v24  ;;  %v396_v34 = vmul.f32 %v4342_v39, %v133_v21  ;;  %v147_v21 = vld [vmem:[%s5335_s0 + $0x428] sm:$0xff] }
  0x69   :  { %v657_v33 = vadd.f32 %v4330_v35, %v394_v25  ;;  %3544 = vst [vmem:[%s5338_s3 + $0x1b8] sm:$0xff] %v3128_v27   ;;  %v910_v2 = vmax.f32 %v654_v28, 0.0  ;;  %v911_v36 = vmax.f32 %v655_v29, 0.0  ;;  %v397_v38 = vmul.f32 %v4342_v39, %v134_v26  ;;  %v148_v26 = vld [vmem:[%s5335_s0 + $0x430] sm:$0xff] }
  0x6a   :  { %v658_v37 = vadd.f32 %v4330_v35, %v395_v30  ;;  %v3133_v42 = vpack.c.bf16 %v909_v31, %v908_v23  ;;  %v912_v43 = vmax.f32 %v656_v32, 0.0  ;;  %v659_v45 = vadd.f32 %v4330_v35, %v396_v34  ;;  %v149_v31 = vld [vmem:[%s5335_s0 + $0x438] sm:$0xff] }
  0x6b   :  { %v913_v44 = vmax.f32 %v657_v33, 0.0  ;;  %v3138_v48 = vpack.c.bf16 %v911_v36, %v910_v2  ;;  %v398_v50 = vmul.f32 %v4342_v39, %v135_v5  ;;  %v660_v51 = vadd.f32 %v4330_v35, %v397_v38  ;;  %v150_v2 = vld [vmem:[%s5335_s0 + $0x440] sm:$0xff] }
  0x6c   :  { %v914_v49 = vmax.f32 %v658_v37, 0.0  ;;  %3545 = vst [vmem:[%s5338_s3 + $0x1c0] sm:$0xff] %v3133_v42   ;;  %v915_v54 = vmax.f32 %v659_v45, 0.0  ;;  %v399_v55 = vmul.f32 %v4342_v39, %v136_v40  ;;  %v400_v56 = vmul.f32 %v4342_v39, %v137_v41  ;;  %v151_v45 = vld [vmem:[%s5335_s0 + $0x448] sm:$0xff] }
  0x6d   :  { %v3143_v53 = vpack.c.bf16 %v913_v44, %v912_v43  ;;  %3546 = vst [vmem:[%s5338_s3 + $0x1c8] sm:$0xff] %v3138_v48   ;;  %v661_v58 = vadd.f32 %v4330_v35, %v398_v50  ;;  %v916_v59 = vmax.f32 %v660_v51, 0.0  ;;  %v401_v60 = vmul.f32 %v4342_v39, %v138_v46  ;;  %v152_v50 = vld [vmem:[%s5335_s0 + $0x450] sm:$0xff]  ;;  %v153_v51 = vld [vmem:[%s5335_s0 + $0x458] sm:$0xff] }
  0x6e   :  { %v402_v61 = vmul.f32 %v4342_v39, %v139_v47  ;;  %v3148_v63 = vpack.c.bf16 %v915_v54, %v914_v49  ;;  %v662_v0 = vadd.f32 %v4330_v35, %v399_v55  ;;  %v663_v1 = vadd.f32 %v4330_v35, %v400_v56  ;;  %v154_v56 = vld [vmem:[%s5335_s0 + $0x460] sm:$0xff] }
  0x6f   :  { %3547 = vst [vmem:[%s5338_s3 + $0x1d0] sm:$0xff] %v3143_v53   ;;  %v403_v3 = vmul.f32 %v4342_v39, %v140_v52  ;;  %v917_v4 = vmax.f32 %v661_v58, 0.0  ;;  %v664_v6 = vadd.f32 %v4330_v35, %v401_v60  ;;  %v404_v8 = vmul.f32 %v4342_v39, %v141_v57  ;;  %v155_v57 = vld [vmem:[%s5335_s0 + $0x468] sm:$0xff] }
  0x70   :  { %v665_v7 = vadd.f32 %v4330_v35, %v402_v61  ;;  %3548 = vst [vmem:[%s5338_s3 + $0x1d8] sm:$0xff] %v3148_v63   ;;  %v918_v10 = vmax.f32 %v662_v0, 0.0  ;;  %v919_v11 = vmax.f32 %v663_v1, 0.0  ;;  %v405_v13 = vmul.f32 %v4342_v39, %v142_v62  ;;  %v156_v62 = vld [vmem:[%s5335_s0 + $0x470] sm:$0xff] }
  0x71   :  { %v666_v12 = vadd.f32 %v4330_v35, %v403_v3  ;;  %v3153_v16 = vpack.c.bf16 %v917_v4, %v916_v59  ;;  %v920_v17 = vmax.f32 %v664_v6, 0.0  ;;  %v667_v19 = vadd.f32 %v4330_v35, %v404_v8  ;;  %v157_v4 = vld [vmem:[%s5335_s0 + $0x478] sm:$0xff] }
  0x72   :  { %v921_v18 = vmax.f32 %v665_v7, 0.0  ;;  %v3158_v22 = vpack.c.bf16 %v919_v11, %v918_v10  ;;  %v406_v24 = vmul.f32 %v4342_v39, %v143_v9  ;;  %v668_v25 = vadd.f32 %v4330_v35, %v405_v13  ;;  %v158_v10 = vld [vmem:[%s5335_s0 + $0x480] sm:$0xff] }
  0x73   :  { %v922_v23 = vmax.f32 %v666_v12, 0.0  ;;  %3549 = vst [vmem:[%s5338_s3 + $0x1e0] sm:$0xff] %v3153_v16   ;;  %v923_v28 = vmax.f32 %v667_v19, 0.0  ;;  %v407_v29 = vmul.f32 %v4342_v39, %v144_v14  ;;  %v408_v30 = vmul.f32 %v4342_v39, %v145_v15  ;;  %v159_v19 = vld [vmem:[%s5335_s0 + $0x488] sm:$0xff] }
  0x74   :  { %v3163_v27 = vpack.c.bf16 %v921_v18, %v920_v17  ;;  %3550 = vst [vmem:[%s5338_s3 + $0x1e8] sm:$0xff] %v3158_v22   ;;  %v669_v32 = vadd.f32 %v4330_v35, %v406_v24  ;;  %v924_v33 = vmax.f32 %v668_v25, 0.0  ;;  %v409_v34 = vmul.f32 %v4342_v39, %v146_v20  ;;  %v160_v24 = vld [vmem:[%s5335_s0 + $0x490] sm:$0xff]  ;;  %v161_v25 = vld [vmem:[%s5335_s0 + $0x498] sm:$0xff] }
  0x75   :  { %v410_v5 = vmul.f32 %v4342_v39, %v147_v21  ;;  %v3168_v36 = vpack.c.bf16 %v923_v28, %v922_v23  ;;  %v670_v37 = vadd.f32 %v4330_v35, %v407_v29  ;;  %v671_v38 = vadd.f32 %v4330_v35, %v408_v30  ;;  %v162_v30 = vld [vmem:[%s5335_s0 + $0x4a0] sm:$0xff] }
  0x76   :  { %3551 = vst [vmem:[%s5338_s3 + $0x1f0] sm:$0xff] %v3163_v27   ;;  %v411_v40 = vmul.f32 %v4342_v39, %v148_v26  ;;  %v925_v41 = vmax.f32 %v669_v32, 0.0  ;;  %v672_v42 = vadd.f32 %v4330_v35, %v409_v34  ;;  %v412_v44 = vmul.f32 %v4342_v39, %v149_v31  ;;  %v163_v31 = vld [vmem:[%s5335_s0 + $0x4a8] sm:$0xff] }
  0x77   :  { %v673_v43 = vadd.f32 %v4330_v35, %v410_v5  ;;  %3552 = vst [vmem:[%s5338_s3 + $0x1f8] sm:$0xff] %v3168_v36   ;;  %v926_v46 = vmax.f32 %v670_v37, 0.0  ;;  %v927_v47 = vmax.f32 %v671_v38, 0.0  ;;  %v413_v49 = vmul.f32 %v4342_v39, %v150_v2  ;;  %v164_v2 = vld [vmem:[%s5335_s0 + $0x4b0] sm:$0xff] }
  0x78   :  { %v674_v48 = vadd.f32 %v4330_v35, %v411_v40  ;;  %v3173_v52 = vpack.c.bf16 %v925_v41, %v924_v33  ;;  %v928_v53 = vmax.f32 %v672_v42, 0.0  ;;  %v675_v55 = vadd.f32 %v4330_v35, %v412_v44  ;;  %v165_v41 = vld [vmem:[%s5335_s0 + $0x4b8] sm:$0xff] }
  0x79   :  { %v929_v54 = vmax.f32 %v673_v43, 0.0  ;;  %v3178_v58 = vpack.c.bf16 %v927_v47, %v926_v46  ;;  %v414_v60 = vmul.f32 %v4342_v39, %v151_v45  ;;  %v676_v61 = vadd.f32 %v4330_v35, %v413_v49  ;;  %v166_v46 = vld [vmem:[%s5335_s0 + $0x4c0] sm:$0xff] }
  0x7a   :  { %v930_v59 = vmax.f32 %v674_v48, 0.0  ;;  %3553 = vst [vmem:[%s5338_s3 + $0x200] sm:$0xff] %v3173_v52   ;;  %v931_v0 = vmax.f32 %v675_v55, 0.0  ;;  %v415_v1 = vmul.f32 %v4342_v39, %v152_v50  ;;  %v416_v3 = vmul.f32 %v4342_v39, %v153_v51  ;;  %v167_v55 = vld [vmem:[%s5335_s0 + $0x4c8] sm:$0xff] }
  0x7b   :  { %v3183_v63 = vpack.c.bf16 %v929_v54, %v928_v53  ;;  %3554 = vst [vmem:[%s5338_s3 + $0x208] sm:$0xff] %v3178_v58   ;;  %v677_v6 = vadd.f32 %v4330_v35, %v414_v60  ;;  %v932_v7 = vmax.f32 %v676_v61, 0.0  ;;  %v417_v8 = vmul.f32 %v4342_v39, %v154_v56  ;;  %v168_v60 = vld [vmem:[%s5335_s0 + $0x4d0] sm:$0xff]  ;;  %v169_v61 = vld [vmem:[%s5335_s0 + $0x4d8] sm:$0xff] }
  0x7c   :  { %v418_v9 = vmul.f32 %v4342_v39, %v155_v57  ;;  %v3188_v11 = vpack.c.bf16 %v931_v0, %v930_v59  ;;  %v678_v12 = vadd.f32 %v4330_v35, %v415_v1  ;;  %v679_v13 = vadd.f32 %v4330_v35, %v416_v3  ;;  %v170_v3 = vld [vmem:[%s5335_s0 + $0x4e0] sm:$0xff] }
  0x7d   :  { %3555 = vst [vmem:[%s5338_s3 + $0x210] sm:$0xff] %v3183_v63   ;;  %v419_v14 = vmul.f32 %v4342_v39, %v156_v62  ;;  %v933_v15 = vmax.f32 %v677_v6, 0.0  ;;  %v680_v16 = vadd.f32 %v4330_v35, %v417_v8  ;;  %v420_v18 = vmul.f32 %v4342_v39, %v157_v4  ;;  %v171_v4 = vld [vmem:[%s5335_s0 + $0x4e8] sm:$0xff] }
  0x7e   :  { %v681_v17 = vadd.f32 %v4330_v35, %v418_v9  ;;  %3556 = vst [vmem:[%s5338_s3 + $0x218] sm:$0xff] %v3188_v11   ;;  %v934_v20 = vmax.f32 %v678_v12, 0.0  ;;  %v935_v21 = vmax.f32 %v679_v13, 0.0  ;;  %v421_v23 = vmul.f32 %v4342_v39, %v158_v10  ;;  %v172_v10 = vld [vmem:[%s5335_s0 + $0x4f0] sm:$0xff] }
  0x7f   :  { %v682_v22 = vadd.f32 %v4330_v35, %v419_v14  ;;  %v3193_v26 = vpack.c.bf16 %v933_v15, %v932_v7  ;;  %v936_v27 = vmax.f32 %v680_v16, 0.0  ;;  %v683_v29 = vadd.f32 %v4330_v35, %v420_v18  ;;  %v173_v15 = vld [vmem:[%s5335_s0 + $0x4f8] sm:$0xff] }
  0x80   :  { %v937_v28 = vmax.f32 %v681_v17, 0.0  ;;  %v3198_v32 = vpack.c.bf16 %v935_v21, %v934_v20  ;;  %v422_v34 = vmul.f32 %v4342_v39, %v159_v19  ;;  %v684_v5 = vadd.f32 %v4330_v35, %v421_v23  ;;  %v174_v20 = vld [vmem:[%s5335_s0 + $0x500] sm:$0xff] }
  0x81   :  { %v938_v33 = vmax.f32 %v682_v22, 0.0  ;;  %3557 = vst [vmem:[%s5338_s3 + $0x220] sm:$0xff] %v3193_v26   ;;  %v939_v37 = vmax.f32 %v683_v29, 0.0  ;;  %v423_v38 = vmul.f32 %v4342_v39, %v160_v24  ;;  %v424_v40 = vmul.f32 %v4342_v39, %v161_v25  ;;  %v175_v29 = vld [vmem:[%s5335_s0 + $0x508] sm:$0xff] }
  0x82   :  { %v3203_v36 = vpack.c.bf16 %v937_v28, %v936_v27  ;;  %3558 = vst [vmem:[%s5338_s3 + $0x228] sm:$0xff] %v3198_v32   ;;  %v685_v42 = vadd.f32 %v4330_v35, %v422_v34  ;;  %v940_v43 = vmax.f32 %v684_v5, 0.0  ;;  %v425_v44 = vmul.f32 %v4342_v39, %v162_v30  ;;  %v176_v34 = vld [vmem:[%s5335_s0 + $0x510] sm:$0xff]  ;;  %v177_v5 = vld [vmem:[%s5335_s0 + $0x518] sm:$0xff] }
  0x83   :  { %v426_v45 = vmul.f32 %v4342_v39, %v163_v31  ;;  %v3208_v47 = vpack.c.bf16 %v939_v37, %v938_v33  ;;  %v686_v48 = vadd.f32 %v4330_v35, %v423_v38  ;;  %v687_v49 = vadd.f32 %v4330_v35, %v424_v40  ;;  %v178_v40 = vld [vmem:[%s5335_s0 + $0x520] sm:$0xff] }
  0x84   :  { %3559 = vst [vmem:[%s5338_s3 + $0x230] sm:$0xff] %v3203_v36   ;;  %v427_v50 = vmul.f32 %v4342_v39, %v164_v2  ;;  %v941_v51 = vmax.f32 %v685_v42, 0.0  ;;  %v688_v52 = vadd.f32 %v4330_v35, %v425_v44  ;;  %v428_v54 = vmul.f32 %v4342_v39, %v165_v41  ;;  %v179_v41 = vld [vmem:[%s5335_s0 + $0x528] sm:$0xff] }
  0x85   :  { %v689_v53 = vadd.f32 %v4330_v35, %v426_v45  ;;  %3560 = vst [vmem:[%s5338_s3 + $0x238] sm:$0xff] %v3208_v47   ;;  %v942_v56 = vmax.f32 %v686_v48, 0.0  ;;  %v943_v57 = vmax.f32 %v687_v49, 0.0  ;;  %v429_v59 = vmul.f32 %v4342_v39, %v166_v46  ;;  %v180_v46 = vld [vmem:[%s5335_s0 + $0x530] sm:$0xff] }
  0x86   :  { %v690_v58 = vadd.f32 %v4330_v35, %v427_v50  ;;  %v3213_v62 = vpack.c.bf16 %v941_v51, %v940_v43  ;;  %v944_v63 = vmax.f32 %v688_v52, 0.0  ;;  %v691_v1 = vadd.f32 %v4330_v35, %v428_v54  ;;  %v181_v51 = vld [vmem:[%s5335_s0 + $0x538] sm:$0xff] }
  0x87   :  { %v945_v0 = vmax.f32 %v689_v53, 0.0  ;;  %v3218_v6 = vpack.c.bf16 %v943_v57, %v942_v56  ;;  %v430_v8 = vmul.f32 %v4342_v39, %v167_v55  ;;  %v692_v9 = vadd.f32 %v4330_v35, %v429_v59  ;;  %v182_v56 = vld [vmem:[%s5335_s0 + $0x540] sm:$0xff] }
  0x88   :  { %v946_v7 = vmax.f32 %v690_v58, 0.0  ;;  %3561 = vst [vmem:[%s5338_s3 + $0x240] sm:$0xff] %v3213_v62   ;;  %v947_v12 = vmax.f32 %v691_v1, 0.0  ;;  %v431_v13 = vmul.f32 %v4342_v39, %v168_v60  ;;  %v432_v14 = vmul.f32 %v4342_v39, %v169_v61  ;;  %v183_v1 = vld [vmem:[%s5335_s0 + $0x548] sm:$0xff] }
  0x89   :  { %v3223_v11 = vpack.c.bf16 %v945_v0, %v944_v63  ;;  %3562 = vst [vmem:[%s5338_s3 + $0x248] sm:$0xff] %v3218_v6   ;;  %v693_v16 = vadd.f32 %v4330_v35, %v430_v8  ;;  %v948_v17 = vmax.f32 %v692_v9, 0.0  ;;  %v433_v18 = vmul.f32 %v4342_v39, %v170_v3  ;;  %v184_v8 = vld [vmem:[%s5335_s0 + $0x550] sm:$0xff]  ;;  %v185_v9 = vld [vmem:[%s5335_s0 + $0x558] sm:$0xff] }
  0x8a   :  { %v434_v19 = vmul.f32 %v4342_v39, %v171_v4  ;;  %v3228_v21 = vpack.c.bf16 %v947_v12, %v946_v7  ;;  %v694_v22 = vadd.f32 %v4330_v35, %v431_v13  ;;  %v695_v23 = vadd.f32 %v4330_v35, %v432_v14  ;;  %v186_v14 = vld [vmem:[%s5335_s0 + $0x560] sm:$0xff] }
  0x8b   :  { %3563 = vst [vmem:[%s5338_s3 + $0x250] sm:$0xff] %v3223_v11   ;;  %v435_v24 = vmul.f32 %v4342_v39, %v172_v10  ;;  %v949_v25 = vmax.f32 %v693_v16, 0.0  ;;  %v696_v26 = vadd.f32 %v4330_v35, %v433_v18  ;;  %v436_v28 = vmul.f32 %v4342_v39, %v173_v15  ;;  %v187_v15 = vld [vmem:[%s5335_s0 + $0x568] sm:$0xff] }
  0x8c   :  { %v697_v27 = vadd.f32 %v4330_v35, %v434_v19  ;;  %3564 = vst [vmem:[%s5338_s3 + $0x258] sm:$0xff] %v3228_v21   ;;  %v950_v30 = vmax.f32 %v694_v22, 0.0  ;;  %v951_v31 = vmax.f32 %v695_v23, 0.0  ;;  %v437_v33 = vmul.f32 %v4342_v39, %v174_v20  ;;  %v188_v20 = vld [vmem:[%s5335_s0 + $0x570] sm:$0xff] }
  0x8d   :  { %v698_v32 = vadd.f32 %v4330_v35, %v435_v24  ;;  %v3233_v2 = vpack.c.bf16 %v949_v25, %v948_v17  ;;  %v952_v36 = vmax.f32 %v696_v26, 0.0  ;;  %v699_v38 = vadd.f32 %v4330_v35, %v436_v28  ;;  %v189_v25 = vld [vmem:[%s5335_s0 + $0x578] sm:$0xff] }
  0x8e   :  { %v953_v37 = vmax.f32 %v697_v27, 0.0  ;;  %v3238_v42 = vpack.c.bf16 %v951_v31, %v950_v30  ;;  %v438_v44 = vmul.f32 %v4342_v39, %v175_v29  ;;  %v700_v45 = vadd.f32 %v4330_v35, %v437_v33  ;;  %v190_v30 = vld [vmem:[%s5335_s0 + $0x580] sm:$0xff] }
  0x8f   :  { %v954_v43 = vmax.f32 %v698_v32, 0.0  ;;  %3565 = vst [vmem:[%s5338_s3 + $0x260] sm:$0xff] %v3233_v2   ;;  %v955_v48 = vmax.f32 %v699_v38, 0.0  ;;  %v439_v49 = vmul.f32 %v4342_v39, %v176_v34  ;;  %v440_v50 = vmul.f32 %v4342_v39, %v177_v5  ;;  %v191_v38 = vld [vmem:[%s5335_s0 + $0x588] sm:$0xff] }
  0x90   :  { %v3243_v47 = vpack.c.bf16 %v953_v37, %v952_v36  ;;  %3566 = vst [vmem:[%s5338_s3 + $0x268] sm:$0xff] %v3238_v42   ;;  %v701_v52 = vadd.f32 %v4330_v35, %v438_v44  ;;  %v956_v53 = vmax.f32 %v700_v45, 0.0  ;;  %v441_v54 = vmul.f32 %v4342_v39, %v178_v40  ;;  %v192_v44 = vld [vmem:[%s5335_s0 + $0x590] sm:$0xff]  ;;  %v193_v45 = vld [vmem:[%s5335_s0 + $0x598] sm:$0xff] }
  0x91   :  { %v442_v55 = vmul.f32 %v4342_v39, %v179_v41  ;;  %v3248_v57 = vpack.c.bf16 %v955_v48, %v954_v43  ;;  %v702_v58 = vadd.f32 %v4330_v35, %v439_v49  ;;  %v703_v59 = vadd.f32 %v4330_v35, %v440_v50  ;;  %v194_v50 = vld [vmem:[%s5335_s0 + $0x5a0] sm:$0xff] }
  0x92   :  { %3567 = vst [vmem:[%s5338_s3 + $0x270] sm:$0xff] %v3243_v47   ;;  %v443_v60 = vmul.f32 %v4342_v39, %v180_v46  ;;  %v957_v61 = vmax.f32 %v701_v52, 0.0  ;;  %v704_v62 = vadd.f32 %v4330_v35, %v441_v54  ;;  %v444_v0 = vmul.f32 %v4342_v39, %v181_v51  ;;  %v195_v51 = vld [vmem:[%s5335_s0 + $0x5a8] sm:$0xff] }
  0x93   :  { %v705_v63 = vadd.f32 %v4330_v35, %v442_v55  ;;  %3568 = vst [vmem:[%s5338_s3 + $0x278] sm:$0xff] %v3248_v57   ;;  %v958_v3 = vmax.f32 %v702_v58, 0.0  ;;  %v959_v4 = vmax.f32 %v703_v59, 0.0  ;;  %v445_v7 = vmul.f32 %v4342_v39, %v182_v56  ;;  %v196_v56 = vld [vmem:[%s5335_s0 + $0x5b0] sm:$0xff] }
  0x94   :  { %v706_v6 = vadd.f32 %v4330_v35, %v443_v60  ;;  %v3253_v10 = vpack.c.bf16 %v957_v61, %v956_v53  ;;  %v960_v11 = vmax.f32 %v704_v62, 0.0  ;;  %v707_v13 = vadd.f32 %v4330_v35, %v444_v0  ;;  %v197_v61 = vld [vmem:[%s5335_s0 + $0x5b8] sm:$0xff] }
  0x95   :  { %v961_v12 = vmax.f32 %v705_v63, 0.0  ;;  %v3258_v16 = vpack.c.bf16 %v959_v4, %v958_v3  ;;  %v446_v18 = vmul.f32 %v4342_v39, %v183_v1  ;;  %v708_v19 = vadd.f32 %v4330_v35, %v445_v7  ;;  %v198_v3 = vld [vmem:[%s5335_s0 + $0x5c0] sm:$0xff] }
  0x96   :  { %v962_v17 = vmax.f32 %v706_v6, 0.0  ;;  %3569 = vst [vmem:[%s5338_s3 + $0x280] sm:$0xff] %v3253_v10   ;;  %v963_v22 = vmax.f32 %v707_v13, 0.0  ;;  %v447_v23 = vmul.f32 %v4342_v39, %v184_v8  ;;  %v448_v24 = vmul.f32 %v4342_v39, %v185_v9  ;;  %v199_v13 = vld [vmem:[%s5335_s0 + $0x5c8] sm:$0xff] }
  0x97   :  { %v3263_v21 = vpack.c.bf16 %v961_v12, %v960_v11  ;;  %3570 = vst [vmem:[%s5338_s3 + $0x288] sm:$0xff] %v3258_v16   ;;  %v709_v26 = vadd.f32 %v4330_v35, %v446_v18  ;;  %v964_v27 = vmax.f32 %v708_v19, 0.0  ;;  %v449_v28 = vmul.f32 %v4342_v39, %v186_v14  ;;  %v200_v18 = vld [vmem:[%s5335_s0 + $0x5d0] sm:$0xff]  ;;  %v201_v19 = vld [vmem:[%s5335_s0 + $0x5d8] sm:$0xff] }
  0x98   :  { %v450_v29 = vmul.f32 %v4342_v39, %v187_v15  ;;  %v3268_v31 = vpack.c.bf16 %v963_v22, %v962_v17  ;;  %v710_v32 = vadd.f32 %v4330_v35, %v447_v23  ;;  %v711_v33 = vadd.f32 %v4330_v35, %v448_v24  ;;  %v202_v24 = vld [vmem:[%s5335_s0 + $0x5e0] sm:$0xff] }
  0x99   :  { %3571 = vst [vmem:[%s5338_s3 + $0x290] sm:$0xff] %v3263_v21   ;;  %v451_v34 = vmul.f32 %v4342_v39, %v188_v20  ;;  %v965_v5 = vmax.f32 %v709_v26, 0.0  ;;  %v712_v2 = vadd.f32 %v4330_v35, %v449_v28  ;;  %v452_v37 = vmul.f32 %v4342_v39, %v189_v25  ;;  %v203_v25 = vld [vmem:[%s5335_s0 + $0x5e8] sm:$0xff] }
  0x9a   :  { %v713_v36 = vadd.f32 %v4330_v35, %v450_v29  ;;  %3572 = vst [vmem:[%s5338_s3 + $0x298] sm:$0xff] %v3268_v31   ;;  %v966_v40 = vmax.f32 %v710_v32, 0.0  ;;  %v967_v41 = vmax.f32 %v711_v33, 0.0  ;;  %v453_v43 = vmul.f32 %v4342_v39, %v190_v30  ;;  %v204_v30 = vld [vmem:[%s5335_s0 + $0x5f0] sm:$0xff] }
  0x9b   :  { %v714_v42 = vadd.f32 %v4330_v35, %v451_v34  ;;  %v3273_v46 = vpack.c.bf16 %v965_v5, %v964_v27  ;;  %v968_v47 = vmax.f32 %v712_v2, 0.0  ;;  %v715_v49 = vadd.f32 %v4330_v35, %v452_v37  ;;  %v205_v5 = vld [vmem:[%s5335_s0 + $0x5f8] sm:$0xff] }
  0x9c   :  { %v969_v48 = vmax.f32 %v713_v36, 0.0  ;;  %v3278_v52 = vpack.c.bf16 %v967_v41, %v966_v40  ;;  %v454_v54 = vmul.f32 %v4342_v39, %v191_v38  ;;  %v716_v55 = vadd.f32 %v4330_v35, %v453_v43  ;;  %v206_v40 = vld [vmem:[%s5335_s0 + $0x600] sm:$0xff] }
  0x9d   :  { %v970_v53 = vmax.f32 %v714_v42, 0.0  ;;  %3573 = vst [vmem:[%s5338_s3 + $0x2a0] sm:$0xff] %v3273_v46   ;;  %v971_v58 = vmax.f32 %v715_v49, 0.0  ;;  %v455_v59 = vmul.f32 %v4342_v39, %v192_v44  ;;  %v456_v60 = vmul.f32 %v4342_v39, %v193_v45  ;;  %v207_v49 = vld [vmem:[%s5335_s0 + $0x608] sm:$0xff] }
  0x9e   :  { %v3283_v57 = vpack.c.bf16 %v969_v48, %v968_v47  ;;  %3574 = vst [vmem:[%s5338_s3 + $0x2a8] sm:$0xff] %v3278_v52   ;;  %v717_v62 = vadd.f32 %v4330_v35, %v454_v54  ;;  %v972_v63 = vmax.f32 %v716_v55, 0.0  ;;  %v457_v0 = vmul.f32 %v4342_v39, %v194_v50  ;;  %v208_v54 = vld [vmem:[%s5335_s0 + $0x610] sm:$0xff]  ;;  %v209_v55 = vld [vmem:[%s5335_s0 + $0x618] sm:$0xff] }
  0x9f   :  { %v458_v1 = vmul.f32 %v4342_v39, %v195_v51  ;;  %v3288_v4 = vpack.c.bf16 %v971_v58, %v970_v53  ;;  %v718_v6 = vadd.f32 %v4330_v35, %v455_v59  ;;  %v719_v7 = vadd.f32 %v4330_v35, %v456_v60  ;;  %v210_v60 = vld [vmem:[%s5335_s0 + $0x620] sm:$0xff] }
  0xa0   :  { %3575 = vst [vmem:[%s5338_s3 + $0x2b0] sm:$0xff] %v3283_v57   ;;  %v459_v8 = vmul.f32 %v4342_v39, %v196_v56  ;;  %v973_v9 = vmax.f32 %v717_v62, 0.0  ;;  %v720_v10 = vadd.f32 %v4330_v35, %v457_v0  ;;  %v460_v12 = vmul.f32 %v4342_v39, %v197_v61  ;;  %v211_v61 = vld [vmem:[%s5335_s0 + $0x628] sm:$0xff] }
  0xa1   :  { %v721_v11 = vadd.f32 %v4330_v35, %v458_v1  ;;  %3576 = vst [vmem:[%s5338_s3 + $0x2b8] sm:$0xff] %v3288_v4   ;;  %v974_v14 = vmax.f32 %v718_v6, 0.0  ;;  %v975_v15 = vmax.f32 %v719_v7, 0.0  ;;  %v461_v17 = vmul.f32 %v4342_v39, %v198_v3  ;;  %v212_v3 = vld [vmem:[%s5335_s0 + $0x630] sm:$0xff] }
  0xa2   :  { %v722_v16 = vadd.f32 %v4330_v35, %v459_v8  ;;  %v3293_v20 = vpack.c.bf16 %v973_v9, %v972_v63  ;;  %v976_v21 = vmax.f32 %v720_v10, 0.0  ;;  %v723_v23 = vadd.f32 %v4330_v35, %v460_v12  ;;  %v213_v9 = vld [vmem:[%s5335_s0 + $0x638] sm:$0xff] }
  0xa3   :  { %v977_v22 = vmax.f32 %v721_v11, 0.0  ;;  %v3298_v26 = vpack.c.bf16 %v975_v15, %v974_v14  ;;  %v462_v28 = vmul.f32 %v4342_v39, %v199_v13  ;;  %v724_v29 = vadd.f32 %v4330_v35, %v461_v17  ;;  %v214_v14 = vld [vmem:[%s5335_s0 + $0x640] sm:$0xff] }
  0xa4   :  { %v978_v27 = vmax.f32 %v722_v16, 0.0  ;;  %3577 = vst [vmem:[%s5338_s3 + $0x2c0] sm:$0xff] %v3293_v20   ;;  %v979_v32 = vmax.f32 %v723_v23, 0.0  ;;  %v463_v33 = vmul.f32 %v4342_v39, %v200_v18  ;;  %v464_v34 = vmul.f32 %v4342_v39, %v201_v19  ;;  %v215_v23 = vld [vmem:[%s5335_s0 + $0x648] sm:$0xff] }
  0xa5   :  { %v3303_v31 = vpack.c.bf16 %v977_v22, %v976_v21  ;;  %3578 = vst [vmem:[%s5338_s3 + $0x2c8] sm:$0xff] %v3298_v26   ;;  %v725_v2 = vadd.f32 %v4330_v35, %v462_v28  ;;  %v980_v36 = vmax.f32 %v724_v29, 0.0  ;;  %v465_v37 = vmul.f32 %v4342_v39, %v202_v24  ;;  %v216_v28 = vld [vmem:[%s5335_s0 + $0x650] sm:$0xff]  ;;  %v217_v29 = vld [vmem:[%s5335_s0 + $0x658] sm:$0xff] }
  0xa6   :  { %v466_v38 = vmul.f32 %v4342_v39, %v203_v25  ;;  %v3308_v41 = vpack.c.bf16 %v979_v32, %v978_v27  ;;  %v726_v42 = vadd.f32 %v4330_v35, %v463_v33  ;;  %v727_v43 = vadd.f32 %v4330_v35, %v464_v34  ;;  %v218_v34 = vld [vmem:[%s5335_s0 + $0x660] sm:$0xff] }
  0xa7   :  { %3579 = vst [vmem:[%s5338_s3 + $0x2d0] sm:$0xff] %v3303_v31   ;;  %v467_v44 = vmul.f32 %v4342_v39, %v204_v30  ;;  %v981_v45 = vmax.f32 %v725_v2, 0.0  ;;  %v728_v46 = vadd.f32 %v4330_v35, %v465_v37  ;;  %v468_v48 = vmul.f32 %v4342_v39, %v205_v5  ;;  %v219_v5 = vld [vmem:[%s5335_s0 + $0x668] sm:$0xff] }
  0xa8   :  { %v729_v47 = vadd.f32 %v4330_v35, %v466_v38  ;;  %3580 = vst [vmem:[%s5338_s3 + $0x2d8] sm:$0xff] %v3308_v41   ;;  %v982_v50 = vmax.f32 %v726_v42, 0.0  ;;  %v983_v51 = vmax.f32 %v727_v43, 0.0  ;;  %v469_v53 = vmul.f32 %v4342_v39, %v206_v40  ;;  %v220_v40 = vld [vmem:[%s5335_s0 + $0x670] sm:$0xff] }
  0xa9   :  { %v730_v52 = vadd.f32 %v4330_v35, %v467_v44  ;;  %v3313_v56 = vpack.c.bf16 %v981_v45, %v980_v36  ;;  %v984_v57 = vmax.f32 %v728_v46, 0.0  ;;  %v731_v59 = vadd.f32 %v4330_v35, %v468_v48  ;;  %v221_v45 = vld [vmem:[%s5335_s0 + $0x678] sm:$0xff] }
  0xaa   :  { %v985_v58 = vmax.f32 %v729_v47, 0.0  ;;  %v3318_v62 = vpack.c.bf16 %v983_v51, %v982_v50  ;;  %v470_v0 = vmul.f32 %v4342_v39, %v207_v49  ;;  %v732_v1 = vadd.f32 %v4330_v35, %v469_v53  ;;  %v222_v50 = vld [vmem:[%s5335_s0 + $0x680] sm:$0xff] }
  0xab   :  { %v986_v63 = vmax.f32 %v730_v52, 0.0  ;;  %3581 = vst [vmem:[%s5338_s3 + $0x2e0] sm:$0xff] %v3313_v56   ;;  %v987_v6 = vmax.f32 %v731_v59, 0.0  ;;  %v471_v7 = vmul.f32 %v4342_v39, %v208_v54  ;;  %v472_v8 = vmul.f32 %v4342_v39, %v209_v55  ;;  %v223_v59 = vld [vmem:[%s5335_s0 + $0x688] sm:$0xff] }
  0xac   :  { %v3323_v4 = vpack.c.bf16 %v985_v58, %v984_v57  ;;  %3582 = vst [vmem:[%s5338_s3 + $0x2e8] sm:$0xff] %v3318_v62   ;;  %v733_v10 = vadd.f32 %v4330_v35, %v470_v0  ;;  %v988_v11 = vmax.f32 %v732_v1, 0.0  ;;  %v473_v12 = vmul.f32 %v4342_v39, %v210_v60  ;;  %v5008_v62 = vld [vmem:[%s5337_s2] ss:$0 sm:$0xff]  ;;  %v224_v0 = vld [vmem:[%s5335_s0 + $0x690] sm:$0xff]  ;;  %v225_v1 = vld [vmem:[%s5335_s0 + $0x698] sm:$0xff] }
  0xad   :  { %v474_v13 = vmul.f32 %v4342_v39, %v211_v61  ;;  %v3328_v15 = vpack.c.bf16 %v987_v6, %v986_v63  ;;  %v734_v16 = vadd.f32 %v4330_v35, %v471_v7  ;;  %v735_v17 = vadd.f32 %v4330_v35, %v472_v8  ;;  %v226_v8 = vld [vmem:[%s5335_s0 + $0x6a0] sm:$0xff] }
  0xae   :  { %3583 = vst [vmem:[%s5338_s3 + $0x2f0] sm:$0xff] %v3323_v4   ;;  %v475_v18 = vmul.f32 %v4342_v39, %v212_v3  ;;  %v989_v19 = vmax.f32 %v733_v10, 0.0  ;;  %v736_v20 = vadd.f32 %v4330_v35, %v473_v12  ;;  %v476_v22 = vmul.f32 %v4342_v39, %v213_v9 }
  0xaf   :  { %v737_v21 = vadd.f32 %v4330_v35, %v474_v13  ;;  %3584 = vst [vmem:[%s5338_s3 + $0x2f8] sm:$0xff] %v3328_v15   ;;  %v990_v24 = vmax.f32 %v734_v16, 0.0  ;;  %v991_v25 = vmax.f32 %v735_v17, 0.0  ;;  %v477_v27 = vmul.f32 %v4342_v39, %v214_v14  ;;  %v228_v14 = vld [vmem:[%s5335_s0 + $0x6b0] sm:$0xff] }
  0xb0   :  { %v738_v26 = vadd.f32 %v4330_v35, %v475_v18  ;;  %v3333_v30 = vpack.c.bf16 %v989_v19, %v988_v11  ;;  %v992_v31 = vmax.f32 %v736_v20, 0.0  ;;  %v739_v33 = vadd.f32 %v4330_v35, %v476_v22  ;;  %v5028_v11 = vld [vmem:[%s5336_s1] ss:$0 sm:$0xff]  ;;  %v229_v19 = vld [vmem:[%s5335_s0 + $0x6b8] sm:$0xff] }
  0xb1   :  { %v993_v32 = vmax.f32 %v737_v21, 0.0  ;;  %v3338_v2 = vpack.c.bf16 %v991_v25, %v990_v24  ;;  %v478_v37 = vmul.f32 %v4342_v39, %v215_v23  ;;  %v740_v38 = vadd.f32 %v4330_v35, %v477_v27  ;;  %v230_v24 = vld [vmem:[%s5335_s0 + $0x6c0] sm:$0xff] }
  0xb2   :  { %v994_v36 = vmax.f32 %v738_v26, 0.0  ;;  %3585 = vst [vmem:[%s5338_s3 + $0x300] sm:$0xff] %v3333_v30   ;;  %v995_v42 = vmax.f32 %v739_v33, 0.0  ;;  %v479_v43 = vmul.f32 %v4342_v39, %v216_v28  ;;  %v480_v44 = vmul.f32 %v4342_v39, %v217_v29  ;;  %v231_v33 = vld [vmem:[%s5335_s0 + $0x6c8] sm:$0xff] }
  0xb3   :  { %v3343_v41 = vpack.c.bf16 %v993_v32, %v992_v31  ;;  %3586 = vst [vmem:[%s5338_s3 + $0x308] sm:$0xff] %v3338_v2   ;;  %v741_v46 = vadd.f32 %v4330_v35, %v478_v37  ;;  %v996_v47 = vmax.f32 %v740_v38, 0.0  ;;  %v481_v48 = vmul.f32 %v4342_v39, %v218_v34  ;;  %v232_v37 = vld [vmem:[%s5335_s0 + $0x6d0] sm:$0xff]  ;;  %v233_v38 = vld [vmem:[%s5335_s0 + $0x6d8] sm:$0xff] }
  0xb4   :  { %v482_v49 = vmul.f32 %v4342_v39, %v219_v5  ;;  %v3348_v51 = vpack.c.bf16 %v995_v42, %v994_v36  ;;  %v742_v52 = vadd.f32 %v4330_v35, %v479_v43  ;;  %v743_v53 = vadd.f32 %v4330_v35, %v480_v44  ;;  %v234_v44 = vld [vmem:[%s5335_s0 + $0x6e0] sm:$0xff] }
  0xb5   :  { %3587 = vst [vmem:[%s5338_s3 + $0x310] sm:$0xff] %v3343_v41   ;;  %v483_v54 = vmul.f32 %v4342_v39, %v220_v40  ;;  %v997_v55 = vmax.f32 %v741_v46, 0.0  ;;  %v744_v56 = vadd.f32 %v4330_v35, %v481_v48  ;;  %v484_v58 = vmul.f32 %v4342_v39, %v221_v45  ;;  %v235_v45 = vld [vmem:[%s5335_s0 + $0x6e8] sm:$0xff] }
  0xb6   :  { %v745_v57 = vadd.f32 %v4330_v35, %v482_v49  ;;  %3588 = vst [vmem:[%s5338_s3 + $0x318] sm:$0xff] %v3348_v51   ;;  %v998_v60 = vmax.f32 %v742_v52, 0.0  ;;  %v999_v61 = vmax.f32 %v743_v53, 0.0  ;;  %v485_v35 = vmul.f32 %v4342_v39, %v222_v50  ;;  %v227_v39 = vld [vmem:[%s5335_s0 + $0x6a8] sm:$0xff]  ;;  %v236_v50 = vld [vmem:[%s5335_s0 + $0x6f0] sm:$0xff] }
  0xb7   :  { %v746_v63 = vadd.f32 %v5008_v62, %v483_v54  ;;  %v3353_v3 = vpack.c.bf16 %v997_v55, %v996_v47  ;;  %v1000_v4 = vmax.f32 %v744_v56, 0.0  ;;  %v747_v7 = vadd.f32 %v5008_v62, %v484_v58  ;;  %v237_v55 = vld [vmem:[%s5335_s0 + $0x6f8] sm:$0xff] }
  0xb8   :  { %v1001_v6 = vmax.f32 %v745_v57, 0.0  ;;  %v3358_v9 = vpack.c.bf16 %v999_v61, %v998_v60  ;;  %v486_v12 = vmul.f32 %v5028_v11, %v223_v59  ;;  %v748_v13 = vadd.f32 %v5008_v62, %v485_v35  ;;  %v238_v60 = vld [vmem:[%s5335_s0 + $0x700] sm:$0xff] }
  0xb9   :  { %v1002_v10 = vmax.f32 %v746_v63, 0.0  ;;  %3589 = vst [vmem:[%s5338_s3 + $0x320] sm:$0xff] %v3353_v3   ;;  %v1003_v16 = vmax.f32 %v747_v7, 0.0  ;;  %v487_v17 = vmul.f32 %v5028_v11, %v224_v0  ;;  %v488_v18 = vmul.f32 %v5028_v11, %v225_v1  ;;  %v239_v7 = vld [vmem:[%s5335_s0 + $0x708] sm:$0xff] }
  0xba   :  { %v3363_v15 = vpack.c.bf16 %v1001_v6, %v1000_v4  ;;  %3590 = vst [vmem:[%s5338_s3 + $0x328] sm:$0xff] %v3358_v9   ;;  %v749_v20 = vadd.f32 %v5008_v62, %v486_v12  ;;  %v1004_v21 = vmax.f32 %v748_v13, 0.0  ;;  %v489_v22 = vmul.f32 %v5028_v11, %v226_v8  ;;  %v240_v12 = vld [vmem:[%s5335_s0 + $0x710] sm:$0xff]  ;;  %v241_v13 = vld [vmem:[%s5335_s0 + $0x718] sm:$0xff] }
  0xbb   :  { %v490_v23 = vmul.f32 %v5028_v11, %v227_v39  ;;  %v3368_v25 = vpack.c.bf16 %v1003_v16, %v1002_v10  ;;  %v750_v26 = vadd.f32 %v5008_v62, %v487_v17  ;;  %v751_v27 = vadd.f32 %v5008_v62, %v488_v18  ;;  %v242_v18 = vld [vmem:[%s5335_s0 + $0x720] sm:$0xff] }
  0xbc   :  { %3591 = vst [vmem:[%s5338_s3 + $0x330] sm:$0xff] %v3363_v15   ;;  %v491_v28 = vmul.f32 %v5028_v11, %v228_v14  ;;  %v1005_v29 = vmax.f32 %v749_v20, 0.0  ;;  %v752_v30 = vadd.f32 %v5008_v62, %v489_v22  ;;  %v492_v32 = vmul.f32 %v5028_v11, %v229_v19  ;;  %v243_v19 = vld [vmem:[%s5335_s0 + $0x728] sm:$0xff] }
  0xbd   :  { %v753_v31 = vadd.f32 %v5008_v62, %v490_v23  ;;  %3592 = vst [vmem:[%s5338_s3 + $0x338] sm:$0xff] %v3368_v25   ;;  %v1006_v34 = vmax.f32 %v750_v26, 0.0  ;;  %v1007_v5 = vmax.f32 %v751_v27, 0.0  ;;  %v493_v36 = vmul.f32 %v5028_v11, %v230_v24  ;;  %v244_v24 = vld [vmem:[%s5335_s0 + $0x730] sm:$0xff] }
  0xbe   :  { %v754_v2 = vadd.f32 %v5008_v62, %v491_v28  ;;  %v3373_v40 = vpack.c.bf16 %v1005_v29, %v1004_v21  ;;  %v1008_v41 = vmax.f32 %v752_v30, 0.0  ;;  %v755_v43 = vadd.f32 %v5008_v62, %v492_v32  ;;  %v245_v29 = vld [vmem:[%s5335_s0 + $0x738] sm:$0xff] }
  0xbf   :  { %v1009_v42 = vmax.f32 %v753_v31, 0.0  ;;  %v3378_v46 = vpack.c.bf16 %v1007_v5, %v1006_v34  ;;  %v494_v48 = vmul.f32 %v5028_v11, %v231_v33  ;;  %v756_v49 = vadd.f32 %v5008_v62, %v493_v36  ;;  %v246_v34 = vld [vmem:[%s5335_s0 + $0x740] sm:$0xff] }
  0xc0   :  { %v1010_v47 = vmax.f32 %v754_v2, 0.0  ;;  %3593 = vst [vmem:[%s5338_s3 + $0x340] sm:$0xff] %v3373_v40   ;;  %v1011_v52 = vmax.f32 %v755_v43, 0.0  ;;  %v495_v53 = vmul.f32 %v5028_v11, %v232_v37  ;;  %v496_v54 = vmul.f32 %v5028_v11, %v233_v38  ;;  %v247_v43 = vld [vmem:[%s5335_s0 + $0x748] sm:$0xff] }
  0xc1   :  { %v3383_v51 = vpack.c.bf16 %v1009_v42, %v1008_v41  ;;  %3594 = vst [vmem:[%s5338_s3 + $0x348] sm:$0xff] %v3378_v46   ;;  %v757_v56 = vadd.f32 %v5008_v62, %v494_v48  ;;  %v1012_v57 = vmax.f32 %v756_v49, 0.0  ;;  %v497_v58 = vmul.f32 %v5028_v11, %v234_v44  ;;  %v248_v48 = vld [vmem:[%s5335_s0 + $0x750] sm:$0xff]  ;;  %v249_v49 = vld [vmem:[%s5335_s0 + $0x758] sm:$0xff] }
  0xc2   :  { %v498_v59 = vmul.f32 %v5028_v11, %v235_v45  ;;  %v3388_v61 = vpack.c.bf16 %v1011_v52, %v1010_v47  ;;  %v758_v63 = vadd.f32 %v5008_v62, %v495_v53  ;;  %v759_v35 = vadd.f32 %v5008_v62, %v496_v54  ;;  %v250_v54 = vld [vmem:[%s5335_s0 + $0x760] sm:$0xff] }
  0xc3   :  { %3595 = vst [vmem:[%s5338_s3 + $0x350] sm:$0xff] %v3383_v51   ;;  %v499_v0 = vmul.f32 %v5028_v11, %v236_v50  ;;  %v1013_v1 = vmax.f32 %v757_v56, 0.0  ;;  %v760_v3 = vadd.f32 %v5008_v62, %v497_v58  ;;  %v500_v6 = vmul.f32 %v5028_v11, %v237_v55  ;;  %v251_v55 = vld [vmem:[%s5335_s0 + $0x768] sm:$0xff] }
  0xc4   :  { %v761_v4 = vadd.f32 %v5008_v62, %v498_v59  ;;  %3596 = vst [vmem:[%s5338_s3 + $0x358] sm:$0xff] %v3388_v61   ;;  %v1014_v8 = vmax.f32 %v758_v63, 0.0  ;;  %v1015_v39 = vmax.f32 %v759_v35, 0.0  ;;  %v501_v10 = vmul.f32 %v5028_v11, %v238_v60  ;;  %v252_v60 = vld [vmem:[%s5335_s0 + $0x770] sm:$0xff] }
  0xc5   :  { %v762_v9 = vadd.f32 %v5008_v62, %v499_v0  ;;  %v3393_v14 = vpack.c.bf16 %v1013_v1, %v1012_v57  ;;  %v1016_v15 = vmax.f32 %v760_v3, 0.0  ;;  %v763_v17 = vadd.f32 %v5008_v62, %v500_v6  ;;  %v253_v1 = vld [vmem:[%s5335_s0 + $0x778] sm:$0xff] }
  0xc6   :  { %v1017_v16 = vmax.f32 %v761_v4, 0.0  ;;  %v3398_v20 = vpack.c.bf16 %v1015_v39, %v1014_v8  ;;  %v502_v22 = vmul.f32 %v5028_v11, %v239_v7  ;;  %v764_v23 = vadd.f32 %v5008_v62, %v501_v10  ;;  %v254_v8 = vld [vmem:[%s5335_s0 + $0x780] sm:$0xff] }
  0xc7   :  { %v1018_v21 = vmax.f32 %v762_v9, 0.0  ;;  %3597 = vst [vmem:[%s5338_s3 + $0x360] sm:$0xff] %v3393_v14   ;;  %v1019_v26 = vmax.f32 %v763_v17, 0.0  ;;  %v503_v27 = vmul.f32 %v5028_v11, %v240_v12  ;;  %v504_v28 = vmul.f32 %v5028_v11, %v241_v13  ;;  %v255_v17 = vld [vmem:[%s5335_s0 + $0x788] sm:$0xff] }
  0xc8   :  { %v3403_v25 = vpack.c.bf16 %v1017_v16, %v1016_v15  ;;  %3598 = vst [vmem:[%s5338_s3 + $0x368] sm:$0xff] %v3398_v20   ;;  %v765_v30 = vadd.f32 %v5008_v62, %v502_v22  ;;  %v1020_v31 = vmax.f32 %v764_v23, 0.0  ;;  %v505_v32 = vmul.f32 %v5028_v11, %v242_v18  ;;  %v256_v22 = vld [vmem:[%s5335_s0 + $0x790] sm:$0xff]  ;;  %v257_v23 = vld [vmem:[%s5335_s0 + $0x798] sm:$0xff] }
  0xc9   :  { %v506_v33 = vmul.f32 %v5028_v11, %v243_v19  ;;  %v3408_v5 = vpack.c.bf16 %v1019_v26, %v1018_v21  ;;  %v766_v2 = vadd.f32 %v5008_v62, %v503_v27  ;;  %v767_v36 = vadd.f32 %v5008_v62, %v504_v28  ;;  %v258_v28 = vld [vmem:[%s5335_s0 + $0x7a0] sm:$0xff] }
  0xca   :  { %3599 = vst [vmem:[%s5338_s3 + $0x370] sm:$0xff] %v3403_v25   ;;  %v507_v37 = vmul.f32 %v5028_v11, %v244_v24  ;;  %v1021_v38 = vmax.f32 %v765_v30, 0.0  ;;  %v768_v40 = vadd.f32 %v5008_v62, %v505_v32  ;;  %v508_v42 = vmul.f32 %v5028_v11, %v245_v29  ;;  %v259_v29 = vld [vmem:[%s5335_s0 + $0x7a8] sm:$0xff] }
  0xcb   :  { %v769_v41 = vadd.f32 %v5008_v62, %v506_v33  ;;  %3600 = vst [vmem:[%s5338_s3 + $0x378] sm:$0xff] %v3408_v5   ;;  %v1022_v44 = vmax.f32 %v766_v2, 0.0  ;;  %v1023_v45 = vmax.f32 %v767_v36, 0.0  ;;  %v509_v47 = vmul.f32 %v5028_v11, %v246_v34  ;;  %v260_v34 = vld [vmem:[%s5335_s0 + $0x7b0] sm:$0xff] }
  0xcc   :  { %v770_v46 = vadd.f32 %v5008_v62, %v507_v37  ;;  %v3413_v50 = vpack.c.bf16 %v1021_v38, %v1020_v31  ;;  %v1024_v51 = vmax.f32 %v768_v40, 0.0  ;;  %v771_v53 = vadd.f32 %v5008_v62, %v508_v42  ;;  %v261_v38 = vld [vmem:[%s5335_s0 + $0x7b8] sm:$0xff] }
  0xcd   :  { %v1025_v52 = vmax.f32 %v769_v41, 0.0  ;;  %v3418_v56 = vpack.c.bf16 %v1023_v45, %v1022_v44  ;;  %v510_v58 = vmul.f32 %v5028_v11, %v247_v43  ;;  %v772_v59 = vadd.f32 %v5008_v62, %v509_v47  ;;  %v262_v44 = vld [vmem:[%s5335_s0 + $0x7c0] sm:$0xff] }
  0xce   :  { %v1026_v57 = vmax.f32 %v770_v46, 0.0  ;;  %3601 = vst [vmem:[%s5338_s3 + $0x380] sm:$0xff] %v3413_v50   ;;  %v1027_v63 = vmax.f32 %v771_v53, 0.0  ;;  %v511_v35 = vmul.f32 %v5028_v11, %v248_v48  ;;  %v512_v0 = vmul.f32 %v5028_v11, %v249_v49  ;;  %v263_v53 = vld [vmem:[%s5335_s0 + $0x7c8] sm:$0xff] }
  0xcf   :  { %v3423_v61 = vpack.c.bf16 %v1025_v52, %v1024_v51  ;;  %3602 = vst [vmem:[%s5338_s3 + $0x388] sm:$0xff] %v3418_v56   ;;  %v773_v3 = vadd.f32 %v5008_v62, %v510_v58  ;;  %v1028_v4 = vmax.f32 %v772_v59, 0.0  ;;  %v513_v6 = vmul.f32 %v5028_v11, %v250_v54  ;;  %v264_v58 = vld [vmem:[%s5335_s0 + $0x7d0] sm:$0xff]  ;;  %v265_v59 = vld [vmem:[%s5335_s0 + $0x7d8] sm:$0xff] }
  0xd0   :  { %v514_v7 = vmul.f32 %v5028_v11, %v251_v55  ;;  %v3428_v39 = vpack.c.bf16 %v1027_v63, %v1026_v57  ;;  %v774_v9 = vadd.f32 %v5008_v62, %v511_v35  ;;  %v775_v10 = vadd.f32 %v5008_v62, %v512_v0  ;;  %v266_v0 = vld [vmem:[%s5335_s0 + $0x7e0] sm:$0xff] }
  0xd1   :  { %3603 = vst [vmem:[%s5338_s3 + $0x390] sm:$0xff] %v3423_v61   ;;  %v515_v12 = vmul.f32 %v5028_v11, %v252_v60  ;;  %v1029_v13 = vmax.f32 %v773_v3, 0.0  ;;  %v776_v14 = vadd.f32 %v5008_v62, %v513_v6  ;;  %v516_v16 = vmul.f32 %v5028_v11, %v253_v1  ;;  %v267_v1 = vld [vmem:[%s5335_s0 + $0x7e8] sm:$0xff] }
  0xd2   :  { %v777_v15 = vadd.f32 %v5008_v62, %v514_v7  ;;  %3604 = vst [vmem:[%s5338_s3 + $0x398] sm:$0xff] %v3428_v39   ;;  %v1030_v18 = vmax.f32 %v774_v9, 0.0  ;;  %v1031_v19 = vmax.f32 %v775_v10, 0.0  ;;  %v517_v21 = vmul.f32 %v5028_v11, %v254_v8  ;;  %v268_v8 = vld [vmem:[%s5335_s0 + $0x7f0] sm:$0xff] }
  0xd3   :  { %v778_v20 = vadd.f32 %v5008_v62, %v515_v12  ;;  %v3433_v24 = vpack.c.bf16 %v1029_v13, %v1028_v4  ;;  %v1032_v25 = vmax.f32 %v776_v14, 0.0  ;;  %v779_v27 = vadd.f32 %v5008_v62, %v516_v16  ;;  %v269_v13 = vld [vmem:[%s5335_s0 + $0x7f8] sm:$0xff] }
  0xd4   :  { %v1033_v26 = vmax.f32 %v777_v15, 0.0  ;;  %v3438_v30 = vpack.c.bf16 %v1031_v19, %v1030_v18  ;;  %v518_v32 = vmul.f32 %v5028_v11, %v255_v17  ;;  %v780_v33 = vadd.f32 %v5008_v62, %v517_v21 }
  0xd5   :  { %v1034_v31 = vmax.f32 %v778_v20, 0.0  ;;  %3605 = vst [vmem:[%s5338_s3 + $0x3a0] sm:$0xff] %v3433_v24   ;;  %v1035_v2 = vmax.f32 %v779_v27, 0.0  ;;  %v519_v36 = vmul.f32 %v5028_v11, %v256_v22  ;;  %v520_v37 = vmul.f32 %v5028_v11, %v257_v23 }
  0xd6   :  { %v3443_v5 = vpack.c.bf16 %v1033_v26, %v1032_v25  ;;  %3606 = vst [vmem:[%s5338_s3 + $0x3a8] sm:$0xff] %v3438_v30   ;;  %v781_v40 = vadd.f32 %v5008_v62, %v518_v32  ;;  %v1036_v41 = vmax.f32 %v780_v33, 0.0  ;;  %v521_v42 = vmul.f32 %v5028_v11, %v258_v28 }
  0xd7   :  { %v522_v43 = vmul.f32 %v5028_v11, %v259_v29  ;;  %v3448_v45 = vpack.c.bf16 %v1035_v2, %v1034_v31  ;;  %v782_v46 = vadd.f32 %v5008_v62, %v519_v36  ;;  %v783_v47 = vadd.f32 %v5008_v62, %v520_v37 }
  0xd8   :  { %3607 = vst [vmem:[%s5338_s3 + $0x3b0] sm:$0xff] %v3443_v5   ;;  %v523_v48 = vmul.f32 %v5028_v11, %v260_v34  ;;  %v1037_v49 = vmax.f32 %v781_v40, 0.0  ;;  %v784_v50 = vadd.f32 %v5008_v62, %v521_v42  ;;  %v524_v52 = vmul.f32 %v5028_v11, %v261_v38 }
  0xd9   :  { %v785_v51 = vadd.f32 %v5008_v62, %v522_v43  ;;  %3608 = vst [vmem:[%s5338_s3 + $0x3b8] sm:$0xff] %v3448_v45   ;;  %v1038_v54 = vmax.f32 %v782_v46, 0.0  ;;  %v1039_v55 = vmax.f32 %v783_v47, 0.0  ;;  %v525_v57 = vmul.f32 %v5028_v11, %v262_v44 }
  0xda   :  { %v786_v56 = vadd.f32 %v5008_v62, %v523_v48  ;;  %v3453_v60 = vpack.c.bf16 %v1037_v49, %v1036_v41  ;;  %v1040_v61 = vmax.f32 %v784_v50, 0.0  ;;  %v787_v35 = vadd.f32 %v5008_v62, %v524_v52 }
  0xdb   :  { %v1041_v63 = vmax.f32 %v785_v51, 0.0  ;;  %v3458_v3 = vpack.c.bf16 %v1039_v55, %v1038_v54  ;;  %v526_v6 = vmul.f32 %v5028_v11, %v263_v53  ;;  %v788_v7 = vadd.f32 %v5008_v62, %v525_v57 }
  0xdc   :  { %v1042_v4 = vmax.f32 %v786_v56, 0.0  ;;  %3609 = vst [vmem:[%s5338_s3 + $0x3c0] sm:$0xff] %v3453_v60   ;;  %v1043_v9 = vmax.f32 %v787_v35, 0.0  ;;  %v527_v10 = vmul.f32 %v5028_v11, %v264_v58  ;;  %v528_v12 = vmul.f32 %v5028_v11, %v265_v59 }
  0xdd   :  { %v3463_v39 = vpack.c.bf16 %v1041_v63, %v1040_v61  ;;  %3610 = vst [vmem:[%s5338_s3 + $0x3c8] sm:$0xff] %v3458_v3   ;;  %v789_v14 = vadd.f32 %v5008_v62, %v526_v6  ;;  %v1044_v15 = vmax.f32 %v788_v7, 0.0  ;;  %v529_v16 = vmul.f32 %v5028_v11, %v266_v0 }
  0xde   :  { %v530_v17 = vmul.f32 %v5028_v11, %v267_v1  ;;  %v3468_v18 = vpack.c.bf16 %v1043_v9, %v1042_v4  ;;  %v790_v19 = vadd.f32 %v5008_v62, %v527_v10  ;;  %v791_v20 = vadd.f32 %v5008_v62, %v528_v12 }
  0xdf   :  { %3611 = vst [vmem:[%s5338_s3 + $0x3d0] sm:$0xff] %v3463_v39   ;;  %v531_v21 = vmul.f32 %v5028_v11, %v268_v8  ;;  %v1045_v22 = vmax.f32 %v789_v14, 0.0  ;;  %v792_v23 = vadd.f32 %v5008_v62, %v529_v16  ;;  %v532_v25 = vmul.f32 %v5028_v11, %v269_v13 }
  0xe0   :  { %v793_v24 = vadd.f32 %v5008_v62, %v530_v17  ;;  %3612 = vst [vmem:[%s5338_s3 + $0x3d8] sm:$0xff] %v3468_v18   ;;  %v1046_v26 = vmax.f32 %v790_v19, 0.0  ;;  %v1047_v27 = vmax.f32 %v791_v20, 0.0 }
  0xe1   :  { %v794_v28 = vadd.f32 %v5008_v62, %v531_v21  ;;  %v3473_v29 = vpack.c.bf16 %v1045_v22, %v1044_v15  ;;  %v1048_v30 = vmax.f32 %v792_v23, 0.0  ;;  %v795_v32 = vadd.f32 %v5008_v62, %v532_v25 }
  0xe2   :  { %v1049_v31 = vmax.f32 %v793_v24, 0.0  ;;  %v3478_v33 = vpack.c.bf16 %v1047_v27, %v1046_v26 }
  0xe3   :  { %v1050_v34 = vmax.f32 %v794_v28, 0.0  ;;  %3613 = vst [vmem:[%s5338_s3 + $0x3e0] sm:$0xff] %v3473_v29   ;;  %v1051_v5 = vmax.f32 %v795_v32, 0.0 }
  0xe4   :  { %v3483_v11 = vpack.c.bf16 %v1049_v31, %v1048_v30  ;;  %3614 = vst [vmem:[%s5338_s3 + $0x3e8] sm:$0xff] %v3478_v33  }
  0xe5   :  { %v3488_v2 = vpack.c.bf16 %v1051_v5, %v1050_v34 }
  0xe6   :  { %3615 = vst [vmem:[%s5338_s3 + $0x3f0] sm:$0xff] %v3483_v11  }
  0xe7   :  { %3616 = vst [vmem:[%s5338_s3 + $0x3f8] sm:$0xff] %v3488_v2  }

// kernel: generator_forward.17
= control target key start
LH: loop header
LB: loop body
LE: loop exit
PB: predicated region body
PF: predicated region fallthrough
CT: control target
= control target key end

     0   :  { %s8757_s12 = smov 0   ;;  %s8759_s13 = smov 0   ;;  %s9922_s0 = inlined_call_operand.vmem [shape: bf16[4,2048,512], index: 0, kind: input, shape index: {}]   ;;  %s9923_s1 = inlined_call_operand.vmem [shape: bf16[4,512,128], index: 1, kind: input, shape index: {}]   ;;  %s9924_s2 = inlined_call_operand.vmem [shape: f32[1,128], index: 2, kind: input, shape index: {}]   ;;  %s9925_s3 = inlined_call_operand.vmem [shape: f32[4,2048,128], index: 3, kind: output, shape index: {}]  }
   0x1   :  { %s8761_s14 = smov 0  }
   0x2 LB: > { %s25_s15 = sadd.s32 1, %s8730_s13  ;;  %p6301_p0 = scmp.ge.s32.totalorder %s8734_s14, 1  ;;  %s8734_s14 = sphi %s8761_s14, %s13_s14   ;;  %s8730_s13 = sphi %s8759_s13, %s9927_s13   ;;  %s8726_s12 = sphi %s8757_s12, %s9926_s12  }
   0x3   : > { %p27_p1 = scmp.ge.s32.totalorder %s25_s15, 4  ;;  %p169_p2 = scmp.lt.s32.totalorder %s8734_s14, 5 }
   0x5   : > { %s9929_s15 = smov (%p27_p1, %s25_s15), 0  ;;  %p170_p3 = pnand %p6301_p0, %p169_p2 }
   0x6   : > { %p208_p4 = scmp.lt.s32.totalorder (!%p170_p3), %s8726_s12, 3  ;;  %v8736_v0 = vmov (!%p170_p3), 0  }
   0x7   : > { %173 = sbr.rel (%p170_p3) target bundleno = 1328 (0x530), region = 32  ;;  %3569 = vmatprep.subr.bf16.mxu1 (!%p170_p3), %v8736_v0  ;;  %4626 = vmatprep.subr.bf16.mxu0 (!%p170_p3), %v8736_v0 }
   0xe   : > { %s9931_s12 = smov (!%p208_p4, %s8726_s12), 3 }
   0xf   : > { %s6856_s16 = sshll.u32 %s9931_s12, 8  ;;  %s6855_s20 = sshll.u32 %s9931_s12, 12 }
  0x10   : > { %s8783_s19 = scalar_lea.vmem %s9923_s1, %s6856_s16  ;;  %s8820_s23 = scalar_lea.vmem %s9922_s0, %s6855_s20 }
  0x11   : > { %v7395_v1 = vld [vmem:[%s8783_s19] sm:$0xff]   ;;  %v7397_v3 = vld [vmem:[%s8783_s19 + $0x8] sm:$0xff]   ;;  %v7399_v5 = vld [vmem:[%s8783_s19 + $0x10] sm:$0xff]   ;;  %s6857_s26 = sshll.u32 %s9931_s12, 11 }
  0x12   : > { %v7396_v2 = vld [vmem:[%s8783_s19 + $0x80] sm:$0xff]   ;;  %3570 = vmatpush1.bf16.msra.mxu1 %v7395_v1  ;;  %v7398_v4 = vld [vmem:[%s8783_s19 + $0x88] sm:$0xff]   ;;  %v7400_v6 = vld [vmem:[%s8783_s19 + $0x90] sm:$0xff]   ;;  %s8984_s29 = scalar_lea.vmem %s9925_s3, %s6857_s26 }
  0x13   : > { %4627 = vmatpush1.bf16.msra.mxu0 %v7396_v2  ;;  %3571 = vmatprep.subr.bf16.mxu1 %v8736_v0  ;;  %v7401_v7 = vld [vmem:[%s8783_s19 + $0x18] sm:$0xff]   ;;  %v7403_v9 = vld [vmem:[%s8783_s19 + $0x20] sm:$0xff]   ;;  %v7405_v11 = vld [vmem:[%s8783_s19 + $0x28] sm:$0xff]  }
  0x14   : > { %4628 = vmatprep.subr.bf16.mxu0 %v8736_v0  ;;  %v7402_v8 = vld [vmem:[%s8783_s19 + $0x98] sm:$0xff]   ;;  %v7404_v10 = vld [vmem:[%s8783_s19 + $0xa0] sm:$0xff]   ;;  %v7406_v12 = vld [vmem:[%s8783_s19 + $0xa8] sm:$0xff]  }
  0x15   : > { %v7407_v13 = vld [vmem:[%s8783_s19 + $0x30] sm:$0xff]   ;;  %v7409_v15 = vld [vmem:[%s8783_s19 + $0x38] sm:$0xff]   ;;  %v7411_v17 = vld [vmem:[%s8783_s19 + $0x40] sm:$0xff]  }
  0x16   : > { %3572 = vmatpush1.bf16.msra.mxu1 %v7397_v3  ;;  %v7408_v14 = vld [vmem:[%s8783_s19 + $0xb0] sm:$0xff]   ;;  %v7410_v16 = vld [vmem:[%s8783_s19 + $0xb8] sm:$0xff]   ;;  %v7412_v18 = vld [vmem:[%s8783_s19 + $0xc0] sm:$0xff]  }
  0x17   : > { %4629 = vmatpush1.bf16.msra.mxu0 %v7398_v4  ;;  %3573 = vmatprep.subr.bf16.mxu1 %v8736_v0  ;;  %v7429_v19 = vld [vmem:[%s8820_s23 + $0x4] ss:$16 sps:$4 sm:$0xff]   ;;  %v7413_v20 = vld [vmem:[%s8783_s19 + $0x48] sm:$0xff]   ;;  %v7417_v25 = vld [vmem:[%s8783_s19 + $0x58] sm:$0xff]  }
  0x18   : > { %4630 = vmatprep.subr.bf16.mxu0 %v8736_v0  ;;  %v7432_v21 = vld [vmem:[%s8820_s23 + $0xc] ss:$16 sps:$4 sm:$0xff]   ;;  %3601 = vmatprep.mubr.bf16.mxu1 %v7429_v19  ;;  %v7415_v23 = vld [vmem:[%s8783_s19 + $0x50] sm:$0xff]   ;;  %v7419_v27 = vld [vmem:[%s8783_s19 + $0x60] sm:$0xff]  }
  0x19   : > { %v7414_v22 = vld [vmem:[%s8783_s19 + $0xc8] sm:$0xff]   ;;  %4658 = vmatprep.mubr.bf16.mxu0 %v7432_v21  ;;  %v7416_v24 = vld [vmem:[%s8783_s19 + $0xd0] sm:$0xff]   ;;  %v7418_v26 = vld [vmem:[%s8783_s19 + $0xd8] sm:$0xff]  }
  0x1a   : > { %3574 = vmatpush1.bf16.msra.mxu1 %v7399_v5  ;;  %v7420_v28 = vld [vmem:[%s8783_s19 + $0xe0] sm:$0xff]   ;;  %v7421_v29 = vld [vmem:[%s8783_s19 + $0x68] sm:$0xff]   ;;  %v7423_v31 = vld [vmem:[%s8783_s19 + $0x70] sm:$0xff]  }
  0x1b   : > { %4631 = vmatpush1.bf16.msra.mxu0 %v7400_v6  ;;  %3575 = vmatprep.subr.bf16.mxu1 %v8736_v0  ;;  %v7422_v30 = vld [vmem:[%s8783_s19 + $0xe8] sm:$0xff]   ;;  %v7424_v32 = vld [vmem:[%s8783_s19 + $0xf0] sm:$0xff]   ;;  %v7425_v33 = vld [vmem:[%s8783_s19 + $0x78] sm:$0xff]  }
  0x1c   : > { %4632 = vmatprep.subr.bf16.mxu0 %v8736_v0  ;;  %v7426_v34 = vld [vmem:[%s8783_s19 + $0xf8] sm:$0xff]   ;;  %v7427_v35 = vld [vmem:[%s8820_s23] ss:$16 sps:$4 sm:$0xff]   ;;  %v7433_v37 = vld [vmem:[%s8820_s23 + $0x24] ss:$16 sps:$4 sm:$0xff]  }
  0x1d   : > { %v7430_v36 = vld [vmem:[%s8820_s23 + $0x8] ss:$16 sps:$4 sm:$0xff]   ;;  %v7435_v38 = vld [vmem:[%s8820_s23 + $0x2c] ss:$16 sps:$4 sm:$0xff]   ;;  %v7437_v39 = vld [vmem:[%s8820_s23 + $0x20] ss:$16 sps:$4 sm:$0xff]  }
  0x1e   : > { %3576 = vmatpush1.bf16.msra.mxu1 %v7401_v7  ;;  %v7438_v40 = vld [vmem:[%s8820_s23 + $0x28] ss:$16 sps:$4 sm:$0xff]   ;;  %v7439_v41 = vld [vmem:[%s8820_s23 + $0x44] ss:$16 sps:$4 sm:$0xff]   ;;  %v7441_v42 = vld [vmem:[%s8820_s23 + $0x4c] ss:$16 sps:$4 sm:$0xff]  }
  0x1f   : > { %4633 = vmatpush1.bf16.msra.mxu0 %v7402_v8  ;;  %3577 = vmatprep.subr.bf16.mxu1 %v8736_v0  ;;  %v7443_v43 = vld [vmem:[%s8820_s23 + $0x40] ss:$16 sps:$4 sm:$0xff]   ;;  %v7444_v44 = vld [vmem:[%s8820_s23 + $0x48] ss:$16 sps:$4 sm:$0xff]   ;;  %v7445_v45 = vld [vmem:[%s8820_s23 + $0x64] ss:$16 sps:$4 sm:$0xff]  }
  0x20   : > { %4634 = vmatprep.subr.bf16.mxu0 %v8736_v0  ;;  %v7447_v46 = vld [vmem:[%s8820_s23 + $0x6c] ss:$16 sps:$4 sm:$0xff]   ;;  %v7449_v47 = vld [vmem:[%s8820_s23 + $0x60] ss:$16 sps:$4 sm:$0xff]   ;;  %v7450_v48 = vld [vmem:[%s8820_s23 + $0x68] ss:$16 sps:$4 sm:$0xff]  }
  0x21   : > { %v7451_v49 = vld [vmem:[%s8820_s23 + $0x84] ss:$16 sps:$4 sm:$0xff]   ;;  %v7453_v50 = vld [vmem:[%s8820_s23 + $0x8c] ss:$16 sps:$4 sm:$0xff]   ;;  %v7455_v51 = vld [vmem:[%s8820_s23 + $0x80] ss:$16 sps:$4 sm:$0xff]  }
  0x22   : > { %3578 = vmatpush1.bf16.msra.mxu1 %v7403_v9  ;;  %v7456_v52 = vld [vmem:[%s8820_s23 + $0x88] ss:$16 sps:$4 sm:$0xff]   ;;  %v7457_v53 = vld [vmem:[%s8820_s23 + $0xa4] ss:$16 sps:$4 sm:$0xff]   ;;  %v7459_v54 = vld [vmem:[%s8820_s23 + $0xac] ss:$16 sps:$4 sm:$0xff]  }
  0x23   : > { %4635 = vmatpush1.bf16.msra.mxu0 %v7404_v10  ;;  %3579 = vmatprep.subr.bf16.mxu1 %v8736_v0  ;;  %v7461_v55 = vld [vmem:[%s8820_s23 + $0xa0] ss:$16 sps:$4 sm:$0xff]   ;;  %v7462_v56 = vld [vmem:[%s8820_s23 + $0xa8] ss:$16 sps:$4 sm:$0xff]   ;;  %v7463_v57 = vld [vmem:[%s8820_s23 + $0xc4] ss:$16 sps:$4 sm:$0xff]  }
  0x24   : > { %4636 = vmatprep.subr.bf16.mxu0 %v8736_v0  ;;  %v7465_v58 = vld [vmem:[%s8820_s23 + $0xcc] ss:$16 sps:$4 sm:$0xff]   ;;  %v7467_v59 = vld [vmem:[%s8820_s23 + $0xc0] ss:$16 sps:$4 sm:$0xff]   ;;  %v7468_v60 = vld [vmem:[%s8820_s23 + $0xc8] ss:$16 sps:$4 sm:$0xff]  }
  0x25   : > { %v7469_v61 = vld [vmem:[%s8820_s23 + $0xe4] ss:$16 sps:$4 sm:$0xff]   ;;  %v7471_v62 = vld [vmem:[%s8820_s23 + $0xec] ss:$16 sps:$4 sm:$0xff]   ;;  %v7473_v63 = vld [vmem:[%s8820_s23 + $0xe0] ss:$16 sps:$4 sm:$0xff]  }
  0x26   : > { %3580 = vmatpush1.bf16.msra.mxu1 %v7405_v11  ;;  %v7475_v1 = vld [vmem:[%s8820_s23 + $0x104] ss:$16 sps:$4 sm:$0xff]   ;;  %v7477_v2 = vld [vmem:[%s8820_s23 + $0x10c] ss:$16 sps:$4 sm:$0xff]   ;;  %v7479_v3 = vld [vmem:[%s8820_s23 + $0x100] ss:$16 sps:$4 sm:$0xff]  }
  0x27   : > { %4637 = vmatpush1.bf16.msra.mxu0 %v7406_v12  ;;  %3581 = vmatprep.subr.bf16.mxu1 %v8736_v0  ;;  %v7480_v4 = vld [vmem:[%s8820_s23 + $0x108] ss:$16 sps:$4 sm:$0xff]   ;;  %v7481_v5 = vld [vmem:[%s8820_s23 + $0x124] ss:$16 sps:$4 sm:$0xff]   ;;  %v7483_v6 = vld [vmem:[%s8820_s23 + $0x12c] ss:$16 sps:$4 sm:$0xff]  }
  0x28   : > { %4638 = vmatprep.subr.bf16.mxu0 %v8736_v0  ;;  %v7485_v7 = vld [vmem:[%s8820_s23 + $0x120] ss:$16 sps:$4 sm:$0xff]   ;;  %v7486_v8 = vld [vmem:[%s8820_s23 + $0x128] ss:$16 sps:$4 sm:$0xff]   ;;  %v7487_v9 = vld [vmem:[%s8820_s23 + $0x144] ss:$16 sps:$4 sm:$0xff]  }
  0x29   : > { %v7489_v10 = vld [vmem:[%s8820_s23 + $0x14c] ss:$16 sps:$4 sm:$0xff]   ;;  %v7491_v11 = vld [vmem:[%s8820_s23 + $0x140] ss:$16 sps:$4 sm:$0xff]   ;;  %v7492_v12 = vld [vmem:[%s8820_s23 + $0x148] ss:$16 sps:$4 sm:$0xff]  }
  0x2a   : > { %3582 = vmatpush1.bf16.msra.mxu1 %v7407_v13  ;;  %v7493_v13 = vld [vmem:[%s8820_s23 + $0x164] ss:$16 sps:$4 sm:$0xff]   ;;  %v7503_v19 = vld [vmem:[%s8820_s23 + $0x180] ss:$16 sps:$4 sm:$0xff]  }
  0x2b   : > { %4639 = vmatpush1.bf16.msra.mxu0 %v7408_v14  ;;  %3583 = vmatprep.subr.bf16.mxu1 %v8736_v0  ;;  %v7495_v14 = vld [vmem:[%s8820_s23 + $0x16c] ss:$16 sps:$4 sm:$0xff]   ;;  %v7505_v21 = vld [vmem:[%s8820_s23 + $0x1a4] ss:$16 sps:$4 sm:$0xff]  }
  0x2c   : > { %4640 = vmatprep.subr.bf16.mxu0 %v8736_v0 }
  0x2e   : > { %3584 = vmatpush1.bf16.msra.mxu1 %v7409_v15  ;;  %v7497_v15 = vld [vmem:[%s8820_s23 + $0x160] ss:$16 sps:$4 sm:$0xff]  }
  0x2f   : > { %4641 = vmatpush1.bf16.msra.mxu0 %v7410_v16  ;;  %3585 = vmatprep.subr.bf16.mxu1 %v8736_v0  ;;  %v7498_v16 = vld [vmem:[%s8820_s23 + $0x168] ss:$16 sps:$4 sm:$0xff]  }
  0x30   : > { %4642 = vmatprep.subr.bf16.mxu0 %v8736_v0 }
  0x32   : > { %3586 = vmatpush1.bf16.msra.mxu1 %v7411_v17  ;;  %v7499_v17 = vld [vmem:[%s8820_s23 + $0x184] ss:$16 sps:$4 sm:$0xff]  }
  0x33   : > { %4643 = vmatpush1.bf16.msra.mxu0 %v7412_v18  ;;  %3587 = vmatprep.subr.bf16.mxu1 %v8736_v0  ;;  %v7501_v18 = vld [vmem:[%s8820_s23 + $0x18c] ss:$16 sps:$4 sm:$0xff]  }
  0x34   : > { %4644 = vmatprep.subr.bf16.mxu0 %v8736_v0 }
  0x36   : > { %3588 = vmatpush1.bf16.msra.mxu1 %v7413_v20  ;;  %v7504_v20 = vld [vmem:[%s8820_s23 + $0x188] ss:$16 sps:$4 sm:$0xff]  }
  0x37   : > { %4645 = vmatpush1.bf16.msra.mxu0 %v7414_v22  ;;  %3589 = vmatprep.subr.bf16.mxu1 %v8736_v0  ;;  %v7507_v22 = vld [vmem:[%s8820_s23 + $0x1ac] ss:$16 sps:$4 sm:$0xff]  }
  0x38   : > { %4646 = vmatprep.subr.bf16.mxu0 %v8736_v0 }
  0x3a   : > { %3590 = vmatpush1.bf16.msra.mxu1 %v7415_v23  ;;  %v7509_v23 = vld [vmem:[%s8820_s23 + $0x1a0] ss:$16 sps:$4 sm:$0xff]  }
  0x3b   : > { %4647 = vmatpush1.bf16.msra.mxu0 %v7416_v24  ;;  %3591 = vmatprep.subr.bf16.mxu1 %v8736_v0  ;;  %v7510_v24 = vld [vmem:[%s8820_s23 + $0x1a8] ss:$16 sps:$4 sm:$0xff]  }
  0x3c   : > { %4648 = vmatprep.subr.bf16.mxu0 %v8736_v0 }
  0x3e   : > { %3592 = vmatpush1.bf16.msra.mxu1 %v7417_v25  ;;  %v7511_v25 = vld [vmem:[%s8820_s23 + $0x1c4] ss:$16 sps:$4 sm:$0xff]  }
  0x3f   : > { %4649 = vmatpush1.bf16.msra.mxu0 %v7418_v26  ;;  %3593 = vmatprep.subr.bf16.mxu1 %v8736_v0  ;;  %v7513_v26 = vld [vmem:[%s8820_s23 + $0x1cc] ss:$16 sps:$4 sm:$0xff]  }
  0x40   : > { %4650 = vmatprep.subr.bf16.mxu0 %v8736_v0 }
  0x42   : > { %3594 = vmatpush1.bf16.msra.mxu1 %v7419_v27  ;;  %v7515_v27 = vld [vmem:[%s8820_s23 + $0x1c0] ss:$16 sps:$4 sm:$0xff]  }
  0x43   : > { %4651 = vmatpush1.bf16.msra.mxu0 %v7420_v28  ;;  %3595 = vmatprep.subr.bf16.mxu1 %v8736_v0  ;;  %v7516_v28 = vld [vmem:[%s8820_s23 + $0x1c8] ss:$16 sps:$4 sm:$0xff]  }
  0x44   : > { %4652 = vmatprep.subr.bf16.mxu0 %v8736_v0 }
  0x46   : > { %3596 = vmatpush1.bf16.msra.mxu1 %v7421_v29  ;;  %v7517_v29 = vld [vmem:[%s8820_s23 + $0x1e4] ss:$16 sps:$4 sm:$0xff]  }
  0x47   : > { %4653 = vmatpush1.bf16.msra.mxu0 %v7422_v30  ;;  %3597 = vmatprep.subr.bf16.mxu1 %v8736_v0  ;;  %v7519_v30 = vld [vmem:[%s8820_s23 + $0x1ec] ss:$16 sps:$4 sm:$0xff]  }
  0x48   : > { %4654 = vmatprep.subr.bf16.mxu0 %v8736_v0 }
  0x4a   : > { %3598 = vmatpush1.bf16.msra.mxu1 %v7423_v31  ;;  %v7521_v31 = vld [vmem:[%s8820_s23 + $0x1e0] ss:$16 sps:$4 sm:$0xff]  }
  0x4b   : > { %4655 = vmatpush1.bf16.msra.mxu0 %v7424_v32  ;;  %3599 = vmatprep.subr.bf16.mxu1 %v8736_v0  ;;  %v7522_v32 = vld [vmem:[%s8820_s23 + $0x1e8] ss:$16 sps:$4 sm:$0xff]  }
  0x4c   : > { %4656 = vmatprep.subr.bf16.mxu0 %v8736_v0  ;;  %v7474_v0 = vld [vmem:[%s8820_s23 + $0xe8] ss:$16 sps:$4 sm:$0xff]  }
  0x4e   : > { %3600 = vmatpush1.bf16.msra.mxu1 %v7425_v33  ;;  %v7523_v33 = vld [vmem:[%s8820_s23 + $0x204] ss:$16 sps:$4 sm:$0xff]  }
  0x4f   : > { %4657 = vmatpush1.bf16.msra.mxu0 %v7426_v34  ;;  %v7525_v34 = vld [vmem:[%s8820_s23 + $0x20c] ss:$16 sps:$4 sm:$0xff]  }
  0x51   : > { %3602 = vmatmul.mubr.bf16.vlgmr.msra.gmra.mrb[0].mxu1 %v7427_v35  ;;  %v7527_v35 = vld [vmem:[%s8820_s23 + $0x200] ss:$16 sps:$4 sm:$0xff]  }
  0x52   : > { %4659 = vmatmul.mubr.bf16.vlgmr.msra.gmra.mrb[0].mxu0 %v7430_v36  ;;  %3609 = vmatprep.mubr.bf16.mxu1 %v7433_v37  ;;  %v7528_v36 = vld [vmem:[%s8820_s23 + $0x208] ss:$16 sps:$4 sm:$0xff]   ;;  %v7529_v37 = vld [vmem:[%s8820_s23 + $0x224] ss:$16 sps:$4 sm:$0xff]  }
  0x53   : > { %4666 = vmatprep.mubr.bf16.mxu0 %v7435_v38  ;;  %v7531_v38 = vld [vmem:[%s8820_s23 + $0x22c] ss:$16 sps:$4 sm:$0xff]  }
  0x59   : > { %3610 = vmatmul.mubr.bf16.gmra.mrb[4].mxu1 %v7437_v39  ;;  %v7533_v39 = vld [vmem:[%s8820_s23 + $0x220] ss:$16 sps:$4 sm:$0xff]  }
  0x5a   : > { %4667 = vmatmul.mubr.bf16.gmra.mrb[4].mxu0 %v7438_v40  ;;  %3617 = vmatprep.mubr.bf16.mxu1 %v7439_v41  ;;  %v7534_v40 = vld [vmem:[%s8820_s23 + $0x228] ss:$16 sps:$4 sm:$0xff]   ;;  %v7535_v41 = vld [vmem:[%s8820_s23 + $0x244] ss:$16 sps:$4 sm:$0xff]  }
  0x5b   : > { %4674 = vmatprep.mubr.bf16.mxu0 %v7441_v42  ;;  %v7537_v42 = vld [vmem:[%s8820_s23 + $0x24c] ss:$16 sps:$4 sm:$0xff]  }
  0x61   : > { %3618 = vmatmul.mubr.bf16.gmra.mrb[8].mxu1 %v7443_v43  ;;  %v7539_v43 = vld [vmem:[%s8820_s23 + $0x240] ss:$16 sps:$4 sm:$0xff]  }
  0x62   : > { %4675 = vmatmul.mubr.bf16.gmra.mrb[8].mxu0 %v7444_v44  ;;  %3625 = vmatprep.mubr.bf16.mxu1 %v7445_v45  ;;  %v7540_v44 = vld [vmem:[%s8820_s23 + $0x248] ss:$16 sps:$4 sm:$0xff]   ;;  %v7541_v45 = vld [vmem:[%s8820_s23 + $0x264] ss:$16 sps:$4 sm:$0xff]  }
  0x63   : > { %4682 = vmatprep.mubr.bf16.mxu0 %v7447_v46  ;;  %v7543_v46 = vld [vmem:[%s8820_s23 + $0x26c] ss:$16 sps:$4 sm:$0xff]  }
  0x69   : > { %3626 = vmatmul.mubr.bf16.gmra.mrb[12].mxu1 %v7449_v47  ;;  %v7545_v47 = vld [vmem:[%s8820_s23 + $0x260] ss:$16 sps:$4 sm:$0xff]  }
  0x6a   : > { %4683 = vmatmul.mubr.bf16.gmra.mrb[12].mxu0 %v7450_v48  ;;  %3633 = vmatprep.mubr.bf16.mxu1 %v7451_v49  ;;  %v7546_v48 = vld [vmem:[%s8820_s23 + $0x268] ss:$16 sps:$4 sm:$0xff]   ;;  %v7547_v49 = vld [vmem:[%s8820_s23 + $0x284] ss:$16 sps:$4 sm:$0xff]  }
  0x6b   : > { %4690 = vmatprep.mubr.bf16.mxu0 %v7453_v50  ;;  %v7549_v50 = vld [vmem:[%s8820_s23 + $0x28c] ss:$16 sps:$4 sm:$0xff]  }
  0x71   : > { %3634 = vmatmul.mubr.bf16.gmra.mrb[16].mxu1 %v7455_v51  ;;  %v7551_v51 = vld [vmem:[%s8820_s23 + $0x280] ss:$16 sps:$4 sm:$0xff]  }
  0x72   : > { %4691 = vmatmul.mubr.bf16.gmra.mrb[16].mxu0 %v7456_v52  ;;  %3641 = vmatprep.mubr.bf16.mxu1 %v7457_v53  ;;  %v7552_v52 = vld [vmem:[%s8820_s23 + $0x288] ss:$16 sps:$4 sm:$0xff]   ;;  %v7553_v53 = vld [vmem:[%s8820_s23 + $0x2a4] ss:$16 sps:$4 sm:$0xff]  }
  0x73   : > { %4698 = vmatprep.mubr.bf16.mxu0 %v7459_v54  ;;  %v7555_v54 = vld [vmem:[%s8820_s23 + $0x2ac] ss:$16 sps:$4 sm:$0xff]  }
  0x79   : > { %3642 = vmatmul.mubr.bf16.gmra.mrb[20].mxu1 %v7461_v55  ;;  %v7557_v55 = vld [vmem:[%s8820_s23 + $0x2a0] ss:$16 sps:$4 sm:$0xff]  }
  0x7a   : > { %4699 = vmatmul.mubr.bf16.gmra.mrb[20].mxu0 %v7462_v56  ;;  %3649 = vmatprep.mubr.bf16.mxu1 %v7463_v57  ;;  %v7558_v56 = vld [vmem:[%s8820_s23 + $0x2a8] ss:$16 sps:$4 sm:$0xff]   ;;  %v7559_v57 = vld [vmem:[%s8820_s23 + $0x2c4] ss:$16 sps:$4 sm:$0xff]  }
  0x7b   : > { %4706 = vmatprep.mubr.bf16.mxu0 %v7465_v58  ;;  %v7561_v58 = vld [vmem:[%s8820_s23 + $0x2cc] ss:$16 sps:$4 sm:$0xff]  }
  0x81   : > { %3650 = vmatmul.mubr.bf16.gmra.mrb[24].mxu1 %v7467_v59  ;;  %v7563_v59 = vld [vmem:[%s8820_s23 + $0x2c0] ss:$16 sps:$4 sm:$0xff]  }
  0x82   : > { %4707 = vmatmul.mubr.bf16.gmra.mrb[24].mxu0 %v7468_v60  ;;  %3657 = vmatprep.mubr.bf16.mxu1 %v7469_v61  ;;  %v7564_v60 = vld [vmem:[%s8820_s23 + $0x2c8] ss:$16 sps:$4 sm:$0xff]   ;;  %v7565_v61 = vld [vmem:[%s8820_s23 + $0x2e4] ss:$16 sps:$4 sm:$0xff]  }
  0x83   : > { %4714 = vmatprep.mubr.bf16.mxu0 %v7471_v62  ;;  %v7567_v62 = vld [vmem:[%s8820_s23 + $0x2ec] ss:$16 sps:$4 sm:$0xff]  }
  0x89   : > { %3658 = vmatmul.mubr.bf16.gmra.mrb[28].mxu1 %v7473_v63  ;;  %v7569_v63 = vld [vmem:[%s8820_s23 + $0x2e0] ss:$16 sps:$4 sm:$0xff]  }
  0x8a   : > { %4715 = vmatmul.mubr.bf16.gmra.mrb[28].mxu0 %v7474_v0  ;;  %3665 = vmatprep.mubr.bf16.mxu1 %v7475_v1  ;;  %v7570_v0 = vld [vmem:[%s8820_s23 + $0x2e8] ss:$16 sps:$4 sm:$0xff]   ;;  %v7571_v1 = vld [vmem:[%s8820_s23 + $0x304] ss:$16 sps:$4 sm:$0xff]  }
  0x8b   : > { %4722 = vmatprep.mubr.bf16.mxu0 %v7477_v2  ;;  %v7573_v2 = vld [vmem:[%s8820_s23 + $0x30c] ss:$16 sps:$4 sm:$0xff]  }
  0x91   : > { %3666 = vmatmul.mubr.bf16.gmra.mrb[32].mxu1 %v7479_v3  ;;  %v7575_v3 = vld [vmem:[%s8820_s23 + $0x300] ss:$16 sps:$4 sm:$0xff]  }
  0x92   : > { %4723 = vmatmul.mubr.bf16.gmra.mrb[32].mxu0 %v7480_v4  ;;  %3673 = vmatprep.mubr.bf16.mxu1 %v7481_v5  ;;  %v7576_v4 = vld [vmem:[%s8820_s23 + $0x308] ss:$16 sps:$4 sm:$0xff]   ;;  %v7577_v5 = vld [vmem:[%s8820_s23 + $0x324] ss:$16 sps:$4 sm:$0xff]  }
  0x93   : > { %4730 = vmatprep.mubr.bf16.mxu0 %v7483_v6  ;;  %v7579_v6 = vld [vmem:[%s8820_s23 + $0x32c] ss:$16 sps:$4 sm:$0xff]  }
  0x99   : > { %3674 = vmatmul.mubr.bf16.gmra.mrb[36].mxu1 %v7485_v7  ;;  %v7581_v7 = vld [vmem:[%s8820_s23 + $0x320] ss:$16 sps:$4 sm:$0xff]  }
  0x9a   : > { %4731 = vmatmul.mubr.bf16.gmra.mrb[36].mxu0 %v7486_v8  ;;  %3681 = vmatprep.mubr.bf16.mxu1 %v7487_v9  ;;  %v7582_v8 = vld [vmem:[%s8820_s23 + $0x328] ss:$16 sps:$4 sm:$0xff]   ;;  %v7583_v9 = vld [vmem:[%s8820_s23 + $0x344] ss:$16 sps:$4 sm:$0xff]  }
  0x9b   : > { %4738 = vmatprep.mubr.bf16.mxu0 %v7489_v10  ;;  %v7585_v10 = vld [vmem:[%s8820_s23 + $0x34c] ss:$16 sps:$4 sm:$0xff]  }
  0xa1   : > { %3682 = vmatmul.mubr.bf16.gmra.mrb[40].mxu1 %v7491_v11  ;;  %v7587_v11 = vld [vmem:[%s8820_s23 + $0x340] ss:$16 sps:$4 sm:$0xff]  }
  0xa2   : > { %4739 = vmatmul.mubr.bf16.gmra.mrb[40].mxu0 %v7492_v12  ;;  %3689 = vmatprep.mubr.bf16.mxu1 %v7493_v13  ;;  %v7588_v12 = vld [vmem:[%s8820_s23 + $0x348] ss:$16 sps:$4 sm:$0xff]   ;;  %v7589_v13 = vld [vmem:[%s8820_s23 + $0x364] ss:$16 sps:$4 sm:$0xff]  }
  0xa3   : > { %4746 = vmatprep.mubr.bf16.mxu0 %v7495_v14  ;;  %v7591_v14 = vld [vmem:[%s8820_s23 + $0x36c] ss:$16 sps:$4 sm:$0xff]  }
  0xa9   : > { %3690 = vmatmul.mubr.bf16.gmra.mrb[44].mxu1 %v7497_v15  ;;  %v8966_v15 = vld [vmem:[%s9924_s2] ss:$0 sm:$0xff] }
  0xaa   : > { %4747 = vmatmul.mubr.bf16.gmra.mrb[44].mxu0 %v7498_v16  ;;  %3697 = vmatprep.mubr.bf16.mxu1 %v7499_v17 }
  0xab   : > { %4754 = vmatprep.mubr.bf16.mxu0 %v7501_v18 }
  0xb1   : > { %3698 = vmatmul.mubr.bf16.gmra.mrb[48].mxu1 %v7503_v19 }
  0xb2   : > { %4755 = vmatmul.mubr.bf16.gmra.mrb[48].mxu0 %v7504_v20  ;;  %3705 = vmatprep.mubr.bf16.mxu1 %v7505_v21  ;;  %v7593_v20 = vld [vmem:[%s8820_s23 + $0x360] ss:$16 sps:$4 sm:$0xff]  }
  0xb3   : > { %4762 = vmatprep.mubr.bf16.mxu0 %v7507_v22 }
  0xb9   : > { %3706 = vmatmul.mubr.bf16.gmra.mrb[52].mxu1 %v7509_v23  ;;  %v7594_v23 = vld [vmem:[%s8820_s23 + $0x368] ss:$16 sps:$4 sm:$0xff]  }
  0xba   : > { %4763 = vmatmul.mubr.bf16.gmra.mrb[52].mxu0 %v7510_v24  ;;  %3713 = vmatprep.mubr.bf16.mxu1 %v7511_v25  ;;  %v7595_v24 = vld [vmem:[%s8820_s23 + $0x384] ss:$16 sps:$4 sm:$0xff]  }
  0xbb   : > { %4770 = vmatprep.mubr.bf16.mxu0 %v7513_v26 }
  0xc1   : > { %3714 = vmatmul.mubr.bf16.gmra.mrb[56].mxu1 %v7515_v27 }
  0xc2   : > { %4771 = vmatmul.mubr.bf16.gmra.mrb[56].mxu0 %v7516_v28  ;;  %3721 = vmatprep.mubr.bf16.mxu1 %v7517_v29  ;;  %v7597_v29 = vld [vmem:[%s8820_s23 + $0x38c] ss:$16 sps:$4 sm:$0xff]  }
  0xc3   : > { %4778 = vmatprep.mubr.bf16.mxu0 %v7519_v30 }
  0xc9   : > { %3722 = vmatmul.mubr.bf16.gmra.mrb[60].mxu1 %v7521_v31 }
  0xca   : > { %4779 = vmatmul.mubr.bf16.gmra.mrb[60].mxu0 %v7522_v32  ;;  %3729 = vmatprep.mubr.bf16.mxu1 %v7523_v33 }
  0xcb   : > { %4786 = vmatprep.mubr.bf16.mxu0 %v7525_v34 }
  0xd1   : > { %3730 = vmatmul.mubr.bf16.gmra.mrb[64].mxu1 %v7527_v35 }
  0xd2   : > { %4787 = vmatmul.mubr.bf16.gmra.mrb[64].mxu0 %v7528_v36  ;;  %3737 = vmatprep.mubr.bf16.mxu1 %v7529_v37  ;;  %v7599_v36 = vld [vmem:[%s8820_s23 + $0x380] ss:$16 sps:$4 sm:$0xff]  }
  0xd3   : > { %4794 = vmatprep.mubr.bf16.mxu0 %v7531_v38 }
  0xd9   : > { %3738 = vmatmul.mubr.bf16.gmra.mrb[68].mxu1 %v7533_v39  ;;  %v7600_v39 = vld [vmem:[%s8820_s23 + $0x388] ss:$16 sps:$4 sm:$0xff]  }
  0xda   : > { %4795 = vmatmul.mubr.bf16.gmra.mrb[68].mxu0 %v7534_v40  ;;  %3745 = vmatprep.mubr.bf16.mxu1 %v7535_v41  ;;  %v7601_v40 = vld [vmem:[%s8820_s23 + $0x3a4] ss:$16 sps:$4 sm:$0xff]  }
  0xdb   : > { %4802 = vmatprep.mubr.bf16.mxu0 %v7537_v42 }
  0xe1   : > { %3746 = vmatmul.mubr.bf16.gmra.mrb[72].mxu1 %v7539_v43 }
  0xe2   : > { %4803 = vmatmul.mubr.bf16.gmra.mrb[72].mxu0 %v7540_v44  ;;  %3753 = vmatprep.mubr.bf16.mxu1 %v7541_v45  ;;  %v7603_v45 = vld [vmem:[%s8820_s23 + $0x3ac] ss:$16 sps:$4 sm:$0xff]  }
  0xe3   : > { %4810 = vmatprep.mubr.bf16.mxu0 %v7543_v46 }
  0xe9   : > { %3754 = vmatmul.mubr.bf16.gmra.mrb[76].mxu1 %v7545_v47 }
  0xea   : > { %4811 = vmatmul.mubr.bf16.gmra.mrb[76].mxu0 %v7546_v48  ;;  %3761 = vmatprep.mubr.bf16.mxu1 %v7547_v49 }
  0xeb   : > { %4818 = vmatprep.mubr.bf16.mxu0 %v7549_v50 }
  0xf1   : > { %3762 = vmatmul.mubr.bf16.gmra.mrb[80].mxu1 %v7551_v51 }
  0xf2   : > { %4819 = vmatmul.mubr.bf16.gmra.mrb[80].mxu0 %v7552_v52  ;;  %3769 = vmatprep.mubr.bf16.mxu1 %v7553_v53 }
  0xf3   : > { %4826 = vmatprep.mubr.bf16.mxu0 %v7555_v54  ;;  %v7605_v54 = vld [vmem:[%s8820_s23 + $0x3a0] ss:$16 sps:$4 sm:$0xff]  }
  0xf9   : > { %3770 = vmatmul.mubr.bf16.gmra.mrb[84].mxu1 %v7557_v55 }
  0xfa   : > { %4827 = vmatmul.mubr.bf16.gmra.mrb[84].mxu0 %v7558_v56  ;;  %3777 = vmatprep.mubr.bf16.mxu1 %v7559_v57  ;;  %v7606_v57 = vld [vmem:[%s8820_s23 + $0x3a8] ss:$16 sps:$4 sm:$0xff]  }
  0xfb   : > { %4834 = vmatprep.mubr.bf16.mxu0 %v7561_v58  ;;  %v7607_v58 = vld [vmem:[%s8820_s23 + $0x3c4] ss:$16 sps:$4 sm:$0xff]  }
 0x101   : > { %3778 = vmatmul.mubr.bf16.gmra.mrb[88].mxu1 %v7563_v59 }
 0x102   : > { %4835 = vmatmul.mubr.bf16.gmra.mrb[88].mxu0 %v7564_v60  ;;  %3785 = vmatprep.mubr.bf16.mxu1 %v7565_v61 }
 0x103   : > { %4842 = vmatprep.mubr.bf16.mxu0 %v7567_v62 }
 0x109   : > { %3786 = vmatmul.mubr.bf16.gmra.mrb[92].mxu1 %v7569_v63  ;;  %v7609_v63 = vld [vmem:[%s8820_s23 + $0x3cc] ss:$16 sps:$4 sm:$0xff]  }
 0x10a   : > { %4843 = vmatmul.mubr.bf16.gmra.mrb[92].mxu0 %v7570_v0  ;;  %3793 = vmatprep.mubr.bf16.mxu1 %v7571_v1 }
 0x10b   : > { %4850 = vmatprep.mubr.bf16.mxu0 %v7573_v2 }
 0x111   : > { %3794 = vmatmul.mubr.bf16.gmra.mrb[96].mxu1 %v7575_v3 }
 0x112   : > { %4851 = vmatmul.mubr.bf16.gmra.mrb[96].mxu0 %v7576_v4  ;;  %3801 = vmatprep.mubr.bf16.mxu1 %v7577_v5 }
 0x113   : > { %4858 = vmatprep.mubr.bf16.mxu0 %v7579_v6 }
 0x119   : > { %3802 = vmatmul.mubr.bf16.gmra.mrb[100].mxu1 %v7581_v7 }
 0x11a   : > { %4859 = vmatmul.mubr.bf16.gmra.mrb[100].mxu0 %v7582_v8  ;;  %3809 = vmatprep.mubr.bf16.mxu1 %v7583_v9  ;;  %v7611_v8 = vld [vmem:[%s8820_s23 + $0x3c0] ss:$16 sps:$4 sm:$0xff]  }
 0x11b   : > { %4866 = vmatprep.mubr.bf16.mxu0 %v7585_v10 }
 0x121   : > { %3810 = vmatmul.mubr.bf16.gmra.mrb[104].mxu1 %v7587_v11  ;;  %v7612_v11 = vld [vmem:[%s8820_s23 + $0x3c8] ss:$16 sps:$4 sm:$0xff]  }
 0x122   : > { %4867 = vmatmul.mubr.bf16.gmra.mrb[104].mxu0 %v7588_v12  ;;  %3817 = vmatprep.mubr.bf16.mxu1 %v7589_v13  ;;  %v7613_v12 = vld [vmem:[%s8820_s23 + $0x3e4] ss:$16 sps:$4 sm:$0xff]  }
 0x123   : > { %4874 = vmatprep.mubr.bf16.mxu0 %v7591_v14 }
 0x124   : > { %v3603_v16 = vpop.f32.mrb[0].mxu1 }
 0x125   : > { %v3604_v17 = vadd.f32 %v8966_v15, %v3603_v16  ;;  %v4660_v18 = vpop.f32.mrb[0].mxu0  ;;  %v3605_v19 = vpop.f32.mrb[1].mxu1 }
 0x126   : > { %v4662_v21 = vpop.f32.mrb[1].mxu0  ;;  %v3606_v22 = vpop.f32.mrb[2].mxu1 }
 0x127   : > { %v4661_v25 = vadd.f32 %v4660_v18, %v3604_v17  ;;  %v3607_v26 = vadd.f32 %v8966_v15, %v3606_v22  ;;  %v4663_v27 = vpop.f32.mrb[2].mxu0  ;;  %v3608_v28 = vpop.f32.mrb[3].mxu1  ;;  %v7615_v18 = vld [vmem:[%s8820_s23 + $0x3ec] ss:$16 sps:$4 sm:$0xff]  }
 0x128   : > { %v4665_v30 = vpop.f32.mrb[3].mxu0 }
 0x129   : > { %8195 = vtanh.f32 %v4661_v25  ;;  %v4664_v31 = vadd.f32 %v4663_v27, %v3607_v26  ;;  %3818 = vmatmul.mubr.bf16.gmra.mrb[108].mxu1 %v7593_v20  ;;  %v7617_v27 = vld [vmem:[%s8820_s23 + $0x3e0] ss:$16 sps:$4 sm:$0xff]   ;;  %v7618_v30 = vld [vmem:[%s8820_s23 + $0x3e8] ss:$16 sps:$4 sm:$0xff]  }
 0x12a   : > { %4875 = vmatmul.mubr.bf16.gmra.mrb[108].mxu0 %v7594_v23  ;;  %3825 = vmatprep.mubr.bf16.mxu1 %v7595_v24 }
 0x12b   : > { %8197 = vtanh.f32 %v4664_v31  ;;  %4882 = vmatprep.mubr.bf16.mxu0 %v7597_v29  ;;  %v7619_v31 = vld [vmem:[%s8820_s23 + $0x404] ss:$16 sps:$4 sm:$0xff]  }
 0x12c   : > { %v3611_v32 = vpop.f32.mrb[4].mxu1 }
 0x12d   : > { %v3612_v33 = vadd.f32 %v8966_v15, %v3611_v32  ;;  %v4668_v34 = vpop.f32.mrb[4].mxu0  ;;  %v3613_v35 = vpop.f32.mrb[5].mxu1 }
 0x12e   : > { %v4670_v37 = vpop.f32.mrb[5].mxu0  ;;  %v3614_v38 = vpop.f32.mrb[6].mxu1 }
 0x12f   : > { %v4669_v41 = vadd.f32 %v4668_v34, %v3612_v33  ;;  %v3615_v42 = vadd.f32 %v8966_v15, %v3614_v38  ;;  %v4671_v43 = vpop.f32.mrb[6].mxu0  ;;  %v3616_v44 = vpop.f32.mrb[7].mxu1 }
 0x130   : > { %v4673_v46 = vpop.f32.mrb[7].mxu0 }
 0x131   : > { %8199 = vtanh.f32 %v4669_v41  ;;  %v4672_v47 = vadd.f32 %v4671_v43, %v3615_v42  ;;  %3826 = vmatmul.mubr.bf16.gmra.mrb[112].mxu1 %v7599_v36  ;;  %v7621_v36 = vld [vmem:[%s8820_s23 + $0x40c] ss:$16 sps:$4 sm:$0xff]  }
 0x132   : > { %4883 = vmatmul.mubr.bf16.gmra.mrb[112].mxu0 %v7600_v39  ;;  %3833 = vmatprep.mubr.bf16.mxu1 %v7601_v40 }
 0x133   : > { %v8196_v48 = vpop.eup %8195  ;;  %8201 = vtanh.f32 %v4672_v47  ;;  %4890 = vmatprep.mubr.bf16.mxu0 %v7603_v45  ;;  %v7623_v45 = vld [vmem:[%s8820_s23 + $0x400] ss:$16 sps:$4 sm:$0xff]  }
 0x134   : > { %5939 = vst [vmem:[%s8984_s29] sm:$0xff] %v8196_v48  ;;  %v3619_v49 = vpop.f32.mrb[8].mxu1  ;;  %v7624_v48 = vld [vmem:[%s8820_s23 + $0x408] ss:$16 sps:$4 sm:$0xff]  }
 0x135   : > { %v8198_v50 = vpop.eup %8197  ;;  %v3620_v51 = vadd.f32 %v8966_v15, %v3619_v49  ;;  %v4676_v52 = vpop.f32.mrb[8].mxu0  ;;  %v7625_v49 = vld [vmem:[%s8820_s23 + $0x424] ss:$16 sps:$4 sm:$0xff]  }
 0x136   : > { %v3621_v53 = vpop.f32.mrb[9].mxu1  ;;  %5940 = vst [vmem:[%s8984_s29 + $0x8] sm:$0xff] %v8198_v50  ;;  %v4678_v55 = vpop.f32.mrb[9].mxu0 }
 0x137   : > { %v3622_v56 = vpop.f32.mrb[10].mxu1  ;;  %v4677_v59 = vadd.f32 %v4676_v52, %v3620_v51  ;;  %v4679_v61 = vpop.f32.mrb[10].mxu0 }
 0x138   : > { %v3623_v60 = vadd.f32 %v8966_v15, %v3622_v56  ;;  %v3624_v62 = vpop.f32.mrb[11].mxu1  ;;  %v4681_v0 = vpop.f32.mrb[11].mxu0 }
 0x139   : > { %8203 = vtanh.f32 %v4677_v59  ;;  %3834 = vmatmul.mubr.bf16.gmra.mrb[116].mxu1 %v7605_v54  ;;  %v7627_v54 = vld [vmem:[%s8820_s23 + $0x42c] ss:$16 sps:$4 sm:$0xff]  }
 0x13a   : > { %v4680_v1 = vadd.f32 %v4679_v61, %v3623_v60  ;;  %4891 = vmatmul.mubr.bf16.gmra.mrb[116].mxu0 %v7606_v57  ;;  %3841 = vmatprep.mubr.bf16.mxu1 %v7607_v58 }
 0x13b   : > { %v8200_v2 = vpop.eup %8199  ;;  %4898 = vmatprep.mubr.bf16.mxu0 %v7609_v63  ;;  %v7629_v63 = vld [vmem:[%s8820_s23 + $0x420] ss:$16 sps:$4 sm:$0xff]  }
 0x13c   : > { %8205 = vtanh.f32 %v4680_v1  ;;  %5941 = vst [vmem:[%s8984_s29 + $0x10] sm:$0xff] %v8200_v2  ;;  %v3627_v3 = vpop.f32.mrb[12].mxu1  ;;  %v7630_v2 = vld [vmem:[%s8820_s23 + $0x428] ss:$16 sps:$4 sm:$0xff]  }
 0x13d   : > { %v8202_v4 = vpop.eup %8201  ;;  %v3628_v5 = vadd.f32 %v8966_v15, %v3627_v3  ;;  %v4684_v6 = vpop.f32.mrb[12].mxu0  ;;  %v7631_v3 = vld [vmem:[%s8820_s23 + $0x444] ss:$16 sps:$4 sm:$0xff]  }
 0x13e   : > { %v3629_v7 = vpop.f32.mrb[13].mxu1  ;;  %5942 = vst [vmem:[%s8984_s29 + $0x18] sm:$0xff] %v8202_v4  ;;  %v4686_v9 = vpop.f32.mrb[13].mxu0 }
 0x13f   : > { %v3630_v10 = vpop.f32.mrb[14].mxu1  ;;  %v4685_v13 = vadd.f32 %v4684_v6, %v3628_v5  ;;  %v4687_v16 = vpop.f32.mrb[14].mxu0 }
 0x140   : > { %v3631_v14 = vadd.f32 %v8966_v15, %v3630_v10  ;;  %v3632_v17 = vpop.f32.mrb[15].mxu1  ;;  %v4689_v19 = vpop.f32.mrb[15].mxu0 }
 0x141   : > { %8207 = vtanh.f32 %v4685_v13  ;;  %3842 = vmatmul.mubr.bf16.gmra.mrb[120].mxu1 %v7611_v8  ;;  %v7633_v8 = vld [vmem:[%s8820_s23 + $0x44c] ss:$16 sps:$4 sm:$0xff]  }
 0x142   : > { %v4688_v20 = vadd.f32 %v4687_v16, %v3631_v14  ;;  %4899 = vmatmul.mubr.bf16.gmra.mrb[120].mxu0 %v7612_v11  ;;  %3849 = vmatprep.mubr.bf16.mxu1 %v7613_v12 }
 0x143   : > { %v8204_v21 = vpop.eup %8203  ;;  %4906 = vmatprep.mubr.bf16.mxu0 %v7615_v18  ;;  %v7635_v18 = vld [vmem:[%s8820_s23 + $0x440] ss:$16 sps:$4 sm:$0xff]  }
 0x144   : > { %8209 = vtanh.f32 %v4688_v20  ;;  %5943 = vst [vmem:[%s8984_s29 + $0x20] sm:$0xff] %v8204_v21  ;;  %v3635_v22 = vpop.f32.mrb[16].mxu1  ;;  %v7636_v21 = vld [vmem:[%s8820_s23 + $0x448] ss:$16 sps:$4 sm:$0xff]  }
 0x145   : > { %v3636_v24 = vadd.f32 %v8966_v15, %v3635_v22  ;;  %v4692_v25 = vpop.f32.mrb[16].mxu0  ;;  %v3637_v26 = vpop.f32.mrb[17].mxu1  ;;  %v7637_v22 = vld [vmem:[%s8820_s23 + $0x464] ss:$16 sps:$4 sm:$0xff]  }
 0x146   : > { %v8206_v23 = vpop.eup %8205  ;;  %v4694_v28 = vpop.f32.mrb[17].mxu0 }
 0x147   : > { %5944 = vst [vmem:[%s8984_s29 + $0x28] sm:$0xff] %v8206_v23  ;;  %v3638_v29 = vpop.f32.mrb[18].mxu1  ;;  %v4693_v32 = vadd.f32 %v4692_v25, %v3636_v24  ;;  %v4695_v34 = vpop.f32.mrb[18].mxu0 }
 0x148   : > { %v3639_v33 = vadd.f32 %v8966_v15, %v3638_v29  ;;  %v3640_v35 = vpop.f32.mrb[19].mxu1  ;;  %v4697_v37 = vpop.f32.mrb[19].mxu0 }
 0x149   : > { %8211 = vtanh.f32 %v4693_v32  ;;  %3850 = vmatmul.mubr.bf16.gmra.mrb[124].mxu1 %v7617_v27  ;;  %v7639_v27 = vld [vmem:[%s8820_s23 + $0x46c] ss:$16 sps:$4 sm:$0xff]  }
 0x14a   : > { %v4696_v38 = vadd.f32 %v4695_v34, %v3639_v33  ;;  %4907 = vmatmul.mubr.bf16.gmra.mrb[124].mxu0 %v7618_v30  ;;  %3857 = vmatprep.mubr.bf16.mxu1 %v7619_v31 }
 0x14b   : > { %v8208_v39 = vpop.eup %8207  ;;  %4914 = vmatprep.mubr.bf16.mxu0 %v7621_v36  ;;  %v7641_v36 = vld [vmem:[%s8820_s23 + $0x460] ss:$16 sps:$4 sm:$0xff]  }
 0x14c   : > { %8213 = vtanh.f32 %v4696_v38  ;;  %5945 = vst [vmem:[%s8984_s29 + $0x30] sm:$0xff] %v8208_v39  ;;  %v3643_v40 = vpop.f32.mrb[20].mxu1  ;;  %v7642_v39 = vld [vmem:[%s8820_s23 + $0x468] ss:$16 sps:$4 sm:$0xff]  }
 0x14d   : > { %v3644_v42 = vadd.f32 %v8966_v15, %v3643_v40  ;;  %v4700_v43 = vpop.f32.mrb[20].mxu0  ;;  %v3645_v44 = vpop.f32.mrb[21].mxu1  ;;  %v7643_v40 = vld [vmem:[%s8820_s23 + $0x484] ss:$16 sps:$4 sm:$0xff]  }
 0x14e   : > { %v8210_v41 = vpop.eup %8209  ;;  %v4702_v46 = vpop.f32.mrb[21].mxu0 }
 0x14f   : > { %5946 = vst [vmem:[%s8984_s29 + $0x38] sm:$0xff] %v8210_v41  ;;  %v3646_v47 = vpop.f32.mrb[22].mxu1  ;;  %v4701_v50 = vadd.f32 %v4700_v43, %v3644_v42  ;;  %v4703_v52 = vpop.f32.mrb[22].mxu0 }
 0x150   : > { %v3647_v51 = vadd.f32 %v8966_v15, %v3646_v47  ;;  %v3648_v53 = vpop.f32.mrb[23].mxu1  ;;  %v4705_v55 = vpop.f32.mrb[23].mxu0 }
 0x151   : > { %8215 = vtanh.f32 %v4701_v50  ;;  %3858 = vmatmul.mubr.bf16.gmra.mrb[128].mxu1 %v7623_v45  ;;  %v7645_v45 = vld [vmem:[%s8820_s23 + $0x48c] ss:$16 sps:$4 sm:$0xff]  }
 0x152   : > { %v4704_v56 = vadd.f32 %v4703_v52, %v3647_v51  ;;  %4915 = vmatmul.mubr.bf16.gmra.mrb[128].mxu0 %v7624_v48  ;;  %3865 = vmatprep.mubr.bf16.mxu1 %v7625_v49 }
 0x153   : > { %v8212_v57 = vpop.eup %8211  ;;  %4922 = vmatprep.mubr.bf16.mxu0 %v7627_v54  ;;  %v7647_v54 = vld [vmem:[%s8820_s23 + $0x480] ss:$16 sps:$4 sm:$0xff]  }
 0x154   : > { %8217 = vtanh.f32 %v4704_v56  ;;  %5947 = vst [vmem:[%s8984_s29 + $0x40] sm:$0xff] %v8212_v57  ;;  %v3651_v58 = vpop.f32.mrb[24].mxu1  ;;  %v7648_v57 = vld [vmem:[%s8820_s23 + $0x488] ss:$16 sps:$4 sm:$0xff]  }
 0x155   : > { %v3652_v60 = vadd.f32 %v8966_v15, %v3651_v58  ;;  %v4708_v61 = vpop.f32.mrb[24].mxu0  ;;  %v3653_v62 = vpop.f32.mrb[25].mxu1  ;;  %v7649_v58 = vld [vmem:[%s8820_s23 + $0x4a4] ss:$16 sps:$4 sm:$0xff]  }
 0x156   : > { %v8214_v59 = vpop.eup %8213  ;;  %v4710_v0 = vpop.f32.mrb[25].mxu0 }
 0x157   : > { %5948 = vst [vmem:[%s8984_s29 + $0x48] sm:$0xff] %v8214_v59  ;;  %v3654_v1 = vpop.f32.mrb[26].mxu1  ;;  %v4709_v4 = vadd.f32 %v4708_v61, %v3652_v60  ;;  %v4711_v6 = vpop.f32.mrb[26].mxu0 }
 0x158   : > { %v3655_v5 = vadd.f32 %v8966_v15, %v3654_v1  ;;  %v3656_v7 = vpop.f32.mrb[27].mxu1  ;;  %v4713_v9 = vpop.f32.mrb[27].mxu0 }
 0x159   : > { %8219 = vtanh.f32 %v4709_v4  ;;  %3866 = vmatmul.mubr.bf16.gmra.mrb[132].mxu1 %v7629_v63  ;;  %v7651_v63 = vld [vmem:[%s8820_s23 + $0x4ac] ss:$16 sps:$4 sm:$0xff]  }
 0x15a   : > { %v4712_v10 = vadd.f32 %v4711_v6, %v3655_v5  ;;  %4923 = vmatmul.mubr.bf16.gmra.mrb[132].mxu0 %v7630_v2  ;;  %3873 = vmatprep.mubr.bf16.mxu1 %v7631_v3 }
 0x15b   : > { %v8216_v11 = vpop.eup %8215  ;;  %4930 = vmatprep.mubr.bf16.mxu0 %v7633_v8  ;;  %v7653_v8 = vld [vmem:[%s8820_s23 + $0x4a0] ss:$16 sps:$4 sm:$0xff]  }
 0x15c   : > { %8221 = vtanh.f32 %v4712_v10  ;;  %5949 = vst [vmem:[%s8984_s29 + $0x50] sm:$0xff] %v8216_v11  ;;  %v3659_v12 = vpop.f32.mrb[28].mxu1  ;;  %v7654_v11 = vld [vmem:[%s8820_s23 + $0x4a8] ss:$16 sps:$4 sm:$0xff]  }
 0x15d   : > { %v3660_v14 = vadd.f32 %v8966_v15, %v3659_v12  ;;  %v4716_v16 = vpop.f32.mrb[28].mxu0  ;;  %v3661_v17 = vpop.f32.mrb[29].mxu1  ;;  %v7655_v12 = vld [vmem:[%s8820_s23 + $0x4c4] ss:$16 sps:$4 sm:$0xff]  }
 0x15e   : > { %v8218_v13 = vpop.eup %8217  ;;  %v4718_v19 = vpop.f32.mrb[29].mxu0 }
 0x15f   : > { %5950 = vst [vmem:[%s8984_s29 + $0x58] sm:$0xff] %v8218_v13  ;;  %v3662_v20 = vpop.f32.mrb[30].mxu1  ;;  %v4717_v23 = vadd.f32 %v4716_v16, %v3660_v14  ;;  %v4719_v25 = vpop.f32.mrb[30].mxu0 }
 0x160   : > { %v3663_v24 = vadd.f32 %v8966_v15, %v3662_v20  ;;  %v3664_v26 = vpop.f32.mrb[31].mxu1  ;;  %v4721_v28 = vpop.f32.mrb[31].mxu0 }
 0x161   : > { %8223 = vtanh.f32 %v4717_v23  ;;  %3874 = vmatmul.mubr.bf16.gmra.mrb[136].mxu1 %v7635_v18  ;;  %v7657_v18 = vld [vmem:[%s8820_s23 + $0x4cc] ss:$16 sps:$4 sm:$0xff]  }
 0x162   : > { %v4720_v29 = vadd.f32 %v4719_v25, %v3663_v24  ;;  %4931 = vmatmul.mubr.bf16.gmra.mrb[136].mxu0 %v7636_v21  ;;  %3881 = vmatprep.mubr.bf16.mxu1 %v7637_v22 }
 0x163   : > { %v8220_v30 = vpop.eup %8219  ;;  %4938 = vmatprep.mubr.bf16.mxu0 %v7639_v27  ;;  %v7659_v27 = vld [vmem:[%s8820_s23 + $0x4c0] ss:$16 sps:$4 sm:$0xff]  }
 0x164   : > { %8225 = vtanh.f32 %v4720_v29  ;;  %5951 = vst [vmem:[%s8984_s29 + $0x60] sm:$0xff] %v8220_v30  ;;  %v3667_v31 = vpop.f32.mrb[32].mxu1  ;;  %v7660_v30 = vld [vmem:[%s8820_s23 + $0x4c8] ss:$16 sps:$4 sm:$0xff]  }
 0x165   : > { %v3668_v33 = vadd.f32 %v8966_v15, %v3667_v31  ;;  %v4724_v34 = vpop.f32.mrb[32].mxu0  ;;  %v3669_v35 = vpop.f32.mrb[33].mxu1  ;;  %v7661_v31 = vld [vmem:[%s8820_s23 + $0x4e4] ss:$16 sps:$4 sm:$0xff]  }
 0x166   : > { %v8222_v32 = vpop.eup %8221  ;;  %v4726_v37 = vpop.f32.mrb[33].mxu0 }
 0x167   : > { %5952 = vst [vmem:[%s8984_s29 + $0x68] sm:$0xff] %v8222_v32  ;;  %v3670_v38 = vpop.f32.mrb[34].mxu1  ;;  %v4725_v41 = vadd.f32 %v4724_v34, %v3668_v33  ;;  %v4727_v43 = vpop.f32.mrb[34].mxu0 }
 0x168   : > { %v3671_v42 = vadd.f32 %v8966_v15, %v3670_v38  ;;  %v3672_v44 = vpop.f32.mrb[35].mxu1  ;;  %v4729_v46 = vpop.f32.mrb[35].mxu0 }
 0x169   : > { %8227 = vtanh.f32 %v4725_v41  ;;  %3882 = vmatmul.mubr.bf16.gmra.mrb[140].mxu1 %v7641_v36  ;;  %v7663_v36 = vld [vmem:[%s8820_s23 + $0x4ec] ss:$16 sps:$4 sm:$0xff]  }
 0x16a   : > { %v4728_v47 = vadd.f32 %v4727_v43, %v3671_v42  ;;  %4939 = vmatmul.mubr.bf16.gmra.mrb[140].mxu0 %v7642_v39  ;;  %3889 = vmatprep.mubr.bf16.mxu1 %v7643_v40 }
 0x16b   : > { %v8224_v48 = vpop.eup %8223  ;;  %4946 = vmatprep.mubr.bf16.mxu0 %v7645_v45  ;;  %v7665_v45 = vld [vmem:[%s8820_s23 + $0x4e0] ss:$16 sps:$4 sm:$0xff]  }
 0x16c   : > { %8229 = vtanh.f32 %v4728_v47  ;;  %5953 = vst [vmem:[%s8984_s29 + $0x70] sm:$0xff] %v8224_v48  ;;  %v3675_v49 = vpop.f32.mrb[36].mxu1  ;;  %v7666_v48 = vld [vmem:[%s8820_s23 + $0x4e8] ss:$16 sps:$4 sm:$0xff]  }
 0x16d   : > { %v3676_v51 = vadd.f32 %v8966_v15, %v3675_v49  ;;  %v4732_v52 = vpop.f32.mrb[36].mxu0  ;;  %v3677_v53 = vpop.f32.mrb[37].mxu1  ;;  %v7667_v49 = vld [vmem:[%s8820_s23 + $0x504] ss:$16 sps:$4 sm:$0xff]  }
 0x16e   : > { %v8226_v50 = vpop.eup %8225  ;;  %v4734_v55 = vpop.f32.mrb[37].mxu0 }
 0x16f   : > { %5954 = vst [vmem:[%s8984_s29 + $0x78] sm:$0xff] %v8226_v50  ;;  %v3678_v56 = vpop.f32.mrb[38].mxu1  ;;  %v4733_v59 = vadd.f32 %v4732_v52, %v3676_v51  ;;  %v4735_v61 = vpop.f32.mrb[38].mxu0 }
 0x170   : > { %v3679_v60 = vadd.f32 %v8966_v15, %v3678_v56  ;;  %v3680_v62 = vpop.f32.mrb[39].mxu1  ;;  %v4737_v0 = vpop.f32.mrb[39].mxu0 }
 0x171   : > { %8231 = vtanh.f32 %v4733_v59  ;;  %3890 = vmatmul.mubr.bf16.gmra.mrb[144].mxu1 %v7647_v54  ;;  %v7669_v54 = vld [vmem:[%s8820_s23 + $0x50c] ss:$16 sps:$4 sm:$0xff]  }
 0x172   : > { %v4736_v1 = vadd.f32 %v4735_v61, %v3679_v60  ;;  %4947 = vmatmul.mubr.bf16.gmra.mrb[144].mxu0 %v7648_v57  ;;  %3897 = vmatprep.mubr.bf16.mxu1 %v7649_v58 }
 0x173   : > { %v8228_v2 = vpop.eup %8227  ;;  %4954 = vmatprep.mubr.bf16.mxu0 %v7651_v63  ;;  %v7671_v63 = vld [vmem:[%s8820_s23 + $0x500] ss:$16 sps:$4 sm:$0xff]  }
 0x174   : > { %8233 = vtanh.f32 %v4736_v1  ;;  %5955 = vst [vmem:[%s8984_s29 + $0x80] sm:$0xff] %v8228_v2  ;;  %v3683_v3 = vpop.f32.mrb[40].mxu1  ;;  %v7672_v2 = vld [vmem:[%s8820_s23 + $0x508] ss:$16 sps:$4 sm:$0xff]  }
 0x175   : > { %v3684_v5 = vadd.f32 %v8966_v15, %v3683_v3  ;;  %v4740_v6 = vpop.f32.mrb[40].mxu0  ;;  %v3685_v7 = vpop.f32.mrb[41].mxu1  ;;  %v7673_v3 = vld [vmem:[%s8820_s23 + $0x524] ss:$16 sps:$4 sm:$0xff]  }
 0x176   : > { %v8230_v4 = vpop.eup %8229  ;;  %v4742_v9 = vpop.f32.mrb[41].mxu0 }
 0x177   : > { %5956 = vst [vmem:[%s8984_s29 + $0x88] sm:$0xff] %v8230_v4  ;;  %v3686_v10 = vpop.f32.mrb[42].mxu1  ;;  %v4741_v13 = vadd.f32 %v4740_v6, %v3684_v5  ;;  %v4743_v16 = vpop.f32.mrb[42].mxu0 }
 0x178   : > { %v3687_v14 = vadd.f32 %v8966_v15, %v3686_v10  ;;  %v3688_v17 = vpop.f32.mrb[43].mxu1  ;;  %v4745_v19 = vpop.f32.mrb[43].mxu0 }
 0x179   : > { %8235 = vtanh.f32 %v4741_v13  ;;  %3898 = vmatmul.mubr.bf16.gmra.mrb[148].mxu1 %v7653_v8  ;;  %v7675_v8 = vld [vmem:[%s8820_s23 + $0x52c] ss:$16 sps:$4 sm:$0xff]  }
 0x17a   : > { %v4744_v20 = vadd.f32 %v4743_v16, %v3687_v14  ;;  %4955 = vmatmul.mubr.bf16.gmra.mrb[148].mxu0 %v7654_v11  ;;  %3905 = vmatprep.mubr.bf16.mxu1 %v7655_v12 }
 0x17b   : > { %v8232_v21 = vpop.eup %8231  ;;  %4962 = vmatprep.mubr.bf16.mxu0 %v7657_v18  ;;  %v7677_v18 = vld [vmem:[%s8820_s23 + $0x520] ss:$16 sps:$4 sm:$0xff]  }
 0x17c   : > { %8237 = vtanh.f32 %v4744_v20  ;;  %5957 = vst [vmem:[%s8984_s29 + $0x90] sm:$0xff] %v8232_v21  ;;  %v3691_v22 = vpop.f32.mrb[44].mxu1  ;;  %v7678_v21 = vld [vmem:[%s8820_s23 + $0x528] ss:$16 sps:$4 sm:$0xff]  }
 0x17d   : > { %v3692_v24 = vadd.f32 %v8966_v15, %v3691_v22  ;;  %v4748_v25 = vpop.f32.mrb[44].mxu0  ;;  %v3693_v26 = vpop.f32.mrb[45].mxu1  ;;  %v7679_v22 = vld [vmem:[%s8820_s23 + $0x544] ss:$16 sps:$4 sm:$0xff]  }
 0x17e   : > { %v8234_v23 = vpop.eup %8233  ;;  %v4750_v28 = vpop.f32.mrb[45].mxu0 }
 0x17f   : > { %5958 = vst [vmem:[%s8984_s29 + $0x98] sm:$0xff] %v8234_v23  ;;  %v3694_v29 = vpop.f32.mrb[46].mxu1  ;;  %v4749_v32 = vadd.f32 %v4748_v25, %v3692_v24  ;;  %v4751_v34 = vpop.f32.mrb[46].mxu0 }
 0x180   : > { %v3695_v33 = vadd.f32 %v8966_v15, %v3694_v29  ;;  %v3696_v35 = vpop.f32.mrb[47].mxu1  ;;  %v4753_v37 = vpop.f32.mrb[47].mxu0 }
 0x181   : > { %8239 = vtanh.f32 %v4749_v32  ;;  %3906 = vmatmul.mubr.bf16.gmra.mrb[152].mxu1 %v7659_v27  ;;  %v7681_v27 = vld [vmem:[%s8820_s23 + $0x54c] ss:$16 sps:$4 sm:$0xff]  }
 0x182   : > { %v4752_v38 = vadd.f32 %v4751_v34, %v3695_v33  ;;  %4963 = vmatmul.mubr.bf16.gmra.mrb[152].mxu0 %v7660_v30  ;;  %3913 = vmatprep.mubr.bf16.mxu1 %v7661_v31 }
 0x183   : > { %v8236_v39 = vpop.eup %8235  ;;  %4970 = vmatprep.mubr.bf16.mxu0 %v7663_v36  ;;  %v7683_v36 = vld [vmem:[%s8820_s23 + $0x540] ss:$16 sps:$4 sm:$0xff]  }
 0x184   : > { %8241 = vtanh.f32 %v4752_v38  ;;  %5959 = vst [vmem:[%s8984_s29 + $0xa0] sm:$0xff] %v8236_v39  ;;  %v3699_v40 = vpop.f32.mrb[48].mxu1  ;;  %v7684_v39 = vld [vmem:[%s8820_s23 + $0x548] ss:$16 sps:$4 sm:$0xff]  }
 0x185   : > { %v3700_v42 = vadd.f32 %v8966_v15, %v3699_v40  ;;  %v4756_v43 = vpop.f32.mrb[48].mxu0  ;;  %v3701_v44 = vpop.f32.mrb[49].mxu1  ;;  %v7685_v40 = vld [vmem:[%s8820_s23 + $0x564] ss:$16 sps:$4 sm:$0xff]  }
 0x186   : > { %v8238_v41 = vpop.eup %8237  ;;  %v4758_v46 = vpop.f32.mrb[49].mxu0 }
 0x187   : > { %5960 = vst [vmem:[%s8984_s29 + $0xa8] sm:$0xff] %v8238_v41  ;;  %v3702_v47 = vpop.f32.mrb[50].mxu1  ;;  %v4757_v50 = vadd.f32 %v4756_v43, %v3700_v42  ;;  %v4759_v52 = vpop.f32.mrb[50].mxu0 }
 0x188   : > { %v3703_v51 = vadd.f32 %v8966_v15, %v3702_v47  ;;  %v3704_v53 = vpop.f32.mrb[51].mxu1  ;;  %v4761_v55 = vpop.f32.mrb[51].mxu0 }
 0x189   : > { %8243 = vtanh.f32 %v4757_v50  ;;  %3914 = vmatmul.mubr.bf16.gmra.mrb[156].mxu1 %v7665_v45  ;;  %v7687_v45 = vld [vmem:[%s8820_s23 + $0x56c] ss:$16 sps:$4 sm:$0xff]  }
 0x18a   : > { %v4760_v56 = vadd.f32 %v4759_v52, %v3703_v51  ;;  %4971 = vmatmul.mubr.bf16.gmra.mrb[156].mxu0 %v7666_v48  ;;  %3921 = vmatprep.mubr.bf16.mxu1 %v7667_v49 }
 0x18b   : > { %v8240_v57 = vpop.eup %8239  ;;  %4978 = vmatprep.mubr.bf16.mxu0 %v7669_v54  ;;  %v7689_v54 = vld [vmem:[%s8820_s23 + $0x560] ss:$16 sps:$4 sm:$0xff]  }
 0x18c   : > { %8245 = vtanh.f32 %v4760_v56  ;;  %5961 = vst [vmem:[%s8984_s29 + $0xb0] sm:$0xff] %v8240_v57  ;;  %v3707_v58 = vpop.f32.mrb[52].mxu1  ;;  %v7690_v57 = vld [vmem:[%s8820_s23 + $0x568] ss:$16 sps:$4 sm:$0xff]  }
 0x18d   : > { %v3708_v60 = vadd.f32 %v8966_v15, %v3707_v58  ;;  %v4764_v61 = vpop.f32.mrb[52].mxu0  ;;  %v3709_v62 = vpop.f32.mrb[53].mxu1  ;;  %v7691_v58 = vld [vmem:[%s8820_s23 + $0x584] ss:$16 sps:$4 sm:$0xff]  }
 0x18e   : > { %v8242_v59 = vpop.eup %8241  ;;  %v4766_v0 = vpop.f32.mrb[53].mxu0 }
 0x18f   : > { %5962 = vst [vmem:[%s8984_s29 + $0xb8] sm:$0xff] %v8242_v59  ;;  %v3710_v1 = vpop.f32.mrb[54].mxu1  ;;  %v4765_v4 = vadd.f32 %v4764_v61, %v3708_v60  ;;  %v4767_v6 = vpop.f32.mrb[54].mxu0 }
 0x190   : > { %v3711_v5 = vadd.f32 %v8966_v15, %v3710_v1  ;;  %v3712_v7 = vpop.f32.mrb[55].mxu1  ;;  %v4769_v9 = vpop.f32.mrb[55].mxu0 }
 0x191   : > { %8247 = vtanh.f32 %v4765_v4  ;;  %3922 = vmatmul.mubr.bf16.gmra.mrb[160].mxu1 %v7671_v63  ;;  %v7693_v63 = vld [vmem:[%s8820_s23 + $0x58c] ss:$16 sps:$4 sm:$0xff]  }
 0x192   : > { %v4768_v10 = vadd.f32 %v4767_v6, %v3711_v5  ;;  %4979 = vmatmul.mubr.bf16.gmra.mrb[160].mxu0 %v7672_v2  ;;  %3929 = vmatprep.mubr.bf16.mxu1 %v7673_v3 }
 0x193   : > { %v8244_v11 = vpop.eup %8243  ;;  %4986 = vmatprep.mubr.bf16.mxu0 %v7675_v8  ;;  %v7695_v8 = vld [vmem:[%s8820_s23 + $0x580] ss:$16 sps:$4 sm:$0xff]  }
 0x194   : > { %8249 = vtanh.f32 %v4768_v10  ;;  %5963 = vst [vmem:[%s8984_s29 + $0xc0] sm:$0xff] %v8244_v11  ;;  %v3715_v12 = vpop.f32.mrb[56].mxu1  ;;  %v7696_v11 = vld [vmem:[%s8820_s23 + $0x588] ss:$16 sps:$4 sm:$0xff]  }
 0x195   : > { %v3716_v14 = vadd.f32 %v8966_v15, %v3715_v12  ;;  %v4772_v16 = vpop.f32.mrb[56].mxu0  ;;  %v3717_v17 = vpop.f32.mrb[57].mxu1  ;;  %v7697_v12 = vld [vmem:[%s8820_s23 + $0x5a4] ss:$16 sps:$4 sm:$0xff]  }
 0x196   : > { %v8246_v13 = vpop.eup %8245  ;;  %v4774_v19 = vpop.f32.mrb[57].mxu0 }
 0x197   : > { %5964 = vst [vmem:[%s8984_s29 + $0xc8] sm:$0xff] %v8246_v13  ;;  %v3718_v20 = vpop.f32.mrb[58].mxu1  ;;  %v4773_v23 = vadd.f32 %v4772_v16, %v3716_v14  ;;  %v4775_v25 = vpop.f32.mrb[58].mxu0 }
 0x198   : > { %v3719_v24 = vadd.f32 %v8966_v15, %v3718_v20  ;;  %v3720_v26 = vpop.f32.mrb[59].mxu1  ;;  %v4777_v28 = vpop.f32.mrb[59].mxu0 }
 0x199   : > { %8251 = vtanh.f32 %v4773_v23  ;;  %3930 = vmatmul.mubr.bf16.gmra.mrb[164].mxu1 %v7677_v18  ;;  %v7699_v18 = vld [vmem:[%s8820_s23 + $0x5ac] ss:$16 sps:$4 sm:$0xff]  }
 0x19a   : > { %v4776_v29 = vadd.f32 %v4775_v25, %v3719_v24  ;;  %4987 = vmatmul.mubr.bf16.gmra.mrb[164].mxu0 %v7678_v21  ;;  %3937 = vmatprep.mubr.bf16.mxu1 %v7679_v22 }
 0x19b   : > { %v8248_v30 = vpop.eup %8247  ;;  %4994 = vmatprep.mubr.bf16.mxu0 %v7681_v27  ;;  %v7701_v27 = vld [vmem:[%s8820_s23 + $0x5a0] ss:$16 sps:$4 sm:$0xff]  }
 0x19c   : > { %8253 = vtanh.f32 %v4776_v29  ;;  %5965 = vst [vmem:[%s8984_s29 + $0xd0] sm:$0xff] %v8248_v30  ;;  %v3723_v31 = vpop.f32.mrb[60].mxu1  ;;  %v7702_v30 = vld [vmem:[%s8820_s23 + $0x5a8] ss:$16 sps:$4 sm:$0xff]  }
 0x19d   : > { %v3724_v33 = vadd.f32 %v8966_v15, %v3723_v31  ;;  %v4780_v34 = vpop.f32.mrb[60].mxu0  ;;  %v3725_v35 = vpop.f32.mrb[61].mxu1  ;;  %v7703_v31 = vld [vmem:[%s8820_s23 + $0x5c4] ss:$16 sps:$4 sm:$0xff]  }
 0x19e   : > { %v8250_v32 = vpop.eup %8249  ;;  %v4782_v37 = vpop.f32.mrb[61].mxu0 }
 0x19f   : > { %5966 = vst [vmem:[%s8984_s29 + $0xd8] sm:$0xff] %v8250_v32  ;;  %v3726_v38 = vpop.f32.mrb[62].mxu1  ;;  %v4781_v41 = vadd.f32 %v4780_v34, %v3724_v33  ;;  %v4783_v43 = vpop.f32.mrb[62].mxu0 }
 0x1a0   : > { %v3727_v42 = vadd.f32 %v8966_v15, %v3726_v38  ;;  %v3728_v44 = vpop.f32.mrb[63].mxu1  ;;  %v4785_v46 = vpop.f32.mrb[63].mxu0 }
 0x1a1   : > { %8255 = vtanh.f32 %v4781_v41  ;;  %3938 = vmatmul.mubr.bf16.gmra.mrb[168].mxu1 %v7683_v36  ;;  %v7705_v36 = vld [vmem:[%s8820_s23 + $0x5cc] ss:$16 sps:$4 sm:$0xff]  }
 0x1a2   : > { %v4784_v47 = vadd.f32 %v4783_v43, %v3727_v42  ;;  %4995 = vmatmul.mubr.bf16.gmra.mrb[168].mxu0 %v7684_v39  ;;  %3945 = vmatprep.mubr.bf16.mxu1 %v7685_v40 }
 0x1a3   : > { %v8252_v48 = vpop.eup %8251  ;;  %5002 = vmatprep.mubr.bf16.mxu0 %v7687_v45  ;;  %v7707_v45 = vld [vmem:[%s8820_s23 + $0x5c0] ss:$16 sps:$4 sm:$0xff]  }
 0x1a4   : > { %8257 = vtanh.f32 %v4784_v47  ;;  %5967 = vst [vmem:[%s8984_s29 + $0xe0] sm:$0xff] %v8252_v48  ;;  %v3731_v49 = vpop.f32.mrb[64].mxu1  ;;  %v7708_v48 = vld [vmem:[%s8820_s23 + $0x5c8] ss:$16 sps:$4 sm:$0xff]  }
 0x1a5   : > { %v3732_v51 = vadd.f32 %v8966_v15, %v3731_v49  ;;  %v4788_v52 = vpop.f32.mrb[64].mxu0  ;;  %v3733_v53 = vpop.f32.mrb[65].mxu1  ;;  %v7709_v49 = vld [vmem:[%s8820_s23 + $0x5e4] ss:$16 sps:$4 sm:$0xff]  }
 0x1a6   : > { %v8254_v50 = vpop.eup %8253  ;;  %v4790_v55 = vpop.f32.mrb[65].mxu0 }
 0x1a7   : > { %5968 = vst [vmem:[%s8984_s29 + $0xe8] sm:$0xff] %v8254_v50  ;;  %v3734_v56 = vpop.f32.mrb[66].mxu1  ;;  %v4789_v59 = vadd.f32 %v4788_v52, %v3732_v51  ;;  %v4791_v61 = vpop.f32.mrb[66].mxu0 }
 0x1a8   : > { %v3735_v60 = vadd.f32 %v8966_v15, %v3734_v56  ;;  %v3736_v62 = vpop.f32.mrb[67].mxu1  ;;  %v4793_v0 = vpop.f32.mrb[67].mxu0 }
 0x1a9   : > { %8259 = vtanh.f32 %v4789_v59  ;;  %3946 = vmatmul.mubr.bf16.gmra.mrb[172].mxu1 %v7689_v54  ;;  %v7711_v54 = vld [vmem:[%s8820_s23 + $0x5ec] ss:$16 sps:$4 sm:$0xff]   ;;  %v9134_v59 = vld [vmem:[%s9924_s2] ss:$0 sm:$0xff] }
 0x1aa   : > { %v4792_v1 = vadd.f32 %v4791_v61, %v3735_v60  ;;  %5003 = vmatmul.mubr.bf16.gmra.mrb[172].mxu0 %v7690_v57  ;;  %3953 = vmatprep.mubr.bf16.mxu1 %v7691_v58 }
 0x1ab   : > { %v8256_v2 = vpop.eup %8255  ;;  %5010 = vmatprep.mubr.bf16.mxu0 %v7693_v63  ;;  %v7713_v63 = vld [vmem:[%s8820_s23 + $0x5e0] ss:$16 sps:$4 sm:$0xff]  }
 0x1ac   : > { %8261 = vtanh.f32 %v4792_v1  ;;  %5969 = vst [vmem:[%s8984_s29 + $0xf0] sm:$0xff] %v8256_v2  ;;  %v3739_v3 = vpop.f32.mrb[68].mxu1  ;;  %v7714_v2 = vld [vmem:[%s8820_s23 + $0x5e8] ss:$16 sps:$4 sm:$0xff]  }
 0x1ad   : > { %v3740_v5 = vadd.f32 %v8966_v15, %v3739_v3  ;;  %v4796_v6 = vpop.f32.mrb[68].mxu0  ;;  %v3741_v7 = vpop.f32.mrb[69].mxu1  ;;  %v7715_v3 = vld [vmem:[%s8820_s23 + $0x604] ss:$16 sps:$4 sm:$0xff]  }
 0x1ae   : > { %v8258_v4 = vpop.eup %8257  ;;  %v4798_v9 = vpop.f32.mrb[69].mxu0 }
 0x1af   : > { %5970 = vst [vmem:[%s8984_s29 + $0xf8] sm:$0xff] %v8258_v4  ;;  %v3742_v10 = vpop.f32.mrb[70].mxu1  ;;  %v4797_v13 = vadd.f32 %v4796_v6, %v3740_v5  ;;  %v4799_v16 = vpop.f32.mrb[70].mxu0 }
 0x1b0   : > { %v3743_v14 = vadd.f32 %v8966_v15, %v3742_v10  ;;  %v3744_v17 = vpop.f32.mrb[71].mxu1  ;;  %v4801_v19 = vpop.f32.mrb[71].mxu0 }
 0x1b1   : > { %8263 = vtanh.f32 %v4797_v13  ;;  %3954 = vmatmul.mubr.bf16.gmra.mrb[176].mxu1 %v7695_v8  ;;  %v7717_v8 = vld [vmem:[%s8820_s23 + $0x60c] ss:$16 sps:$4 sm:$0xff]  }
 0x1b2   : > { %v4800_v20 = vadd.f32 %v4799_v16, %v3743_v14  ;;  %5011 = vmatmul.mubr.bf16.gmra.mrb[176].mxu0 %v7696_v11  ;;  %3961 = vmatprep.mubr.bf16.mxu1 %v7697_v12 }
 0x1b3   : > { %v8260_v21 = vpop.eup %8259  ;;  %5018 = vmatprep.mubr.bf16.mxu0 %v7699_v18  ;;  %v7719_v18 = vld [vmem:[%s8820_s23 + $0x600] ss:$16 sps:$4 sm:$0xff]  }
 0x1b4   : > { %8265 = vtanh.f32 %v4800_v20  ;;  %5971 = vst [vmem:[%s8984_s29 + $0x100] sm:$0xff] %v8260_v21  ;;  %v3747_v22 = vpop.f32.mrb[72].mxu1  ;;  %v7720_v21 = vld [vmem:[%s8820_s23 + $0x608] ss:$16 sps:$4 sm:$0xff]  }
 0x1b5   : > { %v3748_v24 = vadd.f32 %v8966_v15, %v3747_v22  ;;  %v4804_v25 = vpop.f32.mrb[72].mxu0  ;;  %v3749_v26 = vpop.f32.mrb[73].mxu1  ;;  %v7721_v22 = vld [vmem:[%s8820_s23 + $0x624] ss:$16 sps:$4 sm:$0xff]  }
 0x1b6   : > { %v8262_v23 = vpop.eup %8261  ;;  %v4806_v28 = vpop.f32.mrb[73].mxu0 }
 0x1b7   : > { %5972 = vst [vmem:[%s8984_s29 + $0x108] sm:$0xff] %v8262_v23  ;;  %v3750_v29 = vpop.f32.mrb[74].mxu1  ;;  %v4805_v32 = vadd.f32 %v4804_v25, %v3748_v24  ;;  %v4807_v34 = vpop.f32.mrb[74].mxu0 }
 0x1b8   : > { %v3751_v33 = vadd.f32 %v8966_v15, %v3750_v29  ;;  %v3752_v35 = vpop.f32.mrb[75].mxu1  ;;  %v4809_v37 = vpop.f32.mrb[75].mxu0 }
 0x1b9   : > { %8267 = vtanh.f32 %v4805_v32  ;;  %3962 = vmatmul.mubr.bf16.gmra.mrb[180].mxu1 %v7701_v27  ;;  %v7723_v27 = vld [vmem:[%s8820_s23 + $0x62c] ss:$16 sps:$4 sm:$0xff]  }
 0x1ba   : > { %v4808_v38 = vadd.f32 %v4807_v34, %v3751_v33  ;;  %5019 = vmatmul.mubr.bf16.gmra.mrb[180].mxu0 %v7702_v30  ;;  %3969 = vmatprep.mubr.bf16.mxu1 %v7703_v31 }
 0x1bb   : > { %v8264_v39 = vpop.eup %8263  ;;  %5026 = vmatprep.mubr.bf16.mxu0 %v7705_v36  ;;  %v7725_v36 = vld [vmem:[%s8820_s23 + $0x620] ss:$16 sps:$4 sm:$0xff]  }
 0x1bc   : > { %8269 = vtanh.f32 %v4808_v38  ;;  %5973 = vst [vmem:[%s8984_s29 + $0x110] sm:$0xff] %v8264_v39  ;;  %v3755_v40 = vpop.f32.mrb[76].mxu1  ;;  %v7726_v39 = vld [vmem:[%s8820_s23 + $0x628] ss:$16 sps:$4 sm:$0xff]  }
 0x1bd   : > { %v3756_v42 = vadd.f32 %v8966_v15, %v3755_v40  ;;  %v4812_v43 = vpop.f32.mrb[76].mxu0  ;;  %v3757_v44 = vpop.f32.mrb[77].mxu1  ;;  %v7727_v40 = vld [vmem:[%s8820_s23 + $0x644] ss:$16 sps:$4 sm:$0xff]  }
 0x1be   : > { %v8266_v41 = vpop.eup %8265  ;;  %v4814_v46 = vpop.f32.mrb[77].mxu0 }
 0x1bf   : > { %5974 = vst [vmem:[%s8984_s29 + $0x118] sm:$0xff] %v8266_v41  ;;  %v3758_v47 = vpop.f32.mrb[78].mxu1  ;;  %v4813_v50 = vadd.f32 %v4812_v43, %v3756_v42  ;;  %v4815_v52 = vpop.f32.mrb[78].mxu0 }
 0x1c0   : > { %v3759_v51 = vadd.f32 %v8966_v15, %v3758_v47  ;;  %v3760_v53 = vpop.f32.mrb[79].mxu1  ;;  %v4817_v55 = vpop.f32.mrb[79].mxu0 }
 0x1c1   : > { %8271 = vtanh.f32 %v4813_v50  ;;  %3970 = vmatmul.mubr.bf16.gmra.mrb[184].mxu1 %v7707_v45  ;;  %v7729_v45 = vld [vmem:[%s8820_s23 + $0x64c] ss:$16 sps:$4 sm:$0xff]  }
 0x1c2   : > { %v4816_v56 = vadd.f32 %v4815_v52, %v3759_v51  ;;  %5027 = vmatmul.mubr.bf16.gmra.mrb[184].mxu0 %v7708_v48  ;;  %3977 = vmatprep.mubr.bf16.mxu1 %v7709_v49 }
 0x1c3   : > { %v8268_v57 = vpop.eup %8267  ;;  %5034 = vmatprep.mubr.bf16.mxu0 %v7711_v54  ;;  %v7731_v54 = vld [vmem:[%s8820_s23 + $0x640] ss:$16 sps:$4 sm:$0xff]  }
 0x1c4   : > { %8273 = vtanh.f32 %v4816_v56  ;;  %5975 = vst [vmem:[%s8984_s29 + $0x120] sm:$0xff] %v8268_v57  ;;  %v3763_v58 = vpop.f32.mrb[80].mxu1  ;;  %v7732_v57 = vld [vmem:[%s8820_s23 + $0x648] ss:$16 sps:$4 sm:$0xff]  }
 0x1c5   : > { %v3764_v60 = vadd.f32 %v9134_v59, %v3763_v58  ;;  %v4820_v61 = vpop.f32.mrb[80].mxu0  ;;  %v3765_v62 = vpop.f32.mrb[81].mxu1  ;;  %v7733_v58 = vld [vmem:[%s8820_s23 + $0x664] ss:$16 sps:$4 sm:$0xff]  }
 0x1c6   : > { %v8270_v15 = vpop.eup %8269  ;;  %v4822_v0 = vpop.f32.mrb[81].mxu0 }
 0x1c7   : > { %5976 = vst [vmem:[%s8984_s29 + $0x128] sm:$0xff] %v8270_v15  ;;  %v3766_v1 = vpop.f32.mrb[82].mxu1  ;;  %v4821_v4 = vadd.f32 %v4820_v61, %v3764_v60  ;;  %v4823_v6 = vpop.f32.mrb[82].mxu0 }
 0x1c8   : > { %v3767_v5 = vadd.f32 %v9134_v59, %v3766_v1  ;;  %v3768_v7 = vpop.f32.mrb[83].mxu1  ;;  %v4825_v9 = vpop.f32.mrb[83].mxu0 }
 0x1c9   : > { %8275 = vtanh.f32 %v4821_v4  ;;  %3978 = vmatmul.mubr.bf16.gmra.mrb[188].mxu1 %v7713_v63  ;;  %v7735_v63 = vld [vmem:[%s8820_s23 + $0x66c] ss:$16 sps:$4 sm:$0xff]  }
 0x1ca   : > { %v4824_v10 = vadd.f32 %v4823_v6, %v3767_v5  ;;  %5035 = vmatmul.mubr.bf16.gmra.mrb[188].mxu0 %v7714_v2  ;;  %3985 = vmatprep.mubr.bf16.mxu1 %v7715_v3 }
 0x1cb   : > { %v8272_v11 = vpop.eup %8271  ;;  %5042 = vmatprep.mubr.bf16.mxu0 %v7717_v8  ;;  %v7737_v8 = vld [vmem:[%s8820_s23 + $0x660] ss:$16 sps:$4 sm:$0xff]  }
 0x1cc   : > { %8277 = vtanh.f32 %v4824_v10  ;;  %5977 = vst [vmem:[%s8984_s29 + $0x130] sm:$0xff] %v8272_v11  ;;  %v3771_v12 = vpop.f32.mrb[84].mxu1  ;;  %v7738_v11 = vld [vmem:[%s8820_s23 + $0x668] ss:$16 sps:$4 sm:$0xff]  }
 0x1cd   : > { %v3772_v14 = vadd.f32 %v9134_v59, %v3771_v12  ;;  %v4828_v16 = vpop.f32.mrb[84].mxu0  ;;  %v3773_v17 = vpop.f32.mrb[85].mxu1  ;;  %v7739_v12 = vld [vmem:[%s8820_s23 + $0x684] ss:$16 sps:$4 sm:$0xff]  }
 0x1ce   : > { %v8274_v13 = vpop.eup %8273  ;;  %v4830_v19 = vpop.f32.mrb[85].mxu0 }
 0x1cf   : > { %5978 = vst [vmem:[%s8984_s29 + $0x138] sm:$0xff] %v8274_v13  ;;  %v3774_v20 = vpop.f32.mrb[86].mxu1  ;;  %v4829_v23 = vadd.f32 %v4828_v16, %v3772_v14  ;;  %v4831_v25 = vpop.f32.mrb[86].mxu0 }
 0x1d0   : > { %v3775_v24 = vadd.f32 %v9134_v59, %v3774_v20  ;;  %v3776_v26 = vpop.f32.mrb[87].mxu1  ;;  %v4833_v28 = vpop.f32.mrb[87].mxu0 }
 0x1d1   : > { %8279 = vtanh.f32 %v4829_v23  ;;  %3986 = vmatmul.mubr.bf16.gmra.mrb[192].mxu1 %v7719_v18  ;;  %v7741_v18 = vld [vmem:[%s8820_s23 + $0x68c] ss:$16 sps:$4 sm:$0xff]  }
 0x1d2   : > { %v4832_v29 = vadd.f32 %v4831_v25, %v3775_v24  ;;  %5043 = vmatmul.mubr.bf16.gmra.mrb[192].mxu0 %v7720_v21  ;;  %3993 = vmatprep.mubr.bf16.mxu1 %v7721_v22 }
 0x1d3   : > { %v8276_v30 = vpop.eup %8275  ;;  %5050 = vmatprep.mubr.bf16.mxu0 %v7723_v27  ;;  %v7743_v27 = vld [vmem:[%s8820_s23 + $0x680] ss:$16 sps:$4 sm:$0xff]  }
 0x1d4   : > { %8281 = vtanh.f32 %v4832_v29  ;;  %5979 = vst [vmem:[%s8984_s29 + $0x140] sm:$0xff] %v8276_v30  ;;  %v3779_v31 = vpop.f32.mrb[88].mxu1  ;;  %v7744_v30 = vld [vmem:[%s8820_s23 + $0x688] ss:$16 sps:$4 sm:$0xff]  }
 0x1d5   : > { %v3780_v33 = vadd.f32 %v9134_v59, %v3779_v31  ;;  %v4836_v34 = vpop.f32.mrb[88].mxu0  ;;  %v3781_v35 = vpop.f32.mrb[89].mxu1  ;;  %v7745_v31 = vld [vmem:[%s8820_s23 + $0x6a4] ss:$16 sps:$4 sm:$0xff]  }
 0x1d6   : > { %v8278_v32 = vpop.eup %8277  ;;  %v4838_v37 = vpop.f32.mrb[89].mxu0 }
 0x1d7   : > { %5980 = vst [vmem:[%s8984_s29 + $0x148] sm:$0xff] %v8278_v32  ;;  %v3782_v38 = vpop.f32.mrb[90].mxu1  ;;  %v4837_v41 = vadd.f32 %v4836_v34, %v3780_v33  ;;  %v4839_v43 = vpop.f32.mrb[90].mxu0 }
 0x1d8   : > { %v3783_v42 = vadd.f32 %v9134_v59, %v3782_v38  ;;  %v3784_v44 = vpop.f32.mrb[91].mxu1  ;;  %v4841_v46 = vpop.f32.mrb[91].mxu0 }
 0x1d9   : > { %8283 = vtanh.f32 %v4837_v41  ;;  %3994 = vmatmul.mubr.bf16.gmra.mrb[196].mxu1 %v7725_v36  ;;  %v7747_v36 = vld [vmem:[%s8820_s23 + $0x6ac] ss:$16 sps:$4 sm:$0xff]  }
 0x1da   : > { %v4840_v47 = vadd.f32 %v4839_v43, %v3783_v42  ;;  %5051 = vmatmul.mubr.bf16.gmra.mrb[196].mxu0 %v7726_v39  ;;  %4001 = vmatprep.mubr.bf16.mxu1 %v7727_v40 }
 0x1db   : > { %v8280_v48 = vpop.eup %8279  ;;  %5058 = vmatprep.mubr.bf16.mxu0 %v7729_v45  ;;  %v7749_v45 = vld [vmem:[%s8820_s23 + $0x6a0] ss:$16 sps:$4 sm:$0xff]  }
 0x1dc   : > { %8285 = vtanh.f32 %v4840_v47  ;;  %5981 = vst [vmem:[%s8984_s29 + $0x150] sm:$0xff] %v8280_v48  ;;  %v3787_v49 = vpop.f32.mrb[92].mxu1  ;;  %v7750_v48 = vld [vmem:[%s8820_s23 + $0x6a8] ss:$16 sps:$4 sm:$0xff]  }
 0x1dd   : > { %v3788_v51 = vadd.f32 %v9134_v59, %v3787_v49  ;;  %v4844_v52 = vpop.f32.mrb[92].mxu0  ;;  %v3789_v53 = vpop.f32.mrb[93].mxu1  ;;  %v7751_v49 = vld [vmem:[%s8820_s23 + $0x6c4] ss:$16 sps:$4 sm:$0xff]  }
 0x1de   : > { %v8282_v50 = vpop.eup %8281  ;;  %v4846_v55 = vpop.f32.mrb[93].mxu0 }
 0x1df   : > { %5982 = vst [vmem:[%s8984_s29 + $0x158] sm:$0xff] %v8282_v50  ;;  %v3790_v56 = vpop.f32.mrb[94].mxu1  ;;  %v4845_v15 = vadd.f32 %v4844_v52, %v3788_v51  ;;  %v4847_v61 = vpop.f32.mrb[94].mxu0 }
 0x1e0   : > { %v3791_v60 = vadd.f32 %v9134_v59, %v3790_v56  ;;  %v3792_v62 = vpop.f32.mrb[95].mxu1  ;;  %v4849_v0 = vpop.f32.mrb[95].mxu0 }
 0x1e1   : > { %8287 = vtanh.f32 %v4845_v15  ;;  %4002 = vmatmul.mubr.bf16.gmra.mrb[200].mxu1 %v7731_v54  ;;  %v7753_v54 = vld [vmem:[%s8820_s23 + $0x6cc] ss:$16 sps:$4 sm:$0xff]  }
 0x1e2   : > { %v4848_v1 = vadd.f32 %v4847_v61, %v3791_v60  ;;  %5059 = vmatmul.mubr.bf16.gmra.mrb[200].mxu0 %v7732_v57  ;;  %4009 = vmatprep.mubr.bf16.mxu1 %v7733_v58 }
 0x1e3   : > { %v8284_v2 = vpop.eup %8283  ;;  %5066 = vmatprep.mubr.bf16.mxu0 %v7735_v63  ;;  %v7755_v63 = vld [vmem:[%s8820_s23 + $0x6c0] ss:$16 sps:$4 sm:$0xff]  }
 0x1e4   : > { %8289 = vtanh.f32 %v4848_v1  ;;  %5983 = vst [vmem:[%s8984_s29 + $0x160] sm:$0xff] %v8284_v2  ;;  %v3795_v3 = vpop.f32.mrb[96].mxu1  ;;  %v7756_v2 = vld [vmem:[%s8820_s23 + $0x6c8] ss:$16 sps:$4 sm:$0xff]  }
 0x1e5   : > { %v3796_v5 = vadd.f32 %v9134_v59, %v3795_v3  ;;  %v4852_v6 = vpop.f32.mrb[96].mxu0  ;;  %v3797_v7 = vpop.f32.mrb[97].mxu1  ;;  %v7757_v3 = vld [vmem:[%s8820_s23 + $0x6e4] ss:$16 sps:$4 sm:$0xff]  }
 0x1e6   : > { %v8286_v4 = vpop.eup %8285  ;;  %v4854_v9 = vpop.f32.mrb[97].mxu0 }
 0x1e7   : > { %5984 = vst [vmem:[%s8984_s29 + $0x168] sm:$0xff] %v8286_v4  ;;  %v3798_v10 = vpop.f32.mrb[98].mxu1  ;;  %v4853_v13 = vadd.f32 %v4852_v6, %v3796_v5  ;;  %v4855_v16 = vpop.f32.mrb[98].mxu0 }
 0x1e8   : > { %v3799_v14 = vadd.f32 %v9134_v59, %v3798_v10  ;;  %v3800_v17 = vpop.f32.mrb[99].mxu1  ;;  %v4857_v19 = vpop.f32.mrb[99].mxu0 }
 0x1e9   : > { %8291 = vtanh.f32 %v4853_v13  ;;  %4010 = vmatmul.mubr.bf16.gmra.mrb[204].mxu1 %v7737_v8  ;;  %v7759_v8 = vld [vmem:[%s8820_s23 + $0x6ec] ss:$16 sps:$4 sm:$0xff]  }
 0x1ea   : > { %v4856_v20 = vadd.f32 %v4855_v16, %v3799_v14  ;;  %5067 = vmatmul.mubr.bf16.gmra.mrb[204].mxu0 %v7738_v11  ;;  %4017 = vmatprep.mubr.bf16.mxu1 %v7739_v12 }
 0x1eb   : > { %v8288_v21 = vpop.eup %8287  ;;  %5074 = vmatprep.mubr.bf16.mxu0 %v7741_v18  ;;  %v7761_v18 = vld [vmem:[%s8820_s23 + $0x6e0] ss:$16 sps:$4 sm:$0xff]  }
 0x1ec   : > { %8293 = vtanh.f32 %v4856_v20  ;;  %5985 = vst [vmem:[%s8984_s29 + $0x170] sm:$0xff] %v8288_v21  ;;  %v3803_v22 = vpop.f32.mrb[100].mxu1  ;;  %v7762_v21 = vld [vmem:[%s8820_s23 + $0x6e8] ss:$16 sps:$4 sm:$0xff]  }
 0x1ed   : > { %v3804_v24 = vadd.f32 %v9134_v59, %v3803_v22  ;;  %v4860_v25 = vpop.f32.mrb[100].mxu0  ;;  %v3805_v26 = vpop.f32.mrb[101].mxu1  ;;  %v7763_v22 = vld [vmem:[%s8820_s23 + $0x704] ss:$16 sps:$4 sm:$0xff]  }
 0x1ee   : > { %v8290_v23 = vpop.eup %8289  ;;  %v4862_v28 = vpop.f32.mrb[101].mxu0 }
 0x1ef   : > { %5986 = vst [vmem:[%s8984_s29 + $0x178] sm:$0xff] %v8290_v23  ;;  %v3806_v29 = vpop.f32.mrb[102].mxu1  ;;  %v4861_v32 = vadd.f32 %v4860_v25, %v3804_v24  ;;  %v4863_v34 = vpop.f32.mrb[102].mxu0 }
 0x1f0   : > { %v3807_v33 = vadd.f32 %v9134_v59, %v3806_v29  ;;  %v3808_v35 = vpop.f32.mrb[103].mxu1  ;;  %v4865_v37 = vpop.f32.mrb[103].mxu0 }
 0x1f1   : > { %8295 = vtanh.f32 %v4861_v32  ;;  %4018 = vmatmul.mubr.bf16.gmra.mrb[208].mxu1 %v7743_v27  ;;  %v7765_v27 = vld [vmem:[%s8820_s23 + $0x70c] ss:$16 sps:$4 sm:$0xff]  }
 0x1f2   : > { %v4864_v38 = vadd.f32 %v4863_v34, %v3807_v33  ;;  %5075 = vmatmul.mubr.bf16.gmra.mrb[208].mxu0 %v7744_v30  ;;  %4025 = vmatprep.mubr.bf16.mxu1 %v7745_v31 }
 0x1f3   : > { %v8292_v39 = vpop.eup %8291  ;;  %5082 = vmatprep.mubr.bf16.mxu0 %v7747_v36  ;;  %v7767_v36 = vld [vmem:[%s8820_s23 + $0x700] ss:$16 sps:$4 sm:$0xff]  }
 0x1f4   : > { %8297 = vtanh.f32 %v4864_v38  ;;  %5987 = vst [vmem:[%s8984_s29 + $0x180] sm:$0xff] %v8292_v39  ;;  %v3811_v40 = vpop.f32.mrb[104].mxu1  ;;  %v7768_v39 = vld [vmem:[%s8820_s23 + $0x708] ss:$16 sps:$4 sm:$0xff]  }
 0x1f5   : > { %v3812_v42 = vadd.f32 %v9134_v59, %v3811_v40  ;;  %v4868_v43 = vpop.f32.mrb[104].mxu0  ;;  %v3813_v44 = vpop.f32.mrb[105].mxu1  ;;  %v7769_v40 = vld [vmem:[%s8820_s23 + $0x724] ss:$16 sps:$4 sm:$0xff]  }
 0x1f6   : > { %v8294_v41 = vpop.eup %8293  ;;  %v4870_v46 = vpop.f32.mrb[105].mxu0 }
 0x1f7   : > { %5988 = vst [vmem:[%s8984_s29 + $0x188] sm:$0xff] %v8294_v41  ;;  %v3814_v47 = vpop.f32.mrb[106].mxu1  ;;  %v4869_v50 = vadd.f32 %v4868_v43, %v3812_v42  ;;  %v4871_v52 = vpop.f32.mrb[106].mxu0 }
 0x1f8   : > { %v3815_v51 = vadd.f32 %v9134_v59, %v3814_v47  ;;  %v3816_v53 = vpop.f32.mrb[107].mxu1  ;;  %v4873_v55 = vpop.f32.mrb[107].mxu0 }
 0x1f9   : > { %8299 = vtanh.f32 %v4869_v50  ;;  %4026 = vmatmul.mubr.bf16.gmra.mrb[212].mxu1 %v7749_v45  ;;  %v7771_v45 = vld [vmem:[%s8820_s23 + $0x72c] ss:$16 sps:$4 sm:$0xff]  }
 0x1fa   : > { %v4872_v56 = vadd.f32 %v4871_v52, %v3815_v51  ;;  %5083 = vmatmul.mubr.bf16.gmra.mrb[212].mxu0 %v7750_v48  ;;  %4033 = vmatprep.mubr.bf16.mxu1 %v7751_v49 }
 0x1fb   : > { %v8296_v57 = vpop.eup %8295  ;;  %5090 = vmatprep.mubr.bf16.mxu0 %v7753_v54  ;;  %v7773_v54 = vld [vmem:[%s8820_s23 + $0x720] ss:$16 sps:$4 sm:$0xff]  }
 0x1fc   : > { %8301 = vtanh.f32 %v4872_v56  ;;  %5989 = vst [vmem:[%s8984_s29 + $0x190] sm:$0xff] %v8296_v57  ;;  %v3819_v58 = vpop.f32.mrb[108].mxu1  ;;  %v7774_v57 = vld [vmem:[%s8820_s23 + $0x728] ss:$16 sps:$4 sm:$0xff]  }
 0x1fd   : > { %v3820_v60 = vadd.f32 %v9134_v59, %v3819_v58  ;;  %v4876_v61 = vpop.f32.mrb[108].mxu0  ;;  %v3821_v62 = vpop.f32.mrb[109].mxu1  ;;  %v7775_v58 = vld [vmem:[%s8820_s23 + $0x744] ss:$16 sps:$4 sm:$0xff]  }
 0x1fe   : > { %v8298_v15 = vpop.eup %8297  ;;  %v4878_v0 = vpop.f32.mrb[109].mxu0 }
 0x1ff   : > { %5990 = vst [vmem:[%s8984_s29 + $0x198] sm:$0xff] %v8298_v15  ;;  %v3822_v1 = vpop.f32.mrb[110].mxu1  ;;  %v4877_v4 = vadd.f32 %v4876_v61, %v3820_v60  ;;  %v4879_v6 = vpop.f32.mrb[110].mxu0 }
 0x200   : > { %v3823_v5 = vadd.f32 %v9134_v59, %v3822_v1  ;;  %v3824_v7 = vpop.f32.mrb[111].mxu1  ;;  %v4881_v9 = vpop.f32.mrb[111].mxu0 }
 0x201   : > { %8303 = vtanh.f32 %v4877_v4  ;;  %4034 = vmatmul.mubr.bf16.gmra.mrb[216].mxu1 %v7755_v63  ;;  %v7777_v63 = vld [vmem:[%s8820_s23 + $0x74c] ss:$16 sps:$4 sm:$0xff]  }
 0x202   : > { %v4880_v10 = vadd.f32 %v4879_v6, %v3823_v5  ;;  %5091 = vmatmul.mubr.bf16.gmra.mrb[216].mxu0 %v7756_v2  ;;  %4041 = vmatprep.mubr.bf16.mxu1 %v7757_v3 }
 0x203   : > { %v8300_v11 = vpop.eup %8299  ;;  %5098 = vmatprep.mubr.bf16.mxu0 %v7759_v8  ;;  %v7779_v8 = vld [vmem:[%s8820_s23 + $0x740] ss:$16 sps:$4 sm:$0xff]  }
 0x204   : > { %8305 = vtanh.f32 %v4880_v10  ;;  %5991 = vst [vmem:[%s8984_s29 + $0x1a0] sm:$0xff] %v8300_v11  ;;  %v3827_v12 = vpop.f32.mrb[112].mxu1  ;;  %v7780_v11 = vld [vmem:[%s8820_s23 + $0x748] ss:$16 sps:$4 sm:$0xff]  }
 0x205   : > { %v3828_v14 = vadd.f32 %v9134_v59, %v3827_v12  ;;  %v4884_v16 = vpop.f32.mrb[112].mxu0  ;;  %v3829_v17 = vpop.f32.mrb[113].mxu1  ;;  %v7781_v12 = vld [vmem:[%s8820_s23 + $0x764] ss:$16 sps:$4 sm:$0xff]  }
 0x206   : > { %v8302_v13 = vpop.eup %8301  ;;  %v4886_v19 = vpop.f32.mrb[113].mxu0 }
 0x207   : > { %5992 = vst [vmem:[%s8984_s29 + $0x1a8] sm:$0xff] %v8302_v13  ;;  %v3830_v20 = vpop.f32.mrb[114].mxu1  ;;  %v4885_v23 = vadd.f32 %v4884_v16, %v3828_v14  ;;  %v4887_v25 = vpop.f32.mrb[114].mxu0 }
 0x208   : > { %v3831_v24 = vadd.f32 %v9134_v59, %v3830_v20  ;;  %v3832_v26 = vpop.f32.mrb[115].mxu1  ;;  %v4889_v28 = vpop.f32.mrb[115].mxu0 }
 0x209   : > { %8307 = vtanh.f32 %v4885_v23  ;;  %4042 = vmatmul.mubr.bf16.gmra.mrb[220].mxu1 %v7761_v18  ;;  %v7783_v18 = vld [vmem:[%s8820_s23 + $0x76c] ss:$16 sps:$4 sm:$0xff]  }
 0x20a   : > { %v4888_v29 = vadd.f32 %v4887_v25, %v3831_v24  ;;  %5099 = vmatmul.mubr.bf16.gmra.mrb[220].mxu0 %v7762_v21  ;;  %4049 = vmatprep.mubr.bf16.mxu1 %v7763_v22 }
 0x20b   : > { %v8304_v30 = vpop.eup %8303  ;;  %5106 = vmatprep.mubr.bf16.mxu0 %v7765_v27  ;;  %v7785_v27 = vld [vmem:[%s8820_s23 + $0x760] ss:$16 sps:$4 sm:$0xff]  }
 0x20c   : > { %8309 = vtanh.f32 %v4888_v29  ;;  %5993 = vst [vmem:[%s8984_s29 + $0x1b0] sm:$0xff] %v8304_v30  ;;  %v3835_v31 = vpop.f32.mrb[116].mxu1  ;;  %v7786_v30 = vld [vmem:[%s8820_s23 + $0x768] ss:$16 sps:$4 sm:$0xff]  }
 0x20d   : > { %v3836_v33 = vadd.f32 %v9134_v59, %v3835_v31  ;;  %v4892_v34 = vpop.f32.mrb[116].mxu0  ;;  %v3837_v35 = vpop.f32.mrb[117].mxu1  ;;  %v7787_v31 = vld [vmem:[%s8820_s23 + $0x784] ss:$16 sps:$4 sm:$0xff]  }
 0x20e   : > { %v8306_v32 = vpop.eup %8305  ;;  %v4894_v37 = vpop.f32.mrb[117].mxu0 }
 0x20f   : > { %5994 = vst [vmem:[%s8984_s29 + $0x1b8] sm:$0xff] %v8306_v32  ;;  %v3838_v38 = vpop.f32.mrb[118].mxu1  ;;  %v4893_v41 = vadd.f32 %v4892_v34, %v3836_v33  ;;  %v4895_v43 = vpop.f32.mrb[118].mxu0 }
 0x210   : > { %v3839_v42 = vadd.f32 %v9134_v59, %v3838_v38  ;;  %v3840_v44 = vpop.f32.mrb[119].mxu1  ;;  %v4897_v46 = vpop.f32.mrb[119].mxu0 }
 0x211   : > { %8311 = vtanh.f32 %v4893_v41  ;;  %4050 = vmatmul.mubr.bf16.gmra.mrb[224].mxu1 %v7767_v36  ;;  %v7789_v36 = vld [vmem:[%s8820_s23 + $0x78c] ss:$16 sps:$4 sm:$0xff]  }
 0x212   : > { %v4896_v47 = vadd.f32 %v4895_v43, %v3839_v42  ;;  %5107 = vmatmul.mubr.bf16.gmra.mrb[224].mxu0 %v7768_v39  ;;  %4057 = vmatprep.mubr.bf16.mxu1 %v7769_v40 }
 0x213   : > { %v8308_v48 = vpop.eup %8307  ;;  %5114 = vmatprep.mubr.bf16.mxu0 %v7771_v45  ;;  %v7791_v45 = vld [vmem:[%s8820_s23 + $0x780] ss:$16 sps:$4 sm:$0xff]  }
 0x214   : > { %8313 = vtanh.f32 %v4896_v47  ;;  %5995 = vst [vmem:[%s8984_s29 + $0x1c0] sm:$0xff] %v8308_v48  ;;  %v3843_v49 = vpop.f32.mrb[120].mxu1  ;;  %v7792_v48 = vld [vmem:[%s8820_s23 + $0x788] ss:$16 sps:$4 sm:$0xff]  }
 0x215   : > { %v3844_v51 = vadd.f32 %v9134_v59, %v3843_v49  ;;  %v4900_v52 = vpop.f32.mrb[120].mxu0  ;;  %v3845_v53 = vpop.f32.mrb[121].mxu1  ;;  %v7793_v49 = vld [vmem:[%s8820_s23 + $0x7a4] ss:$16 sps:$4 sm:$0xff]  }
 0x216   : > { %v8310_v50 = vpop.eup %8309  ;;  %v4902_v55 = vpop.f32.mrb[121].mxu0 }
 0x217   : > { %5996 = vst [vmem:[%s8984_s29 + $0x1c8] sm:$0xff] %v8310_v50  ;;  %v3846_v56 = vpop.f32.mrb[122].mxu1  ;;  %v4901_v15 = vadd.f32 %v4900_v52, %v3844_v51  ;;  %v4903_v61 = vpop.f32.mrb[122].mxu0 }
 0x218   : > { %v3847_v60 = vadd.f32 %v9134_v59, %v3846_v56  ;;  %v3848_v62 = vpop.f32.mrb[123].mxu1  ;;  %v4905_v0 = vpop.f32.mrb[123].mxu0 }
 0x219   : > { %8315 = vtanh.f32 %v4901_v15  ;;  %4058 = vmatmul.mubr.bf16.gmra.mrb[228].mxu1 %v7773_v54  ;;  %v7795_v54 = vld [vmem:[%s8820_s23 + $0x7ac] ss:$16 sps:$4 sm:$0xff]  }
 0x21a   : > { %v4904_v1 = vadd.f32 %v4903_v61, %v3847_v60  ;;  %5115 = vmatmul.mubr.bf16.gmra.mrb[228].mxu0 %v7774_v57  ;;  %4065 = vmatprep.mubr.bf16.mxu1 %v7775_v58 }
 0x21b   : > { %v8312_v2 = vpop.eup %8311  ;;  %5122 = vmatprep.mubr.bf16.mxu0 %v7777_v63  ;;  %v7797_v63 = vld [vmem:[%s8820_s23 + $0x7a0] ss:$16 sps:$4 sm:$0xff]  }
 0x21c   : > { %8317 = vtanh.f32 %v4904_v1  ;;  %5997 = vst [vmem:[%s8984_s29 + $0x1d0] sm:$0xff] %v8312_v2  ;;  %v3851_v3 = vpop.f32.mrb[124].mxu1  ;;  %v7798_v2 = vld [vmem:[%s8820_s23 + $0x7a8] ss:$16 sps:$4 sm:$0xff]  }
 0x21d   : > { %v3852_v5 = vadd.f32 %v9134_v59, %v3851_v3  ;;  %v4908_v6 = vpop.f32.mrb[124].mxu0  ;;  %v3853_v7 = vpop.f32.mrb[125].mxu1  ;;  %v7799_v3 = vld [vmem:[%s8820_s23 + $0x7c4] ss:$16 sps:$4 sm:$0xff]  }
 0x21e   : > { %v8314_v4 = vpop.eup %8313  ;;  %v4910_v9 = vpop.f32.mrb[125].mxu0 }
 0x21f   : > { %5998 = vst [vmem:[%s8984_s29 + $0x1d8] sm:$0xff] %v8314_v4  ;;  %v3854_v10 = vpop.f32.mrb[126].mxu1  ;;  %v4909_v13 = vadd.f32 %v4908_v6, %v3852_v5  ;;  %v4911_v16 = vpop.f32.mrb[126].mxu0 }
 0x220   : > { %v3855_v14 = vadd.f32 %v9134_v59, %v3854_v10  ;;  %v3856_v17 = vpop.f32.mrb[127].mxu1  ;;  %v4913_v19 = vpop.f32.mrb[127].mxu0 }
 0x221   : > { %8319 = vtanh.f32 %v4909_v13  ;;  %4066 = vmatmul.mubr.bf16.gmra.mrb[232].mxu1 %v7779_v8  ;;  %v7801_v8 = vld [vmem:[%s8820_s23 + $0x7cc] ss:$16 sps:$4 sm:$0xff]  }
 0x222   : > { %v4912_v20 = vadd.f32 %v4911_v16, %v3855_v14  ;;  %5123 = vmatmul.mubr.bf16.gmra.mrb[232].mxu0 %v7780_v11  ;;  %4073 = vmatprep.mubr.bf16.mxu1 %v7781_v12 }
 0x223   : > { %v8316_v21 = vpop.eup %8315  ;;  %5130 = vmatprep.mubr.bf16.mxu0 %v7783_v18  ;;  %v7803_v18 = vld [vmem:[%s8820_s23 + $0x7c0] ss:$16 sps:$4 sm:$0xff]  }
 0x224   : > { %8321 = vtanh.f32 %v4912_v20  ;;  %5999 = vst [vmem:[%s8984_s29 + $0x1e0] sm:$0xff] %v8316_v21  ;;  %v3859_v22 = vpop.f32.mrb[128].mxu1  ;;  %v7804_v21 = vld [vmem:[%s8820_s23 + $0x7c8] ss:$16 sps:$4 sm:$0xff]  }
 0x225   : > { %v3860_v24 = vadd.f32 %v9134_v59, %v3859_v22  ;;  %v4916_v25 = vpop.f32.mrb[128].mxu0  ;;  %v3861_v26 = vpop.f32.mrb[129].mxu1  ;;  %v7805_v22 = vld [vmem:[%s8820_s23 + $0x7e4] ss:$16 sps:$4 sm:$0xff]  }
 0x226   : > { %v8318_v23 = vpop.eup %8317  ;;  %v4918_v28 = vpop.f32.mrb[129].mxu0 }
 0x227   : > { %6000 = vst [vmem:[%s8984_s29 + $0x1e8] sm:$0xff] %v8318_v23  ;;  %v3862_v29 = vpop.f32.mrb[130].mxu1  ;;  %v4917_v32 = vadd.f32 %v4916_v25, %v3860_v24  ;;  %v4919_v34 = vpop.f32.mrb[130].mxu0 }
 0x228   : > { %v3863_v33 = vadd.f32 %v9134_v59, %v3862_v29  ;;  %v3864_v35 = vpop.f32.mrb[131].mxu1  ;;  %v4921_v37 = vpop.f32.mrb[131].mxu0 }
 0x229   : > { %8323 = vtanh.f32 %v4917_v32  ;;  %4074 = vmatmul.mubr.bf16.gmra.mrb[236].mxu1 %v7785_v27  ;;  %v7807_v27 = vld [vmem:[%s8820_s23 + $0x7ec] ss:$16 sps:$4 sm:$0xff]  }
 0x22a   : > { %v4920_v38 = vadd.f32 %v4919_v34, %v3863_v33  ;;  %5131 = vmatmul.mubr.bf16.gmra.mrb[236].mxu0 %v7786_v30  ;;  %4081 = vmatprep.mubr.bf16.mxu1 %v7787_v31 }
 0x22b   : > { %v8320_v39 = vpop.eup %8319  ;;  %5138 = vmatprep.mubr.bf16.mxu0 %v7789_v36  ;;  %v7809_v36 = vld [vmem:[%s8820_s23 + $0x7e0] ss:$16 sps:$4 sm:$0xff]  }
 0x22c   : > { %8325 = vtanh.f32 %v4920_v38  ;;  %6001 = vst [vmem:[%s8984_s29 + $0x1f0] sm:$0xff] %v8320_v39  ;;  %v3867_v40 = vpop.f32.mrb[132].mxu1  ;;  %v7810_v39 = vld [vmem:[%s8820_s23 + $0x7e8] ss:$16 sps:$4 sm:$0xff]  }
 0x22d   : > { %v3868_v42 = vadd.f32 %v9134_v59, %v3867_v40  ;;  %v4924_v43 = vpop.f32.mrb[132].mxu0  ;;  %v3869_v44 = vpop.f32.mrb[133].mxu1  ;;  %v7813_v40 = vld [vmem:[%s8820_s23 + $0x804] ss:$16 sps:$4 sm:$0xff]  }
 0x22e   : > { %v8322_v41 = vpop.eup %8321  ;;  %v4926_v46 = vpop.f32.mrb[133].mxu0 }
 0x22f   : > { %6002 = vst [vmem:[%s8984_s29 + $0x1f8] sm:$0xff] %v8322_v41  ;;  %v3870_v47 = vpop.f32.mrb[134].mxu1  ;;  %v4925_v50 = vadd.f32 %v4924_v43, %v3868_v42  ;;  %v4927_v52 = vpop.f32.mrb[134].mxu0 }
 0x230   : > { %v3871_v51 = vadd.f32 %v9134_v59, %v3870_v47  ;;  %v3872_v53 = vpop.f32.mrb[135].mxu1  ;;  %v4929_v55 = vpop.f32.mrb[135].mxu0 }
 0x231   : > { %8327 = vtanh.f32 %v4925_v50  ;;  %4082 = vmatmul.mubr.bf16.gmra.mrb[240].mxu1 %v7791_v45  ;;  %v7816_v45 = vld [vmem:[%s8820_s23 + $0x80c] ss:$16 sps:$4 sm:$0xff]  }
 0x232   : > { %v4928_v56 = vadd.f32 %v4927_v52, %v3871_v51  ;;  %5139 = vmatmul.mubr.bf16.gmra.mrb[240].mxu0 %v7792_v48  ;;  %4089 = vmatprep.mubr.bf16.mxu1 %v7793_v49 }
 0x233   : > { %v8324_v57 = vpop.eup %8323  ;;  %5146 = vmatprep.mubr.bf16.mxu0 %v7795_v54  ;;  %v7811_v54 = vld [vmem:[%s8820_s23 + $0x800] ss:$16 sps:$4 sm:$0xff]  }
 0x234   : > { %8329 = vtanh.f32 %v4928_v56  ;;  %6003 = vst [vmem:[%s8984_s29 + $0x200] sm:$0xff] %v8324_v57  ;;  %v3875_v58 = vpop.f32.mrb[136].mxu1  ;;  %v7814_v57 = vld [vmem:[%s8820_s23 + $0x808] ss:$16 sps:$4 sm:$0xff]  }
 0x235   : > { %v3876_v60 = vadd.f32 %v9134_v59, %v3875_v58  ;;  %v4932_v61 = vpop.f32.mrb[136].mxu0  ;;  %v3877_v62 = vpop.f32.mrb[137].mxu1  ;;  %v7819_v58 = vld [vmem:[%s8820_s23 + $0x824] ss:$16 sps:$4 sm:$0xff]  }
 0x236   : > { %v8326_v15 = vpop.eup %8325  ;;  %v4934_v0 = vpop.f32.mrb[137].mxu0 }
 0x237   : > { %6004 = vst [vmem:[%s8984_s29 + $0x208] sm:$0xff] %v8326_v15  ;;  %v3878_v1 = vpop.f32.mrb[138].mxu1  ;;  %v4933_v4 = vadd.f32 %v4932_v61, %v3876_v60  ;;  %v4935_v6 = vpop.f32.mrb[138].mxu0 }
 0x238   : > { %v3879_v5 = vadd.f32 %v9134_v59, %v3878_v1  ;;  %v3880_v7 = vpop.f32.mrb[139].mxu1  ;;  %v4937_v9 = vpop.f32.mrb[139].mxu0 }
 0x239   : > { %8331 = vtanh.f32 %v4933_v4  ;;  %4090 = vmatmul.mubr.bf16.gmra.mrb[244].mxu1 %v7797_v63  ;;  %v7822_v63 = vld [vmem:[%s8820_s23 + $0x82c] ss:$16 sps:$4 sm:$0xff]  }
 0x23a   : > { %v4936_v10 = vadd.f32 %v4935_v6, %v3879_v5  ;;  %5147 = vmatmul.mubr.bf16.gmra.mrb[244].mxu0 %v7798_v2  ;;  %4097 = vmatprep.mubr.bf16.mxu1 %v7799_v3 }
 0x23b   : > { %v8328_v11 = vpop.eup %8327  ;;  %5154 = vmatprep.mubr.bf16.mxu0 %v7801_v8  ;;  %v7817_v8 = vld [vmem:[%s8820_s23 + $0x820] ss:$16 sps:$4 sm:$0xff]  }
 0x23c   : > { %8333 = vtanh.f32 %v4936_v10  ;;  %6005 = vst [vmem:[%s8984_s29 + $0x210] sm:$0xff] %v8328_v11  ;;  %v3883_v12 = vpop.f32.mrb[140].mxu1  ;;  %v7820_v11 = vld [vmem:[%s8820_s23 + $0x828] ss:$16 sps:$4 sm:$0xff]  }
 0x23d   : > { %v3884_v14 = vadd.f32 %v9134_v59, %v3883_v12  ;;  %v4940_v16 = vpop.f32.mrb[140].mxu0  ;;  %v3885_v17 = vpop.f32.mrb[141].mxu1  ;;  %v7825_v12 = vld [vmem:[%s8820_s23 + $0x844] ss:$16 sps:$4 sm:$0xff]  }
 0x23e   : > { %v8330_v13 = vpop.eup %8329  ;;  %v4942_v19 = vpop.f32.mrb[141].mxu0 }
 0x23f   : > { %6006 = vst [vmem:[%s8984_s29 + $0x218] sm:$0xff] %v8330_v13  ;;  %v3886_v20 = vpop.f32.mrb[142].mxu1  ;;  %v4941_v23 = vadd.f32 %v4940_v16, %v3884_v14  ;;  %v4943_v25 = vpop.f32.mrb[142].mxu0 }
 0x240   : > { %v3887_v24 = vadd.f32 %v9134_v59, %v3886_v20  ;;  %v3888_v26 = vpop.f32.mrb[143].mxu1  ;;  %v4945_v28 = vpop.f32.mrb[143].mxu0 }
 0x241   : > { %8335 = vtanh.f32 %v4941_v23  ;;  %4098 = vmatmul.mubr.bf16.gmra.mrb[248].mxu1 %v7803_v18  ;;  %v7828_v18 = vld [vmem:[%s8820_s23 + $0x84c] ss:$16 sps:$4 sm:$0xff]  }
 0x242   : > { %v4944_v29 = vadd.f32 %v4943_v25, %v3887_v24  ;;  %5155 = vmatmul.mubr.bf16.gmra.mrb[248].mxu0 %v7804_v21  ;;  %4105 = vmatprep.mubr.bf16.mxu1 %v7805_v22 }
 0x243   : > { %v8332_v30 = vpop.eup %8331  ;;  %5162 = vmatprep.mubr.bf16.mxu0 %v7807_v27  ;;  %v7823_v27 = vld [vmem:[%s8820_s23 + $0x840] ss:$16 sps:$4 sm:$0xff]  }
 0x244   : > { %8337 = vtanh.f32 %v4944_v29  ;;  %6007 = vst [vmem:[%s8984_s29 + $0x220] sm:$0xff] %v8332_v30  ;;  %v3891_v31 = vpop.f32.mrb[144].mxu1  ;;  %v7826_v30 = vld [vmem:[%s8820_s23 + $0x848] ss:$16 sps:$4 sm:$0xff]  }
 0x245   : > { %v3892_v33 = vadd.f32 %v9134_v59, %v3891_v31  ;;  %v4948_v34 = vpop.f32.mrb[144].mxu0  ;;  %v3893_v35 = vpop.f32.mrb[145].mxu1  ;;  %v7831_v31 = vld [vmem:[%s8820_s23 + $0x864] ss:$16 sps:$4 sm:$0xff]  }
 0x246   : > { %v8334_v32 = vpop.eup %8333  ;;  %v4950_v37 = vpop.f32.mrb[145].mxu0 }
 0x247   : > { %6008 = vst [vmem:[%s8984_s29 + $0x228] sm:$0xff] %v8334_v32  ;;  %v3894_v38 = vpop.f32.mrb[146].mxu1  ;;  %v4949_v41 = vadd.f32 %v4948_v34, %v3892_v33  ;;  %v4951_v43 = vpop.f32.mrb[146].mxu0 }
 0x248   : > { %v3895_v42 = vadd.f32 %v9134_v59, %v3894_v38  ;;  %v3896_v44 = vpop.f32.mrb[147].mxu1  ;;  %v4953_v46 = vpop.f32.mrb[147].mxu0 }
 0x249   : > { %8339 = vtanh.f32 %v4949_v41  ;;  %4106 = vmatmul.mubr.bf16.gmra.mrb[252].mxu1 %v7809_v36  ;;  %v7834_v36 = vld [vmem:[%s8820_s23 + $0x86c] ss:$16 sps:$4 sm:$0xff]   ;;  %v9299_v41 = vld [vmem:[%s9924_s2] ss:$0 sm:$0xff] }
 0x24a   : > { %v4952_v47 = vadd.f32 %v4951_v43, %v3895_v42  ;;  %5163 = vmatmul.mubr.bf16.gmra.mrb[252].mxu0 %v7810_v39  ;;  %4113 = vmatprep.mubr.bf16.mxu1 %v7813_v40 }
 0x24b   : > { %v8336_v48 = vpop.eup %8335  ;;  %5170 = vmatprep.mubr.bf16.mxu0 %v7816_v45  ;;  %v7829_v45 = vld [vmem:[%s8820_s23 + $0x860] ss:$16 sps:$4 sm:$0xff]  }
 0x24c   : > { %8341 = vtanh.f32 %v4952_v47  ;;  %6009 = vst [vmem:[%s8984_s29 + $0x230] sm:$0xff] %v8336_v48  ;;  %v3899_v49 = vpop.f32.mrb[148].mxu1  ;;  %v7832_v48 = vld [vmem:[%s8820_s23 + $0x868] ss:$16 sps:$4 sm:$0xff]  }
 0x24d   : > { %v3900_v51 = vadd.f32 %v9134_v59, %v3899_v49  ;;  %v4956_v52 = vpop.f32.mrb[148].mxu0  ;;  %v3901_v53 = vpop.f32.mrb[149].mxu1  ;;  %v7837_v49 = vld [vmem:[%s8820_s23 + $0x884] ss:$16 sps:$4 sm:$0xff]  }
 0x24e   : > { %v8338_v50 = vpop.eup %8337  ;;  %v4958_v55 = vpop.f32.mrb[149].mxu0 }
 0x24f   : > { %6010 = vst [vmem:[%s8984_s29 + $0x238] sm:$0xff] %v8338_v50  ;;  %v3902_v56 = vpop.f32.mrb[150].mxu1  ;;  %v4957_v15 = vadd.f32 %v4956_v52, %v3900_v51  ;;  %v4959_v61 = vpop.f32.mrb[150].mxu0 }
 0x250   : > { %v3903_v60 = vadd.f32 %v9134_v59, %v3902_v56  ;;  %v3904_v62 = vpop.f32.mrb[151].mxu1  ;;  %v4961_v0 = vpop.f32.mrb[151].mxu0 }
 0x251   : > { %8343 = vtanh.f32 %v4957_v15  ;;  %4114 = vmatmul.mubr.bf16.gmra.mrb[148].mxu1 %v7811_v54  ;;  %v7840_v54 = vld [vmem:[%s8820_s23 + $0x88c] ss:$16 sps:$4 sm:$0xff]  }
 0x252   : > { %v4960_v1 = vadd.f32 %v4959_v61, %v3903_v60  ;;  %5171 = vmatmul.mubr.bf16.gmra.mrb[0].mxu0 %v7814_v57  ;;  %4121 = vmatprep.mubr.bf16.mxu1 %v7819_v58 }
 0x253   : > { %v8340_v2 = vpop.eup %8339  ;;  %5178 = vmatprep.mubr.bf16.mxu0 %v7822_v63  ;;  %v7835_v63 = vld [vmem:[%s8820_s23 + $0x880] ss:$16 sps:$4 sm:$0xff]  }
 0x254   : > { %8345 = vtanh.f32 %v4960_v1  ;;  %6011 = vst [vmem:[%s8984_s29 + $0x240] sm:$0xff] %v8340_v2  ;;  %v3907_v3 = vpop.f32.mrb[152].mxu1  ;;  %v7838_v2 = vld [vmem:[%s8820_s23 + $0x888] ss:$16 sps:$4 sm:$0xff]  }
 0x255   : > { %v3908_v5 = vadd.f32 %v9134_v59, %v3907_v3  ;;  %v4964_v6 = vpop.f32.mrb[152].mxu0  ;;  %v3909_v7 = vpop.f32.mrb[153].mxu1  ;;  %v7843_v3 = vld [vmem:[%s8820_s23 + $0x8a4] ss:$16 sps:$4 sm:$0xff]  }
 0x256   : > { %v8342_v4 = vpop.eup %8341  ;;  %v4966_v9 = vpop.f32.mrb[153].mxu0 }
 0x257   : > { %6012 = vst [vmem:[%s8984_s29 + $0x248] sm:$0xff] %v8342_v4  ;;  %v3910_v10 = vpop.f32.mrb[154].mxu1  ;;  %v4965_v13 = vadd.f32 %v4964_v6, %v3908_v5  ;;  %v4967_v16 = vpop.f32.mrb[154].mxu0 }
 0x258   : > { %v3911_v14 = vadd.f32 %v9134_v59, %v3910_v10  ;;  %v3912_v17 = vpop.f32.mrb[155].mxu1  ;;  %v4969_v19 = vpop.f32.mrb[155].mxu0 }
 0x259   : > { %8347 = vtanh.f32 %v4965_v13  ;;  %4122 = vmatmul.mubr.bf16.gmra.mrb[152].mxu1 %v7817_v8  ;;  %v7846_v8 = vld [vmem:[%s8820_s23 + $0x8ac] ss:$16 sps:$4 sm:$0xff]  }
 0x25a   : > { %v4968_v20 = vadd.f32 %v4967_v16, %v3911_v14  ;;  %5179 = vmatmul.mubr.bf16.gmra.mrb[4].mxu0 %v7820_v11  ;;  %4129 = vmatprep.mubr.bf16.mxu1 %v7825_v12 }
 0x25b   : > { %v8344_v21 = vpop.eup %8343  ;;  %5186 = vmatprep.mubr.bf16.mxu0 %v7828_v18  ;;  %v7841_v18 = vld [vmem:[%s8820_s23 + $0x8a0] ss:$16 sps:$4 sm:$0xff]  }
 0x25c   : > { %8349 = vtanh.f32 %v4968_v20  ;;  %6013 = vst [vmem:[%s8984_s29 + $0x250] sm:$0xff] %v8344_v21  ;;  %v3915_v22 = vpop.f32.mrb[156].mxu1  ;;  %v7844_v21 = vld [vmem:[%s8820_s23 + $0x8a8] ss:$16 sps:$4 sm:$0xff]  }
 0x25d   : > { %v3916_v24 = vadd.f32 %v9134_v59, %v3915_v22  ;;  %v4972_v25 = vpop.f32.mrb[156].mxu0  ;;  %v3917_v26 = vpop.f32.mrb[157].mxu1  ;;  %v7849_v22 = vld [vmem:[%s8820_s23 + $0x8c4] ss:$16 sps:$4 sm:$0xff]  }
 0x25e   : > { %v8346_v23 = vpop.eup %8345  ;;  %v4974_v28 = vpop.f32.mrb[157].mxu0 }
 0x25f   : > { %6014 = vst [vmem:[%s8984_s29 + $0x258] sm:$0xff] %v8346_v23  ;;  %v3918_v29 = vpop.f32.mrb[158].mxu1  ;;  %v4973_v32 = vadd.f32 %v4972_v25, %v3916_v24  ;;  %v4975_v34 = vpop.f32.mrb[158].mxu0 }
 0x260   : > { %v3919_v33 = vadd.f32 %v9134_v59, %v3918_v29  ;;  %v3920_v35 = vpop.f32.mrb[159].mxu1  ;;  %v4977_v37 = vpop.f32.mrb[159].mxu0 }
 0x261   : > { %8351 = vtanh.f32 %v4973_v32  ;;  %4130 = vmatmul.mubr.bf16.gmra.mrb[156].mxu1 %v7823_v27  ;;  %v7852_v27 = vld [vmem:[%s8820_s23 + $0x8cc] ss:$16 sps:$4 sm:$0xff]  }
 0x262   : > { %v4976_v38 = vadd.f32 %v4975_v34, %v3919_v33  ;;  %5187 = vmatmul.mubr.bf16.gmra.mrb[8].mxu0 %v7826_v30  ;;  %4137 = vmatprep.mubr.bf16.mxu1 %v7831_v31 }
 0x263   : > { %v8348_v39 = vpop.eup %8347  ;;  %5194 = vmatprep.mubr.bf16.mxu0 %v7834_v36  ;;  %v7847_v36 = vld [vmem:[%s8820_s23 + $0x8c0] ss:$16 sps:$4 sm:$0xff]  }
 0x264   : > { %8353 = vtanh.f32 %v4976_v38  ;;  %6015 = vst [vmem:[%s8984_s29 + $0x260] sm:$0xff] %v8348_v39  ;;  %v3923_v40 = vpop.f32.mrb[160].mxu1  ;;  %v7850_v39 = vld [vmem:[%s8820_s23 + $0x8c8] ss:$16 sps:$4 sm:$0xff]  }
 0x265   : > { %v3924_v42 = vadd.f32 %v9299_v41, %v3923_v40  ;;  %v4980_v43 = vpop.f32.mrb[160].mxu0  ;;  %v3925_v44 = vpop.f32.mrb[161].mxu1  ;;  %v7855_v40 = vld [vmem:[%s8820_s23 + $0x8e4] ss:$16 sps:$4 sm:$0xff]  }
 0x266   : > { %v8350_v59 = vpop.eup %8349  ;;  %v4982_v46 = vpop.f32.mrb[161].mxu0 }
 0x267   : > { %6016 = vst [vmem:[%s8984_s29 + $0x268] sm:$0xff] %v8350_v59  ;;  %v3926_v47 = vpop.f32.mrb[162].mxu1  ;;  %v4981_v50 = vadd.f32 %v4980_v43, %v3924_v42  ;;  %v4983_v52 = vpop.f32.mrb[162].mxu0 }
 0x268   : > { %v3927_v51 = vadd.f32 %v9299_v41, %v3926_v47  ;;  %v3928_v53 = vpop.f32.mrb[163].mxu1  ;;  %v4985_v55 = vpop.f32.mrb[163].mxu0 }
 0x269   : > { %8355 = vtanh.f32 %v4981_v50  ;;  %4138 = vmatmul.mubr.bf16.gmra.mrb[160].mxu1 %v7829_v45  ;;  %v7858_v45 = vld [vmem:[%s8820_s23 + $0x8ec] ss:$16 sps:$4 sm:$0xff]  }
 0x26a   : > { %v4984_v56 = vadd.f32 %v4983_v52, %v3927_v51  ;;  %5195 = vmatmul.mubr.bf16.gmra.mrb[12].mxu0 %v7832_v48  ;;  %4145 = vmatprep.mubr.bf16.mxu1 %v7837_v49 }
 0x26b   : > { %v8352_v57 = vpop.eup %8351  ;;  %5202 = vmatprep.mubr.bf16.mxu0 %v7840_v54  ;;  %v7853_v54 = vld [vmem:[%s8820_s23 + $0x8e0] ss:$16 sps:$4 sm:$0xff]  }
 0x26c   : > { %8357 = vtanh.f32 %v4984_v56  ;;  %6017 = vst [vmem:[%s8984_s29 + $0x270] sm:$0xff] %v8352_v57  ;;  %v3931_v58 = vpop.f32.mrb[164].mxu1  ;;  %v7856_v57 = vld [vmem:[%s8820_s23 + $0x8e8] ss:$16 sps:$4 sm:$0xff]  }
 0x26d   : > { %v3932_v60 = vadd.f32 %v9299_v41, %v3931_v58  ;;  %v4988_v61 = vpop.f32.mrb[164].mxu0  ;;  %v3933_v62 = vpop.f32.mrb[165].mxu1  ;;  %v7861_v58 = vld [vmem:[%s8820_s23 + $0x904] ss:$16 sps:$4 sm:$0xff]  }
 0x26e   : > { %v8354_v15 = vpop.eup %8353  ;;  %v4990_v0 = vpop.f32.mrb[165].mxu0 }
 0x26f   : > { %6018 = vst [vmem:[%s8984_s29 + $0x278] sm:$0xff] %v8354_v15  ;;  %v3934_v1 = vpop.f32.mrb[166].mxu1  ;;  %v4989_v4 = vadd.f32 %v4988_v61, %v3932_v60  ;;  %v4991_v6 = vpop.f32.mrb[166].mxu0 }
 0x270   : > { %v3935_v5 = vadd.f32 %v9299_v41, %v3934_v1  ;;  %v3936_v7 = vpop.f32.mrb[167].mxu1  ;;  %v4993_v9 = vpop.f32.mrb[167].mxu0 }
 0x271   : > { %8359 = vtanh.f32 %v4989_v4  ;;  %4146 = vmatmul.mubr.bf16.gmra.mrb[164].mxu1 %v7835_v63  ;;  %v7864_v63 = vld [vmem:[%s8820_s23 + $0x90c] ss:$16 sps:$4 sm:$0xff]  }
 0x272   : > { %v4992_v10 = vadd.f32 %v4991_v6, %v3935_v5  ;;  %5203 = vmatmul.mubr.bf16.gmra.mrb[16].mxu0 %v7838_v2  ;;  %4153 = vmatprep.mubr.bf16.mxu1 %v7843_v3 }
 0x273   : > { %v8356_v11 = vpop.eup %8355  ;;  %5210 = vmatprep.mubr.bf16.mxu0 %v7846_v8  ;;  %v7859_v8 = vld [vmem:[%s8820_s23 + $0x900] ss:$16 sps:$4 sm:$0xff]  }
 0x274   : > { %8361 = vtanh.f32 %v4992_v10  ;;  %6019 = vst [vmem:[%s8984_s29 + $0x280] sm:$0xff] %v8356_v11  ;;  %v3939_v12 = vpop.f32.mrb[168].mxu1  ;;  %v7862_v11 = vld [vmem:[%s8820_s23 + $0x908] ss:$16 sps:$4 sm:$0xff]  }
 0x275   : > { %v3940_v14 = vadd.f32 %v9299_v41, %v3939_v12  ;;  %v4996_v16 = vpop.f32.mrb[168].mxu0  ;;  %v3941_v17 = vpop.f32.mrb[169].mxu1  ;;  %v7867_v12 = vld [vmem:[%s8820_s23 + $0x924] ss:$16 sps:$4 sm:$0xff]  }
 0x276   : > { %v8358_v13 = vpop.eup %8357  ;;  %v4998_v19 = vpop.f32.mrb[169].mxu0 }
 0x277   : > { %6020 = vst [vmem:[%s8984_s29 + $0x288] sm:$0xff] %v8358_v13  ;;  %v3942_v20 = vpop.f32.mrb[170].mxu1  ;;  %v4997_v23 = vadd.f32 %v4996_v16, %v3940_v14  ;;  %v4999_v25 = vpop.f32.mrb[170].mxu0 }
 0x278   : > { %v3943_v24 = vadd.f32 %v9299_v41, %v3942_v20  ;;  %v3944_v26 = vpop.f32.mrb[171].mxu1  ;;  %v5001_v28 = vpop.f32.mrb[171].mxu0 }
 0x279   : > { %8363 = vtanh.f32 %v4997_v23  ;;  %4154 = vmatmul.mubr.bf16.gmra.mrb[168].mxu1 %v7841_v18  ;;  %v7870_v18 = vld [vmem:[%s8820_s23 + $0x92c] ss:$16 sps:$4 sm:$0xff]  }
 0x27a   : > { %v5000_v29 = vadd.f32 %v4999_v25, %v3943_v24  ;;  %5211 = vmatmul.mubr.bf16.gmra.mrb[20].mxu0 %v7844_v21  ;;  %4161 = vmatprep.mubr.bf16.mxu1 %v7849_v22 }
 0x27b   : > { %v8360_v30 = vpop.eup %8359  ;;  %5218 = vmatprep.mubr.bf16.mxu0 %v7852_v27  ;;  %v7865_v27 = vld [vmem:[%s8820_s23 + $0x920] ss:$16 sps:$4 sm:$0xff]  }
 0x27c   : > { %8365 = vtanh.f32 %v5000_v29  ;;  %6021 = vst [vmem:[%s8984_s29 + $0x290] sm:$0xff] %v8360_v30  ;;  %v3947_v31 = vpop.f32.mrb[172].mxu1  ;;  %v7868_v30 = vld [vmem:[%s8820_s23 + $0x928] ss:$16 sps:$4 sm:$0xff]  }
 0x27d   : > { %v3948_v33 = vadd.f32 %v9299_v41, %v3947_v31  ;;  %v5004_v34 = vpop.f32.mrb[172].mxu0  ;;  %v3949_v35 = vpop.f32.mrb[173].mxu1  ;;  %v7873_v31 = vld [vmem:[%s8820_s23 + $0x944] ss:$16 sps:$4 sm:$0xff]  }
 0x27e   : > { %v8362_v32 = vpop.eup %8361  ;;  %v5006_v37 = vpop.f32.mrb[173].mxu0 }
 0x27f   : > { %6022 = vst [vmem:[%s8984_s29 + $0x298] sm:$0xff] %v8362_v32  ;;  %v3950_v38 = vpop.f32.mrb[174].mxu1  ;;  %v5005_v59 = vadd.f32 %v5004_v34, %v3948_v33  ;;  %v5007_v43 = vpop.f32.mrb[174].mxu0 }
 0x280   : > { %v3951_v42 = vadd.f32 %v9299_v41, %v3950_v38  ;;  %v3952_v44 = vpop.f32.mrb[175].mxu1  ;;  %v5009_v46 = vpop.f32.mrb[175].mxu0 }
 0x281   : > { %8367 = vtanh.f32 %v5005_v59  ;;  %4162 = vmatmul.mubr.bf16.gmra.mrb[172].mxu1 %v7847_v36  ;;  %v7876_v36 = vld [vmem:[%s8820_s23 + $0x94c] ss:$16 sps:$4 sm:$0xff]  }
 0x282   : > { %v5008_v47 = vadd.f32 %v5007_v43, %v3951_v42  ;;  %5219 = vmatmul.mubr.bf16.gmra.mrb[24].mxu0 %v7850_v39  ;;  %4169 = vmatprep.mubr.bf16.mxu1 %v7855_v40 }
 0x283   : > { %v8364_v48 = vpop.eup %8363  ;;  %5226 = vmatprep.mubr.bf16.mxu0 %v7858_v45  ;;  %v7871_v45 = vld [vmem:[%s8820_s23 + $0x940] ss:$16 sps:$4 sm:$0xff]  }
 0x284   : > { %8369 = vtanh.f32 %v5008_v47  ;;  %6023 = vst [vmem:[%s8984_s29 + $0x2a0] sm:$0xff] %v8364_v48  ;;  %v3955_v49 = vpop.f32.mrb[176].mxu1  ;;  %v7874_v48 = vld [vmem:[%s8820_s23 + $0x948] ss:$16 sps:$4 sm:$0xff]  }
 0x285   : > { %v3956_v51 = vadd.f32 %v9299_v41, %v3955_v49  ;;  %v5012_v52 = vpop.f32.mrb[176].mxu0  ;;  %v3957_v53 = vpop.f32.mrb[177].mxu1  ;;  %v7879_v49 = vld [vmem:[%s8820_s23 + $0x964] ss:$16 sps:$4 sm:$0xff]  }
 0x286   : > { %v8366_v50 = vpop.eup %8365  ;;  %v5014_v55 = vpop.f32.mrb[177].mxu0 }
 0x287   : > { %6024 = vst [vmem:[%s8984_s29 + $0x2a8] sm:$0xff] %v8366_v50  ;;  %v3958_v56 = vpop.f32.mrb[178].mxu1  ;;  %v5013_v15 = vadd.f32 %v5012_v52, %v3956_v51  ;;  %v5015_v61 = vpop.f32.mrb[178].mxu0 }
 0x288   : > { %v3959_v60 = vadd.f32 %v9299_v41, %v3958_v56  ;;  %v3960_v62 = vpop.f32.mrb[179].mxu1  ;;  %v5017_v0 = vpop.f32.mrb[179].mxu0 }
 0x289   : > { %8371 = vtanh.f32 %v5013_v15  ;;  %4170 = vmatmul.mubr.bf16.gmra.mrb[176].mxu1 %v7853_v54  ;;  %v7882_v54 = vld [vmem:[%s8820_s23 + $0x96c] ss:$16 sps:$4 sm:$0xff]  }
 0x28a   : > { %v5016_v1 = vadd.f32 %v5015_v61, %v3959_v60  ;;  %5227 = vmatmul.mubr.bf16.gmra.mrb[28].mxu0 %v7856_v57  ;;  %4177 = vmatprep.mubr.bf16.mxu1 %v7861_v58 }
 0x28b   : > { %v8368_v2 = vpop.eup %8367  ;;  %5234 = vmatprep.mubr.bf16.mxu0 %v7864_v63  ;;  %v7877_v63 = vld [vmem:[%s8820_s23 + $0x960] ss:$16 sps:$4 sm:$0xff]  }
 0x28c   : > { %8373 = vtanh.f32 %v5016_v1  ;;  %6025 = vst [vmem:[%s8984_s29 + $0x2b0] sm:$0xff] %v8368_v2  ;;  %v3963_v3 = vpop.f32.mrb[180].mxu1  ;;  %v7880_v2 = vld [vmem:[%s8820_s23 + $0x968] ss:$16 sps:$4 sm:$0xff]  }
 0x28d   : > { %v3964_v5 = vadd.f32 %v9299_v41, %v3963_v3  ;;  %v5020_v6 = vpop.f32.mrb[180].mxu0  ;;  %v3965_v7 = vpop.f32.mrb[181].mxu1  ;;  %v7885_v3 = vld [vmem:[%s8820_s23 + $0x984] ss:$16 sps:$4 sm:$0xff]  }
 0x28e   : > { %v8370_v4 = vpop.eup %8369  ;;  %v5022_v9 = vpop.f32.mrb[181].mxu0 }
 0x28f   : > { %6026 = vst [vmem:[%s8984_s29 + $0x2b8] sm:$0xff] %v8370_v4  ;;  %v3966_v10 = vpop.f32.mrb[182].mxu1  ;;  %v5021_v13 = vadd.f32 %v5020_v6, %v3964_v5  ;;  %v5023_v16 = vpop.f32.mrb[182].mxu0 }
 0x290   : > { %v3967_v14 = vadd.f32 %v9299_v41, %v3966_v10  ;;  %v3968_v17 = vpop.f32.mrb[183].mxu1  ;;  %v5025_v19 = vpop.f32.mrb[183].mxu0 }
 0x291   : > { %8375 = vtanh.f32 %v5021_v13  ;;  %4178 = vmatmul.mubr.bf16.gmra.mrb[180].mxu1 %v7859_v8  ;;  %v7888_v8 = vld [vmem:[%s8820_s23 + $0x98c] ss:$16 sps:$4 sm:$0xff]  }
 0x292   : > { %v5024_v20 = vadd.f32 %v5023_v16, %v3967_v14  ;;  %5235 = vmatmul.mubr.bf16.gmra.mrb[32].mxu0 %v7862_v11  ;;  %4185 = vmatprep.mubr.bf16.mxu1 %v7867_v12 }
 0x293   : > { %v8372_v21 = vpop.eup %8371  ;;  %5242 = vmatprep.mubr.bf16.mxu0 %v7870_v18  ;;  %v7883_v18 = vld [vmem:[%s8820_s23 + $0x980] ss:$16 sps:$4 sm:$0xff]  }
 0x294   : > { %8377 = vtanh.f32 %v5024_v20  ;;  %6027 = vst [vmem:[%s8984_s29 + $0x2c0] sm:$0xff] %v8372_v21  ;;  %v3971_v22 = vpop.f32.mrb[184].mxu1  ;;  %v7886_v21 = vld [vmem:[%s8820_s23 + $0x988] ss:$16 sps:$4 sm:$0xff]  }
 0x295   : > { %v3972_v24 = vadd.f32 %v9299_v41, %v3971_v22  ;;  %v5028_v25 = vpop.f32.mrb[184].mxu0  ;;  %v3973_v26 = vpop.f32.mrb[185].mxu1  ;;  %v7891_v22 = vld [vmem:[%s8820_s23 + $0x9a4] ss:$16 sps:$4 sm:$0xff]  }
 0x296   : > { %v8374_v23 = vpop.eup %8373  ;;  %v5030_v28 = vpop.f32.mrb[185].mxu0 }
 0x297   : > { %6028 = vst [vmem:[%s8984_s29 + $0x2c8] sm:$0xff] %v8374_v23  ;;  %v3974_v29 = vpop.f32.mrb[186].mxu1  ;;  %v5029_v32 = vadd.f32 %v5028_v25, %v3972_v24  ;;  %v5031_v34 = vpop.f32.mrb[186].mxu0 }
 0x298   : > { %v3975_v33 = vadd.f32 %v9299_v41, %v3974_v29  ;;  %v3976_v35 = vpop.f32.mrb[187].mxu1  ;;  %v5033_v37 = vpop.f32.mrb[187].mxu0 }
 0x299   : > { %8379 = vtanh.f32 %v5029_v32  ;;  %4186 = vmatmul.mubr.bf16.gmra.mrb[184].mxu1 %v7865_v27  ;;  %v7894_v27 = vld [vmem:[%s8820_s23 + $0x9ac] ss:$16 sps:$4 sm:$0xff]  }
 0x29a   : > { %v5032_v38 = vadd.f32 %v5031_v34, %v3975_v33  ;;  %5243 = vmatmul.mubr.bf16.gmra.mrb[36].mxu0 %v7868_v30  ;;  %4193 = vmatprep.mubr.bf16.mxu1 %v7873_v31 }
 0x29b   : > { %v8376_v39 = vpop.eup %8375  ;;  %5250 = vmatprep.mubr.bf16.mxu0 %v7876_v36  ;;  %v7889_v36 = vld [vmem:[%s8820_s23 + $0x9a0] ss:$16 sps:$4 sm:$0xff]  }
 0x29c   : > { %8381 = vtanh.f32 %v5032_v38  ;;  %6029 = vst [vmem:[%s8984_s29 + $0x2d0] sm:$0xff] %v8376_v39  ;;  %v3979_v40 = vpop.f32.mrb[188].mxu1  ;;  %v7892_v39 = vld [vmem:[%s8820_s23 + $0x9a8] ss:$16 sps:$4 sm:$0xff]  }
 0x29d   : > { %v3980_v42 = vadd.f32 %v9299_v41, %v3979_v40  ;;  %v5036_v43 = vpop.f32.mrb[188].mxu0  ;;  %v3981_v44 = vpop.f32.mrb[189].mxu1  ;;  %v7897_v40 = vld [vmem:[%s8820_s23 + $0x9c4] ss:$16 sps:$4 sm:$0xff]  }
 0x29e   : > { %v8378_v59 = vpop.eup %8377  ;;  %v5038_v46 = vpop.f32.mrb[189].mxu0 }
 0x29f   : > { %6030 = vst [vmem:[%s8984_s29 + $0x2d8] sm:$0xff] %v8378_v59  ;;  %v3982_v47 = vpop.f32.mrb[190].mxu1  ;;  %v5037_v50 = vadd.f32 %v5036_v43, %v3980_v42  ;;  %v5039_v52 = vpop.f32.mrb[190].mxu0 }
 0x2a0   : > { %v3983_v51 = vadd.f32 %v9299_v41, %v3982_v47  ;;  %v3984_v53 = vpop.f32.mrb[191].mxu1  ;;  %v5041_v55 = vpop.f32.mrb[191].mxu0 }
 0x2a1   : > { %8383 = vtanh.f32 %v5037_v50  ;;  %4194 = vmatmul.mubr.bf16.gmra.mrb[188].mxu1 %v7871_v45  ;;  %v7900_v45 = vld [vmem:[%s8820_s23 + $0x9cc] ss:$16 sps:$4 sm:$0xff]  }
 0x2a2   : > { %v5040_v56 = vadd.f32 %v5039_v52, %v3983_v51  ;;  %5251 = vmatmul.mubr.bf16.gmra.mrb[40].mxu0 %v7874_v48  ;;  %4201 = vmatprep.mubr.bf16.mxu1 %v7879_v49 }
 0x2a3   : > { %v8380_v57 = vpop.eup %8379  ;;  %5258 = vmatprep.mubr.bf16.mxu0 %v7882_v54  ;;  %v7895_v54 = vld [vmem:[%s8820_s23 + $0x9c0] ss:$16 sps:$4 sm:$0xff]  }
 0x2a4   : > { %8385 = vtanh.f32 %v5040_v56  ;;  %6031 = vst [vmem:[%s8984_s29 + $0x2e0] sm:$0xff] %v8380_v57  ;;  %v3987_v58 = vpop.f32.mrb[192].mxu1  ;;  %v7898_v57 = vld [vmem:[%s8820_s23 + $0x9c8] ss:$16 sps:$4 sm:$0xff]  }
 0x2a5   : > { %v3988_v60 = vadd.f32 %v9299_v41, %v3987_v58  ;;  %v5044_v61 = vpop.f32.mrb[192].mxu0  ;;  %v3989_v62 = vpop.f32.mrb[193].mxu1  ;;  %v7903_v58 = vld [vmem:[%s8820_s23 + $0x9e4] ss:$16 sps:$4 sm:$0xff]  }
 0x2a6   : > { %v8382_v15 = vpop.eup %8381  ;;  %v5046_v0 = vpop.f32.mrb[193].mxu0 }
 0x2a7   : > { %6032 = vst [vmem:[%s8984_s29 + $0x2e8] sm:$0xff] %v8382_v15  ;;  %v3990_v1 = vpop.f32.mrb[194].mxu1  ;;  %v5045_v4 = vadd.f32 %v5044_v61, %v3988_v60  ;;  %v5047_v6 = vpop.f32.mrb[194].mxu0 }
 0x2a8   : > { %v3991_v5 = vadd.f32 %v9299_v41, %v3990_v1  ;;  %v3992_v7 = vpop.f32.mrb[195].mxu1  ;;  %v5049_v9 = vpop.f32.mrb[195].mxu0 }
 0x2a9   : > { %8387 = vtanh.f32 %v5045_v4  ;;  %4202 = vmatmul.mubr.bf16.gmra.mrb[192].mxu1 %v7877_v63  ;;  %v7906_v63 = vld [vmem:[%s8820_s23 + $0x9ec] ss:$16 sps:$4 sm:$0xff]  }
 0x2aa   : > { %v5048_v10 = vadd.f32 %v5047_v6, %v3991_v5  ;;  %5259 = vmatmul.mubr.bf16.gmra.mrb[44].mxu0 %v7880_v2  ;;  %4209 = vmatprep.mubr.bf16.mxu1 %v7885_v3 }
 0x2ab   : > { %v8384_v11 = vpop.eup %8383  ;;  %5266 = vmatprep.mubr.bf16.mxu0 %v7888_v8  ;;  %v7901_v8 = vld [vmem:[%s8820_s23 + $0x9e0] ss:$16 sps:$4 sm:$0xff]  }
 0x2ac   : > { %8389 = vtanh.f32 %v5048_v10  ;;  %6033 = vst [vmem:[%s8984_s29 + $0x2f0] sm:$0xff] %v8384_v11  ;;  %v3995_v12 = vpop.f32.mrb[196].mxu1  ;;  %v7904_v11 = vld [vmem:[%s8820_s23 + $0x9e8] ss:$16 sps:$4 sm:$0xff]  }
 0x2ad   : > { %v3996_v14 = vadd.f32 %v9299_v41, %v3995_v12  ;;  %v5052_v16 = vpop.f32.mrb[196].mxu0  ;;  %v3997_v17 = vpop.f32.mrb[197].mxu1  ;;  %v7909_v12 = vld [vmem:[%s8820_s23 + $0xa04] ss:$16 sps:$4 sm:$0xff]  }
 0x2ae   : > { %v8386_v13 = vpop.eup %8385  ;;  %v5054_v19 = vpop.f32.mrb[197].mxu0 }
 0x2af   : > { %6034 = vst [vmem:[%s8984_s29 + $0x2f8] sm:$0xff] %v8386_v13  ;;  %v3998_v20 = vpop.f32.mrb[198].mxu1  ;;  %v5053_v23 = vadd.f32 %v5052_v16, %v3996_v14  ;;  %v5055_v25 = vpop.f32.mrb[198].mxu0 }
 0x2b0   : > { %v3999_v24 = vadd.f32 %v9299_v41, %v3998_v20  ;;  %v4000_v26 = vpop.f32.mrb[199].mxu1  ;;  %v5057_v28 = vpop.f32.mrb[199].mxu0 }
 0x2b1   : > { %8391 = vtanh.f32 %v5053_v23  ;;  %4210 = vmatmul.mubr.bf16.gmra.mrb[196].mxu1 %v7883_v18  ;;  %v7912_v18 = vld [vmem:[%s8820_s23 + $0xa0c] ss:$16 sps:$4 sm:$0xff]  }
 0x2b2   : > { %v5056_v29 = vadd.f32 %v5055_v25, %v3999_v24  ;;  %5267 = vmatmul.mubr.bf16.gmra.mrb[48].mxu0 %v7886_v21  ;;  %4217 = vmatprep.mubr.bf16.mxu1 %v7891_v22 }
 0x2b3   : > { %v8388_v30 = vpop.eup %8387  ;;  %5274 = vmatprep.mubr.bf16.mxu0 %v7894_v27  ;;  %v7907_v27 = vld [vmem:[%s8820_s23 + $0xa00] ss:$16 sps:$4 sm:$0xff]  }
 0x2b4   : > { %8393 = vtanh.f32 %v5056_v29  ;;  %6035 = vst [vmem:[%s8984_s29 + $0x300] sm:$0xff] %v8388_v30  ;;  %v4003_v31 = vpop.f32.mrb[200].mxu1  ;;  %v7910_v30 = vld [vmem:[%s8820_s23 + $0xa08] ss:$16 sps:$4 sm:$0xff]  }
 0x2b5   : > { %v4004_v33 = vadd.f32 %v9299_v41, %v4003_v31  ;;  %v5060_v34 = vpop.f32.mrb[200].mxu0  ;;  %v4005_v35 = vpop.f32.mrb[201].mxu1  ;;  %v7915_v31 = vld [vmem:[%s8820_s23 + $0xa24] ss:$16 sps:$4 sm:$0xff]  }
 0x2b6   : > { %v8390_v32 = vpop.eup %8389  ;;  %v5062_v37 = vpop.f32.mrb[201].mxu0 }
 0x2b7   : > { %6036 = vst [vmem:[%s8984_s29 + $0x308] sm:$0xff] %v8390_v32  ;;  %v4006_v38 = vpop.f32.mrb[202].mxu1  ;;  %v5061_v59 = vadd.f32 %v5060_v34, %v4004_v33  ;;  %v5063_v43 = vpop.f32.mrb[202].mxu0 }
 0x2b8   : > { %v4007_v42 = vadd.f32 %v9299_v41, %v4006_v38  ;;  %v4008_v44 = vpop.f32.mrb[203].mxu1  ;;  %v5065_v46 = vpop.f32.mrb[203].mxu0 }
 0x2b9   : > { %8395 = vtanh.f32 %v5061_v59  ;;  %4218 = vmatmul.mubr.bf16.gmra.mrb[200].mxu1 %v7889_v36  ;;  %v7918_v36 = vld [vmem:[%s8820_s23 + $0xa2c] ss:$16 sps:$4 sm:$0xff]  }
 0x2ba   : > { %v5064_v47 = vadd.f32 %v5063_v43, %v4007_v42  ;;  %5275 = vmatmul.mubr.bf16.gmra.mrb[52].mxu0 %v7892_v39  ;;  %4225 = vmatprep.mubr.bf16.mxu1 %v7897_v40 }
 0x2bb   : > { %v8392_v48 = vpop.eup %8391  ;;  %5282 = vmatprep.mubr.bf16.mxu0 %v7900_v45  ;;  %v7913_v45 = vld [vmem:[%s8820_s23 + $0xa20] ss:$16 sps:$4 sm:$0xff]  }
 0x2bc   : > { %8397 = vtanh.f32 %v5064_v47  ;;  %6037 = vst [vmem:[%s8984_s29 + $0x310] sm:$0xff] %v8392_v48  ;;  %v4011_v49 = vpop.f32.mrb[204].mxu1  ;;  %v7916_v48 = vld [vmem:[%s8820_s23 + $0xa28] ss:$16 sps:$4 sm:$0xff]  }
 0x2bd   : > { %v4012_v51 = vadd.f32 %v9299_v41, %v4011_v49  ;;  %v5068_v52 = vpop.f32.mrb[204].mxu0  ;;  %v4013_v53 = vpop.f32.mrb[205].mxu1  ;;  %v7921_v49 = vld [vmem:[%s8820_s23 + $0xa44] ss:$16 sps:$4 sm:$0xff]  }
 0x2be   : > { %v8394_v50 = vpop.eup %8393  ;;  %v5070_v55 = vpop.f32.mrb[205].mxu0 }
 0x2bf   : > { %6038 = vst [vmem:[%s8984_s29 + $0x318] sm:$0xff] %v8394_v50  ;;  %v4014_v56 = vpop.f32.mrb[206].mxu1  ;;  %v5069_v15 = vadd.f32 %v5068_v52, %v4012_v51  ;;  %v5071_v61 = vpop.f32.mrb[206].mxu0 }
 0x2c0   : > { %v4015_v60 = vadd.f32 %v9299_v41, %v4014_v56  ;;  %v4016_v62 = vpop.f32.mrb[207].mxu1  ;;  %v5073_v0 = vpop.f32.mrb[207].mxu0 }
 0x2c1   : > { %8399 = vtanh.f32 %v5069_v15  ;;  %4226 = vmatmul.mubr.bf16.gmra.mrb[204].mxu1 %v7895_v54  ;;  %v7924_v54 = vld [vmem:[%s8820_s23 + $0xa4c] ss:$16 sps:$4 sm:$0xff]  }
 0x2c2   : > { %v5072_v1 = vadd.f32 %v5071_v61, %v4015_v60  ;;  %5283 = vmatmul.mubr.bf16.gmra.mrb[56].mxu0 %v7898_v57  ;;  %4233 = vmatprep.mubr.bf16.mxu1 %v7903_v58 }
 0x2c3   : > { %v8396_v2 = vpop.eup %8395  ;;  %5290 = vmatprep.mubr.bf16.mxu0 %v7906_v63  ;;  %v7919_v63 = vld [vmem:[%s8820_s23 + $0xa40] ss:$16 sps:$4 sm:$0xff]  }
 0x2c4   : > { %8401 = vtanh.f32 %v5072_v1  ;;  %6039 = vst [vmem:[%s8984_s29 + $0x320] sm:$0xff] %v8396_v2  ;;  %v4019_v3 = vpop.f32.mrb[208].mxu1  ;;  %v7922_v2 = vld [vmem:[%s8820_s23 + $0xa48] ss:$16 sps:$4 sm:$0xff]  }
 0x2c5   : > { %v4020_v5 = vadd.f32 %v9299_v41, %v4019_v3  ;;  %v5076_v6 = vpop.f32.mrb[208].mxu0  ;;  %v4021_v7 = vpop.f32.mrb[209].mxu1  ;;  %v7927_v3 = vld [vmem:[%s8820_s23 + $0xa64] ss:$16 sps:$4 sm:$0xff]  }
 0x2c6   : > { %v8398_v4 = vpop.eup %8397  ;;  %v5078_v9 = vpop.f32.mrb[209].mxu0 }
 0x2c7   : > { %6040 = vst [vmem:[%s8984_s29 + $0x328] sm:$0xff] %v8398_v4  ;;  %v4022_v10 = vpop.f32.mrb[210].mxu1  ;;  %v5077_v13 = vadd.f32 %v5076_v6, %v4020_v5  ;;  %v5079_v16 = vpop.f32.mrb[210].mxu0 }
 0x2c8   : > { %v4023_v14 = vadd.f32 %v9299_v41, %v4022_v10  ;;  %v4024_v17 = vpop.f32.mrb[211].mxu1  ;;  %v5081_v19 = vpop.f32.mrb[211].mxu0 }
 0x2c9   : > { %8403 = vtanh.f32 %v5077_v13  ;;  %4234 = vmatmul.mubr.bf16.gmra.mrb[208].mxu1 %v7901_v8  ;;  %v7930_v8 = vld [vmem:[%s8820_s23 + $0xa6c] ss:$16 sps:$4 sm:$0xff]  }
 0x2ca   : > { %v5080_v20 = vadd.f32 %v5079_v16, %v4023_v14  ;;  %5291 = vmatmul.mubr.bf16.gmra.mrb[60].mxu0 %v7904_v11  ;;  %4241 = vmatprep.mubr.bf16.mxu1 %v7909_v12 }
 0x2cb   : > { %v8400_v21 = vpop.eup %8399  ;;  %5298 = vmatprep.mubr.bf16.mxu0 %v7912_v18  ;;  %v7925_v18 = vld [vmem:[%s8820_s23 + $0xa60] ss:$16 sps:$4 sm:$0xff]  }
 0x2cc   : > { %8405 = vtanh.f32 %v5080_v20  ;;  %6041 = vst [vmem:[%s8984_s29 + $0x330] sm:$0xff] %v8400_v21  ;;  %v4027_v22 = vpop.f32.mrb[212].mxu1  ;;  %v7928_v21 = vld [vmem:[%s8820_s23 + $0xa68] ss:$16 sps:$4 sm:$0xff]  }
 0x2cd   : > { %v4028_v24 = vadd.f32 %v9299_v41, %v4027_v22  ;;  %v5084_v25 = vpop.f32.mrb[212].mxu0  ;;  %v4029_v26 = vpop.f32.mrb[213].mxu1  ;;  %v7933_v22 = vld [vmem:[%s8820_s23 + $0xa84] ss:$16 sps:$4 sm:$0xff]  }
 0x2ce   : > { %v8402_v23 = vpop.eup %8401  ;;  %v5086_v28 = vpop.f32.mrb[213].mxu0 }
 0x2cf   : > { %6042 = vst [vmem:[%s8984_s29 + $0x338] sm:$0xff] %v8402_v23  ;;  %v4030_v29 = vpop.f32.mrb[214].mxu1  ;;  %v5085_v32 = vadd.f32 %v5084_v25, %v4028_v24  ;;  %v5087_v34 = vpop.f32.mrb[214].mxu0 }
 0x2d0   : > { %v4031_v33 = vadd.f32 %v9299_v41, %v4030_v29  ;;  %v4032_v35 = vpop.f32.mrb[215].mxu1  ;;  %v5089_v37 = vpop.f32.mrb[215].mxu0 }
 0x2d1   : > { %8407 = vtanh.f32 %v5085_v32  ;;  %4242 = vmatmul.mubr.bf16.gmra.mrb[212].mxu1 %v7907_v27  ;;  %v7936_v27 = vld [vmem:[%s8820_s23 + $0xa8c] ss:$16 sps:$4 sm:$0xff]  }
 0x2d2   : > { %v5088_v38 = vadd.f32 %v5087_v34, %v4031_v33  ;;  %5299 = vmatmul.mubr.bf16.gmra.mrb[64].mxu0 %v7910_v30  ;;  %4249 = vmatprep.mubr.bf16.mxu1 %v7915_v31 }
 0x2d3   : > { %v8404_v39 = vpop.eup %8403  ;;  %5306 = vmatprep.mubr.bf16.mxu0 %v7918_v36  ;;  %v7931_v36 = vld [vmem:[%s8820_s23 + $0xa80] ss:$16 sps:$4 sm:$0xff]  }
 0x2d4   : > { %8409 = vtanh.f32 %v5088_v38  ;;  %6043 = vst [vmem:[%s8984_s29 + $0x340] sm:$0xff] %v8404_v39  ;;  %v4035_v40 = vpop.f32.mrb[216].mxu1  ;;  %v7934_v39 = vld [vmem:[%s8820_s23 + $0xa88] ss:$16 sps:$4 sm:$0xff]  }
 0x2d5   : > { %v4036_v42 = vadd.f32 %v9299_v41, %v4035_v40  ;;  %v5092_v43 = vpop.f32.mrb[216].mxu0  ;;  %v4037_v44 = vpop.f32.mrb[217].mxu1  ;;  %v7939_v40 = vld [vmem:[%s8820_s23 + $0xaa4] ss:$16 sps:$4 sm:$0xff]  }
 0x2d6   : > { %v8406_v59 = vpop.eup %8405  ;;  %v5094_v46 = vpop.f32.mrb[217].mxu0 }
 0x2d7   : > { %6044 = vst [vmem:[%s8984_s29 + $0x348] sm:$0xff] %v8406_v59  ;;  %v4038_v47 = vpop.f32.mrb[218].mxu1  ;;  %v5093_v50 = vadd.f32 %v5092_v43, %v4036_v42  ;;  %v5095_v52 = vpop.f32.mrb[218].mxu0 }
 0x2d8   : > { %v4039_v51 = vadd.f32 %v9299_v41, %v4038_v47  ;;  %v4040_v53 = vpop.f32.mrb[219].mxu1  ;;  %v5097_v55 = vpop.f32.mrb[219].mxu0 }
 0x2d9   : > { %8411 = vtanh.f32 %v5093_v50  ;;  %4250 = vmatmul.mubr.bf16.gmra.mrb[216].mxu1 %v7913_v45  ;;  %v7942_v45 = vld [vmem:[%s8820_s23 + $0xaac] ss:$16 sps:$4 sm:$0xff]  }
 0x2da   : > { %v5096_v56 = vadd.f32 %v5095_v52, %v4039_v51  ;;  %5307 = vmatmul.mubr.bf16.gmra.mrb[68].mxu0 %v7916_v48  ;;  %4257 = vmatprep.mubr.bf16.mxu1 %v7921_v49 }
 0x2db   : > { %v8408_v57 = vpop.eup %8407  ;;  %5314 = vmatprep.mubr.bf16.mxu0 %v7924_v54  ;;  %v7937_v54 = vld [vmem:[%s8820_s23 + $0xaa0] ss:$16 sps:$4 sm:$0xff]  }
 0x2dc   : > { %8413 = vtanh.f32 %v5096_v56  ;;  %6045 = vst [vmem:[%s8984_s29 + $0x350] sm:$0xff] %v8408_v57  ;;  %v4043_v58 = vpop.f32.mrb[220].mxu1  ;;  %v7940_v57 = vld [vmem:[%s8820_s23 + $0xaa8] ss:$16 sps:$4 sm:$0xff]  }
 0x2dd   : > { %v4044_v60 = vadd.f32 %v9299_v41, %v4043_v58  ;;  %v5100_v61 = vpop.f32.mrb[220].mxu0  ;;  %v4045_v62 = vpop.f32.mrb[221].mxu1  ;;  %v7945_v58 = vld [vmem:[%s8820_s23 + $0xac4] ss:$16 sps:$4 sm:$0xff]  }
 0x2de   : > { %v8410_v15 = vpop.eup %8409  ;;  %v5102_v0 = vpop.f32.mrb[221].mxu0 }
 0x2df   : > { %6046 = vst [vmem:[%s8984_s29 + $0x358] sm:$0xff] %v8410_v15  ;;  %v4046_v1 = vpop.f32.mrb[222].mxu1  ;;  %v5101_v4 = vadd.f32 %v5100_v61, %v4044_v60  ;;  %v5103_v6 = vpop.f32.mrb[222].mxu0 }
 0x2e0   : > { %v4047_v5 = vadd.f32 %v9299_v41, %v4046_v1  ;;  %v4048_v7 = vpop.f32.mrb[223].mxu1  ;;  %v5105_v9 = vpop.f32.mrb[223].mxu0 }
 0x2e1   : > { %8415 = vtanh.f32 %v5101_v4  ;;  %4258 = vmatmul.mubr.bf16.gmra.mrb[220].mxu1 %v7919_v63  ;;  %v7948_v63 = vld [vmem:[%s8820_s23 + $0xacc] ss:$16 sps:$4 sm:$0xff]  }
 0x2e2   : > { %v5104_v10 = vadd.f32 %v5103_v6, %v4047_v5  ;;  %5315 = vmatmul.mubr.bf16.gmra.mrb[72].mxu0 %v7922_v2  ;;  %4265 = vmatprep.mubr.bf16.mxu1 %v7927_v3 }
 0x2e3   : > { %v8412_v11 = vpop.eup %8411  ;;  %5322 = vmatprep.mubr.bf16.mxu0 %v7930_v8  ;;  %v7943_v8 = vld [vmem:[%s8820_s23 + $0xac0] ss:$16 sps:$4 sm:$0xff]  }
 0x2e4   : > { %8417 = vtanh.f32 %v5104_v10  ;;  %6047 = vst [vmem:[%s8984_s29 + $0x360] sm:$0xff] %v8412_v11  ;;  %v4051_v12 = vpop.f32.mrb[224].mxu1  ;;  %v7946_v11 = vld [vmem:[%s8820_s23 + $0xac8] ss:$16 sps:$4 sm:$0xff]  }
 0x2e5   : > { %v4052_v14 = vadd.f32 %v9299_v41, %v4051_v12  ;;  %v5108_v16 = vpop.f32.mrb[224].mxu0  ;;  %v4053_v17 = vpop.f32.mrb[225].mxu1  ;;  %v7951_v12 = vld [vmem:[%s8820_s23 + $0xae4] ss:$16 sps:$4 sm:$0xff]  }
 0x2e6   : > { %v8414_v13 = vpop.eup %8413  ;;  %v5110_v19 = vpop.f32.mrb[225].mxu0 }
 0x2e7   : > { %6048 = vst [vmem:[%s8984_s29 + $0x368] sm:$0xff] %v8414_v13  ;;  %v4054_v20 = vpop.f32.mrb[226].mxu1  ;;  %v5109_v23 = vadd.f32 %v5108_v16, %v4052_v14  ;;  %v5111_v25 = vpop.f32.mrb[226].mxu0 }
 0x2e8   : > { %v4055_v24 = vadd.f32 %v9299_v41, %v4054_v20  ;;  %v4056_v26 = vpop.f32.mrb[227].mxu1  ;;  %v5113_v28 = vpop.f32.mrb[227].mxu0 }
 0x2e9   : > { %8419 = vtanh.f32 %v5109_v23  ;;  %4266 = vmatmul.mubr.bf16.gmra.mrb[224].mxu1 %v7925_v18  ;;  %v7954_v18 = vld [vmem:[%s8820_s23 + $0xaec] ss:$16 sps:$4 sm:$0xff]   ;;  %v9464_v23 = vld [vmem:[%s9924_s2] ss:$0 sm:$0xff] }
 0x2ea   : > { %v5112_v29 = vadd.f32 %v5111_v25, %v4055_v24  ;;  %5323 = vmatmul.mubr.bf16.gmra.mrb[76].mxu0 %v7928_v21  ;;  %4273 = vmatprep.mubr.bf16.mxu1 %v7933_v22 }
 0x2eb   : > { %v8416_v30 = vpop.eup %8415  ;;  %5330 = vmatprep.mubr.bf16.mxu0 %v7936_v27  ;;  %v7949_v27 = vld [vmem:[%s8820_s23 + $0xae0] ss:$16 sps:$4 sm:$0xff]  }
 0x2ec   : > { %8421 = vtanh.f32 %v5112_v29  ;;  %6049 = vst [vmem:[%s8984_s29 + $0x370] sm:$0xff] %v8416_v30  ;;  %v4059_v31 = vpop.f32.mrb[228].mxu1  ;;  %v7952_v30 = vld [vmem:[%s8820_s23 + $0xae8] ss:$16 sps:$4 sm:$0xff]  }
 0x2ed   : > { %v4060_v33 = vadd.f32 %v9299_v41, %v4059_v31  ;;  %v5116_v34 = vpop.f32.mrb[228].mxu0  ;;  %v4061_v35 = vpop.f32.mrb[229].mxu1  ;;  %v7957_v31 = vld [vmem:[%s8820_s23 + $0xb04] ss:$16 sps:$4 sm:$0xff]  }
 0x2ee   : > { %v8418_v32 = vpop.eup %8417  ;;  %v5118_v37 = vpop.f32.mrb[229].mxu0 }
 0x2ef   : > { %6050 = vst [vmem:[%s8984_s29 + $0x378] sm:$0xff] %v8418_v32  ;;  %v4062_v38 = vpop.f32.mrb[230].mxu1  ;;  %v5117_v59 = vadd.f32 %v5116_v34, %v4060_v33  ;;  %v5119_v43 = vpop.f32.mrb[230].mxu0 }
 0x2f0   : > { %v4063_v42 = vadd.f32 %v9299_v41, %v4062_v38  ;;  %v4064_v44 = vpop.f32.mrb[231].mxu1  ;;  %v5121_v46 = vpop.f32.mrb[231].mxu0 }
 0x2f1   : > { %8423 = vtanh.f32 %v5117_v59  ;;  %4274 = vmatmul.mubr.bf16.gmra.mrb[228].mxu1 %v7931_v36  ;;  %v7960_v36 = vld [vmem:[%s8820_s23 + $0xb0c] ss:$16 sps:$4 sm:$0xff]  }
 0x2f2   : > { %v5120_v47 = vadd.f32 %v5119_v43, %v4063_v42  ;;  %5331 = vmatmul.mubr.bf16.gmra.mrb[80].mxu0 %v7934_v39  ;;  %4281 = vmatprep.mubr.bf16.mxu1 %v7939_v40 }
 0x2f3   : > { %v8420_v48 = vpop.eup %8419  ;;  %5338 = vmatprep.mubr.bf16.mxu0 %v7942_v45  ;;  %v7955_v45 = vld [vmem:[%s8820_s23 + $0xb00] ss:$16 sps:$4 sm:$0xff]  }
 0x2f4   : > { %8425 = vtanh.f32 %v5120_v47  ;;  %6051 = vst [vmem:[%s8984_s29 + $0x380] sm:$0xff] %v8420_v48  ;;  %v4067_v49 = vpop.f32.mrb[232].mxu1  ;;  %v7958_v48 = vld [vmem:[%s8820_s23 + $0xb08] ss:$16 sps:$4 sm:$0xff]  }
 0x2f5   : > { %v4068_v51 = vadd.f32 %v9299_v41, %v4067_v49  ;;  %v5124_v52 = vpop.f32.mrb[232].mxu0  ;;  %v4069_v53 = vpop.f32.mrb[233].mxu1  ;;  %v7963_v49 = vld [vmem:[%s8820_s23 + $0xb24] ss:$16 sps:$4 sm:$0xff]  }
 0x2f6   : > { %v8422_v50 = vpop.eup %8421  ;;  %v5126_v55 = vpop.f32.mrb[233].mxu0 }
 0x2f7   : > { %6052 = vst [vmem:[%s8984_s29 + $0x388] sm:$0xff] %v8422_v50  ;;  %v4070_v56 = vpop.f32.mrb[234].mxu1  ;;  %v5125_v15 = vadd.f32 %v5124_v52, %v4068_v51  ;;  %v5127_v61 = vpop.f32.mrb[234].mxu0 }
 0x2f8   : > { %v4071_v60 = vadd.f32 %v9299_v41, %v4070_v56  ;;  %v4072_v62 = vpop.f32.mrb[235].mxu1  ;;  %v5129_v0 = vpop.f32.mrb[235].mxu0 }
 0x2f9   : > { %8427 = vtanh.f32 %v5125_v15  ;;  %4282 = vmatmul.mubr.bf16.gmra.mrb[232].mxu1 %v7937_v54  ;;  %v7966_v54 = vld [vmem:[%s8820_s23 + $0xb2c] ss:$16 sps:$4 sm:$0xff]  }
 0x2fa   : > { %v5128_v1 = vadd.f32 %v5127_v61, %v4071_v60  ;;  %5339 = vmatmul.mubr.bf16.gmra.mrb[84].mxu0 %v7940_v57  ;;  %4289 = vmatprep.mubr.bf16.mxu1 %v7945_v58 }
 0x2fb   : > { %v8424_v2 = vpop.eup %8423  ;;  %5346 = vmatprep.mubr.bf16.mxu0 %v7948_v63  ;;  %v7961_v63 = vld [vmem:[%s8820_s23 + $0xb20] ss:$16 sps:$4 sm:$0xff]  }
 0x2fc   : > { %8429 = vtanh.f32 %v5128_v1  ;;  %6053 = vst [vmem:[%s8984_s29 + $0x390] sm:$0xff] %v8424_v2  ;;  %v4075_v3 = vpop.f32.mrb[236].mxu1  ;;  %v7964_v2 = vld [vmem:[%s8820_s23 + $0xb28] ss:$16 sps:$4 sm:$0xff]  }
 0x2fd   : > { %v4076_v5 = vadd.f32 %v9299_v41, %v4075_v3  ;;  %v5132_v6 = vpop.f32.mrb[236].mxu0  ;;  %v4077_v7 = vpop.f32.mrb[237].mxu1  ;;  %v7969_v3 = vld [vmem:[%s8820_s23 + $0xb44] ss:$16 sps:$4 sm:$0xff]  }
 0x2fe   : > { %v8426_v4 = vpop.eup %8425  ;;  %v5134_v9 = vpop.f32.mrb[237].mxu0 }
 0x2ff   : > { %6054 = vst [vmem:[%s8984_s29 + $0x398] sm:$0xff] %v8426_v4  ;;  %v4078_v10 = vpop.f32.mrb[238].mxu1  ;;  %v5133_v13 = vadd.f32 %v5132_v6, %v4076_v5  ;;  %v5135_v16 = vpop.f32.mrb[238].mxu0 }
 0x300   : > { %v4079_v14 = vadd.f32 %v9299_v41, %v4078_v10  ;;  %v4080_v17 = vpop.f32.mrb[239].mxu1  ;;  %v5137_v19 = vpop.f32.mrb[239].mxu0 }
 0x301   : > { %8431 = vtanh.f32 %v5133_v13  ;;  %4290 = vmatmul.mubr.bf16.gmra.mrb[236].mxu1 %v7943_v8  ;;  %v7972_v8 = vld [vmem:[%s8820_s23 + $0xb4c] ss:$16 sps:$4 sm:$0xff]  }
 0x302   : > { %v5136_v20 = vadd.f32 %v5135_v16, %v4079_v14  ;;  %5347 = vmatmul.mubr.bf16.gmra.mrb[88].mxu0 %v7946_v11  ;;  %4297 = vmatprep.mubr.bf16.mxu1 %v7951_v12 }
 0x303   : > { %v8428_v21 = vpop.eup %8427  ;;  %5354 = vmatprep.mubr.bf16.mxu0 %v7954_v18  ;;  %v7967_v18 = vld [vmem:[%s8820_s23 + $0xb40] ss:$16 sps:$4 sm:$0xff]  }
 0x304   : > { %8433 = vtanh.f32 %v5136_v20  ;;  %6055 = vst [vmem:[%s8984_s29 + $0x3a0] sm:$0xff] %v8428_v21  ;;  %v4083_v22 = vpop.f32.mrb[240].mxu1  ;;  %v7970_v21 = vld [vmem:[%s8820_s23 + $0xb48] ss:$16 sps:$4 sm:$0xff]  }
 0x305   : > { %v4084_v24 = vadd.f32 %v9464_v23, %v4083_v22  ;;  %v5140_v25 = vpop.f32.mrb[240].mxu0  ;;  %v4085_v26 = vpop.f32.mrb[241].mxu1  ;;  %v7975_v22 = vld [vmem:[%s8820_s23 + $0xb64] ss:$16 sps:$4 sm:$0xff]  }
 0x306   : > { %v8430_v41 = vpop.eup %8429  ;;  %v5142_v28 = vpop.f32.mrb[241].mxu0 }
 0x307   : > { %6056 = vst [vmem:[%s8984_s29 + $0x3a8] sm:$0xff] %v8430_v41  ;;  %v4086_v29 = vpop.f32.mrb[242].mxu1  ;;  %v5141_v32 = vadd.f32 %v5140_v25, %v4084_v24  ;;  %v5143_v34 = vpop.f32.mrb[242].mxu0 }
 0x308   : > { %v4087_v33 = vadd.f32 %v9464_v23, %v4086_v29  ;;  %v4088_v35 = vpop.f32.mrb[243].mxu1  ;;  %v5145_v37 = vpop.f32.mrb[243].mxu0 }
 0x309   : > { %8435 = vtanh.f32 %v5141_v32  ;;  %4298 = vmatmul.mubr.bf16.gmra.mrb[240].mxu1 %v7949_v27  ;;  %v7978_v27 = vld [vmem:[%s8820_s23 + $0xb6c] ss:$16 sps:$4 sm:$0xff]  }
 0x30a   : > { %v5144_v38 = vadd.f32 %v5143_v34, %v4087_v33  ;;  %5355 = vmatmul.mubr.bf16.gmra.mrb[92].mxu0 %v7952_v30  ;;  %4305 = vmatprep.mubr.bf16.mxu1 %v7957_v31 }
 0x30b   : > { %v8432_v39 = vpop.eup %8431  ;;  %5362 = vmatprep.mubr.bf16.mxu0 %v7960_v36  ;;  %v7973_v36 = vld [vmem:[%s8820_s23 + $0xb60] ss:$16 sps:$4 sm:$0xff]  }
 0x30c   : > { %8437 = vtanh.f32 %v5144_v38  ;;  %6057 = vst [vmem:[%s8984_s29 + $0x3b0] sm:$0xff] %v8432_v39  ;;  %v4091_v40 = vpop.f32.mrb[244].mxu1  ;;  %v7976_v39 = vld [vmem:[%s8820_s23 + $0xb68] ss:$16 sps:$4 sm:$0xff]  }
 0x30d   : > { %v4092_v42 = vadd.f32 %v9464_v23, %v4091_v40  ;;  %v5148_v43 = vpop.f32.mrb[244].mxu0  ;;  %v4093_v44 = vpop.f32.mrb[245].mxu1  ;;  %v7981_v40 = vld [vmem:[%s8820_s23 + $0xb84] ss:$16 sps:$4 sm:$0xff]  }
 0x30e   : > { %v8434_v59 = vpop.eup %8433  ;;  %v5150_v46 = vpop.f32.mrb[245].mxu0 }
 0x30f   : > { %6058 = vst [vmem:[%s8984_s29 + $0x3b8] sm:$0xff] %v8434_v59  ;;  %v4094_v47 = vpop.f32.mrb[246].mxu1  ;;  %v5149_v50 = vadd.f32 %v5148_v43, %v4092_v42  ;;  %v5151_v52 = vpop.f32.mrb[246].mxu0 }
 0x310   : > { %v4095_v51 = vadd.f32 %v9464_v23, %v4094_v47  ;;  %v4096_v53 = vpop.f32.mrb[247].mxu1  ;;  %v5153_v55 = vpop.f32.mrb[247].mxu0 }
 0x311   : > { %8439 = vtanh.f32 %v5149_v50  ;;  %4306 = vmatmul.mubr.bf16.gmra.mrb[244].mxu1 %v7955_v45  ;;  %v7984_v45 = vld [vmem:[%s8820_s23 + $0xb8c] ss:$16 sps:$4 sm:$0xff]  }
 0x312   : > { %v5152_v56 = vadd.f32 %v5151_v52, %v4095_v51  ;;  %5363 = vmatmul.mubr.bf16.gmra.mrb[96].mxu0 %v7958_v48  ;;  %4313 = vmatprep.mubr.bf16.mxu1 %v7963_v49 }
 0x313   : > { %v8436_v57 = vpop.eup %8435  ;;  %5370 = vmatprep.mubr.bf16.mxu0 %v7966_v54  ;;  %v7979_v54 = vld [vmem:[%s8820_s23 + $0xb80] ss:$16 sps:$4 sm:$0xff]  }
 0x314   : > { %8441 = vtanh.f32 %v5152_v56  ;;  %6059 = vst [vmem:[%s8984_s29 + $0x3c0] sm:$0xff] %v8436_v57  ;;  %v4099_v58 = vpop.f32.mrb[248].mxu1  ;;  %v7982_v57 = vld [vmem:[%s8820_s23 + $0xb88] ss:$16 sps:$4 sm:$0xff]  }
 0x315   : > { %v4100_v60 = vadd.f32 %v9464_v23, %v4099_v58  ;;  %v5156_v61 = vpop.f32.mrb[248].mxu0  ;;  %v4101_v62 = vpop.f32.mrb[249].mxu1  ;;  %v7987_v58 = vld [vmem:[%s8820_s23 + $0xba4] ss:$16 sps:$4 sm:$0xff]  }
 0x316   : > { %v8438_v15 = vpop.eup %8437  ;;  %v5158_v0 = vpop.f32.mrb[249].mxu0 }
 0x317   : > { %6060 = vst [vmem:[%s8984_s29 + $0x3c8] sm:$0xff] %v8438_v15  ;;  %v4102_v1 = vpop.f32.mrb[250].mxu1  ;;  %v5157_v4 = vadd.f32 %v5156_v61, %v4100_v60  ;;  %v5159_v6 = vpop.f32.mrb[250].mxu0 }
 0x318   : > { %v4103_v5 = vadd.f32 %v9464_v23, %v4102_v1  ;;  %v4104_v7 = vpop.f32.mrb[251].mxu1  ;;  %v5161_v9 = vpop.f32.mrb[251].mxu0 }
 0x319   : > { %8443 = vtanh.f32 %v5157_v4  ;;  %4314 = vmatmul.mubr.bf16.gmra.mrb[248].mxu1 %v7961_v63  ;;  %v7990_v63 = vld [vmem:[%s8820_s23 + $0xbac] ss:$16 sps:$4 sm:$0xff]  }
 0x31a   : > { %v5160_v10 = vadd.f32 %v5159_v6, %v4103_v5  ;;  %5371 = vmatmul.mubr.bf16.gmra.mrb[100].mxu0 %v7964_v2  ;;  %4321 = vmatprep.mubr.bf16.mxu1 %v7969_v3 }
 0x31b   : > { %v8440_v11 = vpop.eup %8439  ;;  %5378 = vmatprep.mubr.bf16.mxu0 %v7972_v8  ;;  %v7985_v8 = vld [vmem:[%s8820_s23 + $0xba0] ss:$16 sps:$4 sm:$0xff]  }
 0x31c   : > { %8445 = vtanh.f32 %v5160_v10  ;;  %6061 = vst [vmem:[%s8984_s29 + $0x3d0] sm:$0xff] %v8440_v11  ;;  %v4107_v12 = vpop.f32.mrb[252].mxu1  ;;  %v7988_v11 = vld [vmem:[%s8820_s23 + $0xba8] ss:$16 sps:$4 sm:$0xff]  }
 0x31d   : > { %v4108_v14 = vadd.f32 %v9464_v23, %v4107_v12  ;;  %v5164_v16 = vpop.f32.mrb[252].mxu0  ;;  %v4109_v17 = vpop.f32.mrb[253].mxu1  ;;  %v7993_v12 = vld [vmem:[%s8820_s23 + $0xbc4] ss:$16 sps:$4 sm:$0xff]  }
 0x31e   : > { %v8442_v13 = vpop.eup %8441  ;;  %v5166_v19 = vpop.f32.mrb[253].mxu0 }
 0x31f   : > { %6062 = vst [vmem:[%s8984_s29 + $0x3d8] sm:$0xff] %v8442_v13  ;;  %v4110_v20 = vpop.f32.mrb[254].mxu1  ;;  %v5165_v41 = vadd.f32 %v5164_v16, %v4108_v14  ;;  %v5167_v25 = vpop.f32.mrb[254].mxu0 }
 0x320   : > { %v4111_v24 = vadd.f32 %v9464_v23, %v4110_v20  ;;  %v4112_v26 = vpop.f32.mrb[255].mxu1  ;;  %v5169_v28 = vpop.f32.mrb[255].mxu0 }
 0x321   : > { %8447 = vtanh.f32 %v5165_v41  ;;  %4322 = vmatmul.mubr.bf16.gmra.mrb[252].mxu1 %v7967_v18  ;;  %v7996_v18 = vld [vmem:[%s8820_s23 + $0xbcc] ss:$16 sps:$4 sm:$0xff]  }
 0x322   : > { %v5168_v29 = vadd.f32 %v5167_v25, %v4111_v24  ;;  %5379 = vmatmul.mubr.bf16.gmra.mrb[104].mxu0 %v7970_v21  ;;  %4329 = vmatprep.mubr.bf16.mxu1 %v7975_v22 }
 0x323   : > { %v8444_v30 = vpop.eup %8443  ;;  %5386 = vmatprep.mubr.bf16.mxu0 %v7978_v27  ;;  %v7991_v27 = vld [vmem:[%s8820_s23 + $0xbc0] ss:$16 sps:$4 sm:$0xff]  }
 0x324   : > { %8449 = vtanh.f32 %v5168_v29  ;;  %6063 = vst [vmem:[%s8984_s29 + $0x3e0] sm:$0xff] %v8444_v30  ;;  %v4115_v31 = vpop.f32.mrb[148].mxu1  ;;  %v7994_v30 = vld [vmem:[%s8820_s23 + $0xbc8] ss:$16 sps:$4 sm:$0xff]  }
 0x325   : > { %v4116_v33 = vadd.f32 %v9464_v23, %v4115_v31  ;;  %v5172_v34 = vpop.f32.mrb[0].mxu0  ;;  %v4117_v35 = vpop.f32.mrb[149].mxu1  ;;  %v7999_v31 = vld [vmem:[%s8820_s23 + $0xbe4] ss:$16 sps:$4 sm:$0xff]  }
 0x326   : > { %v8446_v32 = vpop.eup %8445  ;;  %v5174_v37 = vpop.f32.mrb[1].mxu0 }
 0x327   : > { %6064 = vst [vmem:[%s8984_s29 + $0x3e8] sm:$0xff] %v8446_v32  ;;  %v4118_v38 = vpop.f32.mrb[150].mxu1  ;;  %v5173_v59 = vadd.f32 %v5172_v34, %v4116_v33  ;;  %v5175_v43 = vpop.f32.mrb[2].mxu0 }
 0x328   : > { %v4119_v42 = vadd.f32 %v9464_v23, %v4118_v38  ;;  %v4120_v44 = vpop.f32.mrb[151].mxu1  ;;  %v5177_v46 = vpop.f32.mrb[3].mxu0 }
 0x329   : > { %8451 = vtanh.f32 %v5173_v59  ;;  %4330 = vmatmul.mubr.bf16.gmra.mrb[148].mxu1 %v7973_v36  ;;  %v8002_v36 = vld [vmem:[%s8820_s23 + $0xbec] ss:$16 sps:$4 sm:$0xff]  }
 0x32a   : > { %v5176_v47 = vadd.f32 %v5175_v43, %v4119_v42  ;;  %5387 = vmatmul.mubr.bf16.gmra.mrb[108].mxu0 %v7976_v39  ;;  %4337 = vmatprep.mubr.bf16.mxu1 %v7981_v40 }
 0x32b   : > { %v8448_v48 = vpop.eup %8447  ;;  %5394 = vmatprep.mubr.bf16.mxu0 %v7984_v45  ;;  %v7997_v45 = vld [vmem:[%s8820_s23 + $0xbe0] ss:$16 sps:$4 sm:$0xff]  }
 0x32c   : > { %8453 = vtanh.f32 %v5176_v47  ;;  %6065 = vst [vmem:[%s8984_s29 + $0x3f0] sm:$0xff] %v8448_v48  ;;  %v4123_v49 = vpop.f32.mrb[152].mxu1  ;;  %v8000_v48 = vld [vmem:[%s8820_s23 + $0xbe8] ss:$16 sps:$4 sm:$0xff]  }
 0x32d   : > { %v4124_v51 = vadd.f32 %v9464_v23, %v4123_v49  ;;  %v5180_v52 = vpop.f32.mrb[4].mxu0  ;;  %v4125_v53 = vpop.f32.mrb[153].mxu1  ;;  %v8005_v49 = vld [vmem:[%s8820_s23 + $0xc04] ss:$16 sps:$4 sm:$0xff]  }
 0x32e   : > { %v8450_v50 = vpop.eup %8449  ;;  %v5182_v55 = vpop.f32.mrb[5].mxu0 }
 0x32f   : > { %6066 = vst [vmem:[%s8984_s29 + $0x3f8] sm:$0xff] %v8450_v50  ;;  %v4126_v56 = vpop.f32.mrb[154].mxu1  ;;  %v5181_v15 = vadd.f32 %v5180_v52, %v4124_v51  ;;  %v5183_v61 = vpop.f32.mrb[6].mxu0 }
 0x330   : > { %v4127_v60 = vadd.f32 %v9464_v23, %v4126_v56  ;;  %v4128_v62 = vpop.f32.mrb[155].mxu1  ;;  %v5185_v0 = vpop.f32.mrb[7].mxu0 }
 0x331   : > { %8455 = vtanh.f32 %v5181_v15  ;;  %4338 = vmatmul.mubr.bf16.gmra.mrb[152].mxu1 %v7979_v54  ;;  %v8008_v54 = vld [vmem:[%s8820_s23 + $0xc0c] ss:$16 sps:$4 sm:$0xff]  }
 0x332   : > { %v5184_v1 = vadd.f32 %v5183_v61, %v4127_v60  ;;  %5395 = vmatmul.mubr.bf16.gmra.mrb[112].mxu0 %v7982_v57  ;;  %4345 = vmatprep.mubr.bf16.mxu1 %v7987_v58 }
 0x333   : > { %v8452_v2 = vpop.eup %8451  ;;  %5402 = vmatprep.mubr.bf16.mxu0 %v7990_v63  ;;  %v8003_v63 = vld [vmem:[%s8820_s23 + $0xc00] ss:$16 sps:$4 sm:$0xff]  }
 0x334   : > { %8457 = vtanh.f32 %v5184_v1  ;;  %6067 = vst [vmem:[%s8984_s29 + $0x400] sm:$0xff] %v8452_v2  ;;  %v4131_v3 = vpop.f32.mrb[156].mxu1  ;;  %v8006_v2 = vld [vmem:[%s8820_s23 + $0xc08] ss:$16 sps:$4 sm:$0xff]  }
 0x335   : > { %v4132_v5 = vadd.f32 %v9464_v23, %v4131_v3  ;;  %v5188_v6 = vpop.f32.mrb[8].mxu0  ;;  %v4133_v7 = vpop.f32.mrb[157].mxu1  ;;  %v8011_v3 = vld [vmem:[%s8820_s23 + $0xc24] ss:$16 sps:$4 sm:$0xff]  }
 0x336   : > { %v8454_v4 = vpop.eup %8453  ;;  %v5190_v9 = vpop.f32.mrb[9].mxu0 }
 0x337   : > { %6068 = vst [vmem:[%s8984_s29 + $0x408] sm:$0xff] %v8454_v4  ;;  %v4134_v10 = vpop.f32.mrb[158].mxu1  ;;  %v5189_v13 = vadd.f32 %v5188_v6, %v4132_v5  ;;  %v5191_v16 = vpop.f32.mrb[10].mxu0 }
 0x338   : > { %v4135_v14 = vadd.f32 %v9464_v23, %v4134_v10  ;;  %v4136_v17 = vpop.f32.mrb[159].mxu1  ;;  %v5193_v19 = vpop.f32.mrb[11].mxu0 }
 0x339   : > { %8459 = vtanh.f32 %v5189_v13  ;;  %4346 = vmatmul.mubr.bf16.gmra.mrb[156].mxu1 %v7985_v8  ;;  %v8014_v8 = vld [vmem:[%s8820_s23 + $0xc2c] ss:$16 sps:$4 sm:$0xff]  }
 0x33a   : > { %v5192_v20 = vadd.f32 %v5191_v16, %v4135_v14  ;;  %5403 = vmatmul.mubr.bf16.gmra.mrb[116].mxu0 %v7988_v11  ;;  %4353 = vmatprep.mubr.bf16.mxu1 %v7993_v12 }
 0x33b   : > { %v8456_v21 = vpop.eup %8455  ;;  %5410 = vmatprep.mubr.bf16.mxu0 %v7996_v18  ;;  %v8009_v18 = vld [vmem:[%s8820_s23 + $0xc20] ss:$16 sps:$4 sm:$0xff]  }
 0x33c   : > { %8461 = vtanh.f32 %v5192_v20  ;;  %6069 = vst [vmem:[%s8984_s29 + $0x410] sm:$0xff] %v8456_v21  ;;  %v4139_v22 = vpop.f32.mrb[160].mxu1  ;;  %v8012_v21 = vld [vmem:[%s8820_s23 + $0xc28] ss:$16 sps:$4 sm:$0xff]  }
 0x33d   : > { %v4140_v24 = vadd.f32 %v9464_v23, %v4139_v22  ;;  %v5196_v25 = vpop.f32.mrb[12].mxu0  ;;  %v4141_v26 = vpop.f32.mrb[161].mxu1  ;;  %v8017_v22 = vld [vmem:[%s8820_s23 + $0xc44] ss:$16 sps:$4 sm:$0xff]  }
 0x33e   : > { %v8458_v41 = vpop.eup %8457  ;;  %v5198_v28 = vpop.f32.mrb[13].mxu0 }
 0x33f   : > { %6070 = vst [vmem:[%s8984_s29 + $0x418] sm:$0xff] %v8458_v41  ;;  %v4142_v29 = vpop.f32.mrb[162].mxu1  ;;  %v5197_v32 = vadd.f32 %v5196_v25, %v4140_v24  ;;  %v5199_v34 = vpop.f32.mrb[14].mxu0 }
 0x340   : > { %v4143_v33 = vadd.f32 %v9464_v23, %v4142_v29  ;;  %v4144_v35 = vpop.f32.mrb[163].mxu1  ;;  %v5201_v37 = vpop.f32.mrb[15].mxu0 }
 0x341   : > { %8463 = vtanh.f32 %v5197_v32  ;;  %4354 = vmatmul.mubr.bf16.gmra.mrb[160].mxu1 %v7991_v27  ;;  %v8020_v27 = vld [vmem:[%s8820_s23 + $0xc4c] ss:$16 sps:$4 sm:$0xff]  }
 0x342   : > { %v5200_v38 = vadd.f32 %v5199_v34, %v4143_v33  ;;  %5411 = vmatmul.mubr.bf16.gmra.mrb[120].mxu0 %v7994_v30  ;;  %4361 = vmatprep.mubr.bf16.mxu1 %v7999_v31 }
 0x343   : > { %v8460_v39 = vpop.eup %8459  ;;  %5418 = vmatprep.mubr.bf16.mxu0 %v8002_v36  ;;  %v8015_v36 = vld [vmem:[%s8820_s23 + $0xc40] ss:$16 sps:$4 sm:$0xff]  }
 0x344   : > { %8465 = vtanh.f32 %v5200_v38  ;;  %6071 = vst [vmem:[%s8984_s29 + $0x420] sm:$0xff] %v8460_v39  ;;  %v4147_v40 = vpop.f32.mrb[164].mxu1  ;;  %v8018_v39 = vld [vmem:[%s8820_s23 + $0xc48] ss:$16 sps:$4 sm:$0xff]  }
 0x345   : > { %v4148_v42 = vadd.f32 %v9464_v23, %v4147_v40  ;;  %v5204_v43 = vpop.f32.mrb[16].mxu0  ;;  %v4149_v44 = vpop.f32.mrb[165].mxu1  ;;  %v8023_v40 = vld [vmem:[%s8820_s23 + $0xc64] ss:$16 sps:$4 sm:$0xff]  }
 0x346   : > { %v8462_v59 = vpop.eup %8461  ;;  %v5206_v46 = vpop.f32.mrb[17].mxu0 }
 0x347   : > { %6072 = vst [vmem:[%s8984_s29 + $0x428] sm:$0xff] %v8462_v59  ;;  %v4150_v47 = vpop.f32.mrb[166].mxu1  ;;  %v5205_v50 = vadd.f32 %v5204_v43, %v4148_v42  ;;  %v5207_v52 = vpop.f32.mrb[18].mxu0 }
 0x348   : > { %v4151_v51 = vadd.f32 %v9464_v23, %v4150_v47  ;;  %v4152_v53 = vpop.f32.mrb[167].mxu1  ;;  %v5209_v55 = vpop.f32.mrb[19].mxu0 }
 0x349   : > { %8467 = vtanh.f32 %v5205_v50  ;;  %4362 = vmatmul.mubr.bf16.gmra.mrb[164].mxu1 %v7997_v45  ;;  %v8026_v45 = vld [vmem:[%s8820_s23 + $0xc6c] ss:$16 sps:$4 sm:$0xff]  }
 0x34a   : > { %v5208_v56 = vadd.f32 %v5207_v52, %v4151_v51  ;;  %5419 = vmatmul.mubr.bf16.gmra.mrb[124].mxu0 %v8000_v48  ;;  %4369 = vmatprep.mubr.bf16.mxu1 %v8005_v49 }
 0x34b   : > { %v8464_v57 = vpop.eup %8463  ;;  %5426 = vmatprep.mubr.bf16.mxu0 %v8008_v54  ;;  %v8021_v54 = vld [vmem:[%s8820_s23 + $0xc60] ss:$16 sps:$4 sm:$0xff]  }
 0x34c   : > { %8469 = vtanh.f32 %v5208_v56  ;;  %6073 = vst [vmem:[%s8984_s29 + $0x430] sm:$0xff] %v8464_v57  ;;  %v4155_v58 = vpop.f32.mrb[168].mxu1  ;;  %v8024_v57 = vld [vmem:[%s8820_s23 + $0xc68] ss:$16 sps:$4 sm:$0xff]  }
 0x34d   : > { %v4156_v60 = vadd.f32 %v9464_v23, %v4155_v58  ;;  %v5212_v61 = vpop.f32.mrb[20].mxu0  ;;  %v4157_v62 = vpop.f32.mrb[169].mxu1  ;;  %v8029_v58 = vld [vmem:[%s8820_s23 + $0xc84] ss:$16 sps:$4 sm:$0xff]  }
 0x34e   : > { %v8466_v15 = vpop.eup %8465  ;;  %v5214_v0 = vpop.f32.mrb[21].mxu0 }
 0x34f   : > { %6074 = vst [vmem:[%s8984_s29 + $0x438] sm:$0xff] %v8466_v15  ;;  %v4158_v1 = vpop.f32.mrb[170].mxu1  ;;  %v5213_v4 = vadd.f32 %v5212_v61, %v4156_v60  ;;  %v5215_v6 = vpop.f32.mrb[22].mxu0 }
 0x350   : > { %v4159_v5 = vadd.f32 %v9464_v23, %v4158_v1  ;;  %v4160_v7 = vpop.f32.mrb[171].mxu1  ;;  %v5217_v9 = vpop.f32.mrb[23].mxu0 }
 0x351   : > { %8471 = vtanh.f32 %v5213_v4  ;;  %4370 = vmatmul.mubr.bf16.gmra.mrb[168].mxu1 %v8003_v63  ;;  %v8032_v63 = vld [vmem:[%s8820_s23 + $0xc8c] ss:$16 sps:$4 sm:$0xff]  }
 0x352   : > { %v5216_v10 = vadd.f32 %v5215_v6, %v4159_v5  ;;  %5427 = vmatmul.mubr.bf16.gmra.mrb[128].mxu0 %v8006_v2  ;;  %4377 = vmatprep.mubr.bf16.mxu1 %v8011_v3 }
 0x353   : > { %v8468_v11 = vpop.eup %8467  ;;  %5434 = vmatprep.mubr.bf16.mxu0 %v8014_v8  ;;  %v8027_v8 = vld [vmem:[%s8820_s23 + $0xc80] ss:$16 sps:$4 sm:$0xff]  }
 0x354   : > { %8473 = vtanh.f32 %v5216_v10  ;;  %6075 = vst [vmem:[%s8984_s29 + $0x440] sm:$0xff] %v8468_v11  ;;  %v4163_v12 = vpop.f32.mrb[172].mxu1  ;;  %v8030_v11 = vld [vmem:[%s8820_s23 + $0xc88] ss:$16 sps:$4 sm:$0xff]  }
 0x355   : > { %v4164_v14 = vadd.f32 %v9464_v23, %v4163_v12  ;;  %v5220_v16 = vpop.f32.mrb[24].mxu0  ;;  %v4165_v17 = vpop.f32.mrb[173].mxu1  ;;  %v8035_v12 = vld [vmem:[%s8820_s23 + $0xca4] ss:$16 sps:$4 sm:$0xff]  }
 0x356   : > { %v8470_v13 = vpop.eup %8469  ;;  %v5222_v19 = vpop.f32.mrb[25].mxu0 }
 0x357   : > { %6076 = vst [vmem:[%s8984_s29 + $0x448] sm:$0xff] %v8470_v13  ;;  %v4166_v20 = vpop.f32.mrb[174].mxu1  ;;  %v5221_v41 = vadd.f32 %v5220_v16, %v4164_v14  ;;  %v5223_v25 = vpop.f32.mrb[26].mxu0 }
 0x358   : > { %v4167_v24 = vadd.f32 %v9464_v23, %v4166_v20  ;;  %v4168_v26 = vpop.f32.mrb[175].mxu1  ;;  %v5225_v28 = vpop.f32.mrb[27].mxu0 }
 0x359   : > { %8475 = vtanh.f32 %v5221_v41  ;;  %4378 = vmatmul.mubr.bf16.gmra.mrb[172].mxu1 %v8009_v18  ;;  %v8038_v18 = vld [vmem:[%s8820_s23 + $0xcac] ss:$16 sps:$4 sm:$0xff]  }
 0x35a   : > { %v5224_v29 = vadd.f32 %v5223_v25, %v4167_v24  ;;  %5435 = vmatmul.mubr.bf16.gmra.mrb[132].mxu0 %v8012_v21  ;;  %4385 = vmatprep.mubr.bf16.mxu1 %v8017_v22 }
 0x35b   : > { %v8472_v30 = vpop.eup %8471  ;;  %5442 = vmatprep.mubr.bf16.mxu0 %v8020_v27  ;;  %v8033_v27 = vld [vmem:[%s8820_s23 + $0xca0] ss:$16 sps:$4 sm:$0xff]  }
 0x35c   : > { %8477 = vtanh.f32 %v5224_v29  ;;  %6077 = vst [vmem:[%s8984_s29 + $0x450] sm:$0xff] %v8472_v30  ;;  %v4171_v31 = vpop.f32.mrb[176].mxu1  ;;  %v8036_v30 = vld [vmem:[%s8820_s23 + $0xca8] ss:$16 sps:$4 sm:$0xff]  }
 0x35d   : > { %v4172_v33 = vadd.f32 %v9464_v23, %v4171_v31  ;;  %v5228_v34 = vpop.f32.mrb[28].mxu0  ;;  %v4173_v35 = vpop.f32.mrb[177].mxu1  ;;  %v8041_v31 = vld [vmem:[%s8820_s23 + $0xcc4] ss:$16 sps:$4 sm:$0xff]  }
 0x35e   : > { %v8474_v32 = vpop.eup %8473  ;;  %v5230_v37 = vpop.f32.mrb[29].mxu0 }
 0x35f   : > { %6078 = vst [vmem:[%s8984_s29 + $0x458] sm:$0xff] %v8474_v32  ;;  %v4174_v38 = vpop.f32.mrb[178].mxu1  ;;  %v5229_v59 = vadd.f32 %v5228_v34, %v4172_v33  ;;  %v5231_v43 = vpop.f32.mrb[30].mxu0 }
 0x360   : > { %v4175_v42 = vadd.f32 %v9464_v23, %v4174_v38  ;;  %v4176_v44 = vpop.f32.mrb[179].mxu1  ;;  %v5233_v46 = vpop.f32.mrb[31].mxu0 }
 0x361   : > { %8479 = vtanh.f32 %v5229_v59  ;;  %4386 = vmatmul.mubr.bf16.gmra.mrb[176].mxu1 %v8015_v36  ;;  %v8044_v36 = vld [vmem:[%s8820_s23 + $0xccc] ss:$16 sps:$4 sm:$0xff]  }
 0x362   : > { %v5232_v47 = vadd.f32 %v5231_v43, %v4175_v42  ;;  %5443 = vmatmul.mubr.bf16.gmra.mrb[136].mxu0 %v8018_v39  ;;  %4393 = vmatprep.mubr.bf16.mxu1 %v8023_v40 }
 0x363   : > { %v8476_v48 = vpop.eup %8475  ;;  %5450 = vmatprep.mubr.bf16.mxu0 %v8026_v45  ;;  %v8039_v45 = vld [vmem:[%s8820_s23 + $0xcc0] ss:$16 sps:$4 sm:$0xff]  }
 0x364   : > { %8481 = vtanh.f32 %v5232_v47  ;;  %6079 = vst [vmem:[%s8984_s29 + $0x460] sm:$0xff] %v8476_v48  ;;  %v4179_v49 = vpop.f32.mrb[180].mxu1  ;;  %v8042_v48 = vld [vmem:[%s8820_s23 + $0xcc8] ss:$16 sps:$4 sm:$0xff]  }
 0x365   : > { %v4180_v51 = vadd.f32 %v9464_v23, %v4179_v49  ;;  %v5236_v52 = vpop.f32.mrb[32].mxu0  ;;  %v4181_v53 = vpop.f32.mrb[181].mxu1  ;;  %v8047_v49 = vld [vmem:[%s8820_s23 + $0xce4] ss:$16 sps:$4 sm:$0xff]  }
 0x366   : > { %v8478_v50 = vpop.eup %8477  ;;  %v5238_v55 = vpop.f32.mrb[33].mxu0 }
 0x367   : > { %6080 = vst [vmem:[%s8984_s29 + $0x468] sm:$0xff] %v8478_v50  ;;  %v4182_v56 = vpop.f32.mrb[182].mxu1  ;;  %v5237_v15 = vadd.f32 %v5236_v52, %v4180_v51  ;;  %v5239_v61 = vpop.f32.mrb[34].mxu0 }
 0x368   : > { %v4183_v60 = vadd.f32 %v9464_v23, %v4182_v56  ;;  %v4184_v62 = vpop.f32.mrb[183].mxu1  ;;  %v5241_v0 = vpop.f32.mrb[35].mxu0 }
 0x369   : > { %8483 = vtanh.f32 %v5237_v15  ;;  %4394 = vmatmul.mubr.bf16.gmra.mrb[180].mxu1 %v8021_v54  ;;  %v8050_v54 = vld [vmem:[%s8820_s23 + $0xcec] ss:$16 sps:$4 sm:$0xff]  }
 0x36a   : > { %v5240_v1 = vadd.f32 %v5239_v61, %v4183_v60  ;;  %5451 = vmatmul.mubr.bf16.gmra.mrb[140].mxu0 %v8024_v57  ;;  %4401 = vmatprep.mubr.bf16.mxu1 %v8029_v58 }
 0x36b   : > { %v8480_v2 = vpop.eup %8479  ;;  %5458 = vmatprep.mubr.bf16.mxu0 %v8032_v63  ;;  %v8045_v63 = vld [vmem:[%s8820_s23 + $0xce0] ss:$16 sps:$4 sm:$0xff]  }
 0x36c   : > { %8485 = vtanh.f32 %v5240_v1  ;;  %6081 = vst [vmem:[%s8984_s29 + $0x470] sm:$0xff] %v8480_v2  ;;  %v4187_v3 = vpop.f32.mrb[184].mxu1  ;;  %v8048_v2 = vld [vmem:[%s8820_s23 + $0xce8] ss:$16 sps:$4 sm:$0xff]  }
 0x36d   : > { %v4188_v5 = vadd.f32 %v9464_v23, %v4187_v3  ;;  %v5244_v6 = vpop.f32.mrb[36].mxu0  ;;  %v4189_v7 = vpop.f32.mrb[185].mxu1  ;;  %v8053_v3 = vld [vmem:[%s8820_s23 + $0xd04] ss:$16 sps:$4 sm:$0xff]  }
 0x36e   : > { %v8482_v4 = vpop.eup %8481  ;;  %v5246_v9 = vpop.f32.mrb[37].mxu0 }
 0x36f   : > { %6082 = vst [vmem:[%s8984_s29 + $0x478] sm:$0xff] %v8482_v4  ;;  %v4190_v10 = vpop.f32.mrb[186].mxu1  ;;  %v5245_v13 = vadd.f32 %v5244_v6, %v4188_v5  ;;  %v5247_v16 = vpop.f32.mrb[38].mxu0 }
 0x370   : > { %v4191_v14 = vadd.f32 %v9464_v23, %v4190_v10  ;;  %v4192_v17 = vpop.f32.mrb[187].mxu1  ;;  %v5249_v19 = vpop.f32.mrb[39].mxu0 }
 0x371   : > { %8487 = vtanh.f32 %v5245_v13  ;;  %4402 = vmatmul.mubr.bf16.gmra.mrb[184].mxu1 %v8027_v8  ;;  %v8056_v8 = vld [vmem:[%s8820_s23 + $0xd0c] ss:$16 sps:$4 sm:$0xff]  }
 0x372   : > { %v5248_v20 = vadd.f32 %v5247_v16, %v4191_v14  ;;  %5459 = vmatmul.mubr.bf16.gmra.mrb[144].mxu0 %v8030_v11  ;;  %4409 = vmatprep.mubr.bf16.mxu1 %v8035_v12 }
 0x373   : > { %v8484_v21 = vpop.eup %8483  ;;  %5466 = vmatprep.mubr.bf16.mxu0 %v8038_v18  ;;  %v8051_v18 = vld [vmem:[%s8820_s23 + $0xd00] ss:$16 sps:$4 sm:$0xff]  }
 0x374   : > { %8489 = vtanh.f32 %v5248_v20  ;;  %6083 = vst [vmem:[%s8984_s29 + $0x480] sm:$0xff] %v8484_v21  ;;  %v4195_v22 = vpop.f32.mrb[188].mxu1  ;;  %v8054_v21 = vld [vmem:[%s8820_s23 + $0xd08] ss:$16 sps:$4 sm:$0xff]  }
 0x375   : > { %v4196_v24 = vadd.f32 %v9464_v23, %v4195_v22  ;;  %v5252_v25 = vpop.f32.mrb[40].mxu0  ;;  %v4197_v26 = vpop.f32.mrb[189].mxu1  ;;  %v8059_v22 = vld [vmem:[%s8820_s23 + $0xd24] ss:$16 sps:$4 sm:$0xff]  }
 0x376   : > { %v8486_v41 = vpop.eup %8485  ;;  %v5254_v28 = vpop.f32.mrb[41].mxu0 }
 0x377   : > { %6084 = vst [vmem:[%s8984_s29 + $0x488] sm:$0xff] %v8486_v41  ;;  %v4198_v29 = vpop.f32.mrb[190].mxu1  ;;  %v5253_v32 = vadd.f32 %v5252_v25, %v4196_v24  ;;  %v5255_v34 = vpop.f32.mrb[42].mxu0 }
 0x378   : > { %v4199_v33 = vadd.f32 %v9464_v23, %v4198_v29  ;;  %v4200_v35 = vpop.f32.mrb[191].mxu1  ;;  %v5257_v37 = vpop.f32.mrb[43].mxu0 }
 0x379   : > { %8491 = vtanh.f32 %v5253_v32  ;;  %4410 = vmatmul.mubr.bf16.gmra.mrb[188].mxu1 %v8033_v27  ;;  %v8062_v27 = vld [vmem:[%s8820_s23 + $0xd2c] ss:$16 sps:$4 sm:$0xff]  }
 0x37a   : > { %v5256_v38 = vadd.f32 %v5255_v34, %v4199_v33  ;;  %5467 = vmatmul.mubr.bf16.gmra.mrb[148].mxu0 %v8036_v30  ;;  %4417 = vmatprep.mubr.bf16.mxu1 %v8041_v31 }
 0x37b   : > { %v8488_v39 = vpop.eup %8487  ;;  %5474 = vmatprep.mubr.bf16.mxu0 %v8044_v36  ;;  %v8057_v36 = vld [vmem:[%s8820_s23 + $0xd20] ss:$16 sps:$4 sm:$0xff]  }
 0x37c   : > { %8493 = vtanh.f32 %v5256_v38  ;;  %6085 = vst [vmem:[%s8984_s29 + $0x490] sm:$0xff] %v8488_v39  ;;  %v4203_v40 = vpop.f32.mrb[192].mxu1  ;;  %v8060_v39 = vld [vmem:[%s8820_s23 + $0xd28] ss:$16 sps:$4 sm:$0xff]  }
 0x37d   : > { %v4204_v42 = vadd.f32 %v9464_v23, %v4203_v40  ;;  %v5260_v43 = vpop.f32.mrb[44].mxu0  ;;  %v4205_v44 = vpop.f32.mrb[193].mxu1  ;;  %v8065_v40 = vld [vmem:[%s8820_s23 + $0xd44] ss:$16 sps:$4 sm:$0xff]  }
 0x37e   : > { %v8490_v59 = vpop.eup %8489  ;;  %v5262_v46 = vpop.f32.mrb[45].mxu0 }
 0x37f   : > { %6086 = vst [vmem:[%s8984_s29 + $0x498] sm:$0xff] %v8490_v59  ;;  %v4206_v47 = vpop.f32.mrb[194].mxu1  ;;  %v5261_v50 = vadd.f32 %v5260_v43, %v4204_v42  ;;  %v5263_v52 = vpop.f32.mrb[46].mxu0 }
 0x380   : > { %v4207_v51 = vadd.f32 %v9464_v23, %v4206_v47  ;;  %v4208_v53 = vpop.f32.mrb[195].mxu1  ;;  %v5265_v55 = vpop.f32.mrb[47].mxu0 }
 0x381   : > { %8495 = vtanh.f32 %v5261_v50  ;;  %4418 = vmatmul.mubr.bf16.gmra.mrb[192].mxu1 %v8039_v45  ;;  %v8068_v45 = vld [vmem:[%s8820_s23 + $0xd4c] ss:$16 sps:$4 sm:$0xff]  }
 0x382   : > { %v5264_v56 = vadd.f32 %v5263_v52, %v4207_v51  ;;  %5475 = vmatmul.mubr.bf16.gmra.mrb[152].mxu0 %v8042_v48  ;;  %4425 = vmatprep.mubr.bf16.mxu1 %v8047_v49 }
 0x383   : > { %v8492_v57 = vpop.eup %8491  ;;  %5482 = vmatprep.mubr.bf16.mxu0 %v8050_v54  ;;  %v8063_v54 = vld [vmem:[%s8820_s23 + $0xd40] ss:$16 sps:$4 sm:$0xff]  }
 0x384   : > { %8497 = vtanh.f32 %v5264_v56  ;;  %6087 = vst [vmem:[%s8984_s29 + $0x4a0] sm:$0xff] %v8492_v57  ;;  %v4211_v58 = vpop.f32.mrb[196].mxu1  ;;  %v8066_v57 = vld [vmem:[%s8820_s23 + $0xd48] ss:$16 sps:$4 sm:$0xff]  }
 0x385   : > { %v4212_v60 = vadd.f32 %v9464_v23, %v4211_v58  ;;  %v5268_v61 = vpop.f32.mrb[48].mxu0  ;;  %v4213_v62 = vpop.f32.mrb[197].mxu1  ;;  %v8071_v58 = vld [vmem:[%s8820_s23 + $0xd64] ss:$16 sps:$4 sm:$0xff]  }
 0x386   : > { %v8494_v15 = vpop.eup %8493  ;;  %v5270_v0 = vpop.f32.mrb[49].mxu0 }
 0x387   : > { %6088 = vst [vmem:[%s8984_s29 + $0x4a8] sm:$0xff] %v8494_v15  ;;  %v4214_v1 = vpop.f32.mrb[198].mxu1  ;;  %v5269_v4 = vadd.f32 %v5268_v61, %v4212_v60  ;;  %v5271_v6 = vpop.f32.mrb[50].mxu0 }
 0x388   : > { %v4215_v5 = vadd.f32 %v9464_v23, %v4214_v1  ;;  %v4216_v7 = vpop.f32.mrb[199].mxu1  ;;  %v5273_v9 = vpop.f32.mrb[51].mxu0 }
 0x389   : > { %8499 = vtanh.f32 %v5269_v4  ;;  %4426 = vmatmul.mubr.bf16.gmra.mrb[196].mxu1 %v8045_v63  ;;  %v8074_v63 = vld [vmem:[%s8820_s23 + $0xd6c] ss:$16 sps:$4 sm:$0xff]   ;;  %v9629_v4 = vld [vmem:[%s9924_s2] ss:$0 sm:$0xff] }
 0x38a   : > { %v5272_v10 = vadd.f32 %v5271_v6, %v4215_v5  ;;  %5483 = vmatmul.mubr.bf16.gmra.mrb[156].mxu0 %v8048_v2  ;;  %4433 = vmatprep.mubr.bf16.mxu1 %v8053_v3 }
 0x38b   : > { %v8496_v11 = vpop.eup %8495  ;;  %5490 = vmatprep.mubr.bf16.mxu0 %v8056_v8  ;;  %v8069_v8 = vld [vmem:[%s8820_s23 + $0xd60] ss:$16 sps:$4 sm:$0xff]  }
 0x38c   : > { %8501 = vtanh.f32 %v5272_v10  ;;  %6089 = vst [vmem:[%s8984_s29 + $0x4b0] sm:$0xff] %v8496_v11  ;;  %v4219_v12 = vpop.f32.mrb[200].mxu1  ;;  %v8072_v11 = vld [vmem:[%s8820_s23 + $0xd68] ss:$16 sps:$4 sm:$0xff]  }
 0x38d   : > { %v4220_v14 = vadd.f32 %v9464_v23, %v4219_v12  ;;  %v5276_v16 = vpop.f32.mrb[52].mxu0  ;;  %v4221_v17 = vpop.f32.mrb[201].mxu1  ;;  %v8077_v12 = vld [vmem:[%s8820_s23 + $0xd84] ss:$16 sps:$4 sm:$0xff]  }
 0x38e   : > { %v8498_v13 = vpop.eup %8497  ;;  %v5278_v19 = vpop.f32.mrb[53].mxu0 }
 0x38f   : > { %6090 = vst [vmem:[%s8984_s29 + $0x4b8] sm:$0xff] %v8498_v13  ;;  %v4222_v20 = vpop.f32.mrb[202].mxu1  ;;  %v5277_v41 = vadd.f32 %v5276_v16, %v4220_v14  ;;  %v5279_v25 = vpop.f32.mrb[54].mxu0 }
 0x390   : > { %v4223_v24 = vadd.f32 %v9464_v23, %v4222_v20  ;;  %v4224_v26 = vpop.f32.mrb[203].mxu1  ;;  %v5281_v28 = vpop.f32.mrb[55].mxu0 }
 0x391   : > { %8503 = vtanh.f32 %v5277_v41  ;;  %4434 = vmatmul.mubr.bf16.gmra.mrb[200].mxu1 %v8051_v18  ;;  %v8080_v18 = vld [vmem:[%s8820_s23 + $0xd8c] ss:$16 sps:$4 sm:$0xff]  }
 0x392   : > { %v5280_v29 = vadd.f32 %v5279_v25, %v4223_v24  ;;  %5491 = vmatmul.mubr.bf16.gmra.mrb[160].mxu0 %v8054_v21  ;;  %4441 = vmatprep.mubr.bf16.mxu1 %v8059_v22 }
 0x393   : > { %v8500_v30 = vpop.eup %8499  ;;  %5498 = vmatprep.mubr.bf16.mxu0 %v8062_v27  ;;  %v8075_v27 = vld [vmem:[%s8820_s23 + $0xd80] ss:$16 sps:$4 sm:$0xff]  }
 0x394   : > { %8505 = vtanh.f32 %v5280_v29  ;;  %6091 = vst [vmem:[%s8984_s29 + $0x4c0] sm:$0xff] %v8500_v30  ;;  %v4227_v31 = vpop.f32.mrb[204].mxu1  ;;  %v8078_v30 = vld [vmem:[%s8820_s23 + $0xd88] ss:$16 sps:$4 sm:$0xff]  }
 0x395   : > { %v4228_v33 = vadd.f32 %v9464_v23, %v4227_v31  ;;  %v5284_v34 = vpop.f32.mrb[56].mxu0  ;;  %v4229_v35 = vpop.f32.mrb[205].mxu1  ;;  %v8083_v31 = vld [vmem:[%s8820_s23 + $0xda4] ss:$16 sps:$4 sm:$0xff]  }
 0x396   : > { %v8502_v32 = vpop.eup %8501  ;;  %v5286_v37 = vpop.f32.mrb[57].mxu0 }
 0x397   : > { %6092 = vst [vmem:[%s8984_s29 + $0x4c8] sm:$0xff] %v8502_v32  ;;  %v4230_v38 = vpop.f32.mrb[206].mxu1  ;;  %v5285_v59 = vadd.f32 %v5284_v34, %v4228_v33  ;;  %v5287_v43 = vpop.f32.mrb[58].mxu0 }
 0x398   : > { %v4231_v42 = vadd.f32 %v9464_v23, %v4230_v38  ;;  %v4232_v44 = vpop.f32.mrb[207].mxu1  ;;  %v5289_v46 = vpop.f32.mrb[59].mxu0 }
 0x399   : > { %8507 = vtanh.f32 %v5285_v59  ;;  %4442 = vmatmul.mubr.bf16.gmra.mrb[204].mxu1 %v8057_v36  ;;  %v8086_v36 = vld [vmem:[%s8820_s23 + $0xdac] ss:$16 sps:$4 sm:$0xff]  }
 0x39a   : > { %v5288_v47 = vadd.f32 %v5287_v43, %v4231_v42  ;;  %5499 = vmatmul.mubr.bf16.gmra.mrb[164].mxu0 %v8060_v39  ;;  %4449 = vmatprep.mubr.bf16.mxu1 %v8065_v40 }
 0x39b   : > { %v8504_v48 = vpop.eup %8503  ;;  %5506 = vmatprep.mubr.bf16.mxu0 %v8068_v45  ;;  %v8081_v45 = vld [vmem:[%s8820_s23 + $0xda0] ss:$16 sps:$4 sm:$0xff]  }
 0x39c   : > { %8509 = vtanh.f32 %v5288_v47  ;;  %6093 = vst [vmem:[%s8984_s29 + $0x4d0] sm:$0xff] %v8504_v48  ;;  %v4235_v49 = vpop.f32.mrb[208].mxu1  ;;  %v8084_v48 = vld [vmem:[%s8820_s23 + $0xda8] ss:$16 sps:$4 sm:$0xff]  }
 0x39d   : > { %v4236_v51 = vadd.f32 %v9464_v23, %v4235_v49  ;;  %v5292_v52 = vpop.f32.mrb[60].mxu0  ;;  %v4237_v53 = vpop.f32.mrb[209].mxu1  ;;  %v8089_v49 = vld [vmem:[%s8820_s23 + $0xdc4] ss:$16 sps:$4 sm:$0xff]  }
 0x39e   : > { %v8506_v50 = vpop.eup %8505  ;;  %v5294_v55 = vpop.f32.mrb[61].mxu0 }
 0x39f   : > { %6094 = vst [vmem:[%s8984_s29 + $0x4d8] sm:$0xff] %v8506_v50  ;;  %v4238_v56 = vpop.f32.mrb[210].mxu1  ;;  %v5293_v15 = vadd.f32 %v5292_v52, %v4236_v51  ;;  %v5295_v61 = vpop.f32.mrb[62].mxu0 }
 0x3a0   : > { %v4239_v60 = vadd.f32 %v9464_v23, %v4238_v56  ;;  %v4240_v62 = vpop.f32.mrb[211].mxu1  ;;  %v5297_v0 = vpop.f32.mrb[63].mxu0 }
 0x3a1   : > { %8511 = vtanh.f32 %v5293_v15  ;;  %4450 = vmatmul.mubr.bf16.gmra.mrb[208].mxu1 %v8063_v54  ;;  %v8092_v54 = vld [vmem:[%s8820_s23 + $0xdcc] ss:$16 sps:$4 sm:$0xff]  }
 0x3a2   : > { %v5296_v1 = vadd.f32 %v5295_v61, %v4239_v60  ;;  %5507 = vmatmul.mubr.bf16.gmra.mrb[168].mxu0 %v8066_v57  ;;  %4457 = vmatprep.mubr.bf16.mxu1 %v8071_v58 }
 0x3a3   : > { %v8508_v2 = vpop.eup %8507  ;;  %5514 = vmatprep.mubr.bf16.mxu0 %v8074_v63  ;;  %v8087_v63 = vld [vmem:[%s8820_s23 + $0xdc0] ss:$16 sps:$4 sm:$0xff]  }
 0x3a4   : > { %8513 = vtanh.f32 %v5296_v1  ;;  %6095 = vst [vmem:[%s8984_s29 + $0x4e0] sm:$0xff] %v8508_v2  ;;  %v4243_v3 = vpop.f32.mrb[212].mxu1  ;;  %v8090_v2 = vld [vmem:[%s8820_s23 + $0xdc8] ss:$16 sps:$4 sm:$0xff]  }
 0x3a5   : > { %v4244_v5 = vadd.f32 %v9629_v4, %v4243_v3  ;;  %v5300_v6 = vpop.f32.mrb[64].mxu0  ;;  %v4245_v7 = vpop.f32.mrb[213].mxu1  ;;  %v8095_v3 = vld [vmem:[%s8820_s23 + $0xde4] ss:$16 sps:$4 sm:$0xff]  }
 0x3a6   : > { %v8510_v23 = vpop.eup %8509  ;;  %v5302_v9 = vpop.f32.mrb[65].mxu0 }
 0x3a7   : > { %6096 = vst [vmem:[%s8984_s29 + $0x4e8] sm:$0xff] %v8510_v23  ;;  %v4246_v10 = vpop.f32.mrb[214].mxu1  ;;  %v5301_v13 = vadd.f32 %v5300_v6, %v4244_v5  ;;  %v5303_v16 = vpop.f32.mrb[66].mxu0 }
 0x3a8   : > { %v4247_v14 = vadd.f32 %v9629_v4, %v4246_v10  ;;  %v4248_v17 = vpop.f32.mrb[215].mxu1  ;;  %v5305_v19 = vpop.f32.mrb[67].mxu0 }
 0x3a9   : > { %8515 = vtanh.f32 %v5301_v13  ;;  %4458 = vmatmul.mubr.bf16.gmra.mrb[212].mxu1 %v8069_v8  ;;  %v8098_v8 = vld [vmem:[%s8820_s23 + $0xdec] ss:$16 sps:$4 sm:$0xff]  }
 0x3aa   : > { %v5304_v20 = vadd.f32 %v5303_v16, %v4247_v14  ;;  %5515 = vmatmul.mubr.bf16.gmra.mrb[172].mxu0 %v8072_v11  ;;  %4465 = vmatprep.mubr.bf16.mxu1 %v8077_v12 }
 0x3ab   : > { %v8512_v21 = vpop.eup %8511  ;;  %5522 = vmatprep.mubr.bf16.mxu0 %v8080_v18  ;;  %v8093_v18 = vld [vmem:[%s8820_s23 + $0xde0] ss:$16 sps:$4 sm:$0xff]  }
 0x3ac   : > { %8517 = vtanh.f32 %v5304_v20  ;;  %6097 = vst [vmem:[%s8984_s29 + $0x4f0] sm:$0xff] %v8512_v21  ;;  %v4251_v22 = vpop.f32.mrb[216].mxu1  ;;  %v8096_v21 = vld [vmem:[%s8820_s23 + $0xde8] ss:$16 sps:$4 sm:$0xff]  }
 0x3ad   : > { %v4252_v24 = vadd.f32 %v9629_v4, %v4251_v22  ;;  %v5308_v25 = vpop.f32.mrb[68].mxu0  ;;  %v4253_v26 = vpop.f32.mrb[217].mxu1  ;;  %v8101_v22 = vld [vmem:[%s8820_s23 + $0xe04] ss:$16 sps:$4 sm:$0xff]  }
 0x3ae   : > { %v8514_v41 = vpop.eup %8513  ;;  %v5310_v28 = vpop.f32.mrb[69].mxu0 }
 0x3af   : > { %6098 = vst [vmem:[%s8984_s29 + $0x4f8] sm:$0xff] %v8514_v41  ;;  %v4254_v29 = vpop.f32.mrb[218].mxu1  ;;  %v5309_v32 = vadd.f32 %v5308_v25, %v4252_v24  ;;  %v5311_v34 = vpop.f32.mrb[70].mxu0 }
 0x3b0   : > { %v4255_v33 = vadd.f32 %v9629_v4, %v4254_v29  ;;  %v4256_v35 = vpop.f32.mrb[219].mxu1  ;;  %v5313_v37 = vpop.f32.mrb[71].mxu0 }
 0x3b1   : > { %8519 = vtanh.f32 %v5309_v32  ;;  %4466 = vmatmul.mubr.bf16.gmra.mrb[216].mxu1 %v8075_v27  ;;  %v8104_v27 = vld [vmem:[%s8820_s23 + $0xe0c] ss:$16 sps:$4 sm:$0xff]  }
 0x3b2   : > { %v5312_v38 = vadd.f32 %v5311_v34, %v4255_v33  ;;  %5523 = vmatmul.mubr.bf16.gmra.mrb[176].mxu0 %v8078_v30  ;;  %4473 = vmatprep.mubr.bf16.mxu1 %v8083_v31 }
 0x3b3   : > { %v8516_v39 = vpop.eup %8515  ;;  %5530 = vmatprep.mubr.bf16.mxu0 %v8086_v36  ;;  %v8099_v36 = vld [vmem:[%s8820_s23 + $0xe00] ss:$16 sps:$4 sm:$0xff]  }
 0x3b4   : > { %8521 = vtanh.f32 %v5312_v38  ;;  %6099 = vst [vmem:[%s8984_s29 + $0x500] sm:$0xff] %v8516_v39  ;;  %v4259_v40 = vpop.f32.mrb[220].mxu1  ;;  %v8102_v39 = vld [vmem:[%s8820_s23 + $0xe08] ss:$16 sps:$4 sm:$0xff]  }
 0x3b5   : > { %v4260_v42 = vadd.f32 %v9629_v4, %v4259_v40  ;;  %v5316_v43 = vpop.f32.mrb[72].mxu0  ;;  %v4261_v44 = vpop.f32.mrb[221].mxu1  ;;  %v8107_v40 = vld [vmem:[%s8820_s23 + $0xe24] ss:$16 sps:$4 sm:$0xff]  }
 0x3b6   : > { %v8518_v59 = vpop.eup %8517  ;;  %v5318_v46 = vpop.f32.mrb[73].mxu0 }
 0x3b7   : > { %6100 = vst [vmem:[%s8984_s29 + $0x508] sm:$0xff] %v8518_v59  ;;  %v4262_v47 = vpop.f32.mrb[222].mxu1  ;;  %v5317_v50 = vadd.f32 %v5316_v43, %v4260_v42  ;;  %v5319_v52 = vpop.f32.mrb[74].mxu0 }
 0x3b8   : > { %v4263_v51 = vadd.f32 %v9629_v4, %v4262_v47  ;;  %v4264_v53 = vpop.f32.mrb[223].mxu1  ;;  %v5321_v55 = vpop.f32.mrb[75].mxu0 }
 0x3b9   : > { %8523 = vtanh.f32 %v5317_v50  ;;  %4474 = vmatmul.mubr.bf16.gmra.mrb[220].mxu1 %v8081_v45  ;;  %v8110_v45 = vld [vmem:[%s8820_s23 + $0xe2c] ss:$16 sps:$4 sm:$0xff]  }
 0x3ba   : > { %v5320_v56 = vadd.f32 %v5319_v52, %v4263_v51  ;;  %5531 = vmatmul.mubr.bf16.gmra.mrb[180].mxu0 %v8084_v48  ;;  %4481 = vmatprep.mubr.bf16.mxu1 %v8089_v49 }
 0x3bb   : > { %v8520_v57 = vpop.eup %8519  ;;  %5538 = vmatprep.mubr.bf16.mxu0 %v8092_v54  ;;  %v8105_v54 = vld [vmem:[%s8820_s23 + $0xe20] ss:$16 sps:$4 sm:$0xff]  }
 0x3bc   : > { %8525 = vtanh.f32 %v5320_v56  ;;  %6101 = vst [vmem:[%s8984_s29 + $0x510] sm:$0xff] %v8520_v57  ;;  %v4267_v58 = vpop.f32.mrb[224].mxu1  ;;  %v8108_v57 = vld [vmem:[%s8820_s23 + $0xe28] ss:$16 sps:$4 sm:$0xff]  }
 0x3bd   : > { %v4268_v60 = vadd.f32 %v9629_v4, %v4267_v58  ;;  %v5324_v61 = vpop.f32.mrb[76].mxu0  ;;  %v4269_v62 = vpop.f32.mrb[225].mxu1  ;;  %v8113_v58 = vld [vmem:[%s8820_s23 + $0xe44] ss:$16 sps:$4 sm:$0xff]  }
 0x3be   : > { %v8522_v15 = vpop.eup %8521  ;;  %v5326_v0 = vpop.f32.mrb[77].mxu0 }
 0x3bf   : > { %6102 = vst [vmem:[%s8984_s29 + $0x518] sm:$0xff] %v8522_v15  ;;  %v4270_v1 = vpop.f32.mrb[226].mxu1  ;;  %v5325_v23 = vadd.f32 %v5324_v61, %v4268_v60  ;;  %v5327_v6 = vpop.f32.mrb[78].mxu0 }
 0x3c0   : > { %v4271_v5 = vadd.f32 %v9629_v4, %v4270_v1  ;;  %v4272_v7 = vpop.f32.mrb[227].mxu1  ;;  %v5329_v9 = vpop.f32.mrb[79].mxu0 }
 0x3c1   : > { %8527 = vtanh.f32 %v5325_v23  ;;  %4482 = vmatmul.mubr.bf16.gmra.mrb[224].mxu1 %v8087_v63  ;;  %v8116_v63 = vld [vmem:[%s8820_s23 + $0xe4c] ss:$16 sps:$4 sm:$0xff]  }
 0x3c2   : > { %v5328_v10 = vadd.f32 %v5327_v6, %v4271_v5  ;;  %5539 = vmatmul.mubr.bf16.gmra.mrb[184].mxu0 %v8090_v2  ;;  %4489 = vmatprep.mubr.bf16.mxu1 %v8095_v3 }
 0x3c3   : > { %v8524_v11 = vpop.eup %8523  ;;  %5546 = vmatprep.mubr.bf16.mxu0 %v8098_v8  ;;  %v8111_v8 = vld [vmem:[%s8820_s23 + $0xe40] ss:$16 sps:$4 sm:$0xff]  }
 0x3c4   : > { %8529 = vtanh.f32 %v5328_v10  ;;  %6103 = vst [vmem:[%s8984_s29 + $0x520] sm:$0xff] %v8524_v11  ;;  %v4275_v12 = vpop.f32.mrb[228].mxu1  ;;  %v8114_v11 = vld [vmem:[%s8820_s23 + $0xe48] ss:$16 sps:$4 sm:$0xff]  }
 0x3c5   : > { %v4276_v14 = vadd.f32 %v9629_v4, %v4275_v12  ;;  %v5332_v16 = vpop.f32.mrb[80].mxu0  ;;  %v4277_v17 = vpop.f32.mrb[229].mxu1  ;;  %v8119_v12 = vld [vmem:[%s8820_s23 + $0xe64] ss:$16 sps:$4 sm:$0xff]  }
 0x3c6   : > { %v8526_v13 = vpop.eup %8525  ;;  %v5334_v19 = vpop.f32.mrb[81].mxu0 }
 0x3c7   : > { %6104 = vst [vmem:[%s8984_s29 + $0x528] sm:$0xff] %v8526_v13  ;;  %v4278_v20 = vpop.f32.mrb[230].mxu1  ;;  %v5333_v41 = vadd.f32 %v5332_v16, %v4276_v14  ;;  %v5335_v25 = vpop.f32.mrb[82].mxu0 }
 0x3c8   : > { %v4279_v24 = vadd.f32 %v9629_v4, %v4278_v20  ;;  %v4280_v26 = vpop.f32.mrb[231].mxu1  ;;  %v5337_v28 = vpop.f32.mrb[83].mxu0 }
 0x3c9   : > { %8531 = vtanh.f32 %v5333_v41  ;;  %4490 = vmatmul.mubr.bf16.gmra.mrb[228].mxu1 %v8093_v18  ;;  %v8122_v18 = vld [vmem:[%s8820_s23 + $0xe6c] ss:$16 sps:$4 sm:$0xff]  }
 0x3ca   : > { %v5336_v29 = vadd.f32 %v5335_v25, %v4279_v24  ;;  %5547 = vmatmul.mubr.bf16.gmra.mrb[188].mxu0 %v8096_v21  ;;  %4497 = vmatprep.mubr.bf16.mxu1 %v8101_v22 }
 0x3cb   : > { %v8528_v30 = vpop.eup %8527  ;;  %5554 = vmatprep.mubr.bf16.mxu0 %v8104_v27  ;;  %v8117_v27 = vld [vmem:[%s8820_s23 + $0xe60] ss:$16 sps:$4 sm:$0xff]  }
 0x3cc   : > { %8533 = vtanh.f32 %v5336_v29  ;;  %6105 = vst [vmem:[%s8984_s29 + $0x530] sm:$0xff] %v8528_v30  ;;  %v4283_v31 = vpop.f32.mrb[232].mxu1  ;;  %v8120_v30 = vld [vmem:[%s8820_s23 + $0xe68] ss:$16 sps:$4 sm:$0xff]  }
 0x3cd   : > { %v4284_v33 = vadd.f32 %v9629_v4, %v4283_v31  ;;  %v5340_v34 = vpop.f32.mrb[84].mxu0  ;;  %v4285_v35 = vpop.f32.mrb[233].mxu1  ;;  %v8125_v31 = vld [vmem:[%s8820_s23 + $0xe84] ss:$16 sps:$4 sm:$0xff]  }
 0x3ce   : > { %v8530_v32 = vpop.eup %8529  ;;  %v5342_v37 = vpop.f32.mrb[85].mxu0 }
 0x3cf   : > { %6106 = vst [vmem:[%s8984_s29 + $0x538] sm:$0xff] %v8530_v32  ;;  %v4286_v38 = vpop.f32.mrb[234].mxu1  ;;  %v5341_v59 = vadd.f32 %v5340_v34, %v4284_v33  ;;  %v5343_v43 = vpop.f32.mrb[86].mxu0 }
 0x3d0   : > { %v4287_v42 = vadd.f32 %v9629_v4, %v4286_v38  ;;  %v4288_v44 = vpop.f32.mrb[235].mxu1  ;;  %v5345_v46 = vpop.f32.mrb[87].mxu0 }
 0x3d1   : > { %8535 = vtanh.f32 %v5341_v59  ;;  %4498 = vmatmul.mubr.bf16.gmra.mrb[232].mxu1 %v8099_v36  ;;  %v8128_v36 = vld [vmem:[%s8820_s23 + $0xe8c] ss:$16 sps:$4 sm:$0xff]  }
 0x3d2   : > { %v5344_v47 = vadd.f32 %v5343_v43, %v4287_v42  ;;  %5555 = vmatmul.mubr.bf16.gmra.mrb[192].mxu0 %v8102_v39  ;;  %4505 = vmatprep.mubr.bf16.mxu1 %v8107_v40 }
 0x3d3   : > { %v8532_v48 = vpop.eup %8531  ;;  %5562 = vmatprep.mubr.bf16.mxu0 %v8110_v45  ;;  %v8123_v45 = vld [vmem:[%s8820_s23 + $0xe80] ss:$16 sps:$4 sm:$0xff]  }
 0x3d4   : > { %8537 = vtanh.f32 %v5344_v47  ;;  %6107 = vst [vmem:[%s8984_s29 + $0x540] sm:$0xff] %v8532_v48  ;;  %v4291_v49 = vpop.f32.mrb[236].mxu1  ;;  %v8126_v48 = vld [vmem:[%s8820_s23 + $0xe88] ss:$16 sps:$4 sm:$0xff]  }
 0x3d5   : > { %v4292_v51 = vadd.f32 %v9629_v4, %v4291_v49  ;;  %v5348_v52 = vpop.f32.mrb[88].mxu0  ;;  %v4293_v53 = vpop.f32.mrb[237].mxu1  ;;  %v8131_v49 = vld [vmem:[%s8820_s23 + $0xea4] ss:$16 sps:$4 sm:$0xff]  }
 0x3d6   : > { %v8534_v50 = vpop.eup %8533  ;;  %v5350_v55 = vpop.f32.mrb[89].mxu0 }
 0x3d7   : > { %6108 = vst [vmem:[%s8984_s29 + $0x548] sm:$0xff] %v8534_v50  ;;  %v4294_v56 = vpop.f32.mrb[238].mxu1  ;;  %v5349_v15 = vadd.f32 %v5348_v52, %v4292_v51  ;;  %v5351_v61 = vpop.f32.mrb[90].mxu0 }
 0x3d8   : > { %v4295_v60 = vadd.f32 %v9629_v4, %v4294_v56  ;;  %v4296_v62 = vpop.f32.mrb[239].mxu1  ;;  %v5353_v0 = vpop.f32.mrb[91].mxu0 }
 0x3d9   : > { %8539 = vtanh.f32 %v5349_v15  ;;  %4506 = vmatmul.mubr.bf16.gmra.mrb[236].mxu1 %v8105_v54  ;;  %v8134_v54 = vld [vmem:[%s8820_s23 + $0xeac] ss:$16 sps:$4 sm:$0xff]  }
 0x3da   : > { %v5352_v1 = vadd.f32 %v5351_v61, %v4295_v60  ;;  %5563 = vmatmul.mubr.bf16.gmra.mrb[196].mxu0 %v8108_v57  ;;  %4513 = vmatprep.mubr.bf16.mxu1 %v8113_v58 }
 0x3db   : > { %v8536_v2 = vpop.eup %8535  ;;  %5570 = vmatprep.mubr.bf16.mxu0 %v8116_v63  ;;  %v8129_v63 = vld [vmem:[%s8820_s23 + $0xea0] ss:$16 sps:$4 sm:$0xff]  }
 0x3dc   : > { %8541 = vtanh.f32 %v5352_v1  ;;  %6109 = vst [vmem:[%s8984_s29 + $0x550] sm:$0xff] %v8536_v2  ;;  %v4299_v3 = vpop.f32.mrb[240].mxu1  ;;  %v8132_v2 = vld [vmem:[%s8820_s23 + $0xea8] ss:$16 sps:$4 sm:$0xff]  }
 0x3dd   : > { %v4300_v5 = vadd.f32 %v9629_v4, %v4299_v3  ;;  %v5356_v6 = vpop.f32.mrb[92].mxu0  ;;  %v4301_v7 = vpop.f32.mrb[241].mxu1  ;;  %v8137_v3 = vld [vmem:[%s8820_s23 + $0xec4] ss:$16 sps:$4 sm:$0xff]  }
 0x3de   : > { %v8538_v23 = vpop.eup %8537  ;;  %v5358_v9 = vpop.f32.mrb[93].mxu0 }
 0x3df   : > { %6110 = vst [vmem:[%s8984_s29 + $0x558] sm:$0xff] %v8538_v23  ;;  %v4302_v10 = vpop.f32.mrb[242].mxu1  ;;  %v5357_v13 = vadd.f32 %v5356_v6, %v4300_v5  ;;  %v5359_v16 = vpop.f32.mrb[94].mxu0 }
 0x3e0   : > { %v4303_v14 = vadd.f32 %v9629_v4, %v4302_v10  ;;  %v4304_v17 = vpop.f32.mrb[243].mxu1  ;;  %v5361_v19 = vpop.f32.mrb[95].mxu0 }
 0x3e1   : > { %8543 = vtanh.f32 %v5357_v13  ;;  %4514 = vmatmul.mubr.bf16.gmra.mrb[240].mxu1 %v8111_v8  ;;  %v8140_v8 = vld [vmem:[%s8820_s23 + $0xecc] ss:$16 sps:$4 sm:$0xff]  }
 0x3e2   : > { %v5360_v20 = vadd.f32 %v5359_v16, %v4303_v14  ;;  %5571 = vmatmul.mubr.bf16.gmra.mrb[200].mxu0 %v8114_v11  ;;  %4521 = vmatprep.mubr.bf16.mxu1 %v8119_v12 }
 0x3e3   : > { %v8540_v21 = vpop.eup %8539  ;;  %5578 = vmatprep.mubr.bf16.mxu0 %v8122_v18  ;;  %v8135_v18 = vld [vmem:[%s8820_s23 + $0xec0] ss:$16 sps:$4 sm:$0xff]  }
 0x3e4   : > { %8545 = vtanh.f32 %v5360_v20  ;;  %6111 = vst [vmem:[%s8984_s29 + $0x560] sm:$0xff] %v8540_v21  ;;  %v4307_v22 = vpop.f32.mrb[244].mxu1  ;;  %v8138_v21 = vld [vmem:[%s8820_s23 + $0xec8] ss:$16 sps:$4 sm:$0xff]  }
 0x3e5   : > { %v4308_v24 = vadd.f32 %v9629_v4, %v4307_v22  ;;  %v5364_v25 = vpop.f32.mrb[96].mxu0  ;;  %v4309_v26 = vpop.f32.mrb[245].mxu1  ;;  %v8143_v22 = vld [vmem:[%s8820_s23 + $0xee4] ss:$16 sps:$4 sm:$0xff]  }
 0x3e6   : > { %v8542_v41 = vpop.eup %8541  ;;  %v5366_v28 = vpop.f32.mrb[97].mxu0 }
 0x3e7   : > { %6112 = vst [vmem:[%s8984_s29 + $0x568] sm:$0xff] %v8542_v41  ;;  %v4310_v29 = vpop.f32.mrb[246].mxu1  ;;  %v5365_v32 = vadd.f32 %v5364_v25, %v4308_v24  ;;  %v5367_v34 = vpop.f32.mrb[98].mxu0 }
 0x3e8   : > { %v4311_v33 = vadd.f32 %v9629_v4, %v4310_v29  ;;  %v4312_v35 = vpop.f32.mrb[247].mxu1  ;;  %v5369_v37 = vpop.f32.mrb[99].mxu0 }
 0x3e9   : > { %8547 = vtanh.f32 %v5365_v32  ;;  %4522 = vmatmul.mubr.bf16.gmra.mrb[244].mxu1 %v8117_v27  ;;  %v8146_v27 = vld [vmem:[%s8820_s23 + $0xeec] ss:$16 sps:$4 sm:$0xff]  }
 0x3ea   : > { %v5368_v38 = vadd.f32 %v5367_v34, %v4311_v33  ;;  %5579 = vmatmul.mubr.bf16.gmra.mrb[204].mxu0 %v8120_v30  ;;  %4529 = vmatprep.mubr.bf16.mxu1 %v8125_v31 }
 0x3eb   : > { %v8544_v39 = vpop.eup %8543  ;;  %5586 = vmatprep.mubr.bf16.mxu0 %v8128_v36  ;;  %v8141_v36 = vld [vmem:[%s8820_s23 + $0xee0] ss:$16 sps:$4 sm:$0xff]  }
 0x3ec   : > { %8549 = vtanh.f32 %v5368_v38  ;;  %6113 = vst [vmem:[%s8984_s29 + $0x570] sm:$0xff] %v8544_v39  ;;  %v4315_v40 = vpop.f32.mrb[248].mxu1  ;;  %v8144_v39 = vld [vmem:[%s8820_s23 + $0xee8] ss:$16 sps:$4 sm:$0xff]  }
 0x3ed   : > { %v4316_v42 = vadd.f32 %v9629_v4, %v4315_v40  ;;  %v5372_v43 = vpop.f32.mrb[100].mxu0  ;;  %v4317_v44 = vpop.f32.mrb[249].mxu1  ;;  %v8149_v40 = vld [vmem:[%s8820_s23 + $0xf04] ss:$16 sps:$4 sm:$0xff]  }
 0x3ee   : > { %v8546_v59 = vpop.eup %8545  ;;  %v5374_v46 = vpop.f32.mrb[101].mxu0 }
 0x3ef   : > { %6114 = vst [vmem:[%s8984_s29 + $0x578] sm:$0xff] %v8546_v59  ;;  %v4318_v47 = vpop.f32.mrb[250].mxu1  ;;  %v5373_v50 = vadd.f32 %v5372_v43, %v4316_v42  ;;  %v5375_v52 = vpop.f32.mrb[102].mxu0 }
 0x3f0   : > { %v4319_v51 = vadd.f32 %v9629_v4, %v4318_v47  ;;  %v4320_v53 = vpop.f32.mrb[251].mxu1  ;;  %v5377_v55 = vpop.f32.mrb[103].mxu0 }
 0x3f1   : > { %8551 = vtanh.f32 %v5373_v50  ;;  %4530 = vmatmul.mubr.bf16.gmra.mrb[248].mxu1 %v8123_v45  ;;  %v8152_v45 = vld [vmem:[%s8820_s23 + $0xf0c] ss:$16 sps:$4 sm:$0xff]  }
 0x3f2   : > { %v5376_v56 = vadd.f32 %v5375_v52, %v4319_v51  ;;  %5587 = vmatmul.mubr.bf16.gmra.mrb[208].mxu0 %v8126_v48  ;;  %4537 = vmatprep.mubr.bf16.mxu1 %v8131_v49 }
 0x3f3   : > { %v8548_v57 = vpop.eup %8547  ;;  %5594 = vmatprep.mubr.bf16.mxu0 %v8134_v54  ;;  %v8147_v54 = vld [vmem:[%s8820_s23 + $0xf00] ss:$16 sps:$4 sm:$0xff]  }
 0x3f4   : > { %8553 = vtanh.f32 %v5376_v56  ;;  %6115 = vst [vmem:[%s8984_s29 + $0x580] sm:$0xff] %v8548_v57  ;;  %v4323_v58 = vpop.f32.mrb[252].mxu1  ;;  %v8150_v57 = vld [vmem:[%s8820_s23 + $0xf08] ss:$16 sps:$4 sm:$0xff]  }
 0x3f5   : > { %v4324_v60 = vadd.f32 %v9629_v4, %v4323_v58  ;;  %v5380_v61 = vpop.f32.mrb[104].mxu0  ;;  %v4325_v62 = vpop.f32.mrb[253].mxu1  ;;  %v8155_v58 = vld [vmem:[%s8820_s23 + $0xf24] ss:$16 sps:$4 sm:$0xff]  }
 0x3f6   : > { %v8550_v15 = vpop.eup %8549  ;;  %v5382_v0 = vpop.f32.mrb[105].mxu0 }
 0x3f7   : > { %6116 = vst [vmem:[%s8984_s29 + $0x588] sm:$0xff] %v8550_v15  ;;  %v4326_v1 = vpop.f32.mrb[254].mxu1  ;;  %v5381_v23 = vadd.f32 %v5380_v61, %v4324_v60  ;;  %v5383_v6 = vpop.f32.mrb[106].mxu0 }
 0x3f8   : > { %v4327_v5 = vadd.f32 %v9629_v4, %v4326_v1  ;;  %v4328_v7 = vpop.f32.mrb[255].mxu1  ;;  %v5385_v9 = vpop.f32.mrb[107].mxu0 }
 0x3f9   : > { %8555 = vtanh.f32 %v5381_v23  ;;  %4538 = vmatmul.mubr.bf16.gmra.mrb[252].mxu1 %v8129_v63  ;;  %v8158_v63 = vld [vmem:[%s8820_s23 + $0xf2c] ss:$16 sps:$4 sm:$0xff]  }
 0x3fa   : > { %v5384_v10 = vadd.f32 %v5383_v6, %v4327_v5  ;;  %5595 = vmatmul.mubr.bf16.gmra.mrb[212].mxu0 %v8132_v2  ;;  %4545 = vmatprep.mubr.bf16.mxu1 %v8137_v3 }
 0x3fb   : > { %v8552_v11 = vpop.eup %8551  ;;  %5602 = vmatprep.mubr.bf16.mxu0 %v8140_v8  ;;  %v8153_v8 = vld [vmem:[%s8820_s23 + $0xf20] ss:$16 sps:$4 sm:$0xff]  }
 0x3fc   : > { %8557 = vtanh.f32 %v5384_v10  ;;  %6117 = vst [vmem:[%s8984_s29 + $0x590] sm:$0xff] %v8552_v11  ;;  %v4331_v12 = vpop.f32.mrb[148].mxu1  ;;  %v8156_v11 = vld [vmem:[%s8820_s23 + $0xf28] ss:$16 sps:$4 sm:$0xff]  }
 0x3fd   : > { %v4332_v14 = vadd.f32 %v9629_v4, %v4331_v12  ;;  %v5388_v16 = vpop.f32.mrb[108].mxu0  ;;  %v4333_v17 = vpop.f32.mrb[149].mxu1  ;;  %v8161_v12 = vld [vmem:[%s8820_s23 + $0xf44] ss:$16 sps:$4 sm:$0xff]  }
 0x3fe   : > { %v8554_v13 = vpop.eup %8553  ;;  %v5390_v19 = vpop.f32.mrb[109].mxu0 }
 0x3ff   : > { %6118 = vst [vmem:[%s8984_s29 + $0x598] sm:$0xff] %v8554_v13  ;;  %v4334_v20 = vpop.f32.mrb[150].mxu1  ;;  %v5389_v41 = vadd.f32 %v5388_v16, %v4332_v14  ;;  %v5391_v25 = vpop.f32.mrb[110].mxu0 }
 0x400   : > { %v4335_v24 = vadd.f32 %v9629_v4, %v4334_v20  ;;  %v4336_v26 = vpop.f32.mrb[151].mxu1  ;;  %v5393_v28 = vpop.f32.mrb[111].mxu0 }
 0x401   : > { %8559 = vtanh.f32 %v5389_v41  ;;  %4546 = vmatmul.mubr.bf16.gmra.mrb[148].mxu1 %v8135_v18  ;;  %v8164_v18 = vld [vmem:[%s8820_s23 + $0xf4c] ss:$16 sps:$4 sm:$0xff]  }
 0x402   : > { %v5392_v29 = vadd.f32 %v5391_v25, %v4335_v24  ;;  %5603 = vmatmul.mubr.bf16.gmra.mrb[216].mxu0 %v8138_v21  ;;  %4553 = vmatprep.mubr.bf16.mxu1 %v8143_v22 }
 0x403   : > { %v8556_v30 = vpop.eup %8555  ;;  %5610 = vmatprep.mubr.bf16.mxu0 %v8146_v27  ;;  %v8159_v27 = vld [vmem:[%s8820_s23 + $0xf40] ss:$16 sps:$4 sm:$0xff]  }
 0x404   : > { %8561 = vtanh.f32 %v5392_v29  ;;  %6119 = vst [vmem:[%s8984_s29 + $0x5a0] sm:$0xff] %v8556_v30  ;;  %v4339_v31 = vpop.f32.mrb[152].mxu1  ;;  %v8162_v30 = vld [vmem:[%s8820_s23 + $0xf48] ss:$16 sps:$4 sm:$0xff]  }
 0x405   : > { %v4340_v33 = vadd.f32 %v9629_v4, %v4339_v31  ;;  %v5396_v34 = vpop.f32.mrb[112].mxu0  ;;  %v4341_v35 = vpop.f32.mrb[153].mxu1  ;;  %v8167_v31 = vld [vmem:[%s8820_s23 + $0xf64] ss:$16 sps:$4 sm:$0xff]  }
 0x406   : > { %v8558_v32 = vpop.eup %8557  ;;  %v5398_v37 = vpop.f32.mrb[113].mxu0 }
 0x407   : > { %6120 = vst [vmem:[%s8984_s29 + $0x5a8] sm:$0xff] %v8558_v32  ;;  %v4342_v38 = vpop.f32.mrb[154].mxu1  ;;  %v5397_v59 = vadd.f32 %v5396_v34, %v4340_v33  ;;  %v5399_v43 = vpop.f32.mrb[114].mxu0 }
 0x408   : > { %v4343_v42 = vadd.f32 %v9629_v4, %v4342_v38  ;;  %v4344_v44 = vpop.f32.mrb[155].mxu1  ;;  %v5401_v46 = vpop.f32.mrb[115].mxu0 }
 0x409   : > { %8563 = vtanh.f32 %v5397_v59  ;;  %4554 = vmatmul.mubr.bf16.gmra.mrb[152].mxu1 %v8141_v36  ;;  %v8170_v36 = vld [vmem:[%s8820_s23 + $0xf6c] ss:$16 sps:$4 sm:$0xff]  }
 0x40a   : > { %v5400_v47 = vadd.f32 %v5399_v43, %v4343_v42  ;;  %5611 = vmatmul.mubr.bf16.gmra.mrb[220].mxu0 %v8144_v39  ;;  %4561 = vmatprep.mubr.bf16.mxu1 %v8149_v40 }
 0x40b   : > { %v8560_v48 = vpop.eup %8559  ;;  %5618 = vmatprep.mubr.bf16.mxu0 %v8152_v45  ;;  %v8165_v45 = vld [vmem:[%s8820_s23 + $0xf60] ss:$16 sps:$4 sm:$0xff]  }
 0x40c   : > { %8565 = vtanh.f32 %v5400_v47  ;;  %6121 = vst [vmem:[%s8984_s29 + $0x5b0] sm:$0xff] %v8560_v48  ;;  %v4347_v49 = vpop.f32.mrb[156].mxu1  ;;  %v8168_v48 = vld [vmem:[%s8820_s23 + $0xf68] ss:$16 sps:$4 sm:$0xff]  }
 0x40d   : > { %v4348_v51 = vadd.f32 %v9629_v4, %v4347_v49  ;;  %v5404_v52 = vpop.f32.mrb[116].mxu0  ;;  %v4349_v53 = vpop.f32.mrb[157].mxu1  ;;  %v8173_v49 = vld [vmem:[%s8820_s23 + $0xf84] ss:$16 sps:$4 sm:$0xff]  }
 0x40e   : > { %v8562_v50 = vpop.eup %8561  ;;  %v5406_v55 = vpop.f32.mrb[117].mxu0 }
 0x40f   : > { %6122 = vst [vmem:[%s8984_s29 + $0x5b8] sm:$0xff] %v8562_v50  ;;  %v4350_v56 = vpop.f32.mrb[158].mxu1  ;;  %v5405_v15 = vadd.f32 %v5404_v52, %v4348_v51  ;;  %v5407_v61 = vpop.f32.mrb[118].mxu0 }
 0x410   : > { %v4351_v60 = vadd.f32 %v9629_v4, %v4350_v56  ;;  %v4352_v62 = vpop.f32.mrb[159].mxu1  ;;  %v5409_v0 = vpop.f32.mrb[119].mxu0 }
 0x411   : > { %8567 = vtanh.f32 %v5405_v15  ;;  %4562 = vmatmul.mubr.bf16.gmra.mrb[156].mxu1 %v8147_v54  ;;  %v8176_v54 = vld [vmem:[%s8820_s23 + $0xf8c] ss:$16 sps:$4 sm:$0xff]  }
 0x412   : > { %v5408_v1 = vadd.f32 %v5407_v61, %v4351_v60  ;;  %5619 = vmatmul.mubr.bf16.gmra.mrb[224].mxu0 %v8150_v57  ;;  %4569 = vmatprep.mubr.bf16.mxu1 %v8155_v58 }
 0x413   : > { %v8564_v2 = vpop.eup %8563  ;;  %5626 = vmatprep.mubr.bf16.mxu0 %v8158_v63  ;;  %v8171_v63 = vld [vmem:[%s8820_s23 + $0xf80] ss:$16 sps:$4 sm:$0xff]  }
 0x414   : > { %8569 = vtanh.f32 %v5408_v1  ;;  %6123 = vst [vmem:[%s8984_s29 + $0x5c0] sm:$0xff] %v8564_v2  ;;  %v4355_v3 = vpop.f32.mrb[160].mxu1  ;;  %v8174_v2 = vld [vmem:[%s8820_s23 + $0xf88] ss:$16 sps:$4 sm:$0xff]  }
 0x415   : > { %v4356_v5 = vadd.f32 %v9629_v4, %v4355_v3  ;;  %v5412_v6 = vpop.f32.mrb[120].mxu0  ;;  %v4357_v7 = vpop.f32.mrb[161].mxu1  ;;  %v8179_v3 = vld [vmem:[%s8820_s23 + $0xfa4] ss:$16 sps:$4 sm:$0xff]  }
 0x416   : > { %v8566_v23 = vpop.eup %8565  ;;  %v5414_v9 = vpop.f32.mrb[121].mxu0 }
 0x417   : > { %6124 = vst [vmem:[%s8984_s29 + $0x5c8] sm:$0xff] %v8566_v23  ;;  %v4358_v10 = vpop.f32.mrb[162].mxu1  ;;  %v5413_v13 = vadd.f32 %v5412_v6, %v4356_v5  ;;  %v5415_v16 = vpop.f32.mrb[122].mxu0 }
 0x418   : > { %v4359_v14 = vadd.f32 %v9629_v4, %v4358_v10  ;;  %v4360_v17 = vpop.f32.mrb[163].mxu1  ;;  %v5417_v19 = vpop.f32.mrb[123].mxu0 }
 0x419   : > { %8571 = vtanh.f32 %v5413_v13  ;;  %4570 = vmatmul.mubr.bf16.gmra.mrb[160].mxu1 %v8153_v8  ;;  %v8182_v8 = vld [vmem:[%s8820_s23 + $0xfac] ss:$16 sps:$4 sm:$0xff]  }
 0x41a   : > { %v5416_v20 = vadd.f32 %v5415_v16, %v4359_v14  ;;  %5627 = vmatmul.mubr.bf16.gmra.mrb[228].mxu0 %v8156_v11  ;;  %4577 = vmatprep.mubr.bf16.mxu1 %v8161_v12 }
 0x41b   : > { %v8568_v21 = vpop.eup %8567  ;;  %5634 = vmatprep.mubr.bf16.mxu0 %v8164_v18  ;;  %v8177_v18 = vld [vmem:[%s8820_s23 + $0xfa0] ss:$16 sps:$4 sm:$0xff]  }
 0x41c   : > { %8573 = vtanh.f32 %v5416_v20  ;;  %6125 = vst [vmem:[%s8984_s29 + $0x5d0] sm:$0xff] %v8568_v21  ;;  %v4363_v22 = vpop.f32.mrb[164].mxu1  ;;  %v8180_v21 = vld [vmem:[%s8820_s23 + $0xfa8] ss:$16 sps:$4 sm:$0xff]  }
 0x41d   : > { %v4364_v24 = vadd.f32 %v9629_v4, %v4363_v22  ;;  %v5420_v25 = vpop.f32.mrb[124].mxu0  ;;  %v4365_v26 = vpop.f32.mrb[165].mxu1  ;;  %v8185_v22 = vld [vmem:[%s8820_s23 + $0xfc4] ss:$16 sps:$4 sm:$0xff]  }
 0x41e   : > { %v8570_v41 = vpop.eup %8569  ;;  %v5422_v28 = vpop.f32.mrb[125].mxu0 }
 0x41f   : > { %6126 = vst [vmem:[%s8984_s29 + $0x5d8] sm:$0xff] %v8570_v41  ;;  %v4366_v29 = vpop.f32.mrb[166].mxu1  ;;  %v5421_v32 = vadd.f32 %v5420_v25, %v4364_v24  ;;  %v5423_v34 = vpop.f32.mrb[126].mxu0 }
 0x420   : > { %v4367_v33 = vadd.f32 %v9629_v4, %v4366_v29  ;;  %v4368_v35 = vpop.f32.mrb[167].mxu1  ;;  %v5425_v37 = vpop.f32.mrb[127].mxu0 }
 0x421   : > { %8575 = vtanh.f32 %v5421_v32  ;;  %4578 = vmatmul.mubr.bf16.gmra.mrb[164].mxu1 %v8159_v27  ;;  %v8188_v27 = vld [vmem:[%s8820_s23 + $0xfcc] ss:$16 sps:$4 sm:$0xff]  }
 0x422   : > { %v5424_v38 = vadd.f32 %v5423_v34, %v4367_v33  ;;  %5635 = vmatmul.mubr.bf16.gmra.mrb[232].mxu0 %v8162_v30  ;;  %4585 = vmatprep.mubr.bf16.mxu1 %v8167_v31 }
 0x423   : > { %v8572_v39 = vpop.eup %8571  ;;  %5642 = vmatprep.mubr.bf16.mxu0 %v8170_v36  ;;  %v8183_v36 = vld [vmem:[%s8820_s23 + $0xfc0] ss:$16 sps:$4 sm:$0xff]  }
 0x424   : > { %8577 = vtanh.f32 %v5424_v38  ;;  %6127 = vst [vmem:[%s8984_s29 + $0x5e0] sm:$0xff] %v8572_v39  ;;  %v4371_v40 = vpop.f32.mrb[168].mxu1  ;;  %v8186_v39 = vld [vmem:[%s8820_s23 + $0xfc8] ss:$16 sps:$4 sm:$0xff]  }
 0x425   : > { %v4372_v42 = vadd.f32 %v9629_v4, %v4371_v40  ;;  %v5428_v43 = vpop.f32.mrb[128].mxu0  ;;  %v4373_v44 = vpop.f32.mrb[169].mxu1  ;;  %v8191_v40 = vld [vmem:[%s8820_s23 + $0xfe4] ss:$16 sps:$4 sm:$0xff]  }
 0x426   : > { %v8574_v59 = vpop.eup %8573  ;;  %v5430_v46 = vpop.f32.mrb[129].mxu0 }
 0x427   : > { %6128 = vst [vmem:[%s8984_s29 + $0x5e8] sm:$0xff] %v8574_v59  ;;  %v4374_v47 = vpop.f32.mrb[170].mxu1  ;;  %v5429_v50 = vadd.f32 %v5428_v43, %v4372_v42  ;;  %v5431_v52 = vpop.f32.mrb[130].mxu0 }
 0x428   : > { %v4375_v51 = vadd.f32 %v9629_v4, %v4374_v47  ;;  %v4376_v53 = vpop.f32.mrb[171].mxu1  ;;  %v5433_v55 = vpop.f32.mrb[131].mxu0 }
 0x429   : > { %8579 = vtanh.f32 %v5429_v50  ;;  %4586 = vmatmul.mubr.bf16.gmra.mrb[168].mxu1 %v8165_v45  ;;  %v8194_v45 = vld [vmem:[%s8820_s23 + $0xfec] ss:$16 sps:$4 sm:$0xff]  }
 0x42a   : > { %v5432_v56 = vadd.f32 %v5431_v52, %v4375_v51  ;;  %5643 = vmatmul.mubr.bf16.gmra.mrb[236].mxu0 %v8168_v48  ;;  %4593 = vmatprep.mubr.bf16.mxu1 %v8173_v49 }
 0x42b   : > { %v8576_v57 = vpop.eup %8575  ;;  %5650 = vmatprep.mubr.bf16.mxu0 %v8176_v54  ;;  %v8189_v54 = vld [vmem:[%s8820_s23 + $0xfe0] ss:$16 sps:$4 sm:$0xff]  }
 0x42c   : > { %8581 = vtanh.f32 %v5432_v56  ;;  %6129 = vst [vmem:[%s8984_s29 + $0x5f0] sm:$0xff] %v8576_v57  ;;  %v4379_v58 = vpop.f32.mrb[172].mxu1  ;;  %v8192_v57 = vld [vmem:[%s8820_s23 + $0xfe8] ss:$16 sps:$4 sm:$0xff]  }
 0x42d   : > { %v4380_v60 = vadd.f32 %v9629_v4, %v4379_v58  ;;  %v5436_v61 = vpop.f32.mrb[132].mxu0  ;;  %v4381_v62 = vpop.f32.mrb[173].mxu1 }
 0x42e   : > { %v8578_v15 = vpop.eup %8577  ;;  %v5438_v0 = vpop.f32.mrb[133].mxu0 }
 0x42f   : > { %6130 = vst [vmem:[%s8984_s29 + $0x5f8] sm:$0xff] %v8578_v15  ;;  %v4382_v1 = vpop.f32.mrb[174].mxu1  ;;  %v5437_v23 = vadd.f32 %v5436_v61, %v4380_v60  ;;  %v5439_v6 = vpop.f32.mrb[134].mxu0 }
 0x430   : > { %v4383_v5 = vadd.f32 %v9629_v4, %v4382_v1  ;;  %v4384_v7 = vpop.f32.mrb[175].mxu1  ;;  %v5441_v9 = vpop.f32.mrb[135].mxu0 }
 0x431   : > { %8583 = vtanh.f32 %v5437_v23  ;;  %4594 = vmatmul.mubr.bf16.gmra.mrb[172].mxu1 %v8171_v63 }
 0x432   : > { %v5440_v10 = vadd.f32 %v5439_v6, %v4383_v5  ;;  %5651 = vmatmul.mubr.bf16.gmra.mrb[240].mxu0 %v8174_v2  ;;  %4601 = vmatprep.mubr.bf16.mxu1 %v8179_v3 }
 0x433   : > { %v8580_v11 = vpop.eup %8579  ;;  %5658 = vmatprep.mubr.bf16.mxu0 %v8182_v8 }
 0x434   : > { %8585 = vtanh.f32 %v5440_v10  ;;  %6131 = vst [vmem:[%s8984_s29 + $0x600] sm:$0xff] %v8580_v11  ;;  %v4387_v12 = vpop.f32.mrb[176].mxu1 }
 0x435   : > { %v4388_v14 = vadd.f32 %v9629_v4, %v4387_v12  ;;  %v5444_v16 = vpop.f32.mrb[136].mxu0  ;;  %v4389_v17 = vpop.f32.mrb[177].mxu1 }
 0x436   : > { %v8582_v13 = vpop.eup %8581  ;;  %v5446_v19 = vpop.f32.mrb[137].mxu0 }
 0x437   : > { %6132 = vst [vmem:[%s8984_s29 + $0x608] sm:$0xff] %v8582_v13  ;;  %v4390_v20 = vpop.f32.mrb[178].mxu1  ;;  %v5445_v41 = vadd.f32 %v5444_v16, %v4388_v14  ;;  %v5447_v25 = vpop.f32.mrb[138].mxu0 }
 0x438   : > { %v4391_v24 = vadd.f32 %v9629_v4, %v4390_v20  ;;  %v4392_v26 = vpop.f32.mrb[179].mxu1  ;;  %v5449_v28 = vpop.f32.mrb[139].mxu0 }
 0x439   : > { %8587 = vtanh.f32 %v5445_v41  ;;  %4602 = vmatmul.mubr.bf16.gmra.mrb[176].mxu1 %v8177_v18 }
 0x43a   : > { %v5448_v29 = vadd.f32 %v5447_v25, %v4391_v24  ;;  %5659 = vmatmul.mubr.bf16.gmra.mrb[244].mxu0 %v8180_v21  ;;  %4609 = vmatprep.mubr.bf16.mxu1 %v8185_v22 }
 0x43b   : > { %v8584_v30 = vpop.eup %8583  ;;  %5666 = vmatprep.mubr.bf16.mxu0 %v8188_v27 }
 0x43c   : > { %8589 = vtanh.f32 %v5448_v29  ;;  %6133 = vst [vmem:[%s8984_s29 + $0x610] sm:$0xff] %v8584_v30  ;;  %v4395_v31 = vpop.f32.mrb[180].mxu1 }
 0x43d   : > { %v4396_v33 = vadd.f32 %v9629_v4, %v4395_v31  ;;  %v5452_v34 = vpop.f32.mrb[140].mxu0  ;;  %v4397_v35 = vpop.f32.mrb[181].mxu1 }
 0x43e   : > { %v8586_v32 = vpop.eup %8585  ;;  %v5454_v37 = vpop.f32.mrb[141].mxu0 }
 0x43f   : > { %6134 = vst [vmem:[%s8984_s29 + $0x618] sm:$0xff] %v8586_v32  ;;  %v4398_v38 = vpop.f32.mrb[182].mxu1  ;;  %v5453_v59 = vadd.f32 %v5452_v34, %v4396_v33  ;;  %v5455_v43 = vpop.f32.mrb[142].mxu0 }
 0x440   : > { %v4399_v42 = vadd.f32 %v9629_v4, %v4398_v38  ;;  %v4400_v44 = vpop.f32.mrb[183].mxu1  ;;  %v5457_v46 = vpop.f32.mrb[143].mxu0  ;;  %v9794_v4 = vld [vmem:[%s9924_s2] ss:$0 sm:$0xff] }
 0x441   : > { %8591 = vtanh.f32 %v5453_v59  ;;  %4610 = vmatmul.mubr.bf16.gmra.mrb[180].mxu1 %v8183_v36 }
 0x442   : > { %v5456_v47 = vadd.f32 %v5455_v43, %v4399_v42  ;;  %5667 = vmatmul.mubr.bf16.gmra.mrb[248].mxu0 %v8186_v39  ;;  %4617 = vmatprep.mubr.bf16.mxu1 %v8191_v40 }
 0x443   : > { %v8588_v48 = vpop.eup %8587  ;;  %5674 = vmatprep.mubr.bf16.mxu0 %v8194_v45 }
 0x444   : > { %8593 = vtanh.f32 %v5456_v47  ;;  %6135 = vst [vmem:[%s8984_s29 + $0x620] sm:$0xff] %v8588_v48  ;;  %v4403_v49 = vpop.f32.mrb[184].mxu1 }
 0x445   : > { %v4404_v51 = vadd.f32 %v9794_v4, %v4403_v49  ;;  %v5460_v52 = vpop.f32.mrb[144].mxu0  ;;  %v4405_v53 = vpop.f32.mrb[185].mxu1 }
 0x446   : > { %v8590_v50 = vpop.eup %8589  ;;  %v5462_v55 = vpop.f32.mrb[145].mxu0 }
 0x447   : > { %6136 = vst [vmem:[%s8984_s29 + $0x628] sm:$0xff] %v8590_v50  ;;  %v4406_v56 = vpop.f32.mrb[186].mxu1  ;;  %v5461_v58 = vadd.f32 %v5460_v52, %v4404_v51  ;;  %v5463_v60 = vpop.f32.mrb[146].mxu0 }
 0x448   : > { %v4407_v15 = vadd.f32 %v9794_v4, %v4406_v56  ;;  %v4408_v61 = vpop.f32.mrb[187].mxu1  ;;  %v5465_v62 = vpop.f32.mrb[147].mxu0 }
 0x449   : > { %8595 = vtanh.f32 %v5461_v58  ;;  %4618 = vmatmul.mubr.bf16.gmra.mrb[184].mxu1 %v8189_v54 }
 0x44a   : > { %v5464_v63 = vadd.f32 %v5463_v60, %v4407_v15  ;;  %5675 = vmatmul.mubr.bf16.gmra.mrb[252].mxu0 %v8192_v57 }
 0x44b   : > { %v8592_v0 = vpop.eup %8591 }
 0x44c   : > { %8597 = vtanh.f32 %v5464_v63  ;;  %6137 = vst [vmem:[%s8984_s29 + $0x630] sm:$0xff] %v8592_v0  ;;  %v4411_v1 = vpop.f32.mrb[188].mxu1 }
 0x44d   : > { %v4412_v3 = vadd.f32 %v9794_v4, %v4411_v1  ;;  %v5468_v23 = vpop.f32.mrb[148].mxu0  ;;  %v4413_v5 = vpop.f32.mrb[189].mxu1 }
 0x44e   : > { %v8594_v2 = vpop.eup %8593  ;;  %v5470_v6 = vpop.f32.mrb[149].mxu0 }
 0x44f   : > { %6138 = vst [vmem:[%s8984_s29 + $0x638] sm:$0xff] %v8594_v2  ;;  %v4414_v7 = vpop.f32.mrb[190].mxu1  ;;  %v5469_v8 = vadd.f32 %v5468_v23, %v4412_v3  ;;  %v5471_v10 = vpop.f32.mrb[150].mxu0 }
 0x450   : > { %v4415_v9 = vadd.f32 %v9794_v4, %v4414_v7  ;;  %v4416_v11 = vpop.f32.mrb[191].mxu1  ;;  %v5473_v12 = vpop.f32.mrb[151].mxu0 }
 0x451   : > { %8599 = vtanh.f32 %v5469_v8 }
 0x452   : > { %v5472_v13 = vadd.f32 %v5471_v10, %v4415_v9 }
 0x453   : > { %v8596_v14 = vpop.eup %8595 }
 0x454   : > { %8601 = vtanh.f32 %v5472_v13  ;;  %6139 = vst [vmem:[%s8984_s29 + $0x640] sm:$0xff] %v8596_v14  ;;  %v4419_v16 = vpop.f32.mrb[192].mxu1 }
 0x455   : > { %v4420_v18 = vadd.f32 %v9794_v4, %v4419_v16  ;;  %v5476_v19 = vpop.f32.mrb[152].mxu0  ;;  %v4421_v20 = vpop.f32.mrb[193].mxu1 }
 0x456   : > { %v8598_v17 = vpop.eup %8597  ;;  %v5478_v21 = vpop.f32.mrb[153].mxu0 }
 0x457   : > { %6140 = vst [vmem:[%s8984_s29 + $0x648] sm:$0xff] %v8598_v17  ;;  %v4422_v22 = vpop.f32.mrb[194].mxu1  ;;  %v5477_v41 = vadd.f32 %v5476_v19, %v4420_v18  ;;  %v5479_v25 = vpop.f32.mrb[154].mxu0 }
 0x458   : > { %v4423_v24 = vadd.f32 %v9794_v4, %v4422_v22  ;;  %v4424_v26 = vpop.f32.mrb[195].mxu1  ;;  %v5481_v27 = vpop.f32.mrb[155].mxu0 }
 0x459   : > { %8603 = vtanh.f32 %v5477_v41 }
 0x45a   : > { %v5480_v28 = vadd.f32 %v5479_v25, %v4423_v24 }
 0x45b   : > { %v8600_v29 = vpop.eup %8599 }
 0x45c   : > { %8605 = vtanh.f32 %v5480_v28  ;;  %6141 = vst [vmem:[%s8984_s29 + $0x650] sm:$0xff] %v8600_v29  ;;  %v4427_v30 = vpop.f32.mrb[196].mxu1 }
 0x45d   : > { %v4428_v32 = vadd.f32 %v9794_v4, %v4427_v30  ;;  %v5484_v33 = vpop.f32.mrb[156].mxu0  ;;  %v4429_v34 = vpop.f32.mrb[197].mxu1 }
 0x45e   : > { %v8602_v31 = vpop.eup %8601  ;;  %v5486_v35 = vpop.f32.mrb[157].mxu0 }
 0x45f   : > { %6142 = vst [vmem:[%s8984_s29 + $0x658] sm:$0xff] %v8602_v31  ;;  %v4430_v36 = vpop.f32.mrb[198].mxu1  ;;  %v5485_v37 = vadd.f32 %v5484_v33, %v4428_v32  ;;  %v5487_v39 = vpop.f32.mrb[158].mxu0 }
 0x460   : > { %v4431_v38 = vadd.f32 %v9794_v4, %v4430_v36  ;;  %v4432_v40 = vpop.f32.mrb[199].mxu1  ;;  %v5489_v59 = vpop.f32.mrb[159].mxu0 }
 0x461   : > { %8607 = vtanh.f32 %v5485_v37 }
 0x462   : > { %v5488_v42 = vadd.f32 %v5487_v39, %v4431_v38 }
 0x463   : > { %v8604_v43 = vpop.eup %8603 }
 0x464   : > { %8609 = vtanh.f32 %v5488_v42  ;;  %6143 = vst [vmem:[%s8984_s29 + $0x660] sm:$0xff] %v8604_v43  ;;  %v4435_v44 = vpop.f32.mrb[200].mxu1 }
 0x465   : > { %v4436_v46 = vadd.f32 %v9794_v4, %v4435_v44  ;;  %v5492_v47 = vpop.f32.mrb[160].mxu0  ;;  %v4437_v48 = vpop.f32.mrb[201].mxu1 }
 0x466   : > { %v8606_v45 = vpop.eup %8605  ;;  %v5494_v49 = vpop.f32.mrb[161].mxu0 }
 0x467   : > { %6144 = vst [vmem:[%s8984_s29 + $0x668] sm:$0xff] %v8606_v45  ;;  %v4438_v50 = vpop.f32.mrb[202].mxu1  ;;  %v5493_v51 = vadd.f32 %v5492_v47, %v4436_v46  ;;  %v5495_v53 = vpop.f32.mrb[162].mxu0 }
 0x468   : > { %v4439_v52 = vadd.f32 %v9794_v4, %v4438_v50  ;;  %v4440_v54 = vpop.f32.mrb[203].mxu1  ;;  %v5497_v55 = vpop.f32.mrb[163].mxu0 }
 0x469   : > { %8611 = vtanh.f32 %v5493_v51 }
 0x46a   : > { %v5496_v56 = vadd.f32 %v5495_v53, %v4439_v52 }
 0x46b   : > { %v8608_v57 = vpop.eup %8607 }
 0x46c   : > { %8613 = vtanh.f32 %v5496_v56  ;;  %6145 = vst [vmem:[%s8984_s29 + $0x670] sm:$0xff] %v8608_v57  ;;  %v4443_v58 = vpop.f32.mrb[204].mxu1 }
 0x46d   : > { %v4444_v60 = vadd.f32 %v9794_v4, %v4443_v58  ;;  %v5500_v61 = vpop.f32.mrb[164].mxu0  ;;  %v4445_v62 = vpop.f32.mrb[205].mxu1 }
 0x46e   : > { %v8610_v15 = vpop.eup %8609  ;;  %v5502_v63 = vpop.f32.mrb[165].mxu0 }
 0x46f   : > { %6146 = vst [vmem:[%s8984_s29 + $0x678] sm:$0xff] %v8610_v15  ;;  %v4446_v0 = vpop.f32.mrb[206].mxu1  ;;  %v5501_v1 = vadd.f32 %v5500_v61, %v4444_v60  ;;  %v5503_v3 = vpop.f32.mrb[166].mxu0 }
 0x470   : > { %v4447_v2 = vadd.f32 %v9794_v4, %v4446_v0  ;;  %v4448_v23 = vpop.f32.mrb[207].mxu1  ;;  %v5505_v5 = vpop.f32.mrb[167].mxu0 }
 0x471   : > { %8615 = vtanh.f32 %v5501_v1 }
 0x472   : > { %v5504_v6 = vadd.f32 %v5503_v3, %v4447_v2 }
 0x473   : > { %v8612_v7 = vpop.eup %8611 }
 0x474   : > { %8617 = vtanh.f32 %v5504_v6  ;;  %6147 = vst [vmem:[%s8984_s29 + $0x680] sm:$0xff] %v8612_v7  ;;  %v4451_v8 = vpop.f32.mrb[208].mxu1 }
 0x475   : > { %v4452_v10 = vadd.f32 %v9794_v4, %v4451_v8  ;;  %v5508_v11 = vpop.f32.mrb[168].mxu0  ;;  %v4453_v12 = vpop.f32.mrb[209].mxu1 }
 0x476   : > { %v8614_v9 = vpop.eup %8613  ;;  %v5510_v13 = vpop.f32.mrb[169].mxu0 }
 0x477   : > { %6148 = vst [vmem:[%s8984_s29 + $0x688] sm:$0xff] %v8614_v9  ;;  %v4454_v14 = vpop.f32.mrb[210].mxu1  ;;  %v5509_v16 = vadd.f32 %v5508_v11, %v4452_v10  ;;  %v5511_v18 = vpop.f32.mrb[170].mxu0 }
 0x478   : > { %v4455_v17 = vadd.f32 %v9794_v4, %v4454_v14  ;;  %v4456_v19 = vpop.f32.mrb[211].mxu1  ;;  %v5513_v20 = vpop.f32.mrb[171].mxu0 }
 0x479   : > { %8619 = vtanh.f32 %v5509_v16 }
 0x47a   : > { %v5512_v21 = vadd.f32 %v5511_v18, %v4455_v17 }
 0x47b   : > { %v8616_v22 = vpop.eup %8615 }
 0x47c   : > { %8621 = vtanh.f32 %v5512_v21  ;;  %6149 = vst [vmem:[%s8984_s29 + $0x690] sm:$0xff] %v8616_v22  ;;  %v4459_v41 = vpop.f32.mrb[212].mxu1 }
 0x47d   : > { %v4460_v25 = vadd.f32 %v9794_v4, %v4459_v41  ;;  %v5516_v26 = vpop.f32.mrb[172].mxu0  ;;  %v4461_v27 = vpop.f32.mrb[213].mxu1 }
 0x47e   : > { %v8618_v24 = vpop.eup %8617  ;;  %v5518_v28 = vpop.f32.mrb[173].mxu0 }
 0x47f   : > { %6150 = vst [vmem:[%s8984_s29 + $0x698] sm:$0xff] %v8618_v24  ;;  %v4462_v29 = vpop.f32.mrb[214].mxu1  ;;  %v5517_v30 = vadd.f32 %v5516_v26, %v4460_v25  ;;  %v5519_v32 = vpop.f32.mrb[174].mxu0 }
 0x480   : > { %v4463_v31 = vadd.f32 %v9794_v4, %v4462_v29  ;;  %v4464_v33 = vpop.f32.mrb[215].mxu1  ;;  %v5521_v34 = vpop.f32.mrb[175].mxu0 }
 0x481   : > { %8623 = vtanh.f32 %v5517_v30 }
 0x482   : > { %v5520_v35 = vadd.f32 %v5519_v32, %v4463_v31 }
 0x483   : > { %v8620_v36 = vpop.eup %8619 }
 0x484   : > { %8625 = vtanh.f32 %v5520_v35  ;;  %6151 = vst [vmem:[%s8984_s29 + $0x6a0] sm:$0xff] %v8620_v36  ;;  %v4467_v37 = vpop.f32.mrb[216].mxu1 }
 0x485   : > { %v4468_v39 = vadd.f32 %v9794_v4, %v4467_v37  ;;  %v5524_v40 = vpop.f32.mrb[176].mxu0  ;;  %v4469_v59 = vpop.f32.mrb[217].mxu1 }
 0x486   : > { %v8622_v38 = vpop.eup %8621  ;;  %v5526_v42 = vpop.f32.mrb[177].mxu0 }
 0x487   : > { %6152 = vst [vmem:[%s8984_s29 + $0x6a8] sm:$0xff] %v8622_v38  ;;  %v4470_v43 = vpop.f32.mrb[218].mxu1  ;;  %v5525_v44 = vadd.f32 %v5524_v40, %v4468_v39  ;;  %v5527_v46 = vpop.f32.mrb[178].mxu0 }
 0x488   : > { %v4471_v45 = vadd.f32 %v9794_v4, %v4470_v43  ;;  %v4472_v47 = vpop.f32.mrb[219].mxu1  ;;  %v5529_v48 = vpop.f32.mrb[179].mxu0 }
 0x489   : > { %8627 = vtanh.f32 %v5525_v44 }
 0x48a   : > { %v5528_v49 = vadd.f32 %v5527_v46, %v4471_v45 }
 0x48b   : > { %v8624_v50 = vpop.eup %8623 }
 0x48c   : > { %8629 = vtanh.f32 %v5528_v49  ;;  %6153 = vst [vmem:[%s8984_s29 + $0x6b0] sm:$0xff] %v8624_v50  ;;  %v4475_v51 = vpop.f32.mrb[220].mxu1 }
 0x48d   : > { %v4476_v53 = vadd.f32 %v9794_v4, %v4475_v51  ;;  %v5532_v54 = vpop.f32.mrb[180].mxu0  ;;  %v4477_v55 = vpop.f32.mrb[221].mxu1 }
 0x48e   : > { %v8626_v52 = vpop.eup %8625  ;;  %v5534_v56 = vpop.f32.mrb[181].mxu0 }
 0x48f   : > { %6154 = vst [vmem:[%s8984_s29 + $0x6b8] sm:$0xff] %v8626_v52  ;;  %v4478_v57 = vpop.f32.mrb[222].mxu1  ;;  %v5533_v58 = vadd.f32 %v5532_v54, %v4476_v53  ;;  %v5535_v60 = vpop.f32.mrb[182].mxu0 }
 0x490   : > { %v4479_v15 = vadd.f32 %v9794_v4, %v4478_v57  ;;  %v4480_v61 = vpop.f32.mrb[223].mxu1  ;;  %v5537_v62 = vpop.f32.mrb[183].mxu0 }
 0x491   : > { %8631 = vtanh.f32 %v5533_v58 }
 0x492   : > { %v5536_v63 = vadd.f32 %v5535_v60, %v4479_v15 }
 0x493   : > { %v8628_v0 = vpop.eup %8627 }
 0x494   : > { %8633 = vtanh.f32 %v5536_v63  ;;  %6155 = vst [vmem:[%s8984_s29 + $0x6c0] sm:$0xff] %v8628_v0  ;;  %v4483_v1 = vpop.f32.mrb[224].mxu1 }
 0x495   : > { %v4484_v3 = vadd.f32 %v9794_v4, %v4483_v1  ;;  %v5540_v23 = vpop.f32.mrb[184].mxu0  ;;  %v4485_v5 = vpop.f32.mrb[225].mxu1 }
 0x496   : > { %v8630_v2 = vpop.eup %8629  ;;  %v5542_v6 = vpop.f32.mrb[185].mxu0 }
 0x497   : > { %6156 = vst [vmem:[%s8984_s29 + $0x6c8] sm:$0xff] %v8630_v2  ;;  %v4486_v7 = vpop.f32.mrb[226].mxu1  ;;  %v5541_v8 = vadd.f32 %v5540_v23, %v4484_v3  ;;  %v5543_v10 = vpop.f32.mrb[186].mxu0 }
 0x498   : > { %v4487_v9 = vadd.f32 %v9794_v4, %v4486_v7  ;;  %v4488_v11 = vpop.f32.mrb[227].mxu1  ;;  %v5545_v12 = vpop.f32.mrb[187].mxu0 }
 0x499   : > { %8635 = vtanh.f32 %v5541_v8 }
 0x49a   : > { %v5544_v13 = vadd.f32 %v5543_v10, %v4487_v9 }
 0x49b   : > { %v8632_v14 = vpop.eup %8631 }
 0x49c   : > { %8637 = vtanh.f32 %v5544_v13  ;;  %6157 = vst [vmem:[%s8984_s29 + $0x6d0] sm:$0xff] %v8632_v14  ;;  %v4491_v16 = vpop.f32.mrb[228].mxu1 }
 0x49d   : > { %v4492_v18 = vadd.f32 %v9794_v4, %v4491_v16  ;;  %v5548_v19 = vpop.f32.mrb[188].mxu0  ;;  %v4493_v20 = vpop.f32.mrb[229].mxu1 }
 0x49e   : > { %v8634_v17 = vpop.eup %8633  ;;  %v5550_v21 = vpop.f32.mrb[189].mxu0 }
 0x49f   : > { %6158 = vst [vmem:[%s8984_s29 + $0x6d8] sm:$0xff] %v8634_v17  ;;  %v4494_v22 = vpop.f32.mrb[230].mxu1  ;;  %v5549_v41 = vadd.f32 %v5548_v19, %v4492_v18  ;;  %v5551_v25 = vpop.f32.mrb[190].mxu0 }
 0x4a0   : > { %v4495_v24 = vadd.f32 %v9794_v4, %v4494_v22  ;;  %v4496_v26 = vpop.f32.mrb[231].mxu1  ;;  %v5553_v27 = vpop.f32.mrb[191].mxu0 }
 0x4a1   : > { %8639 = vtanh.f32 %v5549_v41 }
 0x4a2   : > { %v5552_v28 = vadd.f32 %v5551_v25, %v4495_v24 }
 0x4a3   : > { %v8636_v29 = vpop.eup %8635 }
 0x4a4   : > { %8641 = vtanh.f32 %v5552_v28  ;;  %6159 = vst [vmem:[%s8984_s29 + $0x6e0] sm:$0xff] %v8636_v29  ;;  %v4499_v30 = vpop.f32.mrb[232].mxu1 }
 0x4a5   : > { %v4500_v32 = vadd.f32 %v9794_v4, %v4499_v30  ;;  %v5556_v33 = vpop.f32.mrb[192].mxu0  ;;  %v4501_v34 = vpop.f32.mrb[233].mxu1 }
 0x4a6   : > { %v8638_v31 = vpop.eup %8637  ;;  %v5558_v35 = vpop.f32.mrb[193].mxu0 }
 0x4a7   : > { %6160 = vst [vmem:[%s8984_s29 + $0x6e8] sm:$0xff] %v8638_v31  ;;  %v4502_v36 = vpop.f32.mrb[234].mxu1  ;;  %v5557_v37 = vadd.f32 %v5556_v33, %v4500_v32  ;;  %v5559_v39 = vpop.f32.mrb[194].mxu0 }
 0x4a8   : > { %v4503_v38 = vadd.f32 %v9794_v4, %v4502_v36  ;;  %v4504_v40 = vpop.f32.mrb[235].mxu1  ;;  %v5561_v59 = vpop.f32.mrb[195].mxu0 }
 0x4a9   : > { %8643 = vtanh.f32 %v5557_v37 }
 0x4aa   : > { %v5560_v42 = vadd.f32 %v5559_v39, %v4503_v38 }
 0x4ab   : > { %v8640_v43 = vpop.eup %8639 }
 0x4ac   : > { %8645 = vtanh.f32 %v5560_v42  ;;  %6161 = vst [vmem:[%s8984_s29 + $0x6f0] sm:$0xff] %v8640_v43  ;;  %v4507_v44 = vpop.f32.mrb[236].mxu1 }
 0x4ad   : > { %v4508_v46 = vadd.f32 %v9794_v4, %v4507_v44  ;;  %v5564_v47 = vpop.f32.mrb[196].mxu0  ;;  %v4509_v48 = vpop.f32.mrb[237].mxu1 }
 0x4ae   : > { %v8642_v45 = vpop.eup %8641  ;;  %v5566_v49 = vpop.f32.mrb[197].mxu0 }
 0x4af   : > { %6162 = vst [vmem:[%s8984_s29 + $0x6f8] sm:$0xff] %v8642_v45  ;;  %v4510_v50 = vpop.f32.mrb[238].mxu1  ;;  %v5565_v51 = vadd.f32 %v5564_v47, %v4508_v46  ;;  %v5567_v53 = vpop.f32.mrb[198].mxu0 }
 0x4b0   : > { %v4511_v52 = vadd.f32 %v9794_v4, %v4510_v50  ;;  %v4512_v54 = vpop.f32.mrb[239].mxu1  ;;  %v5569_v55 = vpop.f32.mrb[199].mxu0 }
 0x4b1   : > { %8647 = vtanh.f32 %v5565_v51 }
 0x4b2   : > { %v5568_v56 = vadd.f32 %v5567_v53, %v4511_v52 }
 0x4b3   : > { %v8644_v57 = vpop.eup %8643 }
 0x4b4   : > { %8649 = vtanh.f32 %v5568_v56  ;;  %6163 = vst [vmem:[%s8984_s29 + $0x700] sm:$0xff] %v8644_v57  ;;  %v4515_v58 = vpop.f32.mrb[240].mxu1 }
 0x4b5   : > { %v4516_v60 = vadd.f32 %v9794_v4, %v4515_v58  ;;  %v5572_v61 = vpop.f32.mrb[200].mxu0  ;;  %v4517_v62 = vpop.f32.mrb[241].mxu1 }
 0x4b6   : > { %v8646_v15 = vpop.eup %8645  ;;  %v5574_v63 = vpop.f32.mrb[201].mxu0 }
 0x4b7   : > { %6164 = vst [vmem:[%s8984_s29 + $0x708] sm:$0xff] %v8646_v15  ;;  %v4518_v0 = vpop.f32.mrb[242].mxu1  ;;  %v5573_v1 = vadd.f32 %v5572_v61, %v4516_v60  ;;  %v5575_v3 = vpop.f32.mrb[202].mxu0 }
 0x4b8   : > { %v4519_v2 = vadd.f32 %v9794_v4, %v4518_v0  ;;  %v4520_v23 = vpop.f32.mrb[243].mxu1  ;;  %v5577_v5 = vpop.f32.mrb[203].mxu0 }
 0x4b9   : > { %8651 = vtanh.f32 %v5573_v1 }
 0x4ba   : > { %v5576_v6 = vadd.f32 %v5575_v3, %v4519_v2 }
 0x4bb   : > { %v8648_v7 = vpop.eup %8647 }
 0x4bc   : > { %8653 = vtanh.f32 %v5576_v6  ;;  %6165 = vst [vmem:[%s8984_s29 + $0x710] sm:$0xff] %v8648_v7  ;;  %v4523_v8 = vpop.f32.mrb[244].mxu1 }
 0x4bd   : > { %v4524_v10 = vadd.f32 %v9794_v4, %v4523_v8  ;;  %v5580_v11 = vpop.f32.mrb[204].mxu0  ;;  %v4525_v12 = vpop.f32.mrb[245].mxu1 }
 0x4be   : > { %v8650_v9 = vpop.eup %8649  ;;  %v5582_v13 = vpop.f32.mrb[205].mxu0 }
 0x4bf   : > { %6166 = vst [vmem:[%s8984_s29 + $0x718] sm:$0xff] %v8650_v9  ;;  %v4526_v14 = vpop.f32.mrb[246].mxu1  ;;  %v5581_v16 = vadd.f32 %v5580_v11, %v4524_v10  ;;  %v5583_v18 = vpop.f32.mrb[206].mxu0 }
 0x4c0   : > { %v4527_v17 = vadd.f32 %v9794_v4, %v4526_v14  ;;  %v4528_v19 = vpop.f32.mrb[247].mxu1  ;;  %v5585_v20 = vpop.f32.mrb[207].mxu0 }
 0x4c1   : > { %8655 = vtanh.f32 %v5581_v16 }
 0x4c2   : > { %v5584_v21 = vadd.f32 %v5583_v18, %v4527_v17 }
 0x4c3   : > { %v8652_v22 = vpop.eup %8651 }
 0x4c4   : > { %8657 = vtanh.f32 %v5584_v21  ;;  %6167 = vst [vmem:[%s8984_s29 + $0x720] sm:$0xff] %v8652_v22  ;;  %v4531_v41 = vpop.f32.mrb[248].mxu1 }
 0x4c5   : > { %v4532_v25 = vadd.f32 %v9794_v4, %v4531_v41  ;;  %v5588_v26 = vpop.f32.mrb[208].mxu0  ;;  %v4533_v27 = vpop.f32.mrb[249].mxu1 }
 0x4c6   : > { %v8654_v24 = vpop.eup %8653  ;;  %v5590_v28 = vpop.f32.mrb[209].mxu0 }
 0x4c7   : > { %6168 = vst [vmem:[%s8984_s29 + $0x728] sm:$0xff] %v8654_v24  ;;  %v4534_v29 = vpop.f32.mrb[250].mxu1  ;;  %v5589_v30 = vadd.f32 %v5588_v26, %v4532_v25  ;;  %v5591_v32 = vpop.f32.mrb[210].mxu0 }
 0x4c8   : > { %v4535_v31 = vadd.f32 %v9794_v4, %v4534_v29  ;;  %v4536_v33 = vpop.f32.mrb[251].mxu1  ;;  %v5593_v34 = vpop.f32.mrb[211].mxu0 }
 0x4c9   : > { %8659 = vtanh.f32 %v5589_v30 }
 0x4ca   : > { %v5592_v35 = vadd.f32 %v5591_v32, %v4535_v31 }
 0x4cb   : > { %v8656_v36 = vpop.eup %8655 }
 0x4cc   : > { %8661 = vtanh.f32 %v5592_v35  ;;  %6169 = vst [vmem:[%s8984_s29 + $0x730] sm:$0xff] %v8656_v36  ;;  %v4539_v37 = vpop.f32.mrb[252].mxu1 }
 0x4cd   : > { %v4540_v39 = vadd.f32 %v9794_v4, %v4539_v37  ;;  %v5596_v40 = vpop.f32.mrb[212].mxu0  ;;  %v4541_v59 = vpop.f32.mrb[253].mxu1 }
 0x4ce   : > { %v8658_v38 = vpop.eup %8657  ;;  %v5598_v42 = vpop.f32.mrb[213].mxu0 }
 0x4cf   : > { %6170 = vst [vmem:[%s8984_s29 + $0x738] sm:$0xff] %v8658_v38  ;;  %v4542_v43 = vpop.f32.mrb[254].mxu1  ;;  %v5597_v44 = vadd.f32 %v5596_v40, %v4540_v39  ;;  %v5599_v46 = vpop.f32.mrb[214].mxu0 }
 0x4d0   : > { %v4543_v45 = vadd.f32 %v9794_v4, %v4542_v43  ;;  %v4544_v47 = vpop.f32.mrb[255].mxu1  ;;  %v5601_v48 = vpop.f32.mrb[215].mxu0 }
 0x4d1   : > { %8663 = vtanh.f32 %v5597_v44 }
 0x4d2   : > { %v5600_v49 = vadd.f32 %v5599_v46, %v4543_v45 }
 0x4d3   : > { %v8660_v50 = vpop.eup %8659 }
 0x4d4   : > { %8665 = vtanh.f32 %v5600_v49  ;;  %6171 = vst [vmem:[%s8984_s29 + $0x740] sm:$0xff] %v8660_v50  ;;  %v4547_v51 = vpop.f32.mrb[148].mxu1 }
 0x4d5   : > { %v4548_v53 = vadd.f32 %v9794_v4, %v4547_v51  ;;  %v5604_v54 = vpop.f32.mrb[216].mxu0  ;;  %v4549_v55 = vpop.f32.mrb[149].mxu1 }
 0x4d6   : > { %v8662_v52 = vpop.eup %8661  ;;  %v5606_v56 = vpop.f32.mrb[217].mxu0 }
 0x4d7   : > { %6172 = vst [vmem:[%s8984_s29 + $0x748] sm:$0xff] %v8662_v52  ;;  %v4550_v57 = vpop.f32.mrb[150].mxu1  ;;  %v5605_v58 = vadd.f32 %v5604_v54, %v4548_v53  ;;  %v5607_v60 = vpop.f32.mrb[218].mxu0 }
 0x4d8   : > { %v4551_v15 = vadd.f32 %v9794_v4, %v4550_v57  ;;  %v4552_v61 = vpop.f32.mrb[151].mxu1  ;;  %v5609_v62 = vpop.f32.mrb[219].mxu0 }
 0x4d9   : > { %8667 = vtanh.f32 %v5605_v58 }
 0x4da   : > { %v5608_v63 = vadd.f32 %v5607_v60, %v4551_v15 }
 0x4db   : > { %v8664_v0 = vpop.eup %8663 }
 0x4dc   : > { %8669 = vtanh.f32 %v5608_v63  ;;  %6173 = vst [vmem:[%s8984_s29 + $0x750] sm:$0xff] %v8664_v0  ;;  %v4555_v1 = vpop.f32.mrb[152].mxu1 }
 0x4dd   : > { %v4556_v3 = vadd.f32 %v9794_v4, %v4555_v1  ;;  %v5612_v23 = vpop.f32.mrb[220].mxu0  ;;  %v4557_v5 = vpop.f32.mrb[153].mxu1 }
 0x4de   : > { %v8666_v2 = vpop.eup %8665  ;;  %v5614_v6 = vpop.f32.mrb[221].mxu0 }
 0x4df   : > { %6174 = vst [vmem:[%s8984_s29 + $0x758] sm:$0xff] %v8666_v2  ;;  %v4558_v7 = vpop.f32.mrb[154].mxu1  ;;  %v5613_v8 = vadd.f32 %v5612_v23, %v4556_v3  ;;  %v5615_v10 = vpop.f32.mrb[222].mxu0 }
 0x4e0   : > { %v4559_v9 = vadd.f32 %v9794_v4, %v4558_v7  ;;  %v4560_v11 = vpop.f32.mrb[155].mxu1  ;;  %v5617_v12 = vpop.f32.mrb[223].mxu0 }
 0x4e1   : > { %8671 = vtanh.f32 %v5613_v8 }
 0x4e2   : > { %v5616_v13 = vadd.f32 %v5615_v10, %v4559_v9 }
 0x4e3   : > { %v8668_v14 = vpop.eup %8667 }
 0x4e4   : > { %8673 = vtanh.f32 %v5616_v13  ;;  %6175 = vst [vmem:[%s8984_s29 + $0x760] sm:$0xff] %v8668_v14  ;;  %v4563_v16 = vpop.f32.mrb[156].mxu1 }
 0x4e5   : > { %v4564_v18 = vadd.f32 %v9794_v4, %v4563_v16  ;;  %v5620_v19 = vpop.f32.mrb[224].mxu0  ;;  %v4565_v20 = vpop.f32.mrb[157].mxu1 }
 0x4e6   : > { %v8670_v17 = vpop.eup %8669  ;;  %v5622_v21 = vpop.f32.mrb[225].mxu0 }
 0x4e7   : > { %6176 = vst [vmem:[%s8984_s29 + $0x768] sm:$0xff] %v8670_v17  ;;  %v4566_v22 = vpop.f32.mrb[158].mxu1  ;;  %v5621_v41 = vadd.f32 %v5620_v19, %v4564_v18  ;;  %v5623_v25 = vpop.f32.mrb[226].mxu0 }
 0x4e8   : > { %v4567_v24 = vadd.f32 %v9794_v4, %v4566_v22  ;;  %v4568_v26 = vpop.f32.mrb[159].mxu1  ;;  %v5625_v27 = vpop.f32.mrb[227].mxu0 }
 0x4e9   : > { %8675 = vtanh.f32 %v5621_v41 }
 0x4ea   : > { %v5624_v28 = vadd.f32 %v5623_v25, %v4567_v24 }
 0x4eb   : > { %v8672_v29 = vpop.eup %8671 }
 0x4ec   : > { %8677 = vtanh.f32 %v5624_v28  ;;  %6177 = vst [vmem:[%s8984_s29 + $0x770] sm:$0xff] %v8672_v29  ;;  %v4571_v30 = vpop.f32.mrb[160].mxu1 }
 0x4ed   : > { %v4572_v32 = vadd.f32 %v9794_v4, %v4571_v30  ;;  %v5628_v33 = vpop.f32.mrb[228].mxu0  ;;  %v4573_v34 = vpop.f32.mrb[161].mxu1 }
 0x4ee   : > { %v8674_v31 = vpop.eup %8673  ;;  %v5630_v35 = vpop.f32.mrb[229].mxu0 }
 0x4ef   : > { %6178 = vst [vmem:[%s8984_s29 + $0x778] sm:$0xff] %v8674_v31  ;;  %v4574_v36 = vpop.f32.mrb[162].mxu1  ;;  %v5629_v37 = vadd.f32 %v5628_v33, %v4572_v32  ;;  %v5631_v39 = vpop.f32.mrb[230].mxu0 }
 0x4f0   : > { %v4575_v38 = vadd.f32 %v9794_v4, %v4574_v36  ;;  %v4576_v40 = vpop.f32.mrb[163].mxu1  ;;  %v5633_v59 = vpop.f32.mrb[231].mxu0 }
 0x4f1   : > { %8679 = vtanh.f32 %v5629_v37 }
 0x4f2   : > { %v5632_v42 = vadd.f32 %v5631_v39, %v4575_v38 }
 0x4f3   : > { %v8676_v43 = vpop.eup %8675 }
 0x4f4   : > { %8681 = vtanh.f32 %v5632_v42  ;;  %6179 = vst [vmem:[%s8984_s29 + $0x780] sm:$0xff] %v8676_v43  ;;  %v4579_v44 = vpop.f32.mrb[164].mxu1 }
 0x4f5   : > { %v4580_v46 = vadd.f32 %v9794_v4, %v4579_v44  ;;  %v5636_v47 = vpop.f32.mrb[232].mxu0  ;;  %v4581_v48 = vpop.f32.mrb[165].mxu1 }
 0x4f6   : > { %v8678_v45 = vpop.eup %8677  ;;  %v5638_v49 = vpop.f32.mrb[233].mxu0 }
 0x4f7   : > { %6180 = vst [vmem:[%s8984_s29 + $0x788] sm:$0xff] %v8678_v45  ;;  %v4582_v50 = vpop.f32.mrb[166].mxu1  ;;  %v5637_v51 = vadd.f32 %v5636_v47, %v4580_v46  ;;  %v5639_v53 = vpop.f32.mrb[234].mxu0 }
 0x4f8   : > { %v4583_v52 = vadd.f32 %v9794_v4, %v4582_v50  ;;  %v4584_v54 = vpop.f32.mrb[167].mxu1  ;;  %v5641_v55 = vpop.f32.mrb[235].mxu0 }
 0x4f9   : > { %8683 = vtanh.f32 %v5637_v51 }
 0x4fa   : > { %v5640_v56 = vadd.f32 %v5639_v53, %v4583_v52 }
 0x4fb   : > { %v8680_v57 = vpop.eup %8679 }
 0x4fc   : > { %8685 = vtanh.f32 %v5640_v56  ;;  %6181 = vst [vmem:[%s8984_s29 + $0x790] sm:$0xff] %v8680_v57  ;;  %v4587_v58 = vpop.f32.mrb[168].mxu1 }
 0x4fd   : > { %v4588_v60 = vadd.f32 %v9794_v4, %v4587_v58  ;;  %v5644_v61 = vpop.f32.mrb[236].mxu0  ;;  %v4589_v62 = vpop.f32.mrb[169].mxu1 }
 0x4fe   : > { %v8682_v15 = vpop.eup %8681  ;;  %v5646_v63 = vpop.f32.mrb[237].mxu0 }
 0x4ff   : > { %6182 = vst [vmem:[%s8984_s29 + $0x798] sm:$0xff] %v8682_v15  ;;  %v4590_v0 = vpop.f32.mrb[170].mxu1  ;;  %v5645_v1 = vadd.f32 %v5644_v61, %v4588_v60  ;;  %v5647_v3 = vpop.f32.mrb[238].mxu0 }
 0x500   : > { %v4591_v2 = vadd.f32 %v9794_v4, %v4590_v0  ;;  %v4592_v23 = vpop.f32.mrb[171].mxu1  ;;  %v5649_v5 = vpop.f32.mrb[239].mxu0 }
 0x501   : > { %8687 = vtanh.f32 %v5645_v1 }
 0x502   : > { %v5648_v6 = vadd.f32 %v5647_v3, %v4591_v2 }
 0x503   : > { %v8684_v7 = vpop.eup %8683 }
 0x504   : > { %8689 = vtanh.f32 %v5648_v6  ;;  %6183 = vst [vmem:[%s8984_s29 + $0x7a0] sm:$0xff] %v8684_v7  ;;  %v4595_v8 = vpop.f32.mrb[172].mxu1 }
 0x505   : > { %v4596_v10 = vadd.f32 %v9794_v4, %v4595_v8  ;;  %v5652_v11 = vpop.f32.mrb[240].mxu0  ;;  %v4597_v12 = vpop.f32.mrb[173].mxu1 }
 0x506   : > { %v8686_v9 = vpop.eup %8685  ;;  %v5654_v13 = vpop.f32.mrb[241].mxu0 }
 0x507   : > { %6184 = vst [vmem:[%s8984_s29 + $0x7a8] sm:$0xff] %v8686_v9  ;;  %v4598_v14 = vpop.f32.mrb[174].mxu1  ;;  %v5653_v16 = vadd.f32 %v5652_v11, %v4596_v10  ;;  %v5655_v18 = vpop.f32.mrb[242].mxu0 }
 0x508   : > { %v4599_v17 = vadd.f32 %v9794_v4, %v4598_v14  ;;  %v4600_v19 = vpop.f32.mrb[175].mxu1  ;;  %v5657_v20 = vpop.f32.mrb[243].mxu0 }
 0x509   : > { %8691 = vtanh.f32 %v5653_v16 }
 0x50a   : > { %v5656_v21 = vadd.f32 %v5655_v18, %v4599_v17 }
 0x50b   : > { %v8688_v22 = vpop.eup %8687 }
 0x50c   : > { %8693 = vtanh.f32 %v5656_v21  ;;  %6185 = vst [vmem:[%s8984_s29 + $0x7b0] sm:$0xff] %v8688_v22  ;;  %v4603_v41 = vpop.f32.mrb[176].mxu1 }
 0x50d   : > { %v4604_v25 = vadd.f32 %v9794_v4, %v4603_v41  ;;  %v5660_v26 = vpop.f32.mrb[244].mxu0  ;;  %v4605_v27 = vpop.f32.mrb[177].mxu1 }
 0x50e   : > { %v8690_v24 = vpop.eup %8689  ;;  %v5662_v28 = vpop.f32.mrb[245].mxu0 }
 0x50f   : > { %6186 = vst [vmem:[%s8984_s29 + $0x7b8] sm:$0xff] %v8690_v24  ;;  %v4606_v29 = vpop.f32.mrb[178].mxu1  ;;  %v5661_v30 = vadd.f32 %v5660_v26, %v4604_v25  ;;  %v5663_v32 = vpop.f32.mrb[246].mxu0 }
 0x510   : > { %v4607_v31 = vadd.f32 %v9794_v4, %v4606_v29  ;;  %v4608_v33 = vpop.f32.mrb[179].mxu1  ;;  %v5665_v34 = vpop.f32.mrb[247].mxu0 }
 0x511   : > { %8695 = vtanh.f32 %v5661_v30 }
 0x512   : > { %v5664_v35 = vadd.f32 %v5663_v32, %v4607_v31 }
 0x513   : > { %v8692_v36 = vpop.eup %8691 }
 0x514   : > { %8697 = vtanh.f32 %v5664_v35  ;;  %6187 = vst [vmem:[%s8984_s29 + $0x7c0] sm:$0xff] %v8692_v36  ;;  %v4611_v37 = vpop.f32.mrb[180].mxu1 }
 0x515   : > { %v4612_v39 = vadd.f32 %v9794_v4, %v4611_v37  ;;  %v5668_v40 = vpop.f32.mrb[248].mxu0  ;;  %v4613_v59 = vpop.f32.mrb[181].mxu1 }
 0x516   : > { %v8694_v38 = vpop.eup %8693  ;;  %v5670_v42 = vpop.f32.mrb[249].mxu0 }
 0x517   : > { %6188 = vst [vmem:[%s8984_s29 + $0x7c8] sm:$0xff] %v8694_v38  ;;  %v4614_v43 = vpop.f32.mrb[182].mxu1  ;;  %v5669_v44 = vadd.f32 %v5668_v40, %v4612_v39  ;;  %v5671_v46 = vpop.f32.mrb[250].mxu0 }
 0x518   : > { %v4615_v45 = vadd.f32 %v9794_v4, %v4614_v43  ;;  %v4616_v47 = vpop.f32.mrb[183].mxu1  ;;  %v5673_v48 = vpop.f32.mrb[251].mxu0 }
 0x519   : > { %8699 = vtanh.f32 %v5669_v44 }
 0x51a   : > { %v5672_v49 = vadd.f32 %v5671_v46, %v4615_v45 }
 0x51b   : > { %v8696_v50 = vpop.eup %8695 }
 0x51c   : > { %8701 = vtanh.f32 %v5672_v49  ;;  %6189 = vst [vmem:[%s8984_s29 + $0x7d0] sm:$0xff] %v8696_v50  ;;  %v4619_v51 = vpop.f32.mrb[184].mxu1 }
 0x51d   : > { %v4620_v53 = vadd.f32 %v9794_v4, %v4619_v51  ;;  %v5676_v54 = vpop.f32.mrb[252].mxu0  ;;  %v4621_v55 = vpop.f32.mrb[185].mxu1 }
 0x51e   : > { %v8698_v52 = vpop.eup %8697  ;;  %v5678_v56 = vpop.f32.mrb[253].mxu0 }
 0x51f   : > { %6190 = vst [vmem:[%s8984_s29 + $0x7d8] sm:$0xff] %v8698_v52  ;;  %v4622_v57 = vpop.f32.mrb[186].mxu1  ;;  %v5677_v58 = vadd.f32 %v5676_v54, %v4620_v53  ;;  %v5679_v60 = vpop.f32.mrb[254].mxu0 }
 0x520   : > { %v4623_v15 = vadd.f32 %v9794_v4, %v4622_v57  ;;  %v4624_v61 = vpop.f32.mrb[187].mxu1  ;;  %v5681_v62 = vpop.f32.mrb[255].mxu0 }
 0x521   : > { %8703 = vtanh.f32 %v5677_v58 }
 0x522   : > { %v5680_v63 = vadd.f32 %v5679_v60, %v4623_v15 }
 0x523   : > { %v8700_v0 = vpop.eup %8699 }
 0x524   : > { %8705 = vtanh.f32 %v5680_v63  ;;  %6191 = vst [vmem:[%s8984_s29 + $0x7e0] sm:$0xff] %v8700_v0 }
 0x526   : > { %v8702_v1 = vpop.eup %8701 }
 0x527   : > { %6192 = vst [vmem:[%s8984_s29 + $0x7e8] sm:$0xff] %v8702_v1 }
 0x52b   : > { %v8704_v2 = vpop.eup %8703 }
 0x52c   : > { %6193 = vst [vmem:[%s8984_s29 + $0x7f0] sm:$0xff] %v8704_v2 }
 0x52e   : > { %v8706_v3 = vpop.eup %8705 }
 0x52f   : > { %6194 = vst [vmem:[%s8984_s29 + $0x7f8] sm:$0xff] %v8706_v3 }
 0x530 PF: > { %s13_s14 = sadd.s32 1, %s8734_s14   ;;  %s9926_s12 = smov %s8730_s13 }
 0x531   : > { %p10_p5 = scmp.ge.s32.totalorder %s13_s14, 6   ;;  %s9927_s13 = smov %s9929_s15 }
 0x533   :  { %12 = sbr.rel (!%p10_p5) target bundleno = 2 (0x2), region = 65 }

</bundles_post_ra>
